<compile_context>
chip_gen: v7x
topology: tpu7x:2x2x1
jax: 0.10.0
libtpu: 0.0.40
codegen_flags: <defaults>
</compile_context>

<pallas_src>
import functools

import jax
import jax.numpy as jnp
from jax.experimental import pallas as pl
from jax.experimental.pallas import tpu as pltpu


# ----------------------------------------------------------------------------
# Pallas kernel: one (M, N) tile of  out = act(A @ W + b)
# A: (TM, K) bf16   W: (K, TN) bf16   b: (1, TN) f32   out: (TM, TN) out_dtype
# ----------------------------------------------------------------------------
def _mm_bias_act_kernel(a_ref, w_ref, b_ref, o_ref, *, activation):
    acc = jnp.dot(a_ref[...], w_ref[...], preferred_element_type=jnp.float32)
    acc = acc + b_ref[...]                      # f32 epilogue
    if activation == "relu":
        acc = jnp.maximum(acc, 0.0)
    elif activation == "sigmoid":
        acc = jax.nn.sigmoid(acc)
    o_ref[...] = acc.astype(o_ref.dtype)


def _round_up(x, m):
    return ((x + m - 1) // m) * m


def _pick_tm(M):
    """Layer-adaptive M tile: big tiles for many-row layers, tiny for few-row ones."""
    M8 = _round_up(M, 8)
    if M8 >= 1024:
        return 512
    if M8 >= 512:
        return 256
    if M8 >= 64 and M8 % 16 == 0:
        return M8 // 2        # two M-tiles so both v7x TensorCores get work
    return M8


def _im2col(x_nhwc, kh, kw, stride, pad):
    """Extract conv patches. Feature order of a patch is (kh, kw, C) flattened."""
    x = jnp.pad(x_nhwc, ((0, 0), (pad, pad), (pad, pad), (0, 0)))
    N, H, W, C = x.shape
    Ho = (H - kh) // stride + 1
    Wo = (W - kw) // stride + 1
    cols = []
    for i in range(kh):
        for j in range(kw):
            cols.append(x[:, i:i + Ho * stride:stride, j:j + Wo * stride:stride, :])
    patches = jnp.stack(cols, axis=-2)                 # (N, Ho, Wo, kh*kw, C)
    return patches.reshape(N * Ho * Wo, kh * kw * C), (N, Ho, Wo)


def conv2d_pallas(x_nhwc, w_oihw, bias, *, stride, pad, activation,
                  out_dtype=jnp.float32):
    """Conv2d + bias + activation; matmul/bias/act fused in one Pallas kernel."""
    O, C, kh, kw = w_oihw.shape

    # im2col directly in bf16 (halves HBM traffic of the expanded patch array).
    patches, (N, Ho, Wo) = _im2col(x_nhwc.astype(jnp.bfloat16), kh, kw, stride, pad)
    K = kh * kw * C
    M = patches.shape[0]

    # weight matrix in the same (kh, kw, C) feature order as the patches
    w_mat = jnp.transpose(w_oihw, (2, 3, 1, 0)).reshape(K, O).astype(jnp.bfloat16)
    b = bias.astype(jnp.float32)

    N_pad = _round_up(O, 128)
    TM = _pick_tm(M)
    M_pad = _round_up(M, TM)
    TN = 256 if N_pad % 256 == 0 else 128

    # Only pad when actually misaligned (avoids redundant HBM copies).
    # K is left unpadded: each block spans the full K dim (48 or a 128-multiple).
    if M_pad != M:
        patches = jnp.pad(patches, ((0, M_pad - M), (0, 0)))
    if N_pad != O:
        w_mat = jnp.pad(w_mat, ((0, 0), (0, N_pad - O)))
        b = jnp.pad(b, (0, N_pad - O))
    b = b.reshape(1, N_pad)

    out = pl.pallas_call(
        functools.partial(_mm_bias_act_kernel, activation=activation),
        out_shape=jax.ShapeDtypeStruct((M_pad, N_pad), out_dtype),
        grid_spec=pltpu.PrefetchScalarGridSpec(
            num_scalar_prefetch=0,
            grid=(M_pad // TM, N_pad // TN),
            in_specs=[
                pl.BlockSpec((TM, K), lambda i, j: (i, 0)),
                pl.BlockSpec((K, TN), lambda i, j: (0, j)),
                pl.BlockSpec((1, TN), lambda i, j: (0, j)),
            ],
            out_specs=pl.BlockSpec((TM, TN), lambda i, j: (i, j)),
        ),
        # No vmem_limit override: worst-case tiles (<5 MiB double-buffered) fit the
        # default scoped VMEM on every generation, incl. v7x's 64 MiB physical VMEM.
        compiler_params=pltpu.CompilerParams(
            dimension_semantics=("parallel", "parallel"),
        ),
    )(patches, w_mat, b)

    out = out[:M, :O].reshape(N, Ho, Wo, O)
    return out


# ----------------------------------------------------------------------------
# Parameter construction (deterministic, matches PyTorch Conv2d shapes OIHW)
# ----------------------------------------------------------------------------
def init_discriminator_params(key):
    layer_defs = [
        (3, 64), (64, 128), (128, 256), (256, 512), (512, 1),
    ]
    params = {}
    for idx, (cin, cout) in enumerate(layer_defs, start=1):
        key, kw_, kb_ = jax.random.split(key, 3)
        params[f"w{idx}"] = 0.02 * jax.random.normal(
            kw_, (cout, cin, 4, 4), dtype=jnp.float32)
        params[f"b{idx}"] = 0.01 * jax.random.normal(
            kb_, (cout,), dtype=jnp.float32)
    return params


def discriminator_forward(x_nchw, params):
    # NCHW -> NHWC
    x = jnp.transpose(x_nchw, (0, 2, 3, 1))
    # Intermediate activations are stored bf16 (next layer consumes them as bf16
    # matmul operands anyway); epilogue math inside the kernel is f32.
    x = conv2d_pallas(x, params["w1"], params["b1"], stride=2, pad=1,
                      activation="relu", out_dtype=jnp.bfloat16)
    x = conv2d_pallas(x, params["w2"], params["b2"], stride=2, pad=1,
                      activation="relu", out_dtype=jnp.bfloat16)
    x = conv2d_pallas(x, params["w3"], params["b3"], stride=2, pad=1,
                      activation="relu", out_dtype=jnp.bfloat16)
    x = conv2d_pallas(x, params["w4"], params["b4"], stride=2, pad=1,
                      activation="relu", out_dtype=jnp.bfloat16)
    x = conv2d_pallas(x, params["w5"], params["b5"], stride=2, pad=0,
                      activation="sigmoid", out_dtype=jnp.float32)
    # NHWC -> NCHW (matches PyTorch output layout)
    return jnp.transpose(x, (0, 3, 1, 2))


if __name__ == "__main__":
    key = jax.random.PRNGKey(0)
    key, kx = jax.random.split(key)

    # Small batch; spatial must be 64 so conv5 (k=4, s=2, p=0) is valid.
    x = jax.random.normal(kx, (2, 3, 64, 64), dtype=jnp.float32)
    params = init_discriminator_params(key)

    fwd = jax.jit(discriminator_forward)
    out = fwd(x, params)
    out = jax.block_until_ready(out)

    assert out.shape == (2, 1, 1, 1), out.shape
    assert bool(jnp.all((out >= 0.0) & (out <= 1.0)))
    print("KERNEL_OK")
</pallas_src>

<mosaic_0001>
module attributes {stable_mosaic.version = 11 : i64} {
  func.func @_mm_bias_act_kernel(%arg0: i32, %arg1: i32, %arg2: memref<512x48xbf16, #tpu.memory_space<vmem>>, %arg3: memref<48x128xbf16, #tpu.memory_space<vmem>>, %arg4: memref<1x128xf32, #tpu.memory_space<vmem>>, %arg5: memref<512x128xbf16, #tpu.memory_space<vmem>>) attributes {dimension_semantics = [#tpu.dimension_semantics<parallel>, #tpu.dimension_semantics<parallel>], iteration_bounds = array<i64: 4, 1>, scalar_prefetch = 0 : i64, scratch_operands = 0 : i64, tpu.core_type = #tpu.core_type<tc>, window_params = [{transform_indices = @transform_0, window_bounds = array<i64: 512, 48>}, {transform_indices = @transform_1, window_bounds = array<i64: 48, 128>}, {transform_indices = @transform_2, window_bounds = array<i64: 1, 128>}, {transform_indices = @transform_3, window_bounds = array<i64: 512, 128>}]} {
    %c0 = arith.constant 0 : index
    %c0_0 = arith.constant 0 : index
    %0 = vector.load %arg2[%c0, %c0_0] : memref<512x48xbf16, #tpu.memory_space<vmem>>, vector<512x48xbf16>
    %c0_1 = arith.constant 0 : index
    %c0_2 = arith.constant 0 : index
    %1 = vector.load %arg3[%c0_1, %c0_2] : memref<48x128xbf16, #tpu.memory_space<vmem>>, vector<48x128xbf16>
    %cst = arith.constant dense<0.000000e+00> : vector<512x128xf32>
    %2 = tpu.matmul %0, %1, %cst {dimension_numbers = #tpu.dot_dimension_numbers<[1], [0], [0], [1], [0, 0, 1, 1], [], []>} : vector<512x48xbf16>, vector<48x128xbf16>, vector<512x128xf32> -> vector<512x128xf32>
    %c0_3 = arith.constant 0 : index
    %c0_4 = arith.constant 0 : index
    %3 = vector.load %arg4[%c0_3, %c0_4] : memref<1x128xf32, #tpu.memory_space<vmem>>, vector<1x128xf32>
    %4 = vector.broadcast %3 : vector<1x128xf32> to vector<512x128xf32>
    %5 = arith.addf %2, %4 : vector<512x128xf32>
    %cst_5 = arith.constant 0.000000e+00 : f32
    %6 = vector.broadcast %cst_5 : f32 to vector<512x128xf32>
    %7 = arith.maximumf %5, %6 : vector<512x128xf32>
    %8 = arith.truncf %7 : vector<512x128xf32> to vector<512x128xbf16>
    %c0_6 = arith.constant 0 : index
    %c0_7 = arith.constant 0 : index
    %9 = vector.load %arg5[%c0_6, %c0_7] : memref<512x128xbf16, #tpu.memory_space<vmem>>, vector<512x128xbf16>
    tpu.vector_store %arg5[%c0_6, %c0_7], %8 {strides = array<i32>} : memref<512x128xbf16, #tpu.memory_space<vmem>>, vector<512x128xbf16>,
    return
  }
  func.func @transform_0(%arg0: i32, %arg1: i32) -> (i32, i32) {
    %c0_i32 = arith.constant 0 : i32
    %c0_i32_0 = arith.constant 0 : i32
    return %arg0, %c0_i32 : i32, i32
  }
  func.func @transform_1(%arg0: i32, %arg1: i32) -> (i32, i32) {
    %c0_i32 = arith.constant 0 : i32
    %c0_i32_0 = arith.constant 0 : i32
    return %c0_i32, %arg1 : i32, i32
  }
  func.func @transform_2(%arg0: i32, %arg1: i32) -> (i32, i32) {
    %c0_i32 = arith.constant 0 : i32
    %c0_i32_0 = arith.constant 0 : i32
    return %c0_i32, %arg1 : i32, i32
  }
  func.func @transform_3(%arg0: i32, %arg1: i32) -> (i32, i32) {
    %c0_i32 = arith.constant 0 : i32
    return %arg0, %arg1 : i32, i32
  }
}

module attributes {stable_mosaic.version = 11 : i64} {
  func.func @_mm_bias_act_kernel(%arg0: i32, %arg1: i32, %arg2: memref<256x1024xbf16, #tpu.memory_space<vmem>>, %arg3: memref<1024x128xbf16, #tpu.memory_space<vmem>>, %arg4: memref<1x128xf32, #tpu.memory_space<vmem>>, %arg5: memref<256x128xbf16, #tpu.memory_space<vmem>>) attributes {dimension_semantics = [#tpu.dimension_semantics<parallel>, #tpu.dimension_semantics<parallel>], iteration_bounds = array<i64: 2, 1>, scalar_prefetch = 0 : i64, scratch_operands = 0 : i64, tpu.core_type = #tpu.core_type<tc>, window_params = [{transform_indices = @transform_0, window_bounds = array<i64: 256, 1024>}, {transform_indices = @transform_1, window_bounds = array<i64: 1024, 128>}, {transform_indices = @transform_2, window_bounds = array<i64: 1, 128>}, {transform_indices = @transform_3, window_bounds = array<i64: 256, 128>}]} {
    %c0 = arith.constant 0 : index
    %c0_0 = arith.constant 0 : index
    %0 = vector.load %arg2[%c0, %c0_0] : memref<256x1024xbf16, #tpu.memory_space<vmem>>, vector<256x1024xbf16>
    %c0_1 = arith.constant 0 : index
    %c0_2 = arith.constant 0 : index
    %1 = vector.load %arg3[%c0_1, %c0_2] : memref<1024x128xbf16, #tpu.memory_space<vmem>>, vector<1024x128xbf16>
    %cst = arith.constant dense<0.000000e+00> : vector<256x128xf32>
    %2 = tpu.matmul %0, %1, %cst {dimension_numbers = #tpu.dot_dimension_numbers<[1], [0], [0], [1], [0, 0, 1, 1], [], []>} : vector<256x1024xbf16>, vector<1024x128xbf16>, vector<256x128xf32> -> vector<256x128xf32>
    %c0_3 = arith.constant 0 : index
    %c0_4 = arith.constant 0 : index
    %3 = vector.load %arg4[%c0_3, %c0_4] : memref<1x128xf32, #tpu.memory_space<vmem>>, vector<1x128xf32>
    %4 = vector.broadcast %3 : vector<1x128xf32> to vector<256x128xf32>
    %5 = arith.addf %2, %4 : vector<256x128xf32>
    %cst_5 = arith.constant 0.000000e+00 : f32
    %6 = vector.broadcast %cst_5 : f32 to vector<256x128xf32>
    %7 = arith.maximumf %5, %6 : vector<256x128xf32>
    %8 = arith.truncf %7 : vector<256x128xf32> to vector<256x128xbf16>
    %c0_6 = arith.constant 0 : index
    %c0_7 = arith.constant 0 : index
    %9 = vector.load %arg5[%c0_6, %c0_7] : memref<256x128xbf16, #tpu.memory_space<vmem>>, vector<256x128xbf16>
    tpu.vector_store %arg5[%c0_6, %c0_7], %8 {strides = array<i32>} : memref<256x128xbf16, #tpu.memory_space<vmem>>, vector<256x128xbf16>,
    return
  }
  func.func @transform_0(%arg0: i32, %arg1: i32) -> (i32, i32) {
    %c0_i32 = arith.constant 0 : i32
    %c0_i32_0 = arith.constant 0 : i32
    return %arg0, %c0_i32 : i32, i32
  }
  func.func @transform_1(%arg0: i32, %arg1: i32) -> (i32, i32) {
    %c0_i32 = arith.constant 0 : i32
    %c0_i32_0 = arith.constant 0 : i32
    return %c0_i32, %arg1 : i32, i32
  }
  func.func @transform_2(%arg0: i32, %arg1: i32) -> (i32, i32) {
    %c0_i32 = arith.constant 0 : i32
    %c0_i32_0 = arith.constant 0 : i32
    return %c0_i32, %arg1 : i32, i32
  }
  func.func @transform_3(%arg0: i32, %arg1: i32) -> (i32, i32) {
    %c0_i32 = arith.constant 0 : i32
    return %arg0, %arg1 : i32, i32
  }
}

module attributes {stable_mosaic.version = 11 : i64} {
  func.func @_mm_bias_act_kernel(%arg0: i32, %arg1: i32, %arg2: memref<64x2048xbf16, #tpu.memory_space<vmem>>, %arg3: memref<2048x256xbf16, #tpu.memory_space<vmem>>, %arg4: memref<1x256xf32, #tpu.memory_space<vmem>>, %arg5: memref<64x256xbf16, #tpu.memory_space<vmem>>) attributes {dimension_semantics = [#tpu.dimension_semantics<parallel>, #tpu.dimension_semantics<parallel>], iteration_bounds = array<i64: 2, 1>, scalar_prefetch = 0 : i64, scratch_operands = 0 : i64, tpu.core_type = #tpu.core_type<tc>, window_params = [{transform_indices = @transform_0, window_bounds = array<i64: 64, 2048>}, {transform_indices = @transform_1, window_bounds = array<i64: 2048, 256>}, {transform_indices = @transform_2, window_bounds = array<i64: 1, 256>}, {transform_indices = @transform_3, window_bounds = array<i64: 64, 256>}]} {
    %c0 = arith.constant 0 : index
    %c0_0 = arith.constant 0 : index
    %0 = vector.load %arg2[%c0, %c0_0] : memref<64x2048xbf16, #tpu.memory_space<vmem>>, vector<64x2048xbf16>
    %c0_1 = arith.constant 0 : index
    %c0_2 = arith.constant 0 : index
    %1 = vector.load %arg3[%c0_1, %c0_2] : memref<2048x256xbf16, #tpu.memory_space<vmem>>, vector<2048x256xbf16>
    %cst = arith.constant dense<0.000000e+00> : vector<64x256xf32>
    %2 = tpu.matmul %0, %1, %cst {dimension_numbers = #tpu.dot_dimension_numbers<[1], [0], [0], [1], [0, 0, 1, 1], [], []>} : vector<64x2048xbf16>, vector<2048x256xbf16>, vector<64x256xf32> -> vector<64x256xf32>
    %c0_3 = arith.constant 0 : index
    %c0_4 = arith.constant 0 : index
    %3 = vector.load %arg4[%c0_3, %c0_4] : memref<1x256xf32, #tpu.memory_space<vmem>>, vector<1x256xf32>
    %4 = vector.broadcast %3 : vector<1x256xf32> to vector<64x256xf32>
    %5 = arith.addf %2, %4 : vector<64x256xf32>
    %cst_5 = arith.constant 0.000000e+00 : f32
    %6 = vector.broadcast %cst_5 : f32 to vector<64x256xf32>
    %7 = arith.maximumf %5, %6 : vector<64x256xf32>
    %8 = arith.truncf %7 : vector<64x256xf32> to vector<64x256xbf16>
    %c0_6 = arith.constant 0 : index
    %c0_7 = arith.constant 0 : index
    %9 = vector.load %arg5[%c0_6, %c0_7] : memref<64x256xbf16, #tpu.memory_space<vmem>>, vector<64x256xbf16>
    tpu.vector_store %arg5[%c0_6, %c0_7], %8 {strides = array<i32>} : memref<64x256xbf16, #tpu.memory_space<vmem>>, vector<64x256xbf16>,
    return
  }
  func.func @transform_0(%arg0: i32, %arg1: i32) -> (i32, i32) {
    %c0_i32 = arith.constant 0 : i32
    %c0_i32_0 = arith.constant 0 : i32
    return %arg0, %c0_i32 : i32, i32
  }
  func.func @transform_1(%arg0: i32, %arg1: i32) -> (i32, i32) {
    %c0_i32 = arith.constant 0 : i32
    %c0_i32_0 = arith.constant 0 : i32
    return %c0_i32, %arg1 : i32, i32
  }
  func.func @transform_2(%arg0: i32, %arg1: i32) -> (i32, i32) {
    %c0_i32 = arith.constant 0 : i32
    %c0_i32_0 = arith.constant 0 : i32
    return %c0_i32, %arg1 : i32, i32
  }
  func.func @transform_3(%arg0: i32, %arg1: i32) -> (i32, i32) {
    %c0_i32 = arith.constant 0 : i32
    return %arg0, %arg1 : i32, i32
  }
}

module attributes {stable_mosaic.version = 11 : i64} {
  func.func @_mm_bias_act_kernel(%arg0: i32, %arg1: i32, %arg2: memref<32x4096xbf16, #tpu.memory_space<vmem>>, %arg3: memref<4096x256xbf16, #tpu.memory_space<vmem>>, %arg4: memref<1x256xf32, #tpu.memory_space<vmem>>, %arg5: memref<32x256xbf16, #tpu.memory_space<vmem>>) attributes {dimension_semantics = [#tpu.dimension_semantics<parallel>, #tpu.dimension_semantics<parallel>], iteration_bounds = array<i64: 1, 2>, scalar_prefetch = 0 : i64, scratch_operands = 0 : i64, tpu.core_type = #tpu.core_type<tc>, window_params = [{transform_indices = @transform_0, window_bounds = array<i64: 32, 4096>}, {transform_indices = @transform_1, window_bounds = array<i64: 4096, 256>}, {transform_indices = @transform_2, window_bounds = array<i64: 1, 256>}, {transform_indices = @transform_3, window_bounds = array<i64: 32, 256>}]} {
    %c0 = arith.constant 0 : index
    %c0_0 = arith.constant 0 : index
    %0 = vector.load %arg2[%c0, %c0_0] : memref<32x4096xbf16, #tpu.memory_space<vmem>>, vector<32x4096xbf16>
    %c0_1 = arith.constant 0 : index
    %c0_2 = arith.constant 0 : index
    %1 = vector.load %arg3[%c0_1, %c0_2] : memref<4096x256xbf16, #tpu.memory_space<vmem>>, vector<4096x256xbf16>
    %cst = arith.constant dense<0.000000e+00> : vector<32x256xf32>
    %2 = tpu.matmul %0, %1, %cst {dimension_numbers = #tpu.dot_dimension_numbers<[1], [0], [0], [1], [0, 0, 1, 1], [], []>} : vector<32x4096xbf16>, vector<4096x256xbf16>, vector<32x256xf32> -> vector<32x256xf32>
    %c0_3 = arith.constant 0 : index
    %c0_4 = arith.constant 0 : index
    %3 = vector.load %arg4[%c0_3, %c0_4] : memref<1x256xf32, #tpu.memory_space<vmem>>, vector<1x256xf32>
    %4 = vector.broadcast %3 : vector<1x256xf32> to vector<32x256xf32>
    %5 = arith.addf %2, %4 : vector<32x256xf32>
    %cst_5 = arith.constant 0.000000e+00 : f32
    %6 = vector.broadcast %cst_5 : f32 to vector<32x256xf32>
    %7 = arith.maximumf %5, %6 : vector<32x256xf32>
    %8 = arith.truncf %7 : vector<32x256xf32> to vector<32x256xbf16>
    %c0_6 = arith.constant 0 : index
    %c0_7 = arith.constant 0 : index
    %9 = vector.load %arg5[%c0_6, %c0_7] : memref<32x256xbf16, #tpu.memory_space<vmem>>, vector<32x256xbf16>
    tpu.vector_store %arg5[%c0_6, %c0_7], %8 {strides = array<i32>} : memref<32x256xbf16, #tpu.memory_space<vmem>>, vector<32x256xbf16>,
    return
  }
  func.func @transform_0(%arg0: i32, %arg1: i32) -> (i32, i32) {
    %c0_i32 = arith.constant 0 : i32
    %c0_i32_0 = arith.constant 0 : i32
    return %arg0, %c0_i32 : i32, i32
  }
  func.func @transform_1(%arg0: i32, %arg1: i32) -> (i32, i32) {
    %c0_i32 = arith.constant 0 : i32
    %c0_i32_0 = arith.constant 0 : i32
    return %c0_i32, %arg1 : i32, i32
  }
  func.func @transform_2(%arg0: i32, %arg1: i32) -> (i32, i32) {
    %c0_i32 = arith.constant 0 : i32
    %c0_i32_0 = arith.constant 0 : i32
    return %c0_i32, %arg1 : i32, i32
  }
  func.func @transform_3(%arg0: i32, %arg1: i32) -> (i32, i32) {
    %c0_i32 = arith.constant 0 : i32
    return %arg0, %arg1 : i32, i32
  }
}

module attributes {stable_mosaic.version = 11 : i64} {
  func.func @_mm_bias_act_kernel(%arg0: i32, %arg1: i32, %arg2: memref<8x8192xbf16, #tpu.memory_space<vmem>>, %arg3: memref<8192x128xbf16, #tpu.memory_space<vmem>>, %arg4: memref<1x128xf32, #tpu.memory_space<vmem>>, %arg5: memref<8x128xf32, #tpu.memory_space<vmem>>) attributes {dimension_semantics = [#tpu.dimension_semantics<parallel>, #tpu.dimension_semantics<parallel>], iteration_bounds = array<i64: 1, 1>, scalar_prefetch = 0 : i64, scratch_operands = 0 : i64, tpu.core_type = #tpu.core_type<tc>, window_params = [{transform_indices = @transform_0, window_bounds = array<i64: 8, 8192>}, {transform_indices = @transform_1, window_bounds = array<i64: 8192, 128>}, {transform_indices = @transform_2, window_bounds = array<i64: 1, 128>}, {transform_indices = @transform_3, window_bounds = array<i64: 8, 128>}]} {
    %c0 = arith.constant 0 : index
    %c0_0 = arith.constant 0 : index
    %0 = vector.load %arg2[%c0, %c0_0] : memref<8x8192xbf16, #tpu.memory_space<vmem>>, vector<8x8192xbf16>
    %c0_1 = arith.constant 0 : index
    %c0_2 = arith.constant 0 : index
    %1 = vector.load %arg3[%c0_1, %c0_2] : memref<8192x128xbf16, #tpu.memory_space<vmem>>, vector<8192x128xbf16>
    %cst = arith.constant dense<0.000000e+00> : vector<8x128xf32>
    %2 = tpu.matmul %0, %1, %cst {dimension_numbers = #tpu.dot_dimension_numbers<[1], [0], [0], [1], [0, 0, 1, 1], [], []>} : vector<8x8192xbf16>, vector<8192x128xbf16>, vector<8x128xf32> -> vector<8x128xf32>
    %c0_3 = arith.constant 0 : index
    %c0_4 = arith.constant 0 : index
    %3 = vector.load %arg4[%c0_3, %c0_4] : memref<1x128xf32, #tpu.memory_space<vmem>>, vector<1x128xf32>
    %4 = vector.broadcast %3 : vector<1x128xf32> to vector<8x128xf32>
    %5 = arith.addf %2, %4 : vector<8x128xf32>
    %6 = arith.negf %5 : vector<8x128xf32>
    %7 = math.exp %6 : vector<8x128xf32>
    %cst_5 = arith.constant 1.000000e+00 : f32
    %8 = vector.broadcast %cst_5 : f32 to vector<8x128xf32>
    %9 = arith.addf %8, %7 : vector<8x128xf32>
    %10 = arith.divf %8, %9 : vector<8x128xf32>
    %c0_6 = arith.constant 0 : index
    %c0_7 = arith.constant 0 : index
    %11 = vector.load %arg5[%c0_6, %c0_7] : memref<8x128xf32, #tpu.memory_space<vmem>>, vector<8x128xf32>
    tpu.vector_store %arg5[%c0_6, %c0_7], %10 {strides = array<i32>} : memref<8x128xf32, #tpu.memory_space<vmem>>, vector<8x128xf32>,
    return
  }
  func.func @transform_0(%arg0: i32, %arg1: i32) -> (i32, i32) {
    %c0_i32 = arith.constant 0 : i32
    %c0_i32_0 = arith.constant 0 : i32
    return %arg0, %c0_i32 : i32, i32
  }
  func.func @transform_1(%arg0: i32, %arg1: i32) -> (i32, i32) {
    %c0_i32 = arith.constant 0 : i32
    %c0_i32_0 = arith.constant 0 : i32
    return %c0_i32, %arg1 : i32, i32
  }
  func.func @transform_2(%arg0: i32, %arg1: i32) -> (i32, i32) {
    %c0_i32 = arith.constant 0 : i32
    %c0_i32_0 = arith.constant 0 : i32
    return %c0_i32, %arg1 : i32, i32
  }
  func.func @transform_3(%arg0: i32, %arg1: i32) -> (i32, i32) {
    %c0_i32 = arith.constant 0 : i32
    return %arg0, %arg1 : i32, i32
  }
}

</mosaic_0001>

<bundles_post_ra>
// kernel: discriminator_forward.5
= control target key start
LH: loop header
LB: loop body
LE: loop exit
PB: predicated region body
PF: predicated region fallthrough
CT: control target
= control target key end

     0   :  { %s1967_s12 = smov 0   ;;  %s1969_s13 = smov 0   ;;  %s2185_s0 = inlined_call_operand.vmem [shape: bf16[2048,48], index: 0, kind: input, shape index: {}]   ;;  %s2186_s1 = inlined_call_operand.vmem [shape: bf16[48,128], index: 1, kind: input, shape index: {}]   ;;  %s2187_s2 = inlined_call_operand.vmem [shape: f32[1,128], index: 2, kind: input, shape index: {}]   ;;  %s2188_s3 = inlined_call_operand.vmem [shape: bf16[2048,128], index: 3, kind: output, shape index: {}]  }
   0x1   :  { %s1971_s14 = smov 0  }
   0x2 LB: > { %s25_s15 = sadd.s32 1, %s1941_s13  ;;  %p1359_p0 = scmp.ge.s32.totalorder %s1945_s14, 1  ;;  %s1945_s14 = sphi %s1971_s14, %s13_s14   ;;  %s1941_s13 = sphi %s1969_s13, %s2190_s13   ;;  %s1937_s12 = sphi %s1967_s12, %s2189_s12  }
   0x3   : > { %p27_p1 = scmp.ge.s32.totalorder %s25_s15, 4  ;;  %p169_p2 = scmp.lt.s32.totalorder %s1945_s14, 5 }
   0x5   : > { %s2192_s15 = smov (%p27_p1, %s25_s15), 0  ;;  %p170_p3 = pnand %p1359_p0, %p169_p2 }
   0x6   : > { %v1888_v0 = vld [vmem:[%s2186_s1] sm:$0xff] (!%p170_p3)   ;;  %s1360_s18 = sshll.u32 (!%p170_p3), %s1937_s12, 6  ;;  %v1889_v1 = vld [vmem:[%s2186_s1 + $0x8] sm:$0xff] (!%p170_p3)   ;;  %v1890_v2 = vld [vmem:[%s2186_s1 + $0x10] sm:$0xff] (!%p170_p3)   ;;  %vm481_vm0 = vcmask (!%p170_p3), 392192  }
   0x7   : > { %173 = sbr.rel (%p170_p3) target bundleno = 298 (0x12a), region = 32  ;;  %p204_p4 = scmp.lt.s32.totalorder (!%p170_p3), %s1360_s18, 255  ;;  %1788 = vmatprep.subr.bf16.mxu0 (!%p170_p3), %v1888_v0  ;;  %1858 = vmatprep.subr.bf16.mxu1 (!%p170_p3), %v1888_v0  ;;  %v2071_v35 = vld [vmem:[%s2187_s2] ss:$0 sm:$0xff] (!%p170_p3) }
   0x8   : > { %1789 = vmatpush3.bf16.msra.mxu0 (!%p170_p3), %v1888_v0  ;;  %1861 = vmatpush3.bf16.msra.mxu1 (!%p170_p3), %v1888_v0 }
   0x9   : > { %1790 = vmatprep.subr.bf16.mxu0 (!%p170_p3), %v1889_v1  ;;  %1859 = vmatprep.subr.bf16.mxu1 (!%p170_p3), %v1889_v1 }
   0xc   : > { %1791 = vmatpush3.bf16.msra.mxu0 (!%p170_p3), %v1889_v1  ;;  %1862 = vmatpush3.bf16.msra.mxu1 (!%p170_p3), %v1889_v1 }
   0xd   : > { %1792 = vmatprep.subr.bf16.mxu0 (!%p170_p3), %v1890_v2  ;;  %1860 = vmatprep.subr.bf16.mxu1 (!%p170_p3), %v1890_v2 }
   0xe   : > { %s2194_s18 = smov (!%p204_p4, %s1360_s18), 255 }
   0xf   : > { %s1361_s23 = sshll.u32 %s2194_s18, 2 }
  0x10   : > { %s2002_s26 = scalar_lea.vmem %s2185_s0, %s1361_s23  ;;  %1793 = vmatpush3.bf16.msra.mxu0 %v1890_v2  ;;  %1863 = vmatpush3.bf16.msra.mxu1 %v1890_v2  ;;  %s2086_s4 = scalar_lea.vmem %s2188_s3, %s1361_s23 }
  0x11   : > { %v1891_v3 = vld [vmem:[%s2002_s26] sm:$0xff]   ;;  %v1893_v5 = vld [vmem:[%s2002_s26 + $0x8] sm:$0xff]   ;;  %v1895_v7 = vld [vmem:[%s2002_s26 + $0x10] sm:$0xff]  }
  0x12   : > { %v1892_v4 = vld [vmem:[%s2002_s26 + $0x80] sm:$0xff]   ;;  %1794 = vmatprep.mubr.msk.bf16.mxu0 %vm481_vm0, %v1891_v3  ;;  %v1894_v6 = vld [vmem:[%s2002_s26 + $0x88] sm:$0xff]   ;;  %v1896_v8 = vld [vmem:[%s2002_s26 + $0x90] sm:$0xff]  }
  0x13   : > { %1826 = vmatprep.mubr.msk.bf16.mxu1 %vm481_vm0, %v1892_v4  ;;  %1795 = vmatmul.mubr.msk.bf16.vlgmr.msra.gmra.mrb[0].mxu0 %vm481_vm0, %v1893_v5  ;;  %v1897_v9 = vld [vmem:[%s2002_s26 + $0x18] sm:$0xff]   ;;  %v1899_v11 = vld [vmem:[%s2002_s26 + $0x20] sm:$0xff]   ;;  %v1901_v13 = vld [vmem:[%s2002_s26 + $0x28] sm:$0xff]  }
  0x14   : > { %1827 = vmatmul.mubr.msk.bf16.vlgmr.msra.gmra.mrb[0].mxu1 %vm481_vm0, %v1894_v6  ;;  %1798 = vmatprep.mubr.msk.bf16.mxu0 %vm481_vm0, %v1895_v7  ;;  %v1898_v10 = vld [vmem:[%s2002_s26 + $0x98] sm:$0xff]   ;;  %v1900_v12 = vld [vmem:[%s2002_s26 + $0xa0] sm:$0xff]   ;;  %v1902_v14 = vld [vmem:[%s2002_s26 + $0xa8] sm:$0xff]  }
  0x15   : > { %1830 = vmatprep.mubr.msk.bf16.mxu1 %vm481_vm0, %v1896_v8  ;;  %v1903_v15 = vld [vmem:[%s2002_s26 + $0x30] sm:$0xff]   ;;  %v1905_v17 = vld [vmem:[%s2002_s26 + $0x38] sm:$0xff]   ;;  %v1907_v19 = vld [vmem:[%s2002_s26 + $0x40] sm:$0xff]  }
  0x16   : > { %v1904_v16 = vld [vmem:[%s2002_s26 + $0xb0] sm:$0xff]   ;;  %v1906_v18 = vld [vmem:[%s2002_s26 + $0xb8] sm:$0xff]   ;;  %v1908_v20 = vld [vmem:[%s2002_s26 + $0xc0] sm:$0xff]  }
  0x17   : > { %v1909_v21 = vld [vmem:[%s2002_s26 + $0x48] sm:$0xff]   ;;  %v1911_v23 = vld [vmem:[%s2002_s26 + $0x50] sm:$0xff]   ;;  %v1913_v25 = vld [vmem:[%s2002_s26 + $0x58] sm:$0xff]  }
  0x18   : > { %v1910_v22 = vld [vmem:[%s2002_s26 + $0xc8] sm:$0xff]   ;;  %v1912_v24 = vld [vmem:[%s2002_s26 + $0xd0] sm:$0xff]   ;;  %v1914_v26 = vld [vmem:[%s2002_s26 + $0xd8] sm:$0xff]  }
  0x19   : > { %v1915_v27 = vld [vmem:[%s2002_s26 + $0x60] sm:$0xff]   ;;  %v1917_v29 = vld [vmem:[%s2002_s26 + $0x68] sm:$0xff]   ;;  %v1919_v31 = vld [vmem:[%s2002_s26 + $0x70] sm:$0xff]  }
  0x1a   : > { %v1916_v28 = vld [vmem:[%s2002_s26 + $0xe0] sm:$0xff]   ;;  %v1918_v30 = vld [vmem:[%s2002_s26 + $0xe8] sm:$0xff]   ;;  %v1920_v32 = vld [vmem:[%s2002_s26 + $0xf0] sm:$0xff]  }
  0x1b   : > { %1799 = vmatmul.mubr.msk.bf16.gmra.mrb[4].mxu0 %vm481_vm0, %v1897_v9  ;;  %v1921_v33 = vld [vmem:[%s2002_s26 + $0x78] sm:$0xff]  }
  0x1c   : > { %1831 = vmatmul.mubr.msk.bf16.gmra.mrb[4].mxu1 %vm481_vm0, %v1898_v10  ;;  %1802 = vmatprep.mubr.msk.bf16.mxu0 %vm481_vm0, %v1899_v11  ;;  %v1922_v34 = vld [vmem:[%s2002_s26 + $0xf8] sm:$0xff]  }
  0x1d   : > { %1834 = vmatprep.mubr.msk.bf16.mxu1 %vm481_vm0, %v1900_v12 }
  0x23   : > { %1803 = vmatmul.mubr.msk.bf16.gmra.mrb[8].mxu0 %vm481_vm0, %v1901_v13 }
  0x24   : > { %1835 = vmatmul.mubr.msk.bf16.gmra.mrb[8].mxu1 %vm481_vm0, %v1902_v14  ;;  %1806 = vmatprep.mubr.msk.bf16.mxu0 %vm481_vm0, %v1903_v15 }
  0x25   : > { %1838 = vmatprep.mubr.msk.bf16.mxu1 %vm481_vm0, %v1904_v16 }
  0x2b   : > { %1807 = vmatmul.mubr.msk.bf16.gmra.mrb[12].mxu0 %vm481_vm0, %v1905_v17 }
  0x2c   : > { %1839 = vmatmul.mubr.msk.bf16.gmra.mrb[12].mxu1 %vm481_vm0, %v1906_v18  ;;  %1810 = vmatprep.mubr.msk.bf16.mxu0 %vm481_vm0, %v1907_v19 }
  0x2d   : > { %1842 = vmatprep.mubr.msk.bf16.mxu1 %vm481_vm0, %v1908_v20 }
  0x33   : > { %1811 = vmatmul.mubr.msk.bf16.gmra.mrb[16].mxu0 %vm481_vm0, %v1909_v21 }
  0x34   : > { %1843 = vmatmul.mubr.msk.bf16.gmra.mrb[16].mxu1 %vm481_vm0, %v1910_v22  ;;  %1814 = vmatprep.mubr.msk.bf16.mxu0 %vm481_vm0, %v1911_v23 }
  0x35   : > { %1846 = vmatprep.mubr.msk.bf16.mxu1 %vm481_vm0, %v1912_v24 }
  0x3b   : > { %1815 = vmatmul.mubr.msk.bf16.gmra.mrb[20].mxu0 %vm481_vm0, %v1913_v25 }
  0x3c   : > { %1847 = vmatmul.mubr.msk.bf16.gmra.mrb[20].mxu1 %vm481_vm0, %v1914_v26  ;;  %1818 = vmatprep.mubr.msk.bf16.mxu0 %vm481_vm0, %v1915_v27 }
  0x3d   : > { %1850 = vmatprep.mubr.msk.bf16.mxu1 %vm481_vm0, %v1916_v28 }
  0x43   : > { %1819 = vmatmul.mubr.msk.bf16.gmra.mrb[24].mxu0 %vm481_vm0, %v1917_v29 }
  0x44   : > { %1851 = vmatmul.mubr.msk.bf16.gmra.mrb[24].mxu1 %vm481_vm0, %v1918_v30  ;;  %1822 = vmatprep.mubr.msk.bf16.mxu0 %vm481_vm0, %v1919_v31 }
  0x45   : > { %1854 = vmatprep.mubr.msk.bf16.mxu1 %vm481_vm0, %v1920_v32 }
  0x4b   : > { %1823 = vmatmul.mubr.msk.bf16.gmra.mrb[28].mxu0 %vm481_vm0, %v1921_v33 }
  0x4c   : > { %1855 = vmatmul.mubr.msk.bf16.gmra.mrb[28].mxu1 %vm481_vm0, %v1922_v34 }
  0xe6   : > { %v1796_v36 = vpop.f32.mrb[0].mxu0 }
  0xe7   : > { %v1828_v37 = vpop.f32.mrb[0].mxu1  ;;  %v621_v38 = vadd.f32 %v1796_v36, %v2071_v35  ;;  %v612_v40 = vpop.f32.mrb[1].mxu0 }
  0xe8   : > { %v749_v39 = vadd.f32 %v1828_v37, %v2071_v35  ;;  %v740_v41 = vpop.f32.mrb[1].mxu1  ;;  %v613_v42 = vadd.f32 %v2071_v35, %v612_v40  ;;  %v1797_v44 = vpop.f32.mrb[2].mxu0 }
  0xe9   : > { %v741_v43 = vadd.f32 %v2071_v35, %v740_v41  ;;  %v1829_v45 = vpop.f32.mrb[2].mxu1  ;;  %v624_v46 = vadd.f32 %v1797_v44, %v2071_v35  ;;  %v615_v48 = vpop.f32.mrb[3].mxu0  ;;  %v869_v52 = vmax.f32 %v621_v38, 0.0 }
  0xea   : > { %v752_v47 = vadd.f32 %v1829_v45, %v2071_v35  ;;  %v743_v49 = vpop.f32.mrb[3].mxu1  ;;  %v616_v50 = vadd.f32 %v2071_v35, %v615_v48  ;;  %v901_v53 = vmax.f32 %v749_v39, 0.0  ;;  %v867_v56 = vmax.f32 %v613_v42, 0.0 }
  0xeb   : > { %v744_v51 = vadd.f32 %v2071_v35, %v743_v49  ;;  %v870_v54 = vmax.f32 %v624_v46, 0.0  ;;  %v899_v57 = vmax.f32 %v741_v43, 0.0 }
  0xec   : > { %v902_v55 = vmax.f32 %v752_v47, 0.0  ;;  %v868_v58 = vmax.f32 %v616_v50, 0.0 }
  0xed   : > { %v900_v59 = vmax.f32 %v744_v51, 0.0  ;;  %v1570_v60 = vpack.c.bf16 %v870_v54, %v869_v52 }
  0xee   : > { %v1650_v61 = vpack.c.bf16 %v902_v55, %v901_v53  ;;  %v1565_v62 = vpack.c.bf16 %v868_v58, %v867_v56  ;;  %v1800_v0 = vpop.f32.mrb[4].mxu0 }
  0xef   : > { %v1645_v63 = vpack.c.bf16 %v900_v59, %v899_v57  ;;  %v1832_v1 = vpop.f32.mrb[4].mxu1  ;;  %1722 = vst [vmem:[%s2086_s4 + $0x8] sm:$0xff] %v1570_v60   ;;  %v637_v2 = vadd.f32 %v1800_v0, %v2071_v35  ;;  %v628_v4 = vpop.f32.mrb[5].mxu0 }
  0xf0   : > { %1738 = vst [vmem:[%s2086_s4 + $0x88] sm:$0xff] %v1650_v61   ;;  %v765_v3 = vadd.f32 %v1832_v1, %v2071_v35  ;;  %v756_v5 = vpop.f32.mrb[5].mxu1  ;;  %1566 = vst [vmem:[%s2086_s4] sm:$0xff] %v1565_v62   ;;  %v629_v6 = vadd.f32 %v2071_v35, %v628_v4  ;;  %v1801_v8 = vpop.f32.mrb[6].mxu0 }
  0xf1   : > { %1737 = vst [vmem:[%s2086_s4 + $0x80] sm:$0xff] %v1645_v63   ;;  %v757_v7 = vadd.f32 %v2071_v35, %v756_v5  ;;  %v1833_v9 = vpop.f32.mrb[6].mxu1  ;;  %v640_v10 = vadd.f32 %v1801_v8, %v2071_v35  ;;  %v631_v12 = vpop.f32.mrb[7].mxu0  ;;  %v873_v16 = vmax.f32 %v637_v2, 0.0 }
  0xf2   : > { %v768_v11 = vadd.f32 %v1833_v9, %v2071_v35  ;;  %v759_v13 = vpop.f32.mrb[7].mxu1  ;;  %v632_v14 = vadd.f32 %v2071_v35, %v631_v12  ;;  %v905_v17 = vmax.f32 %v765_v3, 0.0  ;;  %v871_v20 = vmax.f32 %v629_v6, 0.0 }
  0xf3   : > { %v760_v15 = vadd.f32 %v2071_v35, %v759_v13  ;;  %v874_v18 = vmax.f32 %v640_v10, 0.0  ;;  %v903_v21 = vmax.f32 %v757_v7, 0.0 }
  0xf4   : > { %v906_v19 = vmax.f32 %v768_v11, 0.0  ;;  %v872_v22 = vmax.f32 %v632_v14, 0.0 }
  0xf5   : > { %v904_v23 = vmax.f32 %v760_v15, 0.0  ;;  %v1580_v24 = vpack.c.bf16 %v874_v18, %v873_v16 }
  0xf6   : > { %v1660_v25 = vpack.c.bf16 %v906_v19, %v905_v17  ;;  %v1575_v26 = vpack.c.bf16 %v872_v22, %v871_v20  ;;  %v1804_v28 = vpop.f32.mrb[8].mxu0 }
  0xf7   : > { %v1655_v27 = vpack.c.bf16 %v904_v23, %v903_v21  ;;  %v1836_v29 = vpop.f32.mrb[8].mxu1  ;;  %1724 = vst [vmem:[%s2086_s4 + $0x18] sm:$0xff] %v1580_v24   ;;  %v653_v30 = vadd.f32 %v1804_v28, %v2071_v35  ;;  %v644_v32 = vpop.f32.mrb[9].mxu0 }
  0xf8   : > { %1740 = vst [vmem:[%s2086_s4 + $0x98] sm:$0xff] %v1660_v25   ;;  %v781_v31 = vadd.f32 %v1836_v29, %v2071_v35  ;;  %v772_v33 = vpop.f32.mrb[9].mxu1  ;;  %1723 = vst [vmem:[%s2086_s4 + $0x10] sm:$0xff] %v1575_v26   ;;  %v645_v34 = vadd.f32 %v2071_v35, %v644_v32  ;;  %v1805_v37 = vpop.f32.mrb[10].mxu0 }
  0xf9   : > { %1739 = vst [vmem:[%s2086_s4 + $0x90] sm:$0xff] %v1655_v27   ;;  %v773_v36 = vadd.f32 %v2071_v35, %v772_v33  ;;  %v1837_v38 = vpop.f32.mrb[10].mxu1  ;;  %v656_v39 = vadd.f32 %v1805_v37, %v2071_v35  ;;  %v647_v41 = vpop.f32.mrb[11].mxu0  ;;  %v877_v45 = vmax.f32 %v653_v30, 0.0 }
  0xfa   : > { %v784_v40 = vadd.f32 %v1837_v38, %v2071_v35  ;;  %v775_v42 = vpop.f32.mrb[11].mxu1  ;;  %v648_v43 = vadd.f32 %v2071_v35, %v647_v41  ;;  %v909_v46 = vmax.f32 %v781_v31, 0.0  ;;  %v875_v49 = vmax.f32 %v645_v34, 0.0 }
  0xfb   : > { %v776_v44 = vadd.f32 %v2071_v35, %v775_v42  ;;  %v878_v47 = vmax.f32 %v656_v39, 0.0  ;;  %v907_v50 = vmax.f32 %v773_v36, 0.0 }
  0xfc   : > { %v910_v48 = vmax.f32 %v784_v40, 0.0  ;;  %v876_v51 = vmax.f32 %v648_v43, 0.0 }
  0xfd   : > { %v908_v52 = vmax.f32 %v776_v44, 0.0  ;;  %v1590_v53 = vpack.c.bf16 %v878_v47, %v877_v45 }
  0xfe   : > { %v1670_v54 = vpack.c.bf16 %v910_v48, %v909_v46  ;;  %v1585_v55 = vpack.c.bf16 %v876_v51, %v875_v49  ;;  %v1808_v57 = vpop.f32.mrb[12].mxu0 }
  0xff   : > { %v1665_v56 = vpack.c.bf16 %v908_v52, %v907_v50  ;;  %v1840_v58 = vpop.f32.mrb[12].mxu1  ;;  %1726 = vst [vmem:[%s2086_s4 + $0x28] sm:$0xff] %v1590_v53   ;;  %v669_v59 = vadd.f32 %v1808_v57, %v2071_v35  ;;  %v660_v61 = vpop.f32.mrb[13].mxu0 }
 0x100   : > { %1742 = vst [vmem:[%s2086_s4 + $0xa8] sm:$0xff] %v1670_v54   ;;  %v797_v60 = vadd.f32 %v1840_v58, %v2071_v35  ;;  %v788_v62 = vpop.f32.mrb[13].mxu1  ;;  %1725 = vst [vmem:[%s2086_s4 + $0x20] sm:$0xff] %v1585_v55   ;;  %v661_v63 = vadd.f32 %v2071_v35, %v660_v61  ;;  %v1809_v1 = vpop.f32.mrb[14].mxu0 }
 0x101   : > { %1741 = vst [vmem:[%s2086_s4 + $0xa0] sm:$0xff] %v1665_v56   ;;  %v789_v0 = vadd.f32 %v2071_v35, %v788_v62  ;;  %v1841_v2 = vpop.f32.mrb[14].mxu1  ;;  %v672_v3 = vadd.f32 %v1809_v1, %v2071_v35  ;;  %v663_v5 = vpop.f32.mrb[15].mxu0  ;;  %v881_v9 = vmax.f32 %v669_v59, 0.0 }
 0x102   : > { %v800_v4 = vadd.f32 %v1841_v2, %v2071_v35  ;;  %v791_v6 = vpop.f32.mrb[15].mxu1  ;;  %v664_v7 = vadd.f32 %v2071_v35, %v663_v5  ;;  %v913_v10 = vmax.f32 %v797_v60, 0.0  ;;  %v879_v13 = vmax.f32 %v661_v63, 0.0 }
 0x103   : > { %v792_v8 = vadd.f32 %v2071_v35, %v791_v6  ;;  %v882_v11 = vmax.f32 %v672_v3, 0.0  ;;  %v911_v14 = vmax.f32 %v789_v0, 0.0 }
 0x104   : > { %v914_v12 = vmax.f32 %v800_v4, 0.0  ;;  %v880_v15 = vmax.f32 %v664_v7, 0.0 }
 0x105   : > { %v912_v16 = vmax.f32 %v792_v8, 0.0  ;;  %v1600_v17 = vpack.c.bf16 %v882_v11, %v881_v9 }
 0x106   : > { %v1680_v18 = vpack.c.bf16 %v914_v12, %v913_v10  ;;  %v1595_v19 = vpack.c.bf16 %v880_v15, %v879_v13  ;;  %v1812_v21 = vpop.f32.mrb[16].mxu0 }
 0x107   : > { %v1675_v20 = vpack.c.bf16 %v912_v16, %v911_v14  ;;  %v1844_v22 = vpop.f32.mrb[16].mxu1  ;;  %1728 = vst [vmem:[%s2086_s4 + $0x38] sm:$0xff] %v1600_v17   ;;  %v685_v23 = vadd.f32 %v1812_v21, %v2071_v35  ;;  %v676_v25 = vpop.f32.mrb[17].mxu0 }
 0x108   : > { %1744 = vst [vmem:[%s2086_s4 + $0xb8] sm:$0xff] %v1680_v18   ;;  %v813_v24 = vadd.f32 %v1844_v22, %v2071_v35  ;;  %v804_v26 = vpop.f32.mrb[17].mxu1  ;;  %1727 = vst [vmem:[%s2086_s4 + $0x30] sm:$0xff] %v1595_v19   ;;  %v677_v27 = vadd.f32 %v2071_v35, %v676_v25  ;;  %v1813_v29 = vpop.f32.mrb[18].mxu0 }
 0x109   : > { %1743 = vst [vmem:[%s2086_s4 + $0xb0] sm:$0xff] %v1675_v20   ;;  %v805_v28 = vadd.f32 %v2071_v35, %v804_v26  ;;  %v1845_v30 = vpop.f32.mrb[18].mxu1  ;;  %v688_v31 = vadd.f32 %v1813_v29, %v2071_v35  ;;  %v679_v33 = vpop.f32.mrb[19].mxu0  ;;  %v885_v38 = vmax.f32 %v685_v23, 0.0 }
 0x10a   : > { %v816_v32 = vadd.f32 %v1845_v30, %v2071_v35  ;;  %v807_v34 = vpop.f32.mrb[19].mxu1  ;;  %v680_v36 = vadd.f32 %v2071_v35, %v679_v33  ;;  %v917_v39 = vmax.f32 %v813_v24, 0.0  ;;  %v883_v42 = vmax.f32 %v677_v27, 0.0 }
 0x10b   : > { %v808_v37 = vadd.f32 %v2071_v35, %v807_v34  ;;  %v886_v40 = vmax.f32 %v688_v31, 0.0  ;;  %v915_v43 = vmax.f32 %v805_v28, 0.0 }
 0x10c   : > { %v918_v41 = vmax.f32 %v816_v32, 0.0  ;;  %v884_v44 = vmax.f32 %v680_v36, 0.0 }
 0x10d   : > { %v916_v45 = vmax.f32 %v808_v37, 0.0  ;;  %v1610_v46 = vpack.c.bf16 %v886_v40, %v885_v38 }
 0x10e   : > { %v1690_v47 = vpack.c.bf16 %v918_v41, %v917_v39  ;;  %v1605_v48 = vpack.c.bf16 %v884_v44, %v883_v42  ;;  %v1816_v50 = vpop.f32.mrb[20].mxu0 }
 0x10f   : > { %v1685_v49 = vpack.c.bf16 %v916_v45, %v915_v43  ;;  %v1848_v51 = vpop.f32.mrb[20].mxu1  ;;  %1730 = vst [vmem:[%s2086_s4 + $0x48] sm:$0xff] %v1610_v46   ;;  %v701_v52 = vadd.f32 %v1816_v50, %v2071_v35  ;;  %v692_v54 = vpop.f32.mrb[21].mxu0 }
 0x110   : > { %1746 = vst [vmem:[%s2086_s4 + $0xc8] sm:$0xff] %v1690_v47   ;;  %v829_v53 = vadd.f32 %v1848_v51, %v2071_v35  ;;  %v820_v55 = vpop.f32.mrb[21].mxu1  ;;  %1729 = vst [vmem:[%s2086_s4 + $0x40] sm:$0xff] %v1605_v48   ;;  %v693_v56 = vadd.f32 %v2071_v35, %v692_v54  ;;  %v1817_v58 = vpop.f32.mrb[22].mxu0 }
 0x111   : > { %1745 = vst [vmem:[%s2086_s4 + $0xc0] sm:$0xff] %v1685_v49   ;;  %v821_v57 = vadd.f32 %v2071_v35, %v820_v55  ;;  %v1849_v59 = vpop.f32.mrb[22].mxu1  ;;  %v704_v60 = vadd.f32 %v1817_v58, %v2071_v35  ;;  %v695_v62 = vpop.f32.mrb[23].mxu0  ;;  %v889_v2 = vmax.f32 %v701_v52, 0.0 }
 0x112   : > { %v832_v61 = vadd.f32 %v1849_v59, %v2071_v35  ;;  %v823_v63 = vpop.f32.mrb[23].mxu1  ;;  %v696_v0 = vadd.f32 %v2071_v35, %v695_v62  ;;  %v921_v3 = vmax.f32 %v829_v53, 0.0  ;;  %v887_v6 = vmax.f32 %v693_v56, 0.0 }
 0x113   : > { %v824_v1 = vadd.f32 %v2071_v35, %v823_v63  ;;  %v890_v4 = vmax.f32 %v704_v60, 0.0  ;;  %v919_v7 = vmax.f32 %v821_v57, 0.0 }
 0x114   : > { %v922_v5 = vmax.f32 %v832_v61, 0.0  ;;  %v888_v8 = vmax.f32 %v696_v0, 0.0 }
 0x115   : > { %v920_v9 = vmax.f32 %v824_v1, 0.0  ;;  %v1620_v10 = vpack.c.bf16 %v890_v4, %v889_v2 }
 0x116   : > { %v1700_v11 = vpack.c.bf16 %v922_v5, %v921_v3  ;;  %v1615_v12 = vpack.c.bf16 %v888_v8, %v887_v6  ;;  %v1820_v14 = vpop.f32.mrb[24].mxu0 }
 0x117   : > { %v1695_v13 = vpack.c.bf16 %v920_v9, %v919_v7  ;;  %v1852_v15 = vpop.f32.mrb[24].mxu1  ;;  %1732 = vst [vmem:[%s2086_s4 + $0x58] sm:$0xff] %v1620_v10   ;;  %v717_v16 = vadd.f32 %v1820_v14, %v2071_v35  ;;  %v708_v18 = vpop.f32.mrb[25].mxu0 }
 0x118   : > { %1748 = vst [vmem:[%s2086_s4 + $0xd8] sm:$0xff] %v1700_v11   ;;  %v845_v17 = vadd.f32 %v1852_v15, %v2071_v35  ;;  %v836_v19 = vpop.f32.mrb[25].mxu1  ;;  %1731 = vst [vmem:[%s2086_s4 + $0x50] sm:$0xff] %v1615_v12   ;;  %v709_v20 = vadd.f32 %v2071_v35, %v708_v18  ;;  %v1821_v22 = vpop.f32.mrb[26].mxu0 }
 0x119   : > { %1747 = vst [vmem:[%s2086_s4 + $0xd0] sm:$0xff] %v1695_v13   ;;  %v837_v21 = vadd.f32 %v2071_v35, %v836_v19  ;;  %v1853_v23 = vpop.f32.mrb[26].mxu1  ;;  %v720_v24 = vadd.f32 %v1821_v22, %v2071_v35  ;;  %v711_v26 = vpop.f32.mrb[27].mxu0  ;;  %v893_v30 = vmax.f32 %v717_v16, 0.0 }
 0x11a   : > { %v848_v25 = vadd.f32 %v1853_v23, %v2071_v35  ;;  %v839_v27 = vpop.f32.mrb[27].mxu1  ;;  %v712_v28 = vadd.f32 %v2071_v35, %v711_v26  ;;  %v925_v31 = vmax.f32 %v845_v17, 0.0  ;;  %v891_v34 = vmax.f32 %v709_v20, 0.0 }
 0x11b   : > { %v840_v29 = vadd.f32 %v2071_v35, %v839_v27  ;;  %v894_v32 = vmax.f32 %v720_v24, 0.0  ;;  %v923_v36 = vmax.f32 %v837_v21, 0.0 }
 0x11c   : > { %v926_v33 = vmax.f32 %v848_v25, 0.0  ;;  %v892_v37 = vmax.f32 %v712_v28, 0.0 }
 0x11d   : > { %v924_v38 = vmax.f32 %v840_v29, 0.0  ;;  %v1630_v39 = vpack.c.bf16 %v894_v32, %v893_v30 }
 0x11e   : > { %v1710_v40 = vpack.c.bf16 %v926_v33, %v925_v31  ;;  %v1625_v41 = vpack.c.bf16 %v892_v37, %v891_v34  ;;  %v1824_v43 = vpop.f32.mrb[28].mxu0 }
 0x11f   : > { %v1705_v42 = vpack.c.bf16 %v924_v38, %v923_v36  ;;  %v1856_v44 = vpop.f32.mrb[28].mxu1  ;;  %1734 = vst [vmem:[%s2086_s4 + $0x68] sm:$0xff] %v1630_v39   ;;  %v733_v45 = vadd.f32 %v1824_v43, %v2071_v35  ;;  %v724_v47 = vpop.f32.mrb[29].mxu0 }
 0x120   : > { %1750 = vst [vmem:[%s2086_s4 + $0xe8] sm:$0xff] %v1710_v40   ;;  %v861_v46 = vadd.f32 %v1856_v44, %v2071_v35  ;;  %v852_v48 = vpop.f32.mrb[29].mxu1  ;;  %1733 = vst [vmem:[%s2086_s4 + $0x60] sm:$0xff] %v1625_v41   ;;  %v725_v49 = vadd.f32 %v2071_v35, %v724_v47  ;;  %v1825_v51 = vpop.f32.mrb[30].mxu0 }
 0x121   : > { %1749 = vst [vmem:[%s2086_s4 + $0xe0] sm:$0xff] %v1705_v42   ;;  %v853_v50 = vadd.f32 %v2071_v35, %v852_v48  ;;  %v1857_v52 = vpop.f32.mrb[30].mxu1  ;;  %v736_v53 = vadd.f32 %v1825_v51, %v2071_v35  ;;  %v727_v55 = vpop.f32.mrb[31].mxu0  ;;  %v897_v59 = vmax.f32 %v733_v45, 0.0 }
 0x122   : > { %v864_v54 = vadd.f32 %v1857_v52, %v2071_v35  ;;  %v855_v56 = vpop.f32.mrb[31].mxu1  ;;  %v728_v57 = vadd.f32 %v2071_v35, %v727_v55  ;;  %v929_v60 = vmax.f32 %v861_v46, 0.0  ;;  %v895_v63 = vmax.f32 %v725_v49, 0.0 }
 0x123   : > { %v856_v58 = vadd.f32 %v2071_v35, %v855_v56  ;;  %v898_v61 = vmax.f32 %v736_v53, 0.0  ;;  %v927_v0 = vmax.f32 %v853_v50, 0.0 }
 0x124   : > { %v930_v62 = vmax.f32 %v864_v54, 0.0  ;;  %v896_v1 = vmax.f32 %v728_v57, 0.0 }
 0x125   : > { %v928_v2 = vmax.f32 %v856_v58, 0.0  ;;  %v1640_v3 = vpack.c.bf16 %v898_v61, %v897_v59 }
 0x126   : > { %v1720_v4 = vpack.c.bf16 %v930_v62, %v929_v60  ;;  %v1635_v5 = vpack.c.bf16 %v896_v1, %v895_v63 }
 0x127   : > { %v1715_v6 = vpack.c.bf16 %v928_v2, %v927_v0  ;;  %1736 = vst [vmem:[%s2086_s4 + $0x78] sm:$0xff] %v1640_v3  }
 0x128   : > { %1752 = vst [vmem:[%s2086_s4 + $0xf8] sm:$0xff] %v1720_v4   ;;  %1735 = vst [vmem:[%s2086_s4 + $0x70] sm:$0xff] %v1635_v5  }
 0x129   : > { %1751 = vst [vmem:[%s2086_s4 + $0xf0] sm:$0xff] %v1715_v6  }
 0x12a PF: > { %s13_s14 = sadd.s32 1, %s1945_s14   ;;  %s2189_s12 = smov %s1941_s13 }
 0x12b   : > { %p10_p5 = scmp.ge.s32.totalorder %s13_s14, 6   ;;  %s2190_s13 = smov %s2192_s15 }
 0x12d   :  { %12 = sbr.rel (!%p10_p5) target bundleno = 2 (0x2), region = 68 }

// kernel: discriminator_forward.6
= control target key start
LH: loop header
LB: loop body
LE: loop exit
PB: predicated region body
PF: predicated region fallthrough
CT: control target
= control target key end

     0   :  { %s3401_s12 = smov 0   ;;  %s3403_s13 = smov 0   ;;  %s3914_s0 = inlined_call_operand.vmem [shape: bf16[512,1024], index: 0, kind: input, shape index: {}]   ;;  %s3915_s1 = inlined_call_operand.vmem [shape: bf16[1024,128], index: 1, kind: input, shape index: {}]   ;;  %s3916_s2 = inlined_call_operand.vmem [shape: f32[1,128], index: 2, kind: input, shape index: {}]   ;;  %s3917_s3 = inlined_call_operand.vmem [shape: bf16[512,128], index: 3, kind: output, shape index: {}]  }
   0x1   :  { %s3405_s14 = smov 0  }
   0x2 LB: > { %s25_s15 = sadd.s32 1, %s3375_s13  ;;  %p2460_p0 = scmp.ge.s32.totalorder %s3379_s14, 1  ;;  %s3379_s14 = sphi %s3405_s14, %s13_s14   ;;  %s3375_s13 = sphi %s3403_s13, %s3919_s13   ;;  %s3371_s12 = sphi %s3401_s12, %s3918_s12  }
   0x3   : > { %p27_p1 = scmp.ge.s32.totalorder %s25_s15, 2  ;;  %p170_p2 = scmp.lt.s32.totalorder %s3379_s14, 3 }
   0x5   : > { %s3921_s15 = smov (%p27_p1, %s25_s15), 0  ;;  %p171_p3 = pnand %p2460_p0, %p170_p2 }
   0x6   : > { %v3293_v0 = vld [vmem:[%s3915_s1 + $0x40] sm:$0xff] (!%p171_p3)   ;;  %v3297_v4 = vld [vmem:[%s3915_s1 + $0x48] sm:$0xff] (!%p171_p3)   ;;  %v3301_v8 = vld [vmem:[%s3915_s1 + $0x50] sm:$0xff] (!%p171_p3)   ;;  %s2461_s25 = sshll.u32 (!%p171_p3), %s3371_s12, 5 }
   0x7   : > { %174 = sbr.rel (%p171_p3) target bundleno = 514 (0x202), region = 32  ;;  %v3294_v1 = vld [vmem:[%s3915_s1 + $0xc0] sm:$0xff] (!%p171_p3)   ;;  %2821 = vmatprep.subr.bf16.mxu0 (!%p171_p3), %v3293_v0  ;;  %v3298_v5 = vld [vmem:[%s3915_s1 + $0xc8] sm:$0xff] (!%p171_p3)   ;;  %v3302_v9 = vld [vmem:[%s3915_s1 + $0xd0] sm:$0xff] (!%p171_p3)   ;;  %p206_p4 = scmp.lt.s32.totalorder (!%p171_p3), %s2461_s25, 63 }
   0x8   : > { %v3295_v2 = vld [vmem:[%s3915_s1] sm:$0xff] (!%p171_p3)   ;;  %2933 = vmatprep.subr.bf16.mxu1 (!%p171_p3), %v3294_v1  ;;  %v3299_v6 = vld [vmem:[%s3915_s1 + $0x8] sm:$0xff] (!%p171_p3)   ;;  %v3303_v10 = vld [vmem:[%s3915_s1 + $0x10] sm:$0xff] (!%p171_p3)  }
   0x9   : > { %v3296_v3 = vld [vmem:[%s3915_s1 + $0x80] sm:$0xff] (!%p171_p3)   ;;  %2822 = vmatpush3.bf16.msra.mxu0 (!%p171_p3), %v3295_v2  ;;  %v3300_v7 = vld [vmem:[%s3915_s1 + $0x88] sm:$0xff] (!%p171_p3)   ;;  %v3304_v11 = vld [vmem:[%s3915_s1 + $0x90] sm:$0xff] (!%p171_p3)  }
   0xa   : > { %2934 = vmatpush3.bf16.msra.mxu1 (!%p171_p3), %v3296_v3  ;;  %2823 = vmatprep.subr.bf16.mxu0 (!%p171_p3), %v3297_v4  ;;  %v3305_v12 = vld [vmem:[%s3915_s1 + $0x58] sm:$0xff] (!%p171_p3)   ;;  %v3309_v16 = vld [vmem:[%s3915_s1 + $0x60] sm:$0xff] (!%p171_p3)   ;;  %v3313_v20 = vld [vmem:[%s3915_s1 + $0x68] sm:$0xff] (!%p171_p3)  }
   0xb   : > { %2935 = vmatprep.subr.bf16.mxu1 (!%p171_p3), %v3298_v5  ;;  %v3306_v13 = vld [vmem:[%s3915_s1 + $0xd8] sm:$0xff] (!%p171_p3)   ;;  %v3310_v17 = vld [vmem:[%s3915_s1 + $0xe0] sm:$0xff] (!%p171_p3)   ;;  %v3314_v21 = vld [vmem:[%s3915_s1 + $0xe8] sm:$0xff] (!%p171_p3)  }
   0xc   : > { %v3307_v14 = vld [vmem:[%s3915_s1 + $0x18] sm:$0xff] (!%p171_p3)   ;;  %v3311_v18 = vld [vmem:[%s3915_s1 + $0x20] sm:$0xff] (!%p171_p3)   ;;  %v3315_v22 = vld [vmem:[%s3915_s1 + $0x28] sm:$0xff] (!%p171_p3)  }
   0xd   : > { %2824 = vmatpush3.bf16.msra.mxu0 (!%p171_p3), %v3299_v6  ;;  %v3308_v15 = vld [vmem:[%s3915_s1 + $0x98] sm:$0xff] (!%p171_p3)   ;;  %v3312_v19 = vld [vmem:[%s3915_s1 + $0xa0] sm:$0xff] (!%p171_p3)   ;;  %v3316_v23 = vld [vmem:[%s3915_s1 + $0xa8] sm:$0xff] (!%p171_p3)  }
   0xe   : > { %2936 = vmatpush3.bf16.msra.mxu1 %v3300_v7  ;;  %2825 = vmatprep.subr.bf16.mxu0 %v3301_v8  ;;  %s3923_s25 = smov (!%p206_p4, %s2461_s25), 63  ;;  %v3317_v24 = vld [vmem:[%s3915_s1 + $0x70] sm:$0xff]   ;;  %v3321_v28 = vld [vmem:[%s3915_s1 + $0x78] sm:$0xff]   ;;  %v3325_v40 = vld [vmem:[%s3915_s1 + $0x140] sm:$0xff]  }
   0xf   : > { %2937 = vmatprep.subr.bf16.mxu1 %v3302_v9  ;;  %v3318_v25 = vld [vmem:[%s3915_s1 + $0xf0] sm:$0xff]   ;;  %s2693_s24 = sshll.u32 %s3923_s25, 5  ;;  %v3322_v29 = vld [vmem:[%s3915_s1 + $0xf8] sm:$0xff]   ;;  %v3326_v41 = vld [vmem:[%s3915_s1 + $0x100] sm:$0xff]  }
  0x10   : > { %v3319_v26 = vld [vmem:[%s3915_s1 + $0x30] sm:$0xff]   ;;  %s3518_s12 = scalar_lea.vmem %s3914_s0, %s2693_s24  ;;  %v3323_v30 = vld [vmem:[%s3915_s1 + $0x38] sm:$0xff]   ;;  %v3327_v42 = vld [vmem:[%s3915_s1 + $0x1c0] sm:$0xff]  }
  0x11   : > { %2826 = vmatpush3.bf16.msra.mxu0 %v3303_v10  ;;  %v3320_v27 = vld [vmem:[%s3915_s1 + $0xb0] sm:$0xff]   ;;  %v3324_v31 = vld [vmem:[%s3915_s1 + $0xb8] sm:$0xff]   ;;  %v229_v32 = vld [vmem:[%s3518_s12] sm:$0xff] }
  0x12   : > { %2938 = vmatpush3.bf16.msra.mxu1 %v3304_v11  ;;  %2827 = vmatprep.subr.bf16.mxu0 %v3305_v12  ;;  %v233_v33 = vld [vmem:[%s3518_s12 + $0x20] sm:$0xff]  ;;  %v230_v34 = vld [vmem:[%s3518_s12 + $0x8] sm:$0xff]  ;;  %v3333_v2 = vld [vmem:[%s3915_s1 + $0x150] sm:$0xff]  }
  0x13   : > { %2939 = vmatprep.subr.bf16.mxu1 %v3306_v13  ;;  %v2467_v35 = vcombine.low %v229_v32, %v233_v33  ;;  %v2468_v36 = vcombine.high %v229_v32, %v233_v33  ;;  %v234_v37 = vld [vmem:[%s3518_s12 + $0x28] sm:$0xff]  ;;  %v3328_v43 = vld [vmem:[%s3915_s1 + $0x180] sm:$0xff]   ;;  %v3334_v4 = vld [vmem:[%s3915_s1 + $0x110] sm:$0xff]  }
  0x14   : > { %v2469_v38 = vcombine.low %v230_v34, %v234_v37  ;;  %v2470_v39 = vcombine.high %v230_v34, %v234_v37  ;;  %v237_v44 = vld [vmem:[%s3518_s12 + $0x40] sm:$0xff]  ;;  %v238_v47 = vld [vmem:[%s3518_s12 + $0x48] sm:$0xff]  ;;  %v3335_v7 = vld [vmem:[%s3915_s1 + $0x1d0] sm:$0xff]  }
  0x15   : > { %2828 = vmatpush3.bf16.msra.mxu0 %v3307_v14  ;;  %1548 = vmatprep.mubr.bf16.mxu0 %v2468_v36  ;;  %v241_v45 = vld [vmem:[%s3518_s12 + $0x60] sm:$0xff]  ;;  %v242_v48 = vld [vmem:[%s3518_s12 + $0x68] sm:$0xff]  ;;  %v3336_v9 = vld [vmem:[%s3915_s1 + $0x190] sm:$0xff]  }
  0x16   : > { %2940 = vmatpush3.bf16.msra.mxu1 %v3308_v15  ;;  %2829 = vmatprep.subr.bf16.mxu0 %v3309_v16  ;;  %v2476_v46 = vcombine.high %v237_v44, %v241_v45  ;;  %v245_v49 = vld [vmem:[%s3518_s12 + $0x80] sm:$0xff]  ;;  %v2478_v50 = vcombine.high %v238_v47, %v242_v48  ;;  %v246_v52 = vld [vmem:[%s3518_s12 + $0x88] sm:$0xff]  ;;  %v2475_v54 = vcombine.low %v237_v44, %v241_v45  ;;  %v3337_v14 = vld [vmem:[%s3915_s1 + $0x158] sm:$0xff]  }
  0x17   : > { %2941 = vmatprep.subr.bf16.mxu1 %v3310_v17  ;;  %1709 = vmatprep.mubr.bf16.mxu1 %v2470_v39  ;;  %v249_v51 = vld [vmem:[%s3518_s12 + $0xa0] sm:$0xff]  ;;  %v250_v53 = vld [vmem:[%s3518_s12 + $0xa8] sm:$0xff]  ;;  %v2477_v56 = vcombine.low %v238_v47, %v242_v48  ;;  %v3338_v15 = vld [vmem:[%s3915_s1 + $0x118] sm:$0xff]  }
  0x18   : > { %v3329_v55 = vld [vmem:[%s3915_s1 + $0x148] sm:$0xff]   ;;  %v2484_v57 = vcombine.high %v245_v49, %v249_v51  ;;  %v2486_v59 = vcombine.high %v246_v52, %v250_v53  ;;  %v253_v62 = vld [vmem:[%s3518_s12 + $0xc0] sm:$0xff]  ;;  %v2483_v3 = vcombine.low %v245_v49, %v249_v51  ;;  %v2485_v5 = vcombine.low %v246_v52, %v250_v53  ;;  %v3339_v17 = vld [vmem:[%s3915_s1 + $0x1d8] sm:$0xff]  }
  0x19   : > { %2830 = vmatpush3.bf16.msra.mxu0 %v3311_v18  ;;  %v3330_v58 = vld [vmem:[%s3915_s1 + $0x108] sm:$0xff]   ;;  %v257_v63 = vld [vmem:[%s3518_s12 + $0xe0] sm:$0xff]  ;;  %v3350_v47 = vld [vmem:[%s3915_s1 + $0x130] sm:$0xff]  }
  0x1a   : > { %2942 = vmatpush3.bf16.msra.mxu1 %v3312_v19  ;;  %2831 = vmatprep.subr.bf16.mxu0 %v3313_v20  ;;  %v3331_v60 = vld [vmem:[%s3915_s1 + $0x1c8] sm:$0xff]   ;;  %v2492_v6 = vcombine.high %v253_v62, %v257_v63  ;;  %v261_v10 = vld [vmem:[%s3518_s12 + $0x100] sm:$0xff]  ;;  %v2491_v16 = vcombine.low %v253_v62, %v257_v63  ;;  %v3340_v20 = vld [vmem:[%s3915_s1 + $0x198] sm:$0xff]  }
  0x1b   : > { %2943 = vmatprep.subr.bf16.mxu1 %v3314_v21  ;;  %v3332_v61 = vld [vmem:[%s3915_s1 + $0x188] sm:$0xff]   ;;  %v265_v11 = vld [vmem:[%s3518_s12 + $0x120] sm:$0xff]  ;;  %v3351_v48 = vld [vmem:[%s3915_s1 + $0x1f0] sm:$0xff]  }
  0x1c   : > { %v254_v0 = vld [vmem:[%s3518_s12 + $0xc8] sm:$0xff]  ;;  %v2500_v19 = vcombine.high %v261_v10, %v265_v11  ;;  %v3352_v49 = vld [vmem:[%s3915_s1 + $0x1b0] sm:$0xff]   ;;  %v289_v51 = vld [vmem:[%s3518_s12 + $0x1e0] sm:$0xff] }
  0x1d   : > { %2832 = vmatpush3.bf16.msra.mxu0 %v3315_v22  ;;  %v258_v1 = vld [vmem:[%s3518_s12 + $0xe8] sm:$0xff]  ;;  %v269_v22 = vld [vmem:[%s3518_s12 + $0x140] sm:$0xff] }
  0x1e   : > { %2944 = vmatpush3.bf16.msra.mxu1 %v3316_v23  ;;  %2833 = vmatprep.subr.bf16.mxu0 %v3317_v24  ;;  %v2494_v8 = vcombine.high %v254_v0, %v258_v1  ;;  %v262_v12 = vld [vmem:[%s3518_s12 + $0x108] sm:$0xff]  ;;  %v2493_v18 = vcombine.low %v254_v0, %v258_v1  ;;  %v273_v23 = vld [vmem:[%s3518_s12 + $0x160] sm:$0xff] }
  0x1f   : > { %2945 = vmatprep.subr.bf16.mxu1 %v3318_v25  ;;  %v266_v13 = vld [vmem:[%s3518_s12 + $0x128] sm:$0xff]  ;;  %v3341_v24 = vld [vmem:[%s3915_s1 + $0x160] sm:$0xff]   ;;  %v2508_v32 = vcombine.high %v269_v22, %v273_v23 }
  0x20   : > { %v2502_v21 = vcombine.high %v262_v12, %v266_v13  ;;  %v270_v25 = vld [vmem:[%s3518_s12 + $0x148] sm:$0xff]  ;;  %v293_v62 = vld [vmem:[%s3518_s12 + $0x200] sm:$0xff] }
  0x21   : > { %2834 = vmatpush3.bf16.msra.mxu0 %v3319_v26  ;;  %v274_v26 = vld [vmem:[%s3518_s12 + $0x168] sm:$0xff]  ;;  %v297_v63 = vld [vmem:[%s3518_s12 + $0x220] sm:$0xff] }
  0x22   : > { %2946 = vmatpush3.bf16.msra.mxu1 %v3320_v27  ;;  %2835 = vmatprep.subr.bf16.mxu0 %v3321_v28  ;;  %v3342_v27 = vld [vmem:[%s3915_s1 + $0x120] sm:$0xff]   ;;  %v2510_v33 = vcombine.high %v270_v25, %v274_v26  ;;  %v3345_v34 = vld [vmem:[%s3915_s1 + $0x168] sm:$0xff]  }
  0x23   : > { %2947 = vmatprep.subr.bf16.mxu1 %v3322_v29  ;;  %v3343_v28 = vld [vmem:[%s3915_s1 + $0x1e0] sm:$0xff]   ;;  %v3346_v36 = vld [vmem:[%s3915_s1 + $0x128] sm:$0xff]  }
  0x24   : > { %v3344_v29 = vld [vmem:[%s3915_s1 + $0x1a0] sm:$0xff]   ;;  %v3347_v37 = vld [vmem:[%s3915_s1 + $0x1e8] sm:$0xff]  }
  0x25   : > { %2836 = vmatpush3.bf16.msra.mxu0 %v3323_v30  ;;  %v2499_v30 = vcombine.low %v261_v10, %v265_v11  ;;  %v3348_v39 = vld [vmem:[%s3915_s1 + $0x1a8] sm:$0xff]   ;;  %v2531_v10 = vcombine.low %v293_v62, %v297_v63 }
  0x26   : > { %2948 = vmatpush3.bf16.msra.mxu1 %v3324_v31  ;;  %3045 = vmatprep.subr.bf16.mxu0 %v3325_v40  ;;  %v2501_v31 = vcombine.low %v262_v12, %v266_v13  ;;  %v278_v40 = vld [vmem:[%s3518_s12 + $0x188] sm:$0xff] }
  0x27   : > { %3157 = vmatprep.subr.bf16.mxu1 %v3327_v42  ;;  %v2507_v42 = vcombine.low %v269_v22, %v273_v23  ;;  %v286_v52 = vld [vmem:[%s3518_s12 + $0x1c8] sm:$0xff]  ;;  %v317_v22 = vld [vmem:[%s3518_s12 + $0x2c0] sm:$0xff] }
  0x28   : > { %1549 = vmatmul.mubr.bf16.vlgmr.msra.gmra.mrb[0].mxu0 %v2467_v35  ;;  %v277_v35 = vld [vmem:[%s3518_s12 + $0x180] sm:$0xff]  ;;  %v290_v53 = vld [vmem:[%s3518_s12 + $0x1e8] sm:$0xff] }
  0x29   : > { %1710 = vmatmul.mubr.bf16.vlgmr.msra.gmra.mrb[0].mxu1 %v2469_v38  ;;  %3046 = vmatpush3.bf16.msra.mxu0 %v3326_v41  ;;  %v281_v38 = vld [vmem:[%s3518_s12 + $0x1a0] sm:$0xff]  ;;  %v282_v41 = vld [vmem:[%s3518_s12 + $0x1a8] sm:$0xff] }
  0x2a   : > { %3158 = vmatpush3.bf16.msra.mxu1 %v3328_v43  ;;  %1556 = vmatprep.mubr.bf16.mxu0 %v2476_v46  ;;  %v2509_v43 = vcombine.low %v270_v25, %v274_v26  ;;  %v2516_v44 = vcombine.high %v277_v35, %v281_v38  ;;  %v2518_v45 = vcombine.high %v278_v40, %v282_v41  ;;  %v3349_v46 = vld [vmem:[%s3915_s1 + $0x170] sm:$0xff]   ;;  %v294_v0 = vld [vmem:[%s3518_s12 + $0x208] sm:$0xff]  ;;  %v321_v23 = vld [vmem:[%s3518_s12 + $0x2e0] sm:$0xff] }
  0x2b   : > { %1717 = vmatprep.mubr.bf16.mxu1 %v2478_v50  ;;  %3047 = vmatprep.subr.bf16.mxu0 %v3329_v55  ;;  %v285_v50 = vld [vmem:[%s3518_s12 + $0x1c0] sm:$0xff]  ;;  %v3353_v55 = vld [vmem:[%s3915_s1 + $0x178] sm:$0xff]   ;;  %v298_v1 = vld [vmem:[%s3518_s12 + $0x228] sm:$0xff] }
  0x2c   : > { %3159 = vmatprep.subr.bf16.mxu1 %v3331_v60  ;;  %v3355_v60 = vld [vmem:[%s3915_s1 + $0x1f8] sm:$0xff]   ;;  %v2533_v11 = vcombine.low %v294_v0, %v298_v1  ;;  %v322_v25 = vld [vmem:[%s3518_s12 + $0x2e8] sm:$0xff] }
  0x2d   : > { %3048 = vmatpush3.bf16.msra.mxu0 %v3330_v58  ;;  %v3354_v58 = vld [vmem:[%s3915_s1 + $0x138] sm:$0xff]  }
  0x2e   : > { %3160 = vmatpush3.bf16.msra.mxu1 %v3332_v61  ;;  %3049 = vmatprep.subr.bf16.mxu0 %v3333_v2  ;;  %v3356_v61 = vld [vmem:[%s3915_s1 + $0x1b8] sm:$0xff]   ;;  %v2523_v2 = vcombine.low %v285_v50, %v289_v51 }
  0x2f   : > { %3161 = vmatprep.subr.bf16.mxu1 %v3335_v7  ;;  %v305_v7 = vld [vmem:[%s3518_s12 + $0x260] sm:$0xff] }
  0x30   : > { %1557 = vmatmul.mubr.bf16.gmra.mrb[4].mxu0 %v2475_v54  ;;  %v2515_v54 = vcombine.low %v277_v35, %v281_v38  ;;  %v333_v38 = vld [vmem:[%s3518_s12 + $0x340] sm:$0xff] }
  0x31   : > { %1718 = vmatmul.mubr.bf16.gmra.mrb[4].mxu1 %v2477_v56  ;;  %1564 = vmatprep.mubr.bf16.mxu0 %v2484_v57  ;;  %v2517_v56 = vcombine.low %v278_v40, %v282_v41  ;;  %v2524_v57 = vcombine.high %v285_v50, %v289_v51  ;;  %v334_v40 = vld [vmem:[%s3518_s12 + $0x348] sm:$0xff] }
  0x32   : > { %1725 = vmatprep.mubr.bf16.mxu1 %v2486_v59  ;;  %3050 = vmatpush3.bf16.msra.mxu0 %v3334_v4  ;;  %v2526_v59 = vcombine.high %v286_v52, %v290_v53  ;;  %v2532_v4 = vcombine.high %v293_v62, %v297_v63  ;;  %v338_v41 = vld [vmem:[%s3518_s12 + $0x368] sm:$0xff]  ;;  %v231_v62 = vld [vmem:[%s3518_s12 + $0x10] sm:$0xff] }
  0x33   : > { %3162 = vmatpush3.bf16.msra.mxu1 %v3336_v9  ;;  %3051 = vmatprep.subr.bf16.mxu0 %v3337_v14  ;;  %v306_v9 = vld [vmem:[%s3518_s12 + $0x268] sm:$0xff]  ;;  %v309_v14 = vld [vmem:[%s3518_s12 + $0x280] sm:$0xff]  ;;  %v2573_v51 = vcombine.low %v334_v40, %v338_v41  ;;  %v235_v63 = vld [vmem:[%s3518_s12 + $0x30] sm:$0xff] }
  0x34   : > { %3163 = vmatprep.subr.bf16.mxu1 %v3339_v17  ;;  %v314_v17 = vld [vmem:[%s3518_s12 + $0x2a8] sm:$0xff] }
  0x36   : > { %3052 = vmatpush3.bf16.msra.mxu0 %v3338_v15  ;;  %v313_v15 = vld [vmem:[%s3518_s12 + $0x2a0] sm:$0xff] }
  0x37   : > { %3164 = vmatpush3.bf16.msra.mxu1 %v3340_v20  ;;  %3053 = vmatprep.subr.bf16.mxu0 %v3341_v24  ;;  %v2548_v20 = vcombine.high %v309_v14, %v313_v15  ;;  %v318_v24 = vld [vmem:[%s3518_s12 + $0x2c8] sm:$0xff]  ;;  %v2547_v26 = vcombine.low %v309_v14, %v313_v15  ;;  %v247_v14 = vld [vmem:[%s3518_s12 + $0x90] sm:$0xff] }
  0x38   : > { %1565 = vmatmul.mubr.bf16.gmra.mrb[8].mxu0 %v2483_v3  ;;  %3165 = vmatprep.subr.bf16.mxu1 %v3343_v28  ;;  %v2525_v3 = vcombine.low %v286_v52, %v290_v53  ;;  %v2556_v28 = vcombine.high %v317_v22, %v321_v23  ;;  %v2557_v35 = vcombine.low %v318_v24, %v322_v25  ;;  %v251_v15 = vld [vmem:[%s3518_s12 + $0xb0] sm:$0xff] }
  0x39   : > { %1726 = vmatmul.mubr.bf16.gmra.mrb[8].mxu1 %v2485_v5  ;;  %1572 = vmatprep.mubr.bf16.mxu0 %v2492_v6  ;;  %v2534_v5 = vcombine.high %v294_v0, %v298_v1  ;;  %v301_v6 = vld [vmem:[%s3518_s12 + $0x240] sm:$0xff]  ;;  %v232_v0 = vld [vmem:[%s3518_s12 + $0x18] sm:$0xff] }
  0x3a   : > { %1733 = vmatprep.mubr.bf16.mxu1 %v2494_v8  ;;  %3054 = vmatpush3.bf16.msra.mxu0 %v3342_v27  ;;  %v302_v8 = vld [vmem:[%s3518_s12 + $0x248] sm:$0xff]  ;;  %v2540_v12 = vcombine.high %v301_v6, %v305_v7  ;;  %v236_v1 = vld [vmem:[%s3518_s12 + $0x38] sm:$0xff] }
  0x3b   : > { %3166 = vmatpush3.bf16.msra.mxu1 %v3344_v29  ;;  %3055 = vmatprep.subr.bf16.mxu0 %v3345_v34  ;;  %v2542_v13 = vcombine.high %v302_v8, %v306_v9  ;;  %v2558_v29 = vcombine.high %v318_v24, %v322_v25  ;;  %v2555_v34 = vcombine.low %v317_v22, %v321_v23  ;;  %v255_v22 = vld [vmem:[%s3518_s12 + $0xd0] sm:$0xff]  ;;  %v256_v24 = vld [vmem:[%s3518_s12 + $0xd8] sm:$0xff] }
  0x3c   : > { %3167 = vmatprep.subr.bf16.mxu1 %v3347_v37  ;;  %v259_v23 = vld [vmem:[%s3518_s12 + $0xf0] sm:$0xff]  ;;  %v260_v25 = vld [vmem:[%s3518_s12 + $0xf8] sm:$0xff] }
  0x3e   : > { %3056 = vmatpush3.bf16.msra.mxu0 %v3346_v36 }
  0x3f   : > { %3168 = vmatpush3.bf16.msra.mxu1 %v3348_v39  ;;  %3057 = vmatprep.subr.bf16.mxu0 %v3349_v46  ;;  %v337_v39 = vld [vmem:[%s3518_s12 + $0x360] sm:$0xff] }
  0x40   : > { %1573 = vmatmul.mubr.bf16.gmra.mrb[12].mxu0 %v2491_v16  ;;  %3169 = vmatprep.subr.bf16.mxu1 %v3351_v48  ;;  %v310_v16 = vld [vmem:[%s3518_s12 + $0x288] sm:$0xff]  ;;  %v341_v46 = vld [vmem:[%s3518_s12 + $0x380] sm:$0xff]  ;;  %v2571_v50 = vcombine.low %v333_v38, %v337_v39 }
  0x41   : > { %1734 = vmatmul.mubr.bf16.gmra.mrb[12].mxu1 %v2493_v18  ;;  %1580 = vmatprep.mubr.bf16.mxu0 %v2500_v19  ;;  %v2539_v18 = vcombine.low %v301_v6, %v305_v7  ;;  %v2541_v19 = vcombine.low %v302_v8, %v306_v9  ;;  %v2549_v27 = vcombine.low %v310_v16, %v314_v17  ;;  %v342_v48 = vld [vmem:[%s3518_s12 + $0x388] sm:$0xff]  ;;  %v239_v6 = vld [vmem:[%s3518_s12 + $0x50] sm:$0xff]  ;;  %v240_v8 = vld [vmem:[%s3518_s12 + $0x58] sm:$0xff] }
  0x42   : > { %1741 = vmatprep.mubr.bf16.mxu1 %v2502_v21  ;;  %3058 = vmatpush3.bf16.msra.mxu0 %v3350_v47  ;;  %v2550_v21 = vcombine.high %v310_v16, %v314_v17  ;;  %v345_v47 = vld [vmem:[%s3518_s12 + $0x3a0] sm:$0xff]  ;;  %v243_v7 = vld [vmem:[%s3518_s12 + $0x70] sm:$0xff]  ;;  %v244_v9 = vld [vmem:[%s3518_s12 + $0x78] sm:$0xff] }
  0x43   : > { %3170 = vmatpush3.bf16.msra.mxu1 %v3352_v49  ;;  %3059 = vmatprep.subr.bf16.mxu0 %v3353_v55  ;;  %v346_v49 = vld [vmem:[%s3518_s12 + $0x3a8] sm:$0xff]  ;;  %v2580_v52 = vcombine.high %v341_v46, %v345_v47  ;;  %v353_v55 = vld [vmem:[%s3518_s12 + $0x3e0] sm:$0xff]  ;;  %v248_v16 = vld [vmem:[%s3518_s12 + $0x98] sm:$0xff] }
  0x44   : > { %3171 = vmatprep.subr.bf16.mxu1 %v3355_v60  ;;  %v2582_v53 = vcombine.high %v342_v48, %v346_v49  ;;  %v252_v17 = vld [vmem:[%s3518_s12 + $0xb8] sm:$0xff] }
  0x46   : > { %3060 = vmatpush3.bf16.msra.mxu0 %v3354_v58  ;;  %v2579_v58 = vcombine.low %v341_v46, %v345_v47  ;;  %v279_v46 = vld [vmem:[%s3518_s12 + $0x190] sm:$0xff] }
  0x47   : > { %3172 = vmatpush3.bf16.msra.mxu1 %v3356_v61  ;;  %v283_v47 = vld [vmem:[%s3518_s12 + $0x1b0] sm:$0xff] }
  0x48   : > { %1581 = vmatmul.mubr.bf16.gmra.mrb[16].mxu0 %v2499_v30  ;;  %v325_v30 = vld [vmem:[%s3518_s12 + $0x300] sm:$0xff] }
  0x49   : > { %1742 = vmatmul.mubr.bf16.gmra.mrb[16].mxu1 %v2501_v31  ;;  %1588 = vmatprep.mubr.bf16.mxu0 %v2508_v32  ;;  %v329_v31 = vld [vmem:[%s3518_s12 + $0x320] sm:$0xff]  ;;  %v326_v32 = vld [vmem:[%s3518_s12 + $0x308] sm:$0xff] }
  0x4a   : > { %1749 = vmatprep.mubr.bf16.mxu1 %v2510_v33  ;;  %v330_v33 = vld [vmem:[%s3518_s12 + $0x328] sm:$0xff]  ;;  %v2564_v36 = vcombine.high %v325_v30, %v329_v31 }
  0x4b   : > { %v2566_v37 = vcombine.high %v326_v32, %v330_v33 }
  0x50   : > { %1589 = vmatmul.mubr.bf16.gmra.mrb[20].mxu0 %v2507_v42  ;;  %v2563_v42 = vcombine.low %v325_v30, %v329_v31  ;;  %v263_v30 = vld [vmem:[%s3518_s12 + $0x110] sm:$0xff] }
  0x51   : > { %1750 = vmatmul.mubr.bf16.gmra.mrb[20].mxu1 %v2509_v43  ;;  %1596 = vmatprep.mubr.bf16.mxu0 %v2516_v44  ;;  %v2565_v43 = vcombine.low %v326_v32, %v330_v33  ;;  %v2572_v44 = vcombine.high %v333_v38, %v337_v39  ;;  %v267_v31 = vld [vmem:[%s3518_s12 + $0x130] sm:$0xff]  ;;  %v264_v32 = vld [vmem:[%s3518_s12 + $0x118] sm:$0xff] }
  0x52   : > { %1757 = vmatprep.mubr.bf16.mxu1 %v2518_v45  ;;  %v2574_v45 = vcombine.high %v334_v40, %v338_v41  ;;  %v268_v33 = vld [vmem:[%s3518_s12 + $0x138] sm:$0xff]  ;;  %v271_v38 = vld [vmem:[%s3518_s12 + $0x150] sm:$0xff] }
  0x53   : > { %v275_v39 = vld [vmem:[%s3518_s12 + $0x170] sm:$0xff]  ;;  %v272_v40 = vld [vmem:[%s3518_s12 + $0x158] sm:$0xff] }
  0x54   : > { %v276_v41 = vld [vmem:[%s3518_s12 + $0x178] sm:$0xff] }
  0x58   : > { %1597 = vmatmul.mubr.bf16.gmra.mrb[24].mxu0 %v2515_v54  ;;  %v349_v54 = vld [vmem:[%s3518_s12 + $0x3c0] sm:$0xff] }
  0x59   : > { %1758 = vmatmul.mubr.bf16.gmra.mrb[24].mxu1 %v2517_v56  ;;  %1604 = vmatprep.mubr.bf16.mxu0 %v2524_v57  ;;  %v350_v56 = vld [vmem:[%s3518_s12 + $0x3c8] sm:$0xff]  ;;  %v2588_v60 = vcombine.high %v349_v54, %v353_v55 }
  0x5a   : > { %1765 = vmatprep.mubr.bf16.mxu1 %v2526_v59  ;;  %v354_v57 = vld [vmem:[%s3518_s12 + $0x3e8] sm:$0xff]  ;;  %v2581_v59 = vcombine.low %v342_v48, %v346_v49  ;;  %v280_v48 = vld [vmem:[%s3518_s12 + $0x198] sm:$0xff] }
  0x5b   : > { %v2590_v61 = vcombine.high %v350_v56, %v354_v57  ;;  %v284_v49 = vld [vmem:[%s3518_s12 + $0x1b8] sm:$0xff] }
  0x60   : > { %1605 = vmatmul.mubr.bf16.gmra.mrb[28].mxu0 %v2523_v2  ;;  %v2587_v2 = vcombine.low %v349_v54, %v353_v55  ;;  %v287_v54 = vld [vmem:[%s3518_s12 + $0x1d0] sm:$0xff] }
  0x61   : > { %1766 = vmatmul.mubr.bf16.gmra.mrb[28].mxu1 %v2525_v3  ;;  %1612 = vmatprep.mubr.bf16.mxu0 %v2532_v4  ;;  %v2589_v3 = vcombine.low %v350_v56, %v354_v57  ;;  %v2472_v4 = vcombine.high %v231_v62, %v235_v63  ;;  %v291_v55 = vld [vmem:[%s3518_s12 + $0x1f0] sm:$0xff]  ;;  %v288_v56 = vld [vmem:[%s3518_s12 + $0x1d8] sm:$0xff] }
  0x62   : > { %1773 = vmatprep.mubr.bf16.mxu1 %v2534_v5  ;;  %v2474_v5 = vcombine.high %v232_v0, %v236_v1  ;;  %v292_v57 = vld [vmem:[%s3518_s12 + $0x1f8] sm:$0xff] }
  0x68   : > { %1613 = vmatmul.mubr.bf16.gmra.mrb[32].mxu0 %v2531_v10  ;;  %v2471_v10 = vcombine.low %v231_v62, %v235_v63  ;;  %v295_v62 = vld [vmem:[%s3518_s12 + $0x210] sm:$0xff] }
  0x69   : > { %1774 = vmatmul.mubr.bf16.gmra.mrb[32].mxu1 %v2533_v11  ;;  %1620 = vmatprep.mubr.bf16.mxu0 %v2540_v12  ;;  %v2473_v11 = vcombine.low %v232_v0, %v236_v1  ;;  %v2480_v12 = vcombine.high %v239_v6, %v243_v7  ;;  %v299_v63 = vld [vmem:[%s3518_s12 + $0x230] sm:$0xff]  ;;  %v296_v0 = vld [vmem:[%s3518_s12 + $0x218] sm:$0xff] }
  0x6a   : > { %1781 = vmatprep.mubr.bf16.mxu1 %v2542_v13  ;;  %v2482_v13 = vcombine.high %v240_v8, %v244_v9  ;;  %v300_v1 = vld [vmem:[%s3518_s12 + $0x238] sm:$0xff] }
  0x70   : > { %1621 = vmatmul.mubr.bf16.gmra.mrb[36].mxu0 %v2539_v18  ;;  %v2479_v18 = vcombine.low %v239_v6, %v243_v7  ;;  %v303_v6 = vld [vmem:[%s3518_s12 + $0x250] sm:$0xff] }
  0x71   : > { %1782 = vmatmul.mubr.bf16.gmra.mrb[36].mxu1 %v2541_v19  ;;  %1628 = vmatprep.mubr.bf16.mxu0 %v2548_v20  ;;  %v2481_v19 = vcombine.low %v240_v8, %v244_v9  ;;  %v2488_v20 = vcombine.high %v247_v14, %v251_v15  ;;  %v307_v7 = vld [vmem:[%s3518_s12 + $0x270] sm:$0xff]  ;;  %v304_v8 = vld [vmem:[%s3518_s12 + $0x258] sm:$0xff] }
  0x72   : > { %1789 = vmatprep.mubr.bf16.mxu1 %v2550_v21  ;;  %v2490_v21 = vcombine.high %v248_v16, %v252_v17  ;;  %v308_v9 = vld [vmem:[%s3518_s12 + $0x278] sm:$0xff] }
  0x78   : > { %1629 = vmatmul.mubr.bf16.gmra.mrb[40].mxu0 %v2547_v26  ;;  %v2487_v26 = vcombine.low %v247_v14, %v251_v15  ;;  %v311_v14 = vld [vmem:[%s3518_s12 + $0x290] sm:$0xff] }
  0x79   : > { %1790 = vmatmul.mubr.bf16.gmra.mrb[40].mxu1 %v2549_v27  ;;  %1636 = vmatprep.mubr.bf16.mxu0 %v2556_v28  ;;  %v2489_v27 = vcombine.low %v248_v16, %v252_v17  ;;  %v2496_v28 = vcombine.high %v255_v22, %v259_v23  ;;  %v315_v15 = vld [vmem:[%s3518_s12 + $0x2b0] sm:$0xff]  ;;  %v312_v16 = vld [vmem:[%s3518_s12 + $0x298] sm:$0xff] }
  0x7a   : > { %1797 = vmatprep.mubr.bf16.mxu1 %v2558_v29  ;;  %v2498_v29 = vcombine.high %v256_v24, %v260_v25  ;;  %v316_v17 = vld [vmem:[%s3518_s12 + $0x2b8] sm:$0xff] }
  0x80   : > { %1637 = vmatmul.mubr.bf16.gmra.mrb[44].mxu0 %v2555_v34  ;;  %v2495_v34 = vcombine.low %v255_v22, %v259_v23  ;;  %v319_v22 = vld [vmem:[%s3518_s12 + $0x2d0] sm:$0xff] }
  0x81   : > { %1798 = vmatmul.mubr.bf16.gmra.mrb[44].mxu1 %v2557_v35  ;;  %1644 = vmatprep.mubr.bf16.mxu0 %v2564_v36  ;;  %v2497_v35 = vcombine.low %v256_v24, %v260_v25  ;;  %v2504_v36 = vcombine.high %v263_v30, %v267_v31  ;;  %v323_v23 = vld [vmem:[%s3518_s12 + $0x2f0] sm:$0xff]  ;;  %v320_v24 = vld [vmem:[%s3518_s12 + $0x2d8] sm:$0xff] }
  0x82   : > { %1805 = vmatprep.mubr.bf16.mxu1 %v2566_v37  ;;  %v2506_v37 = vcombine.high %v264_v32, %v268_v33  ;;  %v324_v25 = vld [vmem:[%s3518_s12 + $0x2f8] sm:$0xff] }
  0x88   : > { %1645 = vmatmul.mubr.bf16.gmra.mrb[48].mxu0 %v2563_v42  ;;  %v2503_v42 = vcombine.low %v263_v30, %v267_v31  ;;  %v327_v30 = vld [vmem:[%s3518_s12 + $0x310] sm:$0xff] }
  0x89   : > { %1806 = vmatmul.mubr.bf16.gmra.mrb[48].mxu1 %v2565_v43  ;;  %1652 = vmatprep.mubr.bf16.mxu0 %v2572_v44  ;;  %v2505_v43 = vcombine.low %v264_v32, %v268_v33  ;;  %v2512_v44 = vcombine.high %v271_v38, %v275_v39  ;;  %v331_v31 = vld [vmem:[%s3518_s12 + $0x330] sm:$0xff]  ;;  %v328_v33 = vld [vmem:[%s3518_s12 + $0x318] sm:$0xff] }
  0x8a   : > { %1813 = vmatprep.mubr.bf16.mxu1 %v2574_v45  ;;  %v2514_v45 = vcombine.high %v272_v40, %v276_v41 }
  0x90   : > { %1653 = vmatmul.mubr.bf16.gmra.mrb[52].mxu0 %v2571_v50  ;;  %v2511_v50 = vcombine.low %v271_v38, %v275_v39  ;;  %v2559_v38 = vcombine.low %v319_v22, %v323_v23 }
  0x91   : > { %1814 = vmatmul.mubr.bf16.gmra.mrb[52].mxu1 %v2573_v51  ;;  %1660 = vmatprep.mubr.bf16.mxu0 %v2580_v52  ;;  %v2513_v51 = vcombine.low %v272_v40, %v276_v41  ;;  %v2520_v52 = vcombine.high %v279_v46, %v283_v47 }
  0x92   : > { %1821 = vmatprep.mubr.bf16.mxu1 %v2582_v53  ;;  %v2522_v53 = vcombine.high %v280_v48, %v284_v49 }
  0x98   : > { %1661 = vmatmul.mubr.bf16.gmra.mrb[56].mxu0 %v2579_v58  ;;  %v2519_v58 = vcombine.low %v279_v46, %v283_v47 }
  0x99   : > { %1822 = vmatmul.mubr.bf16.gmra.mrb[56].mxu1 %v2581_v59  ;;  %1668 = vmatprep.mubr.bf16.mxu0 %v2588_v60  ;;  %v2521_v59 = vcombine.low %v280_v48, %v284_v49  ;;  %v2528_v60 = vcombine.high %v287_v54, %v291_v55 }
  0x9a   : > { %1829 = vmatprep.mubr.bf16.mxu1 %v2590_v61  ;;  %v2530_v61 = vcombine.high %v288_v56, %v292_v57 }
  0xa0   : > { %1669 = vmatmul.mubr.bf16.gmra.mrb[60].mxu0 %v2587_v2  ;;  %v2527_v2 = vcombine.low %v287_v54, %v291_v55  ;;  %v335_v54 = vld [vmem:[%s3518_s12 + $0x350] sm:$0xff] }
  0xa1   : > { %1830 = vmatmul.mubr.bf16.gmra.mrb[60].mxu1 %v2589_v3  ;;  %1870 = vmatprep.mubr.bf16.mxu0 %v2472_v4  ;;  %v2529_v3 = vcombine.low %v288_v56, %v292_v57  ;;  %v2536_v4 = vcombine.high %v295_v62, %v299_v63  ;;  %v339_v55 = vld [vmem:[%s3518_s12 + $0x370] sm:$0xff] }
  0xa2   : > { %2031 = vmatprep.mubr.bf16.mxu1 %v2474_v5  ;;  %v2538_v5 = vcombine.high %v296_v0, %v300_v1 }
  0xa8   : > { %1871 = vmatmul.mubr.bf16.vlgmr.msra.gmra.mrb[64].mxu0 %v2471_v10  ;;  %v2535_v10 = vcombine.low %v295_v62, %v299_v63  ;;  %v2567_v62 = vcombine.low %v327_v30, %v331_v31 }
  0xa9   : > { %2032 = vmatmul.mubr.bf16.vlgmr.msra.gmra.mrb[64].mxu1 %v2473_v11  ;;  %1878 = vmatprep.mubr.bf16.mxu0 %v2480_v12  ;;  %v2537_v11 = vcombine.low %v296_v0, %v300_v1  ;;  %v2544_v12 = vcombine.high %v303_v6, %v307_v7 }
  0xaa   : > { %2039 = vmatprep.mubr.bf16.mxu1 %v2482_v13  ;;  %v2546_v13 = vcombine.high %v304_v8, %v308_v9 }
  0xb0   : > { %1879 = vmatmul.mubr.bf16.gmra.mrb[68].mxu0 %v2479_v18  ;;  %v2543_v18 = vcombine.low %v303_v6, %v307_v7 }
  0xb1   : > { %2040 = vmatmul.mubr.bf16.gmra.mrb[68].mxu1 %v2481_v19  ;;  %1886 = vmatprep.mubr.bf16.mxu0 %v2488_v20  ;;  %v2545_v19 = vcombine.low %v304_v8, %v308_v9  ;;  %v2552_v20 = vcombine.high %v311_v14, %v315_v15 }
  0xb2   : > { %2047 = vmatprep.mubr.bf16.mxu1 %v2490_v21  ;;  %v2554_v21 = vcombine.high %v312_v16, %v316_v17 }
  0xb8   : > { %1887 = vmatmul.mubr.bf16.gmra.mrb[72].mxu0 %v2487_v26  ;;  %v2551_v26 = vcombine.low %v311_v14, %v315_v15  ;;  %v343_v14 = vld [vmem:[%s3518_s12 + $0x390] sm:$0xff] }
  0xb9   : > { %2048 = vmatmul.mubr.bf16.gmra.mrb[72].mxu1 %v2489_v27  ;;  %1894 = vmatprep.mubr.bf16.mxu0 %v2496_v28  ;;  %v2553_v27 = vcombine.low %v312_v16, %v316_v17  ;;  %v2560_v28 = vcombine.high %v319_v22, %v323_v23  ;;  %v347_v15 = vld [vmem:[%s3518_s12 + $0x3b0] sm:$0xff]  ;;  %v2575_v22 = vcombine.low %v335_v54, %v339_v55 }
  0xba   : > { %2055 = vmatprep.mubr.bf16.mxu1 %v2498_v29  ;;  %v2562_v29 = vcombine.high %v320_v24, %v324_v25 }
  0xc0   : > { %1895 = vmatmul.mubr.bf16.gmra.mrb[76].mxu0 %v2495_v34  ;;  %v332_v34 = vld [vmem:[%s3518_s12 + $0x338] sm:$0xff] }
  0xc1   : > { %2056 = vmatmul.mubr.bf16.gmra.mrb[76].mxu1 %v2497_v35  ;;  %1902 = vmatprep.mubr.bf16.mxu0 %v2504_v36  ;;  %v3741_v36 = vld [vmem:[%s3916_s2] ss:$0 sm:$0xff]  ;;  %v2570_v47 = vcombine.high %v328_v33, %v332_v34 }
  0xc2   : > { %2063 = vmatprep.mubr.bf16.mxu1 %v2506_v37 }
  0xc8   : > { %1903 = vmatmul.mubr.bf16.gmra.mrb[80].mxu0 %v2503_v42  ;;  %v2561_v42 = vcombine.low %v320_v24, %v324_v25 }
  0xc9   : > { %2064 = vmatmul.mubr.bf16.gmra.mrb[80].mxu1 %v2505_v43  ;;  %1910 = vmatprep.mubr.bf16.mxu0 %v2512_v44  ;;  %v2568_v43 = vcombine.high %v327_v30, %v331_v31 }
  0xca   : > { %2071 = vmatprep.mubr.bf16.mxu1 %v2514_v45 }
  0xd0   : > { %1911 = vmatmul.mubr.bf16.gmra.mrb[84].mxu0 %v2511_v50 }
  0xd1   : > { %2072 = vmatmul.mubr.bf16.gmra.mrb[84].mxu1 %v2513_v51  ;;  %1918 = vmatprep.mubr.bf16.mxu0 %v2520_v52 }
  0xd2   : > { %2079 = vmatprep.mubr.bf16.mxu1 %v2522_v53 }
  0xd8   : > { %1919 = vmatmul.mubr.bf16.gmra.mrb[88].mxu0 %v2519_v58  ;;  %v336_v58 = vld [vmem:[%s3518_s12 + $0x358] sm:$0xff] }
  0xd9   : > { %2080 = vmatmul.mubr.bf16.gmra.mrb[88].mxu1 %v2521_v59  ;;  %1926 = vmatprep.mubr.bf16.mxu0 %v2528_v60  ;;  %v340_v59 = vld [vmem:[%s3518_s12 + $0x378] sm:$0xff] }
  0xda   : > { %2087 = vmatprep.mubr.bf16.mxu1 %v2530_v61  ;;  %v2578_v7 = vcombine.high %v336_v58, %v340_v59 }
  0xe0   : > { %1927 = vmatmul.mubr.bf16.gmra.mrb[92].mxu0 %v2527_v2  ;;  %v2569_v2 = vcombine.low %v328_v33, %v332_v34 }
  0xe1   : > { %2088 = vmatmul.mubr.bf16.gmra.mrb[92].mxu1 %v2529_v3  ;;  %1934 = vmatprep.mubr.bf16.mxu0 %v2536_v4  ;;  %v2576_v3 = vcombine.high %v335_v54, %v339_v55 }
  0xe2   : > { %2095 = vmatprep.mubr.bf16.mxu1 %v2538_v5 }
  0xe8   : > { %1935 = vmatmul.mubr.bf16.gmra.mrb[96].mxu0 %v2535_v10 }
  0xe9   : > { %2096 = vmatmul.mubr.bf16.gmra.mrb[96].mxu1 %v2537_v11  ;;  %1942 = vmatprep.mubr.bf16.mxu0 %v2544_v12 }
  0xea   : > { %2103 = vmatprep.mubr.bf16.mxu1 %v2546_v13 }
  0xf0   : > { %1943 = vmatmul.mubr.bf16.gmra.mrb[100].mxu0 %v2543_v18  ;;  %v344_v18 = vld [vmem:[%s3518_s12 + $0x398] sm:$0xff] }
  0xf1   : > { %2104 = vmatmul.mubr.bf16.gmra.mrb[100].mxu1 %v2545_v19  ;;  %1950 = vmatprep.mubr.bf16.mxu0 %v2552_v20  ;;  %v348_v19 = vld [vmem:[%s3518_s12 + $0x3b8] sm:$0xff] }
  0xf2   : > { %2111 = vmatprep.mubr.bf16.mxu1 %v2554_v21  ;;  %v2586_v31 = vcombine.high %v344_v18, %v348_v19 }
  0xf8   : > { %1951 = vmatmul.mubr.bf16.gmra.mrb[104].mxu0 %v2551_v26  ;;  %v2577_v26 = vcombine.low %v336_v58, %v340_v59 }
  0xf9   : > { %2112 = vmatmul.mubr.bf16.gmra.mrb[104].mxu1 %v2553_v27  ;;  %1958 = vmatprep.mubr.bf16.mxu0 %v2560_v28  ;;  %v2584_v27 = vcombine.high %v343_v14, %v347_v15 }
  0xfa   : > { %2119 = vmatprep.mubr.bf16.mxu1 %v2562_v29 }
  0xfb   : > { %v2837_v32 = vpop.f32.mrb[0].mxu0 }
  0xfc   : > { %v2949_v35 = vpop.f32.mrb[0].mxu1  ;;  %v2838_v37 = vpop.f32.mrb[1].mxu0 }
  0xfd   : > { %v2839_v39 = vadd.f32 %v2838_v37, %v2837_v32  ;;  %v2950_v40 = vpop.f32.mrb[1].mxu1  ;;  %v2840_v41 = vpop.f32.mrb[2].mxu0 }
  0xfe   : > { %v2951_v44 = vadd.f32 %v2950_v40, %v2949_v35  ;;  %v2952_v45 = vpop.f32.mrb[2].mxu1  ;;  %v2841_v46 = vpop.f32.mrb[3].mxu0  ;;  %v355_v40 = vld [vmem:[%s3518_s12 + $0x3f0] sm:$0xff] }
  0xff   : > { %v1551_v48 = vadd.f32 %v2839_v39, %v3741_v36  ;;  %v2842_v49 = vadd.f32 %v2841_v46, %v2840_v41  ;;  %v2953_v50 = vpop.f32.mrb[3].mxu1  ;;  %v351_v39 = vld [vmem:[%s3518_s12 + $0x3d0] sm:$0xff] }
 0x100   : > { %v2954_v51 = vadd.f32 %v2953_v50, %v2952_v45  ;;  %1959 = vmatmul.mubr.bf16.gmra.mrb[108].mxu0 %v2559_v38 }
 0x101   : > { %v3744_v52 = vadd.f32 %v2951_v44, %v1551_v48  ;;  %v1554_v53 = vadd.f32 %v2842_v49, %v3741_v36  ;;  %2120 = vmatmul.mubr.bf16.gmra.mrb[108].mxu1 %v2561_v42  ;;  %1966 = vmatprep.mubr.bf16.mxu0 %v2568_v43  ;;  %v352_v43 = vld [vmem:[%s3518_s12 + $0x3d8] sm:$0xff] }
 0x102   : > { %2127 = vmatprep.mubr.bf16.mxu1 %v2570_v47  ;;  %v356_v44 = vld [vmem:[%s3518_s12 + $0x3f8] sm:$0xff]  ;;  %v2583_v47 = vcombine.low %v343_v14, %v347_v15  ;;  %s2465_s12 = sshll.u32 %s3923_s25, 2 }
 0x103   : > { %v3749_v56 = vadd.f32 %v2954_v51, %v1554_v53  ;;  %v2843_v57 = vpop.f32.mrb[4].mxu0  ;;  %v2585_v51 = vcombine.low %v344_v18, %v348_v19  ;;  %v2592_v53 = vcombine.high %v351_v39, %v355_v40  ;;  %v2594_v58 = vcombine.high %v352_v43, %v356_v44  ;;  %s3857_s17 = scalar_lea.vmem %s3917_s3, %s2465_s12 }
 0x104   : > { %v2955_v60 = vpop.f32.mrb[4].mxu1  ;;  %v2844_v61 = vpop.f32.mrb[5].mxu0 }
 0x105   : > { %v2845_v63 = vadd.f32 %v2844_v61, %v2843_v57  ;;  %v2956_v0 = vpop.f32.mrb[5].mxu1  ;;  %v2846_v1 = vpop.f32.mrb[6].mxu0 }
 0x106   : > { %v2957_v4 = vadd.f32 %v2956_v0, %v2955_v60  ;;  %v2958_v5 = vpop.f32.mrb[6].mxu1  ;;  %v2847_v6 = vpop.f32.mrb[7].mxu0 }
 0x107   : > { %v1559_v8 = vadd.f32 %v2845_v63, %v3741_v36  ;;  %v2848_v9 = vadd.f32 %v2847_v6, %v2846_v1  ;;  %v2959_v10 = vpop.f32.mrb[7].mxu1 }
 0x108   : > { %v2960_v11 = vadd.f32 %v2959_v10, %v2958_v5  ;;  %1967 = vmatmul.mubr.bf16.gmra.mrb[112].mxu0 %v2567_v62  ;;  %v2591_v5 = vcombine.low %v351_v39, %v355_v40 }
 0x109   : > { %v3754_v12 = vadd.f32 %v2957_v4, %v1559_v8  ;;  %v1562_v13 = vadd.f32 %v2848_v9, %v3741_v36  ;;  %2128 = vmatmul.mubr.bf16.gmra.mrb[112].mxu1 %v2569_v2  ;;  %1974 = vmatprep.mubr.bf16.mxu0 %v2576_v3  ;;  %v2593_v9 = vcombine.low %v352_v43, %v356_v44 }
 0x10a   : > { %2135 = vmatprep.mubr.bf16.mxu1 %v2578_v7 }
 0x10b   : > { %v3759_v16 = vadd.f32 %v2960_v11, %v1562_v13  ;;  %v2849_v17 = vpop.f32.mrb[8].mxu0 }
 0x10c   : > { %v2961_v20 = vpop.f32.mrb[8].mxu1  ;;  %v2850_v21 = vpop.f32.mrb[9].mxu0 }
 0x10d   : > { %v2851_v23 = vadd.f32 %v2850_v21, %v2849_v17  ;;  %v2962_v24 = vpop.f32.mrb[9].mxu1  ;;  %v2852_v25 = vpop.f32.mrb[10].mxu0 }
 0x10e   : > { %v2963_v28 = vadd.f32 %v2962_v24, %v2961_v20  ;;  %v2964_v29 = vpop.f32.mrb[10].mxu1  ;;  %v2853_v30 = vpop.f32.mrb[11].mxu0 }
 0x10f   : > { %v1567_v32 = vadd.f32 %v2851_v23, %v3741_v36  ;;  %v2854_v33 = vadd.f32 %v2853_v30, %v2852_v25  ;;  %v2965_v34 = vpop.f32.mrb[11].mxu1 }
 0x110   : > { %v2966_v35 = vadd.f32 %v2965_v34, %v2964_v29  ;;  %1975 = vmatmul.mubr.bf16.gmra.mrb[116].mxu0 %v2575_v22 }
 0x111   : > { %v3764_v37 = vadd.f32 %v2963_v28, %v1567_v32  ;;  %v1570_v38 = vadd.f32 %v2854_v33, %v3741_v36  ;;  %2136 = vmatmul.mubr.bf16.gmra.mrb[116].mxu1 %v2577_v26  ;;  %1982 = vmatprep.mubr.bf16.mxu0 %v2584_v27 }
 0x112   : > { %2143 = vmatprep.mubr.bf16.mxu1 %v2586_v31 }
 0x113   : > { %v3769_v41 = vadd.f32 %v2966_v35, %v1570_v38  ;;  %v2855_v42 = vpop.f32.mrb[12].mxu0 }
 0x114   : > { %v2967_v45 = vpop.f32.mrb[12].mxu1  ;;  %v2856_v46 = vpop.f32.mrb[13].mxu0 }
 0x115   : > { %v2857_v48 = vadd.f32 %v2856_v46, %v2855_v42  ;;  %v2968_v49 = vpop.f32.mrb[13].mxu1  ;;  %v2858_v50 = vpop.f32.mrb[14].mxu0 }
 0x116   : > { %v2969_v54 = vadd.f32 %v2968_v49, %v2967_v45  ;;  %v2970_v55 = vpop.f32.mrb[14].mxu1  ;;  %v2859_v57 = vpop.f32.mrb[15].mxu0 }
 0x117   : > { %v1575_v59 = vadd.f32 %v2857_v48, %v3741_v36  ;;  %v2860_v60 = vadd.f32 %v2859_v57, %v2858_v50  ;;  %v2971_v61 = vpop.f32.mrb[15].mxu1 }
 0x118   : > { %v2972_v62 = vadd.f32 %v2971_v61, %v2970_v55  ;;  %1983 = vmatmul.mubr.bf16.gmra.mrb[120].mxu0 %v2583_v47 }
 0x119   : > { %v3774_v63 = vadd.f32 %v2969_v54, %v1575_v59  ;;  %v1578_v0 = vadd.f32 %v2860_v60, %v3741_v36  ;;  %2144 = vmatmul.mubr.bf16.gmra.mrb[120].mxu1 %v2585_v51  ;;  %1990 = vmatprep.mubr.bf16.mxu0 %v2592_v53 }
 0x11a   : > { %2151 = vmatprep.mubr.bf16.mxu1 %v2594_v58 }
 0x11b   : > { %v3777_v1 = vadd.f32 %v2972_v62, %v1578_v0  ;;  %v2861_v2 = vpop.f32.mrb[16].mxu0 }
 0x11c   : > { %v2973_v3 = vpop.f32.mrb[16].mxu1  ;;  %v2862_v4 = vpop.f32.mrb[17].mxu0 }
 0x11d   : > { %v2863_v6 = vadd.f32 %v2862_v4, %v2861_v2  ;;  %v2974_v7 = vpop.f32.mrb[17].mxu1  ;;  %v2864_v8 = vpop.f32.mrb[18].mxu0 }
 0x11e   : > { %v2975_v10 = vadd.f32 %v2974_v7, %v2973_v3  ;;  %v2976_v11 = vpop.f32.mrb[18].mxu1  ;;  %v2865_v13 = vpop.f32.mrb[19].mxu0 }
 0x11f   : > { %v1583_v14 = vadd.f32 %v2863_v6, %v3741_v36  ;;  %v2866_v15 = vadd.f32 %v2865_v13, %v2864_v8  ;;  %v2977_v17 = vpop.f32.mrb[19].mxu1 }
 0x120   : > { %v2978_v18 = vadd.f32 %v2977_v17, %v2976_v11  ;;  %1991 = vmatmul.mubr.bf16.gmra.mrb[124].mxu0 %v2591_v5 }
 0x121   : > { %v3780_v19 = vadd.f32 %v2975_v10, %v1583_v14  ;;  %v1586_v20 = vadd.f32 %v2866_v15, %v3741_v36  ;;  %2152 = vmatmul.mubr.bf16.gmra.mrb[124].mxu1 %v2593_v9 }
 0x123   : > { %v3783_v21 = vadd.f32 %v2978_v18, %v1586_v20  ;;  %v2867_v22 = vpop.f32.mrb[20].mxu0 }
 0x124   : > { %v2979_v23 = vpop.f32.mrb[20].mxu1  ;;  %v2868_v24 = vpop.f32.mrb[21].mxu0 }
 0x125   : > { %v2869_v25 = vadd.f32 %v2868_v24, %v2867_v22  ;;  %v2980_v26 = vpop.f32.mrb[21].mxu1  ;;  %v2870_v27 = vpop.f32.mrb[22].mxu0 }
 0x126   : > { %v2981_v28 = vadd.f32 %v2980_v26, %v2979_v23  ;;  %v2982_v29 = vpop.f32.mrb[22].mxu1  ;;  %v2871_v30 = vpop.f32.mrb[23].mxu0 }
 0x127   : > { %v1591_v31 = vadd.f32 %v2869_v25, %v3741_v36  ;;  %v2872_v32 = vadd.f32 %v2871_v30, %v2870_v27  ;;  %v2983_v33 = vpop.f32.mrb[23].mxu1 }
 0x128   : > { %v2984_v34 = vadd.f32 %v2983_v33, %v2982_v29 }
 0x129   : > { %v3786_v35 = vadd.f32 %v2981_v28, %v1591_v31  ;;  %v1594_v38 = vadd.f32 %v2872_v32, %v3741_v36 }
 0x12b   : > { %v3789_v39 = vadd.f32 %v2984_v34, %v1594_v38  ;;  %v2873_v40 = vpop.f32.mrb[24].mxu0 }
 0x12c   : > { %v2985_v42 = vpop.f32.mrb[24].mxu1  ;;  %v2874_v43 = vpop.f32.mrb[25].mxu0 }
 0x12d   : > { %v2875_v44 = vadd.f32 %v2874_v43, %v2873_v40  ;;  %v2986_v45 = vpop.f32.mrb[25].mxu1  ;;  %v2876_v46 = vpop.f32.mrb[26].mxu0 }
 0x12e   : > { %v2987_v47 = vadd.f32 %v2986_v45, %v2985_v42  ;;  %v2988_v48 = vpop.f32.mrb[26].mxu1  ;;  %v2877_v49 = vpop.f32.mrb[27].mxu0 }
 0x12f   : > { %v1599_v50 = vadd.f32 %v2875_v44, %v3741_v36  ;;  %v2878_v51 = vadd.f32 %v2877_v49, %v2876_v46  ;;  %v2989_v53 = vpop.f32.mrb[27].mxu1 }
 0x130   : > { %v2990_v54 = vadd.f32 %v2989_v53, %v2988_v48 }
 0x131   : > { %v3792_v55 = vadd.f32 %v2987_v47, %v1599_v50  ;;  %v1602_v57 = vadd.f32 %v2878_v51, %v3741_v36 }
 0x133   : > { %v3795_v58 = vadd.f32 %v2990_v54, %v1602_v57  ;;  %v2879_v59 = vpop.f32.mrb[28].mxu0 }
 0x134   : > { %v2991_v60 = vpop.f32.mrb[28].mxu1  ;;  %v2880_v61 = vpop.f32.mrb[29].mxu0 }
 0x135   : > { %v2881_v62 = vadd.f32 %v2880_v61, %v2879_v59  ;;  %v2992_v0 = vpop.f32.mrb[29].mxu1  ;;  %v2882_v2 = vpop.f32.mrb[30].mxu0 }
 0x136   : > { %v2993_v3 = vadd.f32 %v2992_v0, %v2991_v60  ;;  %v2994_v4 = vpop.f32.mrb[30].mxu1  ;;  %v2883_v5 = vpop.f32.mrb[31].mxu0 }
 0x137   : > { %v1607_v6 = vadd.f32 %v2881_v62, %v3741_v36  ;;  %v2884_v7 = vadd.f32 %v2883_v5, %v2882_v2  ;;  %v2995_v8 = vpop.f32.mrb[31].mxu1 }
 0x138   : > { %v2996_v9 = vadd.f32 %v2995_v8, %v2994_v4 }
 0x139   : > { %v3798_v10 = vadd.f32 %v2993_v3, %v1607_v6  ;;  %v1610_v11 = vadd.f32 %v2884_v7, %v3741_v36 }
 0x13b   : > { %v3801_v13 = vadd.f32 %v2996_v9, %v1610_v11  ;;  %v2885_v14 = vpop.f32.mrb[32].mxu0 }
 0x13c   : > { %v2997_v15 = vpop.f32.mrb[32].mxu1  ;;  %v2886_v17 = vpop.f32.mrb[33].mxu0 }
 0x13d   : > { %v2887_v18 = vadd.f32 %v2886_v17, %v2885_v14  ;;  %v2998_v20 = vpop.f32.mrb[33].mxu1  ;;  %v2888_v22 = vpop.f32.mrb[34].mxu0 }
 0x13e   : > { %v2999_v23 = vadd.f32 %v2998_v20, %v2997_v15  ;;  %v3000_v24 = vpop.f32.mrb[34].mxu1  ;;  %v2889_v25 = vpop.f32.mrb[35].mxu0 }
 0x13f   : > { %v1615_v26 = vadd.f32 %v2887_v18, %v3741_v36  ;;  %v2890_v27 = vadd.f32 %v2889_v25, %v2888_v22  ;;  %v3001_v28 = vpop.f32.mrb[35].mxu1 }
 0x140   : > { %v3002_v29 = vadd.f32 %v3001_v28, %v3000_v24 }
 0x141   : > { %v3804_v30 = vadd.f32 %v2999_v23, %v1615_v26  ;;  %v1618_v31 = vadd.f32 %v2890_v27, %v3741_v36 }
 0x143   : > { %v3807_v32 = vadd.f32 %v3002_v29, %v1618_v31  ;;  %v2891_v33 = vpop.f32.mrb[36].mxu0 }
 0x144   : > { %v3003_v34 = vpop.f32.mrb[36].mxu1  ;;  %v2892_v38 = vpop.f32.mrb[37].mxu0 }
 0x145   : > { %v2893_v40 = vadd.f32 %v2892_v38, %v2891_v33  ;;  %v3004_v42 = vpop.f32.mrb[37].mxu1  ;;  %v2894_v43 = vpop.f32.mrb[38].mxu0 }
 0x146   : > { %v3005_v44 = vadd.f32 %v3004_v42, %v3003_v34  ;;  %v3006_v45 = vpop.f32.mrb[38].mxu1  ;;  %v2895_v46 = vpop.f32.mrb[39].mxu0 }
 0x147   : > { %v1623_v47 = vadd.f32 %v2893_v40, %v3741_v36  ;;  %v2896_v48 = vadd.f32 %v2895_v46, %v2894_v43  ;;  %v3007_v49 = vpop.f32.mrb[39].mxu1 }
 0x148   : > { %v3008_v50 = vadd.f32 %v3007_v49, %v3006_v45 }
 0x149   : > { %v3810_v51 = vadd.f32 %v3005_v44, %v1623_v47  ;;  %v1626_v53 = vadd.f32 %v2896_v48, %v3741_v36 }
 0x14b   : > { %v3813_v54 = vadd.f32 %v3008_v50, %v1626_v53  ;;  %v2897_v57 = vpop.f32.mrb[40].mxu0 }
 0x14c   : > { %v3009_v59 = vpop.f32.mrb[40].mxu1  ;;  %v2898_v60 = vpop.f32.mrb[41].mxu0 }
 0x14d   : > { %v2899_v61 = vadd.f32 %v2898_v60, %v2897_v57  ;;  %v3010_v62 = vpop.f32.mrb[41].mxu1  ;;  %v2900_v0 = vpop.f32.mrb[42].mxu0 }
 0x14e   : > { %v3011_v2 = vadd.f32 %v3010_v62, %v3009_v59  ;;  %v3012_v3 = vpop.f32.mrb[42].mxu1  ;;  %v2901_v4 = vpop.f32.mrb[43].mxu0 }
 0x14f   : > { %v1631_v5 = vadd.f32 %v2899_v61, %v3741_v36  ;;  %v2902_v6 = vadd.f32 %v2901_v4, %v2900_v0  ;;  %v3013_v7 = vpop.f32.mrb[43].mxu1 }
 0x150   : > { %v3014_v8 = vadd.f32 %v3013_v7, %v3012_v3 }
 0x151   : > { %v3816_v9 = vadd.f32 %v3011_v2, %v1631_v5  ;;  %v1634_v11 = vadd.f32 %v2902_v6, %v3741_v36 }
 0x153   : > { %v3819_v14 = vadd.f32 %v3014_v8, %v1634_v11  ;;  %v2903_v15 = vpop.f32.mrb[44].mxu0 }
 0x154   : > { %v3015_v17 = vpop.f32.mrb[44].mxu1  ;;  %v2904_v18 = vpop.f32.mrb[45].mxu0 }
 0x155   : > { %v2905_v20 = vadd.f32 %v2904_v18, %v2903_v15  ;;  %v3016_v22 = vpop.f32.mrb[45].mxu1  ;;  %v2906_v23 = vpop.f32.mrb[46].mxu0 }
 0x156   : > { %v3017_v24 = vadd.f32 %v3016_v22, %v3015_v17  ;;  %v3018_v25 = vpop.f32.mrb[46].mxu1  ;;  %v2907_v26 = vpop.f32.mrb[47].mxu0 }
 0x157   : > { %v1639_v27 = vadd.f32 %v2905_v20, %v3741_v36  ;;  %v2908_v28 = vadd.f32 %v2907_v26, %v2906_v23  ;;  %v3019_v29 = vpop.f32.mrb[47].mxu1 }
 0x158   : > { %v3020_v31 = vadd.f32 %v3019_v29, %v3018_v25 }
 0x159   : > { %v3822_v33 = vadd.f32 %v3017_v24, %v1639_v27  ;;  %v1642_v34 = vadd.f32 %v2908_v28, %v3741_v36 }
 0x15b   : > { %v3825_v38 = vadd.f32 %v3020_v31, %v1642_v34  ;;  %v2909_v40 = vpop.f32.mrb[48].mxu0 }
 0x15c   : > { %v3021_v42 = vpop.f32.mrb[48].mxu1  ;;  %v2910_v43 = vpop.f32.mrb[49].mxu0 }
 0x15d   : > { %v2911_v44 = vadd.f32 %v2910_v43, %v2909_v40  ;;  %v3022_v45 = vpop.f32.mrb[49].mxu1  ;;  %v2912_v46 = vpop.f32.mrb[50].mxu0 }
 0x15e   : > { %v3023_v47 = vadd.f32 %v3022_v45, %v3021_v42  ;;  %v3024_v48 = vpop.f32.mrb[50].mxu1  ;;  %v2913_v49 = vpop.f32.mrb[51].mxu0 }
 0x15f   : > { %v1647_v50 = vadd.f32 %v2911_v44, %v3741_v36  ;;  %v2914_v53 = vadd.f32 %v2913_v49, %v2912_v46  ;;  %v3025_v57 = vpop.f32.mrb[51].mxu1 }
 0x160   : > { %v3026_v59 = vadd.f32 %v3025_v57, %v3024_v48 }
 0x161   : > { %v3828_v60 = vadd.f32 %v3023_v47, %v1647_v50  ;;  %v1650_v61 = vadd.f32 %v2914_v53, %v3741_v36 }
 0x163   : > { %v3831_v62 = vadd.f32 %v3026_v59, %v1650_v61  ;;  %v2915_v0 = vpop.f32.mrb[52].mxu0 }
 0x164   : > { %v3027_v2 = vpop.f32.mrb[52].mxu1  ;;  %v2916_v3 = vpop.f32.mrb[53].mxu0 }
 0x165   : > { %v2917_v4 = vadd.f32 %v2916_v3, %v2915_v0  ;;  %v3028_v5 = vpop.f32.mrb[53].mxu1  ;;  %v2918_v6 = vpop.f32.mrb[54].mxu0 }
 0x166   : > { %v3029_v7 = vadd.f32 %v3028_v5, %v3027_v2  ;;  %v3030_v8 = vpop.f32.mrb[54].mxu1  ;;  %v2919_v11 = vpop.f32.mrb[55].mxu0 }
 0x167   : > { %v1655_v15 = vadd.f32 %v2917_v4, %v3741_v36  ;;  %v2920_v17 = vadd.f32 %v2919_v11, %v2918_v6  ;;  %v3031_v18 = vpop.f32.mrb[55].mxu1 }
 0x168   : > { %v3032_v20 = vadd.f32 %v3031_v18, %v3030_v8 }
 0x169   : > { %v3834_v22 = vadd.f32 %v3029_v7, %v1655_v15  ;;  %v1658_v23 = vadd.f32 %v2920_v17, %v3741_v36 }
 0x16b   : > { %v3837_v24 = vadd.f32 %v3032_v20, %v1658_v23  ;;  %v2921_v25 = vpop.f32.mrb[56].mxu0 }
 0x16c   : > { %v3033_v26 = vpop.f32.mrb[56].mxu1  ;;  %v2922_v27 = vpop.f32.mrb[57].mxu0 }
 0x16d   : > { %v2923_v28 = vadd.f32 %v2922_v27, %v2921_v25  ;;  %v3034_v29 = vpop.f32.mrb[57].mxu1  ;;  %v2924_v31 = vpop.f32.mrb[58].mxu0 }
 0x16e   : > { %v3035_v34 = vadd.f32 %v3034_v29, %v3033_v26  ;;  %v3036_v40 = vpop.f32.mrb[58].mxu1  ;;  %v2925_v42 = vpop.f32.mrb[59].mxu0 }
 0x16f   : > { %v1663_v43 = vadd.f32 %v2923_v28, %v3741_v36  ;;  %v2926_v44 = vadd.f32 %v2925_v42, %v2924_v31  ;;  %v3037_v45 = vpop.f32.mrb[59].mxu1 }
 0x170   : > { %v3038_v46 = vadd.f32 %v3037_v45, %v3036_v40 }
 0x171   : > { %v3840_v47 = vadd.f32 %v3035_v34, %v1663_v43  ;;  %v1666_v48 = vadd.f32 %v2926_v44, %v3741_v36 }
 0x173   : > { %v3843_v49 = vadd.f32 %v3038_v46, %v1666_v48  ;;  %v2927_v50 = vpop.f32.mrb[60].mxu0 }
 0x174   : > { %v3039_v53 = vpop.f32.mrb[60].mxu1  ;;  %v2928_v57 = vpop.f32.mrb[61].mxu0 }
 0x175   : > { %v2929_v59 = vadd.f32 %v2928_v57, %v2927_v50  ;;  %v3040_v61 = vpop.f32.mrb[61].mxu1  ;;  %v2930_v0 = vpop.f32.mrb[62].mxu0 }
 0x176   : > { %v3041_v2 = vadd.f32 %v3040_v61, %v3039_v53  ;;  %v3042_v3 = vpop.f32.mrb[62].mxu1  ;;  %v2931_v4 = vpop.f32.mrb[63].mxu0 }
 0x177   : > { %v1671_v5 = vadd.f32 %v2929_v59, %v3741_v36  ;;  %v2932_v6 = vadd.f32 %v2931_v4, %v2930_v0  ;;  %v3043_v7 = vpop.f32.mrb[63].mxu1 }
 0x178   : > { %v3044_v8 = vadd.f32 %v3043_v7, %v3042_v3 }
 0x179   : > { %v3846_v11 = vadd.f32 %v3041_v2, %v1671_v5  ;;  %v1674_v15 = vadd.f32 %v2932_v6, %v3741_v36 }
 0x17b   : > { %v3849_v17 = vadd.f32 %v3044_v8, %v1674_v15  ;;  %v3061_v18 = vpop.f32.mrb[64].mxu0 }
 0x17c   : > { %v3173_v20 = vpop.f32.mrb[64].mxu1  ;;  %v3062_v23 = vpop.f32.mrb[65].mxu0 }
 0x17d   : > { %v3063_v25 = vadd.f32 %v3062_v23, %v3061_v18  ;;  %v3174_v26 = vpop.f32.mrb[65].mxu1  ;;  %v3064_v27 = vpop.f32.mrb[66].mxu0 }
 0x17e   : > { %v3175_v28 = vadd.f32 %v3174_v26, %v3173_v20  ;;  %v3176_v29 = vpop.f32.mrb[66].mxu1  ;;  %v3065_v31 = vpop.f32.mrb[67].mxu0 }
 0x17f   : > { %v1873_v34 = vadd.f32 %v3063_v25, %v3744_v52  ;;  %v3066_v40 = vadd.f32 %v3065_v31, %v3064_v27  ;;  %v3177_v42 = vpop.f32.mrb[67].mxu1 }
 0x180   : > { %v3178_v43 = vadd.f32 %v3177_v42, %v3176_v29 }
 0x181   : > { %v2034_v44 = vadd.f32 %v3175_v28, %v1873_v34  ;;  %v1876_v36 = vadd.f32 %v3066_v40, %v3749_v56 }
 0x183   : > { %v2037_v45 = vadd.f32 %v3178_v43, %v1876_v36  ;;  %v3067_v46 = vpop.f32.mrb[68].mxu0  ;;  %v2160_v53 = vmax.f32 %v2034_v44, 0.0 }
 0x184   : > { %v3179_v48 = vpop.f32.mrb[68].mxu1  ;;  %v3068_v50 = vpop.f32.mrb[69].mxu0 }
 0x185   : > { %v2161_v57 = vmax.f32 %v2037_v45, 0.0  ;;  %v3069_v59 = vadd.f32 %v3068_v50, %v3067_v46  ;;  %v3180_v61 = vpop.f32.mrb[69].mxu1  ;;  %v3070_v0 = vpop.f32.mrb[70].mxu0 }
 0x186   : > { %v3181_v52 = vadd.f32 %v3180_v61, %v3179_v48  ;;  %v3182_v2 = vpop.f32.mrb[70].mxu1  ;;  %v3071_v3 = vpop.f32.mrb[71].mxu0 }
 0x187   : > { %v2729_v56 = vpack.c.bf16 %v2161_v57, %v2160_v53  ;;  %v1881_v4 = vadd.f32 %v3069_v59, %v3754_v12  ;;  %v3072_v5 = vadd.f32 %v3071_v3, %v3070_v0  ;;  %v3183_v6 = vpop.f32.mrb[71].mxu1 }
 0x188   : > { %v3184_v7 = vadd.f32 %v3183_v6, %v3182_v2 }
 0x189   : > { %2730 = vst [vmem:[%s3857_s17] sm:$0xff] %v2729_v56   ;;  %v2042_v8 = vadd.f32 %v3181_v52, %v1881_v4  ;;  %v1884_v15 = vadd.f32 %v3072_v5, %v3759_v16 }
 0x18b   : > { %v2045_v18 = vadd.f32 %v3184_v7, %v1884_v15  ;;  %v3073_v20 = vpop.f32.mrb[72].mxu0  ;;  %v2162_v26 = vmax.f32 %v2042_v8, 0.0 }
 0x18c   : > { %v3185_v23 = vpop.f32.mrb[72].mxu1  ;;  %v3074_v25 = vpop.f32.mrb[73].mxu0 }
 0x18d   : > { %v2163_v27 = vmax.f32 %v2045_v18, 0.0  ;;  %v3075_v28 = vadd.f32 %v3074_v25, %v3073_v20  ;;  %v3186_v29 = vpop.f32.mrb[73].mxu1  ;;  %v3076_v31 = vpop.f32.mrb[74].mxu0 }
 0x18e   : > { %v3187_v34 = vadd.f32 %v3186_v29, %v3185_v23  ;;  %v3188_v40 = vpop.f32.mrb[74].mxu1  ;;  %v3077_v12 = vpop.f32.mrb[75].mxu0 }
 0x18f   : > { %v2734_v42 = vpack.c.bf16 %v2163_v27, %v2162_v26  ;;  %v1889_v43 = vadd.f32 %v3075_v28, %v3764_v37  ;;  %v3078_v44 = vadd.f32 %v3077_v12, %v3076_v31  ;;  %v3189_v36 = vpop.f32.mrb[75].mxu1 }
 0x190   : > { %v3190_v45 = vadd.f32 %v3189_v36, %v3188_v40 }
 0x191   : > { %2806 = vst [vmem:[%s3857_s17 + $0x8] sm:$0xff] %v2734_v42   ;;  %v2050_v16 = vadd.f32 %v3187_v34, %v1889_v43  ;;  %v1892_v46 = vadd.f32 %v3078_v44, %v3769_v41 }
 0x193   : > { %v2053_v48 = vadd.f32 %v3190_v45, %v1892_v46  ;;  %v3079_v50 = vpop.f32.mrb[76].mxu0  ;;  %v2164_v59 = vmax.f32 %v2050_v16, 0.0 }
 0x194   : > { %v3191_v53 = vpop.f32.mrb[76].mxu1  ;;  %v3080_v57 = vpop.f32.mrb[77].mxu0 }
 0x195   : > { %v2165_v61 = vmax.f32 %v2053_v48, 0.0  ;;  %v3081_v0 = vadd.f32 %v3080_v57, %v3079_v50  ;;  %v3192_v52 = vpop.f32.mrb[77].mxu1  ;;  %v3082_v2 = vpop.f32.mrb[78].mxu0 }
 0x196   : > { %v3193_v3 = vadd.f32 %v3192_v52, %v3191_v53  ;;  %v3194_v56 = vpop.f32.mrb[78].mxu1  ;;  %v3083_v37 = vpop.f32.mrb[79].mxu0 }
 0x197   : > { %v2739_v4 = vpack.c.bf16 %v2165_v61, %v2164_v59  ;;  %v1897_v5 = vadd.f32 %v3081_v0, %v3774_v63  ;;  %v3084_v6 = vadd.f32 %v3083_v37, %v3082_v2  ;;  %v3195_v7 = vpop.f32.mrb[79].mxu1 }
 0x198   : > { %v3196_v8 = vadd.f32 %v3195_v7, %v3194_v56 }
 0x199   : > { %2807 = vst [vmem:[%s3857_s17 + $0x10] sm:$0xff] %v2739_v4   ;;  %v2058_v41 = vadd.f32 %v3193_v3, %v1897_v5  ;;  %v1900_v15 = vadd.f32 %v3084_v6, %v3777_v1 }
 0x19b   : > { %v2061_v18 = vadd.f32 %v3196_v8, %v1900_v15  ;;  %v3085_v20 = vpop.f32.mrb[80].mxu0  ;;  %v2166_v26 = vmax.f32 %v2058_v41, 0.0 }
 0x19c   : > { %v3197_v23 = vpop.f32.mrb[80].mxu1  ;;  %v3086_v25 = vpop.f32.mrb[81].mxu0 }
 0x19d   : > { %v2167_v27 = vmax.f32 %v2061_v18, 0.0  ;;  %v3087_v28 = vadd.f32 %v3086_v25, %v3085_v20  ;;  %v3198_v29 = vpop.f32.mrb[81].mxu1  ;;  %v3088_v31 = vpop.f32.mrb[82].mxu0 }
 0x19e   : > { %v3199_v34 = vadd.f32 %v3198_v29, %v3197_v23  ;;  %v3200_v40 = vpop.f32.mrb[82].mxu1  ;;  %v3089_v63 = vpop.f32.mrb[83].mxu0 }
 0x19f   : > { %v2744_v12 = vpack.c.bf16 %v2167_v27, %v2166_v26  ;;  %v1905_v42 = vadd.f32 %v3087_v28, %v3780_v19  ;;  %v3090_v43 = vadd.f32 %v3089_v63, %v3088_v31  ;;  %v3201_v44 = vpop.f32.mrb[83].mxu1 }
 0x1a0   : > { %v3202_v36 = vadd.f32 %v3201_v44, %v3200_v40 }
 0x1a1   : > { %2808 = vst [vmem:[%s3857_s17 + $0x18] sm:$0xff] %v2744_v12   ;;  %v2066_v1 = vadd.f32 %v3199_v34, %v1905_v42  ;;  %v1908_v45 = vadd.f32 %v3090_v43, %v3783_v21 }
 0x1a3   : > { %v2069_v16 = vadd.f32 %v3202_v36, %v1908_v45  ;;  %v3091_v46 = vpop.f32.mrb[84].mxu0  ;;  %v2168_v53 = vmax.f32 %v2066_v1, 0.0 }
 0x1a4   : > { %v3203_v48 = vpop.f32.mrb[84].mxu1  ;;  %v3092_v50 = vpop.f32.mrb[85].mxu0 }
 0x1a5   : > { %v2169_v57 = vmax.f32 %v2069_v16, 0.0  ;;  %v3093_v59 = vadd.f32 %v3092_v50, %v3091_v46  ;;  %v3204_v61 = vpop.f32.mrb[85].mxu1  ;;  %v3094_v0 = vpop.f32.mrb[86].mxu0 }
 0x1a6   : > { %v3205_v52 = vadd.f32 %v3204_v61, %v3203_v48  ;;  %v3206_v2 = vpop.f32.mrb[86].mxu1  ;;  %v3095_v19 = vpop.f32.mrb[87].mxu0 }
 0x1a7   : > { %v2749_v3 = vpack.c.bf16 %v2169_v57, %v2168_v53  ;;  %v1913_v56 = vadd.f32 %v3093_v59, %v3786_v35  ;;  %v3096_v37 = vadd.f32 %v3095_v19, %v3094_v0  ;;  %v3207_v4 = vpop.f32.mrb[87].mxu1 }
 0x1a8   : > { %v3208_v5 = vadd.f32 %v3207_v4, %v3206_v2 }
 0x1a9   : > { %2809 = vst [vmem:[%s3857_s17 + $0x20] sm:$0xff] %v2749_v3   ;;  %v2074_v21 = vadd.f32 %v3205_v52, %v1913_v56  ;;  %v1916_v6 = vadd.f32 %v3096_v37, %v3789_v39 }
 0x1ab   : > { %v2077_v7 = vadd.f32 %v3208_v5, %v1916_v6  ;;  %v3097_v8 = vpop.f32.mrb[88].mxu0  ;;  %v2170_v18 = vmax.f32 %v2074_v21, 0.0 }
 0x1ac   : > { %v3209_v41 = vpop.f32.mrb[88].mxu1  ;;  %v3098_v15 = vpop.f32.mrb[89].mxu0 }
 0x1ad   : > { %v2171_v20 = vmax.f32 %v2077_v7, 0.0  ;;  %v3099_v23 = vadd.f32 %v3098_v15, %v3097_v8  ;;  %v3210_v25 = vpop.f32.mrb[89].mxu1  ;;  %v3100_v26 = vpop.f32.mrb[90].mxu0 }
 0x1ae   : > { %v3211_v27 = vadd.f32 %v3210_v25, %v3209_v41  ;;  %v3212_v28 = vpop.f32.mrb[90].mxu1  ;;  %v3101_v35 = vpop.f32.mrb[91].mxu0 }
 0x1af   : > { %v2754_v29 = vpack.c.bf16 %v2171_v20, %v2170_v18  ;;  %v1921_v31 = vadd.f32 %v3099_v23, %v3792_v55  ;;  %v3102_v34 = vadd.f32 %v3101_v35, %v3100_v26  ;;  %v3213_v40 = vpop.f32.mrb[91].mxu1 }
 0x1b0   : > { %v3214_v63 = vadd.f32 %v3213_v40, %v3212_v28 }
 0x1b1   : > { %2810 = vst [vmem:[%s3857_s17 + $0x28] sm:$0xff] %v2754_v29   ;;  %v2082_v39 = vadd.f32 %v3211_v27, %v1921_v31  ;;  %v1924_v12 = vadd.f32 %v3102_v34, %v3795_v58 }
 0x1b3   : > { %v2085_v42 = vadd.f32 %v3214_v63, %v1924_v12  ;;  %v3103_v43 = vpop.f32.mrb[92].mxu0  ;;  %v2172_v1 = vmax.f32 %v2082_v39, 0.0 }
 0x1b4   : > { %v3215_v44 = vpop.f32.mrb[92].mxu1  ;;  %v3104_v36 = vpop.f32.mrb[93].mxu0 }
 0x1b5   : > { %v2173_v45 = vmax.f32 %v2085_v42, 0.0  ;;  %v3105_v16 = vadd.f32 %v3104_v36, %v3103_v43  ;;  %v3216_v46 = vpop.f32.mrb[93].mxu1  ;;  %v3106_v48 = vpop.f32.mrb[94].mxu0 }
 0x1b6   : > { %v3217_v50 = vadd.f32 %v3216_v46, %v3215_v44  ;;  %v3218_v53 = vpop.f32.mrb[94].mxu1  ;;  %v3107_v55 = vpop.f32.mrb[95].mxu0 }
 0x1b7   : > { %v2759_v57 = vpack.c.bf16 %v2173_v45, %v2172_v1  ;;  %v1929_v59 = vadd.f32 %v3105_v16, %v3798_v10  ;;  %v3108_v61 = vadd.f32 %v3107_v55, %v3106_v48  ;;  %v3219_v0 = vpop.f32.mrb[95].mxu1 }
 0x1b8   : > { %v3220_v52 = vadd.f32 %v3219_v0, %v3218_v53 }
 0x1b9   : > { %2811 = vst [vmem:[%s3857_s17 + $0x30] sm:$0xff] %v2759_v57   ;;  %v2090_v58 = vadd.f32 %v3217_v50, %v1929_v59  ;;  %v1932_v2 = vadd.f32 %v3108_v61, %v3801_v13 }
 0x1bb   : > { %v2093_v19 = vadd.f32 %v3220_v52, %v1932_v2  ;;  %v3109_v3 = vpop.f32.mrb[96].mxu0  ;;  %v2174_v4 = vmax.f32 %v2090_v58, 0.0 }
 0x1bc   : > { %v3221_v56 = vpop.f32.mrb[96].mxu1  ;;  %v3110_v37 = vpop.f32.mrb[97].mxu0 }
 0x1bd   : > { %v2175_v5 = vmax.f32 %v2093_v19, 0.0  ;;  %v3111_v21 = vadd.f32 %v3110_v37, %v3109_v3  ;;  %v3222_v6 = vpop.f32.mrb[97].mxu1  ;;  %v3112_v7 = vpop.f32.mrb[98].mxu0 }
 0x1be   : > { %v3223_v8 = vadd.f32 %v3222_v6, %v3221_v56  ;;  %v3224_v41 = vpop.f32.mrb[98].mxu1  ;;  %v3113_v10 = vpop.f32.mrb[99].mxu0 }
 0x1bf   : > { %v2764_v15 = vpack.c.bf16 %v2175_v5, %v2174_v4  ;;  %v1937_v18 = vadd.f32 %v3111_v21, %v3804_v30  ;;  %v3114_v20 = vadd.f32 %v3113_v10, %v3112_v7  ;;  %v3225_v23 = vpop.f32.mrb[99].mxu1 }
 0x1c0   : > { %v3226_v25 = vadd.f32 %v3225_v23, %v3224_v41 }
 0x1c1   : > { %2812 = vst [vmem:[%s3857_s17 + $0x38] sm:$0xff] %v2764_v15   ;;  %v2098_v13 = vadd.f32 %v3223_v8, %v1937_v18  ;;  %v1940_v26 = vadd.f32 %v3114_v20, %v3807_v32 }
 0x1c3   : > { %v2101_v27 = vadd.f32 %v3226_v25, %v1940_v26  ;;  %v3115_v28 = vpop.f32.mrb[100].mxu0  ;;  %v2176_v31 = vmax.f32 %v2098_v13, 0.0 }
 0x1c4   : > { %v3227_v35 = vpop.f32.mrb[100].mxu1  ;;  %v3116_v29 = vpop.f32.mrb[101].mxu0 }
 0x1c5   : > { %v2177_v34 = vmax.f32 %v2101_v27, 0.0  ;;  %v3117_v40 = vadd.f32 %v3116_v29, %v3115_v28  ;;  %v3228_v63 = vpop.f32.mrb[101].mxu1  ;;  %v3118_v39 = vpop.f32.mrb[102].mxu0 }
 0x1c6   : > { %v3229_v12 = vadd.f32 %v3228_v63, %v3227_v35  ;;  %v3230_v42 = vpop.f32.mrb[102].mxu1  ;;  %v3119_v30 = vpop.f32.mrb[103].mxu0 }
 0x1c7   : > { %v2769_v43 = vpack.c.bf16 %v2177_v34, %v2176_v31  ;;  %v1945_v44 = vadd.f32 %v3117_v40, %v3810_v51  ;;  %v3120_v36 = vadd.f32 %v3119_v30, %v3118_v39  ;;  %v3231_v1 = vpop.f32.mrb[103].mxu1 }
 0x1c8   : > { %v3232_v45 = vadd.f32 %v3231_v1, %v3230_v42 }
 0x1c9   : > { %2813 = vst [vmem:[%s3857_s17 + $0x40] sm:$0xff] %v2769_v43   ;;  %v2106_v32 = vadd.f32 %v3229_v12, %v1945_v44  ;;  %v1948_v16 = vadd.f32 %v3120_v36, %v3813_v54 }
 0x1cb   : > { %v2109_v46 = vadd.f32 %v3232_v45, %v1948_v16  ;;  %v3121_v48 = vpop.f32.mrb[104].mxu0  ;;  %v2178_v55 = vmax.f32 %v2106_v32, 0.0 }
 0x1cc   : > { %v3233_v50 = vpop.f32.mrb[104].mxu1  ;;  %v3122_v53 = vpop.f32.mrb[105].mxu0 }
 0x1cd   : > { %v2179_v57 = vmax.f32 %v2109_v46, 0.0  ;;  %v3123_v59 = vadd.f32 %v3122_v53, %v3121_v48  ;;  %v3234_v61 = vpop.f32.mrb[105].mxu1  ;;  %v3124_v0 = vpop.f32.mrb[106].mxu0 }
 0x1ce   : > { %v3235_v52 = vadd.f32 %v3234_v61, %v3233_v50  ;;  %v3236_v58 = vpop.f32.mrb[106].mxu1  ;;  %v3125_v51 = vpop.f32.mrb[107].mxu0 }
 0x1cf   : > { %v2774_v2 = vpack.c.bf16 %v2179_v57, %v2178_v55  ;;  %v1953_v19 = vadd.f32 %v3123_v59, %v3816_v9  ;;  %v3126_v3 = vadd.f32 %v3125_v51, %v3124_v0  ;;  %v3237_v56 = vpop.f32.mrb[107].mxu1 }
 0x1d0   : > { %v3238_v37 = vadd.f32 %v3237_v56, %v3236_v58 }
 0x1d1   : > { %2814 = vst [vmem:[%s3857_s17 + $0x48] sm:$0xff] %v2774_v2   ;;  %v2114_v54 = vadd.f32 %v3235_v52, %v1953_v19  ;;  %v1956_v4 = vadd.f32 %v3126_v3, %v3819_v14 }
 0x1d3   : > { %v2117_v5 = vadd.f32 %v3238_v37, %v1956_v4  ;;  %v3127_v21 = vpop.f32.mrb[108].mxu0  ;;  %v2180_v8 = vmax.f32 %v2114_v54, 0.0 }
 0x1d4   : > { %v3239_v6 = vpop.f32.mrb[108].mxu1  ;;  %v3128_v7 = vpop.f32.mrb[109].mxu0 }
 0x1d5   : > { %v2181_v41 = vmax.f32 %v2117_v5, 0.0  ;;  %v3129_v10 = vadd.f32 %v3128_v7, %v3127_v21  ;;  %v3240_v15 = vpop.f32.mrb[109].mxu1  ;;  %v3130_v18 = vpop.f32.mrb[110].mxu0 }
 0x1d6   : > { %v3241_v20 = vadd.f32 %v3240_v15, %v3239_v6  ;;  %v3242_v23 = vpop.f32.mrb[110].mxu1  ;;  %v3131_v9 = vpop.f32.mrb[111].mxu0 }
 0x1d7   : > { %v2779_v25 = vpack.c.bf16 %v2181_v41, %v2180_v8  ;;  %v1961_v13 = vadd.f32 %v3129_v10, %v3822_v33  ;;  %v3132_v26 = vadd.f32 %v3131_v9, %v3130_v18  ;;  %v3243_v27 = vpop.f32.mrb[111].mxu1 }
 0x1d8   : > { %v3244_v28 = vadd.f32 %v3243_v27, %v3242_v23 }
 0x1d9   : > { %2815 = vst [vmem:[%s3857_s17 + $0x50] sm:$0xff] %v2779_v25   ;;  %v2122_v14 = vadd.f32 %v3241_v20, %v1961_v13  ;;  %v1964_v35 = vadd.f32 %v3132_v26, %v3825_v38 }
 0x1db   : > { %v2125_v29 = vadd.f32 %v3244_v28, %v1964_v35  ;;  %v3133_v31 = vpop.f32.mrb[112].mxu0  ;;  %v2182_v63 = vmax.f32 %v2122_v14, 0.0 }
 0x1dc   : > { %v3245_v34 = vpop.f32.mrb[112].mxu1  ;;  %v3134_v40 = vpop.f32.mrb[113].mxu0 }
 0x1dd   : > { %v2183_v39 = vmax.f32 %v2125_v29, 0.0  ;;  %v3135_v12 = vadd.f32 %v3134_v40, %v3133_v31  ;;  %v3246_v42 = vpop.f32.mrb[113].mxu1  ;;  %v3136_v30 = vpop.f32.mrb[114].mxu0 }
 0x1de   : > { %v3247_v43 = vadd.f32 %v3246_v42, %v3245_v34  ;;  %v3248_v44 = vpop.f32.mrb[114].mxu1  ;;  %v3137_v33 = vpop.f32.mrb[115].mxu0 }
 0x1df   : > { %v2784_v36 = vpack.c.bf16 %v2183_v39, %v2182_v63  ;;  %v1969_v1 = vadd.f32 %v3135_v12, %v3828_v60  ;;  %v3138_v45 = vadd.f32 %v3137_v33, %v3136_v30  ;;  %v3249_v32 = vpop.f32.mrb[115].mxu1 }
 0x1e0   : > { %v3250_v16 = vadd.f32 %v3249_v32, %v3248_v44 }
 0x1e1   : > { %2816 = vst [vmem:[%s3857_s17 + $0x58] sm:$0xff] %v2784_v36   ;;  %v2130_v38 = vadd.f32 %v3247_v43, %v1969_v1  ;;  %v1972_v46 = vadd.f32 %v3138_v45, %v3831_v62 }
 0x1e3   : > { %v2133_v48 = vadd.f32 %v3250_v16, %v1972_v46  ;;  %v3139_v50 = vpop.f32.mrb[116].mxu0  ;;  %v2184_v57 = vmax.f32 %v2130_v38, 0.0 }
 0x1e4   : > { %v3251_v53 = vpop.f32.mrb[116].mxu1  ;;  %v3140_v55 = vpop.f32.mrb[117].mxu0 }
 0x1e5   : > { %v2185_v59 = vmax.f32 %v2133_v48, 0.0  ;;  %v3141_v61 = vadd.f32 %v3140_v55, %v3139_v50  ;;  %v3252_v0 = vpop.f32.mrb[117].mxu1  ;;  %v3142_v52 = vpop.f32.mrb[118].mxu0 }
 0x1e6   : > { %v3253_v58 = vadd.f32 %v3252_v0, %v3251_v53  ;;  %v3254_v51 = vpop.f32.mrb[118].mxu1  ;;  %v3143_v60 = vpop.f32.mrb[119].mxu0 }
 0x1e7   : > { %v2789_v2 = vpack.c.bf16 %v2185_v59, %v2184_v57  ;;  %v1977_v19 = vadd.f32 %v3141_v61, %v3834_v22  ;;  %v3144_v3 = vadd.f32 %v3143_v60, %v3142_v52  ;;  %v3255_v56 = vpop.f32.mrb[119].mxu1 }
 0x1e8   : > { %v3256_v37 = vadd.f32 %v3255_v56, %v3254_v51 }
 0x1e9   : > { %2817 = vst [vmem:[%s3857_s17 + $0x60] sm:$0xff] %v2789_v2   ;;  %v2138_v62 = vadd.f32 %v3253_v58, %v1977_v19  ;;  %v1980_v54 = vadd.f32 %v3144_v3, %v3837_v24 }
 0x1eb   : > { %v2141_v4 = vadd.f32 %v3256_v37, %v1980_v54  ;;  %v3145_v5 = vpop.f32.mrb[120].mxu0  ;;  %v2186_v7 = vmax.f32 %v2138_v62, 0.0 }
 0x1ec   : > { %v3257_v21 = vpop.f32.mrb[120].mxu1  ;;  %v3146_v6 = vpop.f32.mrb[121].mxu0 }
 0x1ed   : > { %v2187_v8 = vmax.f32 %v2141_v4, 0.0  ;;  %v3147_v41 = vadd.f32 %v3146_v6, %v3145_v5  ;;  %v3258_v10 = vpop.f32.mrb[121].mxu1  ;;  %v3148_v15 = vpop.f32.mrb[122].mxu0 }
 0x1ee   : > { %v3259_v18 = vadd.f32 %v3258_v10, %v3257_v21  ;;  %v3260_v20 = vpop.f32.mrb[122].mxu1  ;;  %v3149_v22 = vpop.f32.mrb[123].mxu0 }
 0x1ef   : > { %v2794_v23 = vpack.c.bf16 %v2187_v8, %v2186_v7  ;;  %v1985_v9 = vadd.f32 %v3147_v41, %v3840_v47  ;;  %v3150_v25 = vadd.f32 %v3149_v22, %v3148_v15  ;;  %v3261_v13 = vpop.f32.mrb[123].mxu1 }
 0x1f0   : > { %v3262_v26 = vadd.f32 %v3261_v13, %v3260_v20 }
 0x1f1   : > { %2818 = vst [vmem:[%s3857_s17 + $0x68] sm:$0xff] %v2794_v23   ;;  %v2146_v24 = vadd.f32 %v3259_v18, %v1985_v9  ;;  %v1988_v27 = vadd.f32 %v3150_v25, %v3843_v49 }
 0x1f3   : > { %v2149_v28 = vadd.f32 %v3262_v26, %v1988_v27  ;;  %v3151_v14 = vpop.f32.mrb[124].mxu0  ;;  %v2188_v31 = vmax.f32 %v2146_v24, 0.0 }
 0x1f4   : > { %v3263_v35 = vpop.f32.mrb[124].mxu1  ;;  %v3152_v29 = vpop.f32.mrb[125].mxu0 }
 0x1f5   : > { %v2189_v34 = vmax.f32 %v2149_v28, 0.0  ;;  %v3153_v40 = vadd.f32 %v3152_v29, %v3151_v14  ;;  %v3264_v63 = vpop.f32.mrb[125].mxu1  ;;  %v3154_v39 = vpop.f32.mrb[126].mxu0 }
 0x1f6   : > { %v3265_v12 = vadd.f32 %v3264_v63, %v3263_v35  ;;  %v3266_v47 = vpop.f32.mrb[126].mxu1  ;;  %v3155_v42 = vpop.f32.mrb[127].mxu0 }
 0x1f7   : > { %v2799_v30 = vpack.c.bf16 %v2189_v34, %v2188_v31  ;;  %v1993_v43 = vadd.f32 %v3153_v40, %v3846_v11  ;;  %v3156_v44 = vadd.f32 %v3155_v42, %v3154_v39  ;;  %v3267_v33 = vpop.f32.mrb[127].mxu1 }
 0x1f8   : > { %v3268_v49 = vadd.f32 %v3267_v33, %v3266_v47 }
 0x1f9   : > { %2819 = vst [vmem:[%s3857_s17 + $0x70] sm:$0xff] %v2799_v30   ;;  %v2154_v36 = vadd.f32 %v3265_v12, %v1993_v43  ;;  %v1996_v1 = vadd.f32 %v3156_v44, %v3849_v17 }
 0x1fb   : > { %v2157_v45 = vadd.f32 %v3268_v49, %v1996_v1  ;;  %v2190_v32 = vmax.f32 %v2154_v36, 0.0 }
 0x1fd   : > { %v2191_v16 = vmax.f32 %v2157_v45, 0.0 }
 0x1ff   : > { %v2804_v38 = vpack.c.bf16 %v2191_v16, %v2190_v32 }
 0x201   : > { %2820 = vst [vmem:[%s3857_s17 + $0x78] sm:$0xff] %v2804_v38  }
 0x202 PF: > { %s13_s14 = sadd.s32 1, %s3379_s14   ;;  %s3918_s12 = smov %s3375_s13 }
 0x203   : > { %p10_p5 = scmp.ge.s32.totalorder %s13_s14, 4   ;;  %s3919_s13 = smov %s3921_s15 }
 0x205   :  { %12 = sbr.rel (!%p10_p5) target bundleno = 2 (0x2), region = 68 }

// kernel: discriminator_forward.7
= control target key start
LH: loop header
LB: loop body
LE: loop exit
PB: predicated region body
PF: predicated region fallthrough
CT: control target
= control target key end

     0   :  { %s3875_s12 = smov 0   ;;  %s3877_s13 = smov 0   ;;  %s4830_s0 = inlined_call_operand.vmem [shape: bf16[128,2048], index: 0, kind: input, shape index: {}]   ;;  %s4831_s1 = inlined_call_operand.vmem [shape: bf16[2048,256], index: 1, kind: input, shape index: {}]   ;;  %s4832_s2 = inlined_call_operand.vmem [shape: f32[1,256], index: 2, kind: input, shape index: {}]   ;;  %s4833_s3 = inlined_call_operand.vmem [shape: bf16[128,256], index: 3, kind: output, shape index: {}]  }
   0x1   :  { %s3879_s14 = smov 0  }
   0x2 LB: > { %s25_s15 = sadd.s32 1, %s3849_s13  ;;  %p2948_p0 = scmp.ge.s32.totalorder %s3853_s14, 1  ;;  %s3853_s14 = sphi %s3879_s14, %s13_s14   ;;  %s3849_s13 = sphi %s3877_s13, %s4835_s13   ;;  %s3845_s12 = sphi %s3875_s12, %s4834_s12  }
   0x3   : > { %p27_p1 = scmp.ge.s32.totalorder %s25_s15, 2  ;;  %p174_p2 = scmp.lt.s32.totalorder %s3853_s14, 3 }
   0x5   : > { %s4837_s15 = smov (%p27_p1, %s25_s15), 0  ;;  %p175_p3 = pnand %p2948_p0, %p174_p2 }
   0x6   : > { %v3447_v0 = vld [vmem:[%s4831_s1 + $0x4] ss:$8 sps:$4 sm:$0xff] (!%p175_p3)   ;;  %v3451_v2 = vld [vmem:[%s4831_s1] ss:$8 sps:$4 sm:$0xff] (!%p175_p3)   ;;  %v3453_v4 = vld [vmem:[%s4831_s1 + $0x14] ss:$8 sps:$4 sm:$0xff] (!%p175_p3)  }
   0x7   : > { %178 = sbr.rel (%p175_p3) target bundleno = 511 (0x1ff), region = 32  ;;  %v3449_v1 = vld [vmem:[%s4831_s1 + $0x404] ss:$8 sps:$4 sm:$0xff] (!%p175_p3)   ;;  %2175 = vmatprep.subr.bf16.mxu1 (!%p175_p3), %v3447_v0  ;;  %v3452_v3 = vld [vmem:[%s4831_s1 + $0x400] ss:$8 sps:$4 sm:$0xff] (!%p175_p3)   ;;  %s2949_s30 = sshll.u32 (!%p175_p3), %s3845_s12, 3 }
   0x8   : > { %2467 = vmatprep.subr.bf16.mxu0 (!%p175_p3), %v3449_v1  ;;  %2176 = vmatpush1.bf16.msra.mxu1 (!%p175_p3), %v3451_v2  ;;  %v3455_v5 = vld [vmem:[%s4831_s1 + $0x414] ss:$8 sps:$4 sm:$0xff] (!%p175_p3)   ;;  %v3457_v6 = vld [vmem:[%s4831_s1 + $0x10] ss:$8 sps:$4 sm:$0xff] (!%p175_p3)   ;;  %v3459_v8 = vld [vmem:[%s4831_s1 + $0x24] ss:$8 sps:$4 sm:$0xff] (!%p175_p3)  }
   0x9   : > { %2468 = vmatpush1.bf16.msra.mxu0 (!%p175_p3), %v3452_v3  ;;  %2177 = vmatprep.subr.bf16.mxu1 (!%p175_p3), %v3453_v4  ;;  %v3458_v7 = vld [vmem:[%s4831_s1 + $0x410] ss:$8 sps:$4 sm:$0xff] (!%p175_p3)   ;;  %v3461_v9 = vld [vmem:[%s4831_s1 + $0x424] ss:$8 sps:$4 sm:$0xff] (!%p175_p3)   ;;  %v3463_v10 = vld [vmem:[%s4831_s1 + $0x20] ss:$8 sps:$4 sm:$0xff] (!%p175_p3)  }
   0xa   : > { %2469 = vmatprep.subr.bf16.mxu0 (!%p175_p3), %v3455_v5  ;;  %v3464_v11 = vld [vmem:[%s4831_s1 + $0x420] ss:$8 sps:$4 sm:$0xff] (!%p175_p3)   ;;  %v3465_v12 = vld [vmem:[%s4831_s1 + $0x34] ss:$8 sps:$4 sm:$0xff] (!%p175_p3)   ;;  %v3469_v14 = vld [vmem:[%s4831_s1 + $0x30] ss:$8 sps:$4 sm:$0xff] (!%p175_p3)  }
   0xb   : > { %v3467_v13 = vld [vmem:[%s4831_s1 + $0x434] ss:$8 sps:$4 sm:$0xff] (!%p175_p3)   ;;  %v3470_v15 = vld [vmem:[%s4831_s1 + $0x430] ss:$8 sps:$4 sm:$0xff] (!%p175_p3)   ;;  %v3471_v16 = vld [vmem:[%s4831_s1 + $0x44] ss:$8 sps:$4 sm:$0xff] (!%p175_p3)  }
   0xc   : > { %2178 = vmatpush1.bf16.msra.mxu1 (!%p175_p3), %v3457_v6  ;;  %v3473_v17 = vld [vmem:[%s4831_s1 + $0x444] ss:$8 sps:$4 sm:$0xff] (!%p175_p3)   ;;  %v3475_v18 = vld [vmem:[%s4831_s1 + $0x40] ss:$8 sps:$4 sm:$0xff] (!%p175_p3)   ;;  %v3477_v20 = vld [vmem:[%s4831_s1 + $0x54] ss:$8 sps:$4 sm:$0xff] (!%p175_p3)  }
   0xd   : > { %2470 = vmatpush1.bf16.msra.mxu0 (!%p175_p3), %v3458_v7  ;;  %2179 = vmatprep.subr.bf16.mxu1 (!%p175_p3), %v3459_v8  ;;  %v3476_v19 = vld [vmem:[%s4831_s1 + $0x440] ss:$8 sps:$4 sm:$0xff] (!%p175_p3)   ;;  %v3479_v21 = vld [vmem:[%s4831_s1 + $0x454] ss:$8 sps:$4 sm:$0xff] (!%p175_p3)   ;;  %v3481_v22 = vld [vmem:[%s4831_s1 + $0x50] ss:$8 sps:$4 sm:$0xff] (!%p175_p3)  }
   0xe   : > { %2471 = vmatprep.subr.bf16.mxu0 %v3461_v9  ;;  %v3482_v23 = vld [vmem:[%s4831_s1 + $0x450] ss:$8 sps:$4 sm:$0xff]   ;;  %v3483_v24 = vld [vmem:[%s4831_s1 + $0x64] ss:$8 sps:$4 sm:$0xff]   ;;  %v3487_v26 = vld [vmem:[%s4831_s1 + $0x60] ss:$8 sps:$4 sm:$0xff]  }
   0xf   : > { %v3485_v25 = vld [vmem:[%s4831_s1 + $0x464] ss:$8 sps:$4 sm:$0xff]   ;;  %v3488_v27 = vld [vmem:[%s4831_s1 + $0x460] ss:$8 sps:$4 sm:$0xff]   ;;  %v3489_v28 = vld [vmem:[%s4831_s1 + $0x74] ss:$8 sps:$4 sm:$0xff]  }
  0x10   : > { %2180 = vmatpush1.bf16.msra.mxu1 %v3463_v10  ;;  %v3491_v29 = vld [vmem:[%s4831_s1 + $0x474] ss:$8 sps:$4 sm:$0xff]   ;;  %v3493_v30 = vld [vmem:[%s4831_s1 + $0x70] ss:$8 sps:$4 sm:$0xff]   ;;  %v3495_v32 = vld [vmem:[%s4831_s1 + $0x84] ss:$8 sps:$4 sm:$0xff]  }
  0x11   : > { %2472 = vmatpush1.bf16.msra.mxu0 %v3464_v11  ;;  %2181 = vmatprep.subr.bf16.mxu1 %v3465_v12  ;;  %v3494_v31 = vld [vmem:[%s4831_s1 + $0x470] ss:$8 sps:$4 sm:$0xff]   ;;  %p214_p4 = scmp.lt.s32.totalorder %s2949_s30, 15  ;;  %v3497_v33 = vld [vmem:[%s4831_s1 + $0x484] ss:$8 sps:$4 sm:$0xff]  }
  0x12   : > { %2473 = vmatprep.subr.bf16.mxu0 %v3467_v13  ;;  %v3499_v34 = vld [vmem:[%s4831_s1 + $0x80] ss:$8 sps:$4 sm:$0xff]   ;;  %v3501_v36 = vld [vmem:[%s4831_s1 + $0x94] ss:$8 sps:$4 sm:$0xff]   ;;  %v3505_v38 = vld [vmem:[%s4831_s1 + $0x90] ss:$8 sps:$4 sm:$0xff]  }
  0x13   : > { %v3500_v35 = vld [vmem:[%s4831_s1 + $0x480] ss:$8 sps:$4 sm:$0xff]   ;;  %s4839_s30 = smov (!%p214_p4, %s2949_s30), 15  ;;  %v3503_v37 = vld [vmem:[%s4831_s1 + $0x494] ss:$8 sps:$4 sm:$0xff]  }
  0x14   : > { %2182 = vmatpush1.bf16.msra.mxu1 %v3469_v14  ;;  %v3506_v39 = vld [vmem:[%s4831_s1 + $0x490] ss:$8 sps:$4 sm:$0xff]   ;;  %v3507_v40 = vld [vmem:[%s4831_s1 + $0xa4] ss:$8 sps:$4 sm:$0xff]   ;;  %s3285_s29 = sshll.u32 %s4839_s30, 6 }
  0x15   : > { %2474 = vmatpush1.bf16.msra.mxu0 %v3470_v15  ;;  %2183 = vmatprep.subr.bf16.mxu1 %v3471_v16  ;;  %v3509_v41 = vld [vmem:[%s4831_s1 + $0x4a4] ss:$8 sps:$4 sm:$0xff]   ;;  %v3511_v42 = vld [vmem:[%s4831_s1 + $0xa0] ss:$8 sps:$4 sm:$0xff]   ;;  %s4034_s12 = scalar_lea.vmem %s4830_s0, %s3285_s29  ;;  %v3513_v44 = vld [vmem:[%s4831_s1 + $0xb4] ss:$8 sps:$4 sm:$0xff]  }
  0x16   : > { %2475 = vmatprep.subr.bf16.mxu0 %v3473_v17  ;;  %v3512_v43 = vld [vmem:[%s4831_s1 + $0x4a0] ss:$8 sps:$4 sm:$0xff]   ;;  %v3515_v45 = vld [vmem:[%s4831_s1 + $0x4b4] ss:$8 sps:$4 sm:$0xff]   ;;  %v3517_v46 = vld [vmem:[%s4831_s1 + $0xb0] ss:$8 sps:$4 sm:$0xff]  }
  0x17   : > { %v3518_v47 = vld [vmem:[%s4831_s1 + $0x4b0] ss:$8 sps:$4 sm:$0xff]   ;;  %v243_v48 = vld [vmem:[%s4034_s12] sm:$0xff]  ;;  %v3525_v58 = vld [vmem:[%s4831_s1 + $0xd4] ss:$8 sps:$4 sm:$0xff]  }
  0x18   : > { %2184 = vmatpush1.bf16.msra.mxu1 %v3475_v18  ;;  %v251_v49 = vld [vmem:[%s4034_s12 + $0x40] sm:$0xff]  ;;  %v3527_v59 = vld [vmem:[%s4831_s1 + $0x4d4] ss:$8 sps:$4 sm:$0xff]   ;;  %v3529_v60 = vld [vmem:[%s4831_s1 + $0xd0] ss:$8 sps:$4 sm:$0xff]  }
  0x19   : > { %2476 = vmatpush1.bf16.msra.mxu0 %v3476_v19  ;;  %2185 = vmatprep.subr.bf16.mxu1 %v3477_v20  ;;  %v3519_v50 = vld [vmem:[%s4831_s1 + $0xc4] ss:$8 sps:$4 sm:$0xff]   ;;  %v2956_v52 = vcombine.high %v243_v48, %v251_v49  ;;  %v3523_v56 = vld [vmem:[%s4831_s1 + $0xc0] ss:$8 sps:$4 sm:$0xff]   ;;  %v3530_v61 = vld [vmem:[%s4831_s1 + $0x4d0] ss:$8 sps:$4 sm:$0xff]   ;;  %v2955_v8 = vcombine.low %v243_v48, %v251_v49 }
  0x1a   : > { %2477 = vmatprep.subr.bf16.mxu0 %v3479_v21  ;;  %v3521_v51 = vld [vmem:[%s4831_s1 + $0x4c4] ss:$8 sps:$4 sm:$0xff]   ;;  %v3524_v57 = vld [vmem:[%s4831_s1 + $0x4c0] ss:$8 sps:$4 sm:$0xff]   ;;  %v3537_v2 = vld [vmem:[%s4831_s1 + $0xf4] ss:$8 sps:$4 sm:$0xff]  }
  0x1b   : > { %v247_v53 = vld [vmem:[%s4034_s12 + $0x20] sm:$0xff]  ;;  %2207 = vmatprep.mubr.bf16.mxu1 %v2956_v52  ;;  %v3539_v3 = vld [vmem:[%s4831_s1 + $0x4f4] ss:$8 sps:$4 sm:$0xff]   ;;  %v3541_v4 = vld [vmem:[%s4831_s1 + $0xf0] ss:$8 sps:$4 sm:$0xff]  }
  0x1c   : > { %2186 = vmatpush1.bf16.msra.mxu1 %v3481_v22  ;;  %v255_v54 = vld [vmem:[%s4034_s12 + $0x60] sm:$0xff]  ;;  %v3542_v5 = vld [vmem:[%s4831_s1 + $0x4f0] ss:$8 sps:$4 sm:$0xff]   ;;  %v3551_v12 = vld [vmem:[%s4831_s1 + $0x114] ss:$8 sps:$4 sm:$0xff]  }
  0x1d   : > { %2478 = vmatpush1.bf16.msra.mxu0 %v3482_v23  ;;  %2187 = vmatprep.subr.bf16.mxu1 %v3483_v24  ;;  %v2964_v55 = vcombine.high %v247_v53, %v255_v54  ;;  %v3531_v62 = vld [vmem:[%s4831_s1 + $0xe4] ss:$8 sps:$4 sm:$0xff]   ;;  %v3535_v0 = vld [vmem:[%s4831_s1 + $0xe0] ss:$8 sps:$4 sm:$0xff]   ;;  %v2963_v10 = vcombine.low %v247_v53, %v255_v54  ;;  %v3554_v13 = vld [vmem:[%s4831_s1 + $0x514] ss:$8 sps:$4 sm:$0xff]  }
  0x1e   : > { %2479 = vmatprep.subr.bf16.mxu0 %v3485_v25  ;;  %v3533_v63 = vld [vmem:[%s4831_s1 + $0x4e4] ss:$8 sps:$4 sm:$0xff]   ;;  %v3536_v1 = vld [vmem:[%s4831_s1 + $0x4e0] ss:$8 sps:$4 sm:$0xff]   ;;  %v3549_v14 = vld [vmem:[%s4831_s1 + $0x110] ss:$8 sps:$4 sm:$0xff]  }
  0x1f   : > { %2499 = vmatprep.mubr.bf16.mxu0 %v2964_v55  ;;  %v3545_v6 = vld [vmem:[%s4831_s1 + $0x104] ss:$8 sps:$4 sm:$0xff]   ;;  %v3543_v9 = vld [vmem:[%s4831_s1 + $0x100] ss:$8 sps:$4 sm:$0xff]   ;;  %v3552_v15 = vld [vmem:[%s4831_s1 + $0x510] ss:$8 sps:$4 sm:$0xff]  }
  0x20   : > { %2188 = vmatpush1.bf16.msra.mxu1 %v3487_v26  ;;  %v3548_v7 = vld [vmem:[%s4831_s1 + $0x504] ss:$8 sps:$4 sm:$0xff]   ;;  %v3546_v11 = vld [vmem:[%s4831_s1 + $0x500] ss:$8 sps:$4 sm:$0xff]   ;;  %v3563_v22 = vld [vmem:[%s4831_s1 + $0x134] ss:$8 sps:$4 sm:$0xff]  }
  0x21   : > { %2480 = vmatpush1.bf16.msra.mxu0 %v3488_v27  ;;  %2189 = vmatprep.subr.bf16.mxu1 %v3489_v28  ;;  %v3557_v16 = vld [vmem:[%s4831_s1 + $0x124] ss:$8 sps:$4 sm:$0xff]   ;;  %v3555_v18 = vld [vmem:[%s4831_s1 + $0x120] ss:$8 sps:$4 sm:$0xff]   ;;  %v3566_v23 = vld [vmem:[%s4831_s1 + $0x534] ss:$8 sps:$4 sm:$0xff]  }
  0x22   : > { %2481 = vmatprep.subr.bf16.mxu0 %v3491_v29  ;;  %v3560_v17 = vld [vmem:[%s4831_s1 + $0x524] ss:$8 sps:$4 sm:$0xff]   ;;  %v3558_v19 = vld [vmem:[%s4831_s1 + $0x520] ss:$8 sps:$4 sm:$0xff]   ;;  %v3561_v29 = vld [vmem:[%s4831_s1 + $0x130] ss:$8 sps:$4 sm:$0xff]  }
  0x23   : > { %v259_v20 = vld [vmem:[%s4034_s12 + $0x80] sm:$0xff] }
  0x24   : > { %2190 = vmatpush1.bf16.msra.mxu1 %v3493_v30  ;;  %v267_v21 = vld [vmem:[%s4034_s12 + $0xc0] sm:$0xff]  ;;  %v3564_v30 = vld [vmem:[%s4831_s1 + $0x530] ss:$8 sps:$4 sm:$0xff]  }
  0x25   : > { %2482 = vmatpush1.bf16.msra.mxu0 %v3494_v31  ;;  %2191 = vmatprep.subr.bf16.mxu1 %v3495_v32  ;;  %v2972_v24 = vcombine.high %v259_v20, %v267_v21  ;;  %v263_v25 = vld [vmem:[%s4034_s12 + $0xa0] sm:$0xff]  ;;  %v2971_v26 = vcombine.low %v259_v20, %v267_v21  ;;  %v3609_v20 = vld [vmem:[%s4831_s1 + $0x1b0] ss:$8 sps:$4 sm:$0xff]  }
  0x26   : > { %2483 = vmatprep.subr.bf16.mxu0 %v3497_v33  ;;  %v271_v27 = vld [vmem:[%s4034_s12 + $0xe0] sm:$0xff]  ;;  %v3612_v21 = vld [vmem:[%s4831_s1 + $0x5b0] ss:$8 sps:$4 sm:$0xff]  }
  0x27   : > { %v2980_v28 = vcombine.high %v263_v25, %v271_v27  ;;  %v2979_v31 = vcombine.low %v263_v25, %v271_v27  ;;  %v3569_v32 = vld [vmem:[%s4831_s1 + $0x144] ss:$8 sps:$4 sm:$0xff]   ;;  %v3579_v55 = vld [vmem:[%s4831_s1 + $0x160] ss:$8 sps:$4 sm:$0xff]   ;;  %v3626_v27 = vld [vmem:[%s4831_s1 + $0x5d4] ss:$8 sps:$4 sm:$0xff]  }
  0x28   : > { %2192 = vmatpush1.bf16.msra.mxu1 %v3499_v34  ;;  %v3572_v33 = vld [vmem:[%s4831_s1 + $0x544] ss:$8 sps:$4 sm:$0xff]   ;;  %v3618_v25 = vld [vmem:[%s4831_s1 + $0x5c0] ss:$8 sps:$4 sm:$0xff]  }
  0x29   : > { %2484 = vmatpush1.bf16.msra.mxu0 %v3500_v35  ;;  %2193 = vmatprep.subr.bf16.mxu1 %v3501_v36  ;;  %v275_v34 = vld [vmem:[%s4034_s12 + $0x100] sm:$0xff] }
  0x2a   : > { %2485 = vmatprep.subr.bf16.mxu0 %v3503_v37  ;;  %v283_v35 = vld [vmem:[%s4034_s12 + $0x140] sm:$0xff] }
  0x2b   : > { %v3567_v36 = vld [vmem:[%s4831_s1 + $0x140] ss:$8 sps:$4 sm:$0xff]   ;;  %v2988_v37 = vcombine.high %v275_v34, %v283_v35 }
  0x2c   : > { %2194 = vmatpush1.bf16.msra.mxu1 %v3505_v38  ;;  %v3570_v38 = vld [vmem:[%s4831_s1 + $0x540] ss:$8 sps:$4 sm:$0xff]  }
  0x2d   : > { %2486 = vmatpush1.bf16.msra.mxu0 %v3506_v39  ;;  %2195 = vmatprep.subr.bf16.mxu1 %v3507_v40  ;;  %v279_v39 = vld [vmem:[%s4034_s12 + $0x120] sm:$0xff] }
  0x2e   : > { %2487 = vmatprep.subr.bf16.mxu0 %v3509_v41  ;;  %v287_v40 = vld [vmem:[%s4034_s12 + $0x160] sm:$0xff]  ;;  %v2987_v41 = vcombine.low %v275_v34, %v283_v35  ;;  %v3635_v34 = vld [vmem:[%s4831_s1 + $0x1f4] ss:$8 sps:$4 sm:$0xff]  }
  0x2f   : > { %v291_v48 = vld [vmem:[%s4034_s12 + $0x180] sm:$0xff]  ;;  %v3638_v35 = vld [vmem:[%s4831_s1 + $0x5f4] ss:$8 sps:$4 sm:$0xff]  }
  0x30   : > { %2196 = vmatpush1.bf16.msra.mxu1 %v3511_v42  ;;  %v3575_v42 = vld [vmem:[%s4831_s1 + $0x154] ss:$8 sps:$4 sm:$0xff]   ;;  %v299_v49 = vld [vmem:[%s4034_s12 + $0x1c0] sm:$0xff] }
  0x31   : > { %2488 = vmatpush1.bf16.msra.mxu0 %v3512_v43  ;;  %2197 = vmatprep.subr.bf16.mxu1 %v3513_v44  ;;  %v2996_v43 = vcombine.high %v279_v39, %v287_v40  ;;  %v3578_v44 = vld [vmem:[%s4831_s1 + $0x554] ss:$8 sps:$4 sm:$0xff]   ;;  %v3004_v52 = vcombine.high %v291_v48, %v299_v49  ;;  %v295_v53 = vld [vmem:[%s4034_s12 + $0x1a0] sm:$0xff] }
  0x32   : > { %2489 = vmatprep.subr.bf16.mxu0 %v3515_v45  ;;  %v3573_v45 = vld [vmem:[%s4831_s1 + $0x150] ss:$8 sps:$4 sm:$0xff]   ;;  %v303_v54 = vld [vmem:[%s4034_s12 + $0x1e0] sm:$0xff] }
  0x34   : > { %2198 = vmatpush1.bf16.msra.mxu1 %v3517_v46  ;;  %v3576_v46 = vld [vmem:[%s4831_s1 + $0x550] ss:$8 sps:$4 sm:$0xff]  }
  0x35   : > { %2490 = vmatpush1.bf16.msra.mxu0 %v3518_v47  ;;  %2199 = vmatprep.subr.bf16.mxu1 %v3519_v50  ;;  %v2995_v47 = vcombine.low %v279_v39, %v287_v40  ;;  %v3581_v50 = vld [vmem:[%s4831_s1 + $0x164] ss:$8 sps:$4 sm:$0xff]   ;;  %v3639_v40 = vld [vmem:[%s4831_s1 + $0x200] ss:$8 sps:$4 sm:$0xff]  }
  0x36   : > { %2491 = vmatprep.subr.bf16.mxu0 %v3521_v51  ;;  %v3584_v51 = vld [vmem:[%s4831_s1 + $0x564] ss:$8 sps:$4 sm:$0xff]  }
  0x37   : > { %v3644_v39 = vld [vmem:[%s4831_s1 + $0x604] ss:$8 sps:$4 sm:$0xff]  }
  0x38   : > { %2200 = vmatpush1.bf16.msra.mxu1 %v3523_v56  ;;  %v3582_v56 = vld [vmem:[%s4831_s1 + $0x560] ss:$8 sps:$4 sm:$0xff]  }
  0x39   : > { %2492 = vmatpush1.bf16.msra.mxu0 %v3524_v57  ;;  %2201 = vmatprep.subr.bf16.mxu1 %v3525_v58  ;;  %v3012_v57 = vcombine.high %v295_v53, %v303_v54  ;;  %v3003_v58 = vcombine.low %v291_v48, %v299_v49  ;;  %v3647_v48 = vld [vmem:[%s4831_s1 + $0x214] ss:$8 sps:$4 sm:$0xff]  }
  0x3a   : > { %2493 = vmatprep.subr.bf16.mxu0 %v3527_v59  ;;  %v3587_v59 = vld [vmem:[%s4831_s1 + $0x174] ss:$8 sps:$4 sm:$0xff]  }
  0x3b   : > { %v3650_v49 = vld [vmem:[%s4831_s1 + $0x614] ss:$8 sps:$4 sm:$0xff]  }
  0x3c   : > { %2202 = vmatpush1.bf16.msra.mxu1 %v3529_v60  ;;  %v3590_v60 = vld [vmem:[%s4831_s1 + $0x574] ss:$8 sps:$4 sm:$0xff]  }
  0x3d   : > { %2494 = vmatpush1.bf16.msra.mxu0 %v3530_v61  ;;  %2203 = vmatprep.subr.bf16.mxu1 %v3531_v62  ;;  %v3585_v61 = vld [vmem:[%s4831_s1 + $0x170] ss:$8 sps:$4 sm:$0xff]  }
  0x3e   : > { %2495 = vmatprep.subr.bf16.mxu0 %v3533_v63  ;;  %v3588_v62 = vld [vmem:[%s4831_s1 + $0x570] ss:$8 sps:$4 sm:$0xff]   ;;  %v4209_v63 = vld [vmem:[%s4034_s12 + $0x8] sm:$0xff] }
  0x40   : > { %2204 = vmatpush1.bf16.msra.mxu1 %v3535_v0  ;;  %v3011_v0 = vcombine.low %v295_v53, %v303_v54  ;;  %v3648_v53 = vld [vmem:[%s4831_s1 + $0x610] ss:$8 sps:$4 sm:$0xff]   ;;  %v3653_v54 = vld [vmem:[%s4831_s1 + $0x224] ss:$8 sps:$4 sm:$0xff]  }
  0x41   : > { %2496 = vmatpush1.bf16.msra.mxu0 %v3536_v1  ;;  %2205 = vmatprep.subr.bf16.mxu1 %v3537_v2  ;;  %v4212_v1 = vld [vmem:[%s4034_s12 + $0x48] sm:$0xff] }
  0x42   : > { %2497 = vmatprep.subr.bf16.mxu0 %v3539_v3  ;;  %v3593_v2 = vld [vmem:[%s4831_s1 + $0x184] ss:$8 sps:$4 sm:$0xff]  }
  0x43   : > { %v3596_v3 = vld [vmem:[%s4831_s1 + $0x584] ss:$8 sps:$4 sm:$0xff]  }
  0x44   : > { %2206 = vmatpush1.bf16.msra.mxu1 %v3541_v4  ;;  %v2958_v4 = vcombine.high %v4209_v63, %v4212_v1 }
  0x45   : > { %2498 = vmatpush1.bf16.msra.mxu0 %v3542_v5  ;;  %2248 = vmatprep.subr.bf16.mxu1 %v3545_v6  ;;  %v4223_v5 = vld [vmem:[%s4034_s12 + $0x28] sm:$0xff] }
  0x46   : > { %2540 = vmatprep.subr.bf16.mxu0 %v3548_v7  ;;  %v4226_v6 = vld [vmem:[%s4034_s12 + $0x68] sm:$0xff] }
  0x47   : > { %2208 = vmatmul.mubr.bf16.vlgmr.msra.gmra.mrb[0].mxu1 %v2955_v8  ;;  %v2966_v7 = vcombine.high %v4223_v5, %v4226_v6  ;;  %v3591_v8 = vld [vmem:[%s4831_s1 + $0x180] ss:$8 sps:$4 sm:$0xff]  }
  0x48   : > { %2500 = vmatmul.mubr.bf16.vlgmr.msra.gmra.mrb[0].mxu0 %v2963_v10  ;;  %2249 = vmatpush1.bf16.msra.mxu1 %v3543_v9  ;;  %v3594_v9 = vld [vmem:[%s4831_s1 + $0x580] ss:$8 sps:$4 sm:$0xff]   ;;  %v3599_v10 = vld [vmem:[%s4831_s1 + $0x194] ss:$8 sps:$4 sm:$0xff]  }
  0x49   : > { %2541 = vmatpush1.bf16.msra.mxu0 %v3546_v11  ;;  %2250 = vmatprep.subr.bf16.mxu1 %v3551_v12  ;;  %v3602_v11 = vld [vmem:[%s4831_s1 + $0x594] ss:$8 sps:$4 sm:$0xff]   ;;  %v3597_v12 = vld [vmem:[%s4831_s1 + $0x190] ss:$8 sps:$4 sm:$0xff]  }
  0x4a   : > { %2542 = vmatprep.subr.bf16.mxu0 %v3554_v13  ;;  %2217 = vmatprep.mubr.bf16.mxu1 %v2972_v24  ;;  %v3600_v13 = vld [vmem:[%s4831_s1 + $0x590] ss:$8 sps:$4 sm:$0xff]   ;;  %v3615_v24 = vld [vmem:[%s4831_s1 + $0x1c0] ss:$8 sps:$4 sm:$0xff]  }
  0x4b   : > { %2509 = vmatprep.mubr.bf16.mxu0 %v2980_v28  ;;  %v3621_v28 = vld [vmem:[%s4831_s1 + $0x1d0] ss:$8 sps:$4 sm:$0xff]  }
  0x4c   : > { %2251 = vmatpush1.bf16.msra.mxu1 %v3549_v14  ;;  %v3605_v14 = vld [vmem:[%s4831_s1 + $0x1a4] ss:$8 sps:$4 sm:$0xff]  }
  0x4d   : > { %2543 = vmatpush1.bf16.msra.mxu0 %v3552_v15  ;;  %2252 = vmatprep.subr.bf16.mxu1 %v3557_v16  ;;  %v3608_v15 = vld [vmem:[%s4831_s1 + $0x5a4] ss:$8 sps:$4 sm:$0xff]   ;;  %v3603_v16 = vld [vmem:[%s4831_s1 + $0x1a0] ss:$8 sps:$4 sm:$0xff]  }
  0x4e   : > { %2544 = vmatprep.subr.bf16.mxu0 %v3560_v17  ;;  %v3606_v17 = vld [vmem:[%s4831_s1 + $0x5a0] ss:$8 sps:$4 sm:$0xff]  }
  0x4f   : > { %2218 = vmatmul.mubr.bf16.gmra.mrb[4].mxu1 %v2971_v26  ;;  %v3623_v26 = vld [vmem:[%s4831_s1 + $0x1d4] ss:$8 sps:$4 sm:$0xff]  }
  0x50   : > { %2253 = vmatpush1.bf16.msra.mxu1 %v3555_v18  ;;  %2510 = vmatmul.mubr.bf16.gmra.mrb[4].mxu0 %v2979_v31  ;;  %v3611_v18 = vld [vmem:[%s4831_s1 + $0x1b4] ss:$8 sps:$4 sm:$0xff]   ;;  %v3632_v31 = vld [vmem:[%s4831_s1 + $0x5e4] ss:$8 sps:$4 sm:$0xff]  }
  0x51   : > { %2545 = vmatpush1.bf16.msra.mxu0 %v3558_v19  ;;  %2254 = vmatprep.subr.bf16.mxu1 %v3563_v22  ;;  %v3614_v19 = vld [vmem:[%s4831_s1 + $0x5b4] ss:$8 sps:$4 sm:$0xff]   ;;  %v3617_v22 = vld [vmem:[%s4831_s1 + $0x1c4] ss:$8 sps:$4 sm:$0xff]  }
  0x52   : > { %2546 = vmatprep.subr.bf16.mxu0 %v3566_v23  ;;  %2227 = vmatprep.mubr.bf16.mxu1 %v2988_v37  ;;  %v3620_v23 = vld [vmem:[%s4831_s1 + $0x5c4] ss:$8 sps:$4 sm:$0xff]   ;;  %v3636_v37 = vld [vmem:[%s4831_s1 + $0x5f0] ss:$8 sps:$4 sm:$0xff]  }
  0x53   : > { %2519 = vmatprep.mubr.bf16.mxu0 %v2996_v43  ;;  %v2957_v43 = vcombine.low %v4209_v63, %v4212_v1  ;;  %v288_v63 = vld [vmem:[%s4034_s12 + $0x168] sm:$0xff]  ;;  %v3662_v1 = vld [vmem:[%s4831_s1 + $0x634] ss:$8 sps:$4 sm:$0xff]  }
  0x54   : > { %2255 = vmatpush1.bf16.msra.mxu1 %v3561_v29  ;;  %v3624_v29 = vld [vmem:[%s4831_s1 + $0x5d0] ss:$8 sps:$4 sm:$0xff]  }
  0x55   : > { %2547 = vmatpush1.bf16.msra.mxu0 %v3564_v30  ;;  %2256 = vmatprep.subr.bf16.mxu1 %v3569_v32  ;;  %v3629_v30 = vld [vmem:[%s4831_s1 + $0x1e4] ss:$8 sps:$4 sm:$0xff]   ;;  %v3627_v32 = vld [vmem:[%s4831_s1 + $0x1e0] ss:$8 sps:$4 sm:$0xff]  }
  0x56   : > { %2548 = vmatprep.subr.bf16.mxu0 %v3572_v33  ;;  %v3630_v33 = vld [vmem:[%s4831_s1 + $0x5e0] ss:$8 sps:$4 sm:$0xff]  }
  0x57   : > { %2228 = vmatmul.mubr.bf16.gmra.mrb[8].mxu1 %v2987_v41  ;;  %v3642_v41 = vld [vmem:[%s4831_s1 + $0x600] ss:$8 sps:$4 sm:$0xff]  }
  0x58   : > { %2257 = vmatpush1.bf16.msra.mxu1 %v3567_v36  ;;  %2520 = vmatmul.mubr.bf16.gmra.mrb[8].mxu0 %v2995_v47  ;;  %v3633_v36 = vld [vmem:[%s4831_s1 + $0x1f0] ss:$8 sps:$4 sm:$0xff]   ;;  %v272_v47 = vld [vmem:[%s4034_s12 + $0xe8] sm:$0xff] }
  0x59   : > { %2549 = vmatpush1.bf16.msra.mxu0 %v3570_v38  ;;  %2258 = vmatprep.subr.bf16.mxu1 %v3575_v42  ;;  %v3641_v38 = vld [vmem:[%s4831_s1 + $0x204] ss:$8 sps:$4 sm:$0xff]  }
  0x5a   : > { %2550 = vmatprep.subr.bf16.mxu0 %v3578_v44  ;;  %2237 = vmatprep.mubr.bf16.mxu1 %v3004_v52  ;;  %v260_v42 = vld [vmem:[%s4034_s12 + $0x88] sm:$0xff]  ;;  %v2965_v44 = vcombine.low %v4223_v5, %v4226_v6  ;;  %v3645_v52 = vld [vmem:[%s4831_s1 + $0x210] ss:$8 sps:$4 sm:$0xff]  }
  0x5b   : > { %2529 = vmatprep.mubr.bf16.mxu0 %v3012_v57  ;;  %v3654_v57 = vld [vmem:[%s4831_s1 + $0x620] ss:$8 sps:$4 sm:$0xff]   ;;  %v3660_v5 = vld [vmem:[%s4831_s1 + $0x630] ss:$8 sps:$4 sm:$0xff]   ;;  %v3665_v6 = vld [vmem:[%s4831_s1 + $0x244] ss:$8 sps:$4 sm:$0xff]  }
  0x5c   : > { %2259 = vmatpush1.bf16.msra.mxu1 %v3573_v45  ;;  %v268_v45 = vld [vmem:[%s4034_s12 + $0xc8] sm:$0xff] }
  0x5d   : > { %2551 = vmatpush1.bf16.msra.mxu0 %v3576_v46  ;;  %2260 = vmatprep.subr.bf16.mxu1 %v3581_v50  ;;  %v264_v46 = vld [vmem:[%s4034_s12 + $0xa8] sm:$0xff]  ;;  %v2974_v50 = vcombine.high %v260_v42, %v268_v45 }
  0x5e   : > { %2552 = vmatprep.subr.bf16.mxu0 %v3584_v51  ;;  %v2982_v51 = vcombine.high %v264_v46, %v272_v47 }
  0x5f   : > { %2238 = vmatmul.mubr.bf16.gmra.mrb[12].mxu1 %v3003_v58  ;;  %v276_v58 = vld [vmem:[%s4034_s12 + $0x108] sm:$0xff] }
  0x60   : > { %2261 = vmatpush1.bf16.msra.mxu1 %v3579_v55  ;;  %2280 = vmatprep.mubr.bf16.mxu1 %v2958_v4  ;;  %v3656_v55 = vld [vmem:[%s4831_s1 + $0x624] ss:$8 sps:$4 sm:$0xff]   ;;  %v3657_v4 = vld [vmem:[%s4831_s1 + $0x230] ss:$8 sps:$4 sm:$0xff]  }
  0x61   : > { %2553 = vmatpush1.bf16.msra.mxu0 %v3582_v56  ;;  %2262 = vmatprep.subr.bf16.mxu1 %v3587_v59  ;;  %v3651_v56 = vld [vmem:[%s4831_s1 + $0x220] ss:$8 sps:$4 sm:$0xff]  }
  0x62   : > { %2554 = vmatprep.subr.bf16.mxu0 %v3590_v60  ;;  %2530 = vmatmul.mubr.bf16.gmra.mrb[12].mxu0 %v3011_v0  ;;  %v284_v59 = vld [vmem:[%s4034_s12 + $0x148] sm:$0xff]  ;;  %v2973_v60 = vcombine.low %v260_v42, %v268_v45  ;;  %v3659_v0 = vld [vmem:[%s4831_s1 + $0x234] ss:$8 sps:$4 sm:$0xff]   ;;  %v3696_v45 = vld [vmem:[%s4831_s1 + $0x690] ss:$8 sps:$4 sm:$0xff]  }
  0x63   : > { %2572 = vmatprep.mubr.bf16.mxu0 %v2966_v7  ;;  %v3668_v7 = vld [vmem:[%s4831_s1 + $0x644] ss:$8 sps:$4 sm:$0xff]   ;;  %v3695_v42 = vld [vmem:[%s4831_s1 + $0x294] ss:$8 sps:$4 sm:$0xff]  }
  0x64   : > { %2263 = vmatpush1.bf16.msra.mxu1 %v3585_v61  ;;  %v2981_v61 = vcombine.low %v264_v46, %v272_v47  ;;  %v3701_v46 = vld [vmem:[%s4831_s1 + $0x2a4] ss:$8 sps:$4 sm:$0xff]  }
  0x65   : > { %2555 = vmatpush1.bf16.msra.mxu0 %v3588_v62  ;;  %2264 = vmatprep.subr.bf16.mxu1 %v3593_v2  ;;  %v280_v62 = vld [vmem:[%s4034_s12 + $0x128] sm:$0xff]  ;;  %v2990_v2 = vcombine.high %v276_v58, %v284_v59 }
  0x66   : > { %2556 = vmatprep.subr.bf16.mxu0 %v3596_v3  ;;  %v2998_v3 = vcombine.high %v280_v62, %v288_v63  ;;  %v3704_v47 = vld [vmem:[%s4831_s1 + $0x6a4] ss:$8 sps:$4 sm:$0xff]  }
  0x68   : > { %2265 = vmatpush1.bf16.msra.mxu1 %v3591_v8  ;;  %v3663_v8 = vld [vmem:[%s4831_s1 + $0x240] ss:$8 sps:$4 sm:$0xff]  }
  0x69   : > { %2557 = vmatpush1.bf16.msra.mxu0 %v3594_v9  ;;  %2266 = vmatprep.subr.bf16.mxu1 %v3599_v10  ;;  %v3666_v9 = vld [vmem:[%s4831_s1 + $0x640] ss:$8 sps:$4 sm:$0xff]  }
  0x6a   : > { %2558 = vmatprep.subr.bf16.mxu0 %v3602_v11  ;;  %v292_v10 = vld [vmem:[%s4034_s12 + $0x188] sm:$0xff] }
  0x6b   : > { %v300_v11 = vld [vmem:[%s4034_s12 + $0x1c8] sm:$0xff] }
  0x6c   : > { %2267 = vmatpush1.bf16.msra.mxu1 %v3597_v12  ;;  %v2989_v12 = vcombine.low %v276_v58, %v284_v59  ;;  %v3719_v58 = vld [vmem:[%s4831_s1 + $0x2d4] ss:$8 sps:$4 sm:$0xff]  }
  0x6d   : > { %2559 = vmatpush1.bf16.msra.mxu0 %v3600_v13  ;;  %2268 = vmatprep.subr.bf16.mxu1 %v3605_v14  ;;  %v2997_v13 = vcombine.low %v280_v62, %v288_v63  ;;  %v296_v14 = vld [vmem:[%s4034_s12 + $0x1a8] sm:$0xff]  ;;  %v3722_v59 = vld [vmem:[%s4831_s1 + $0x6d4] ss:$8 sps:$4 sm:$0xff]  }
  0x6e   : > { %2560 = vmatprep.subr.bf16.mxu0 %v3608_v15  ;;  %v304_v15 = vld [vmem:[%s4034_s12 + $0x1e8] sm:$0xff] }
  0x6f   : > { %v3725_v62 = vld [vmem:[%s4831_s1 + $0x2e4] ss:$8 sps:$4 sm:$0xff]  }
  0x70   : > { %2269 = vmatpush1.bf16.msra.mxu1 %v3603_v16  ;;  %v3671_v16 = vld [vmem:[%s4831_s1 + $0x254] ss:$8 sps:$4 sm:$0xff]   ;;  %v3728_v63 = vld [vmem:[%s4831_s1 + $0x6e4] ss:$8 sps:$4 sm:$0xff]  }
  0x71   : > { %2561 = vmatpush1.bf16.msra.mxu0 %v3606_v17  ;;  %2270 = vmatprep.subr.bf16.mxu1 %v3611_v18  ;;  %v3674_v17 = vld [vmem:[%s4831_s1 + $0x654] ss:$8 sps:$4 sm:$0xff]   ;;  %v3006_v18 = vcombine.high %v292_v10, %v300_v11 }
  0x72   : > { %2562 = vmatprep.subr.bf16.mxu0 %v3614_v19  ;;  %v3014_v19 = vcombine.high %v296_v14, %v304_v15 }
  0x74   : > { %2271 = vmatpush1.bf16.msra.mxu1 %v3609_v20  ;;  %v3669_v20 = vld [vmem:[%s4831_s1 + $0x250] ss:$8 sps:$4 sm:$0xff]  }
  0x75   : > { %2563 = vmatpush1.bf16.msra.mxu0 %v3612_v21  ;;  %2272 = vmatprep.subr.bf16.mxu1 %v3617_v22  ;;  %v3672_v21 = vld [vmem:[%s4831_s1 + $0x650] ss:$8 sps:$4 sm:$0xff]   ;;  %v3677_v22 = vld [vmem:[%s4831_s1 + $0x264] ss:$8 sps:$4 sm:$0xff]  }
  0x76   : > { %2564 = vmatprep.subr.bf16.mxu0 %v3620_v23  ;;  %v3680_v23 = vld [vmem:[%s4831_s1 + $0x664] ss:$8 sps:$4 sm:$0xff]  }
  0x78   : > { %2273 = vmatpush1.bf16.msra.mxu1 %v3615_v24  ;;  %v3675_v24 = vld [vmem:[%s4831_s1 + $0x260] ss:$8 sps:$4 sm:$0xff]  }
  0x79   : > { %2565 = vmatpush1.bf16.msra.mxu0 %v3618_v25  ;;  %2274 = vmatprep.subr.bf16.mxu1 %v3623_v26  ;;  %v3678_v25 = vld [vmem:[%s4831_s1 + $0x660] ss:$8 sps:$4 sm:$0xff]   ;;  %v4421_v26 = vld [vmem:[%s4034_s12 + $0x10] sm:$0xff] }
  0x7a   : > { %2566 = vmatprep.subr.bf16.mxu0 %v3626_v27  ;;  %v4424_v27 = vld [vmem:[%s4034_s12 + $0x50] sm:$0xff] }
  0x7c   : > { %2275 = vmatpush1.bf16.msra.mxu1 %v3621_v28  ;;  %v3005_v28 = vcombine.low %v292_v10, %v300_v11  ;;  %v269_v11 = vld [vmem:[%s4034_s12 + $0xd0] sm:$0xff] }
  0x7d   : > { %2567 = vmatpush1.bf16.msra.mxu0 %v3624_v29  ;;  %2276 = vmatprep.subr.bf16.mxu1 %v3629_v30  ;;  %v3013_v29 = vcombine.low %v296_v14, %v304_v15  ;;  %v4427_v30 = vld [vmem:[%s4034_s12 + $0x30] sm:$0xff]  ;;  %v3735_v14 = vld [vmem:[%s4831_s1 + $0x300] ss:$8 sps:$4 sm:$0xff]  }
  0x7e   : > { %2568 = vmatprep.subr.bf16.mxu0 %v3632_v31  ;;  %v4430_v31 = vld [vmem:[%s4034_s12 + $0x70] sm:$0xff]  ;;  %v3738_v15 = vld [vmem:[%s4831_s1 + $0x700] ss:$8 sps:$4 sm:$0xff]  }
  0x7f   : > { %v2967_v10 = vcombine.low %v4427_v30, %v4430_v31 }
  0x80   : > { %2277 = vmatpush1.bf16.msra.mxu1 %v3627_v32  ;;  %v3683_v32 = vld [vmem:[%s4831_s1 + $0x274] ss:$8 sps:$4 sm:$0xff]  }
  0x81   : > { %2569 = vmatpush1.bf16.msra.mxu0 %v3630_v33  ;;  %2278 = vmatprep.subr.bf16.mxu1 %v3635_v34  ;;  %v3686_v33 = vld [vmem:[%s4831_s1 + $0x674] ss:$8 sps:$4 sm:$0xff]   ;;  %v2960_v34 = vcombine.high %v4421_v26, %v4424_v27 }
  0x82   : > { %2570 = vmatprep.subr.bf16.mxu0 %v3638_v35  ;;  %v2968_v35 = vcombine.high %v4427_v30, %v4430_v31  ;;  %v3747_v30 = vld [vmem:[%s4831_s1 + $0x320] ss:$8 sps:$4 sm:$0xff]  }
  0x83   : > { %v3750_v31 = vld [vmem:[%s4831_s1 + $0x720] ss:$8 sps:$4 sm:$0xff]  }
  0x84   : > { %2279 = vmatpush1.bf16.msra.mxu1 %v3633_v36  ;;  %v3681_v36 = vld [vmem:[%s4831_s1 + $0x270] ss:$8 sps:$4 sm:$0xff]  }
  0x85   : > { %2571 = vmatpush1.bf16.msra.mxu0 %v3636_v37  ;;  %2321 = vmatprep.subr.bf16.mxu1 %v3641_v38  ;;  %v3684_v37 = vld [vmem:[%s4831_s1 + $0x670] ss:$8 sps:$4 sm:$0xff]   ;;  %v3689_v38 = vld [vmem:[%s4831_s1 + $0x284] ss:$8 sps:$4 sm:$0xff]  }
  0x86   : > { %2613 = vmatprep.subr.bf16.mxu0 %v3644_v39  ;;  %v3692_v39 = vld [vmem:[%s4831_s1 + $0x684] ss:$8 sps:$4 sm:$0xff]  }
  0x87   : > { %2281 = vmatmul.mubr.bf16.vlgmr.msra.gmra.mrb[0].mxu1 %v2957_v43  ;;  %v3698_v43 = vld [vmem:[%s4831_s1 + $0x694] ss:$8 sps:$4 sm:$0xff]  }
  0x88   : > { %2573 = vmatmul.mubr.bf16.vlgmr.msra.gmra.mrb[0].mxu0 %v2965_v44  ;;  %2322 = vmatpush1.bf16.msra.mxu1 %v3639_v40  ;;  %v3687_v40 = vld [vmem:[%s4831_s1 + $0x280] ss:$8 sps:$4 sm:$0xff]   ;;  %v3693_v44 = vld [vmem:[%s4831_s1 + $0x290] ss:$8 sps:$4 sm:$0xff]  }
  0x89   : > { %2614 = vmatpush1.bf16.msra.mxu0 %v3642_v41  ;;  %2323 = vmatprep.subr.bf16.mxu1 %v3647_v48  ;;  %v3690_v41 = vld [vmem:[%s4831_s1 + $0x680] ss:$8 sps:$4 sm:$0xff]  }
  0x8a   : > { %2615 = vmatprep.subr.bf16.mxu0 %v3650_v49  ;;  %2290 = vmatprep.mubr.bf16.mxu1 %v2974_v50  ;;  %v3699_v48 = vld [vmem:[%s4831_s1 + $0x2a0] ss:$8 sps:$4 sm:$0xff]   ;;  %v3707_v50 = vld [vmem:[%s4831_s1 + $0x2b4] ss:$8 sps:$4 sm:$0xff]  }
  0x8b   : > { %2582 = vmatprep.mubr.bf16.mxu0 %v2982_v51  ;;  %v3702_v49 = vld [vmem:[%s4831_s1 + $0x6a0] ss:$8 sps:$4 sm:$0xff]   ;;  %v3710_v51 = vld [vmem:[%s4831_s1 + $0x6b4] ss:$8 sps:$4 sm:$0xff]  }
  0x8c   : > { %2324 = vmatpush1.bf16.msra.mxu1 %v3645_v52  ;;  %v3705_v52 = vld [vmem:[%s4831_s1 + $0x2b0] ss:$8 sps:$4 sm:$0xff]  }
  0x8d   : > { %2616 = vmatpush1.bf16.msra.mxu0 %v3648_v53  ;;  %2325 = vmatprep.subr.bf16.mxu1 %v3653_v54  ;;  %v3708_v53 = vld [vmem:[%s4831_s1 + $0x6b0] ss:$8 sps:$4 sm:$0xff]   ;;  %v3713_v54 = vld [vmem:[%s4831_s1 + $0x2c4] ss:$8 sps:$4 sm:$0xff]  }
  0x8e   : > { %2617 = vmatprep.subr.bf16.mxu0 %v3656_v55  ;;  %v3716_v55 = vld [vmem:[%s4831_s1 + $0x6c4] ss:$8 sps:$4 sm:$0xff]  }
  0x8f   : > { %2291 = vmatmul.mubr.bf16.gmra.mrb[4].mxu1 %v2973_v60  ;;  %v3717_v60 = vld [vmem:[%s4831_s1 + $0x2d0] ss:$8 sps:$4 sm:$0xff]  }
  0x90   : > { %2583 = vmatmul.mubr.bf16.gmra.mrb[4].mxu0 %v2981_v61  ;;  %2326 = vmatpush1.bf16.msra.mxu1 %v3651_v56  ;;  %v3711_v56 = vld [vmem:[%s4831_s1 + $0x2c0] ss:$8 sps:$4 sm:$0xff]   ;;  %v3720_v61 = vld [vmem:[%s4831_s1 + $0x6d0] ss:$8 sps:$4 sm:$0xff]  }
  0x91   : > { %2618 = vmatpush1.bf16.msra.mxu0 %v3654_v57  ;;  %2327 = vmatprep.subr.bf16.mxu1 %v3659_v0  ;;  %v3714_v57 = vld [vmem:[%s4831_s1 + $0x6c0] ss:$8 sps:$4 sm:$0xff]  }
  0x92   : > { %2619 = vmatprep.subr.bf16.mxu0 %v3662_v1  ;;  %2300 = vmatprep.mubr.bf16.mxu1 %v2990_v2  ;;  %v3723_v0 = vld [vmem:[%s4831_s1 + $0x2e0] ss:$8 sps:$4 sm:$0xff]   ;;  %v3731_v2 = vld [vmem:[%s4831_s1 + $0x2f4] ss:$8 sps:$4 sm:$0xff]  }
  0x93   : > { %2592 = vmatprep.mubr.bf16.mxu0 %v2998_v3  ;;  %v3726_v1 = vld [vmem:[%s4831_s1 + $0x6e0] ss:$8 sps:$4 sm:$0xff]   ;;  %v3734_v3 = vld [vmem:[%s4831_s1 + $0x6f4] ss:$8 sps:$4 sm:$0xff]  }
  0x94   : > { %2328 = vmatpush1.bf16.msra.mxu1 %v3657_v4  ;;  %v3729_v4 = vld [vmem:[%s4831_s1 + $0x2f0] ss:$8 sps:$4 sm:$0xff]  }
  0x95   : > { %2620 = vmatpush1.bf16.msra.mxu0 %v3660_v5  ;;  %2329 = vmatprep.subr.bf16.mxu1 %v3665_v6  ;;  %v3732_v5 = vld [vmem:[%s4831_s1 + $0x6f0] ss:$8 sps:$4 sm:$0xff]   ;;  %v3737_v6 = vld [vmem:[%s4831_s1 + $0x304] ss:$8 sps:$4 sm:$0xff]  }
  0x96   : > { %2621 = vmatprep.subr.bf16.mxu0 %v3668_v7  ;;  %v3740_v7 = vld [vmem:[%s4831_s1 + $0x704] ss:$8 sps:$4 sm:$0xff]  }
  0x97   : > { %2301 = vmatmul.mubr.bf16.gmra.mrb[8].mxu1 %v2989_v12  ;;  %v265_v12 = vld [vmem:[%s4034_s12 + $0xb0] sm:$0xff] }
  0x98   : > { %2593 = vmatmul.mubr.bf16.gmra.mrb[8].mxu0 %v2997_v13  ;;  %2330 = vmatpush1.bf16.msra.mxu1 %v3663_v8  ;;  %v261_v8 = vld [vmem:[%s4034_s12 + $0x90] sm:$0xff] }
  0x99   : > { %2622 = vmatpush1.bf16.msra.mxu0 %v3666_v9  ;;  %2331 = vmatprep.subr.bf16.mxu1 %v3671_v16  ;;  %v2959_v9 = vcombine.low %v4421_v26, %v4424_v27  ;;  %v273_v13 = vld [vmem:[%s4034_s12 + $0xf0] sm:$0xff] }
  0x9a   : > { %2623 = vmatprep.subr.bf16.mxu0 %v3674_v17  ;;  %2310 = vmatprep.mubr.bf16.mxu1 %v3006_v18  ;;  %v3743_v16 = vld [vmem:[%s4831_s1 + $0x314] ss:$8 sps:$4 sm:$0xff]   ;;  %v2976_v18 = vcombine.high %v261_v8, %v269_v11  ;;  %v2983_v26 = vcombine.low %v265_v12, %v273_v13 }
  0x9b   : > { %2602 = vmatprep.mubr.bf16.mxu0 %v3014_v19  ;;  %v3746_v17 = vld [vmem:[%s4831_s1 + $0x714] ss:$8 sps:$4 sm:$0xff]   ;;  %v2984_v19 = vcombine.high %v265_v12, %v273_v13  ;;  %v3789_v12 = vld [vmem:[%s4831_s1 + $0x390] ss:$8 sps:$4 sm:$0xff]  }
  0x9c   : > { %2332 = vmatpush1.bf16.msra.mxu1 %v3669_v20  ;;  %v3741_v20 = vld [vmem:[%s4831_s1 + $0x310] ss:$8 sps:$4 sm:$0xff]  }
  0x9d   : > { %2624 = vmatpush1.bf16.msra.mxu0 %v3672_v21  ;;  %2333 = vmatprep.subr.bf16.mxu1 %v3677_v22  ;;  %v3744_v21 = vld [vmem:[%s4831_s1 + $0x710] ss:$8 sps:$4 sm:$0xff]   ;;  %v3749_v22 = vld [vmem:[%s4831_s1 + $0x324] ss:$8 sps:$4 sm:$0xff]  }
  0x9e   : > { %2625 = vmatprep.subr.bf16.mxu0 %v3680_v23  ;;  %v3752_v23 = vld [vmem:[%s4831_s1 + $0x724] ss:$8 sps:$4 sm:$0xff]   ;;  %v285_v27 = vld [vmem:[%s4034_s12 + $0x150] sm:$0xff] }
  0x9f   : > { %2311 = vmatmul.mubr.bf16.gmra.mrb[12].mxu1 %v3005_v28  ;;  %v281_v28 = vld [vmem:[%s4034_s12 + $0x130] sm:$0xff] }
  0xa0   : > { %2603 = vmatmul.mubr.bf16.gmra.mrb[12].mxu0 %v3013_v29  ;;  %2334 = vmatpush1.bf16.msra.mxu1 %v3675_v24  ;;  %v277_v24 = vld [vmem:[%s4034_s12 + $0x110] sm:$0xff] }
  0xa1   : > { %2626 = vmatpush1.bf16.msra.mxu0 %v3678_v25  ;;  %2335 = vmatprep.subr.bf16.mxu1 %v3683_v32  ;;  %v2975_v25 = vcombine.low %v261_v8, %v269_v11  ;;  %v289_v29 = vld [vmem:[%s4034_s12 + $0x170] sm:$0xff]  ;;  %v3783_v8 = vld [vmem:[%s4831_s1 + $0x380] ss:$8 sps:$4 sm:$0xff]  }
  0xa2   : > { %2627 = vmatprep.subr.bf16.mxu0 %v3686_v33  ;;  %2353 = vmatprep.mubr.bf16.mxu1 %v2960_v34  ;;  %v3755_v32 = vld [vmem:[%s4831_s1 + $0x334] ss:$8 sps:$4 sm:$0xff]   ;;  %v2992_v34 = vcombine.high %v277_v24, %v285_v27  ;;  %v3792_v13 = vld [vmem:[%s4831_s1 + $0x790] ss:$8 sps:$4 sm:$0xff]  }
  0xa3   : > { %2645 = vmatprep.mubr.bf16.mxu0 %v2968_v35  ;;  %v3758_v33 = vld [vmem:[%s4831_s1 + $0x734] ss:$8 sps:$4 sm:$0xff]   ;;  %v3000_v35 = vcombine.high %v281_v28, %v289_v29 }
  0xa4   : > { %2336 = vmatpush1.bf16.msra.mxu1 %v3681_v36  ;;  %v3753_v36 = vld [vmem:[%s4831_s1 + $0x330] ss:$8 sps:$4 sm:$0xff]   ;;  %v3794_v11 = vld [vmem:[%s4831_s1 + $0x794] ss:$8 sps:$4 sm:$0xff]  }
  0xa5   : > { %2628 = vmatpush1.bf16.msra.mxu0 %v3684_v37  ;;  %2337 = vmatprep.subr.bf16.mxu1 %v3689_v38  ;;  %v3756_v37 = vld [vmem:[%s4831_s1 + $0x730] ss:$8 sps:$4 sm:$0xff]   ;;  %v3761_v38 = vld [vmem:[%s4831_s1 + $0x344] ss:$8 sps:$4 sm:$0xff]  }
  0xa6   : > { %2629 = vmatprep.subr.bf16.mxu0 %v3692_v39  ;;  %v3764_v39 = vld [vmem:[%s4831_s1 + $0x744] ss:$8 sps:$4 sm:$0xff]  }
  0xa8   : > { %2338 = vmatpush1.bf16.msra.mxu1 %v3687_v40  ;;  %v293_v40 = vld [vmem:[%s4034_s12 + $0x190] sm:$0xff] }
  0xa9   : > { %2630 = vmatpush1.bf16.msra.mxu0 %v3690_v41  ;;  %2339 = vmatprep.subr.bf16.mxu1 %v3695_v42  ;;  %v2991_v41 = vcombine.low %v277_v24, %v285_v27  ;;  %v2999_v42 = vcombine.low %v281_v28, %v289_v29  ;;  %v3807_v24 = vld [vmem:[%s4831_s1 + $0x3c0] ss:$8 sps:$4 sm:$0xff]   ;;  %v3818_v27 = vld [vmem:[%s4831_s1 + $0x7d4] ss:$8 sps:$4 sm:$0xff]   ;;  %v3813_v28 = vld [vmem:[%s4831_s1 + $0x3d0] ss:$8 sps:$4 sm:$0xff]  }
  0xaa   : > { %2631 = vmatprep.subr.bf16.mxu0 %v3698_v43  ;;  %v301_v43 = vld [vmem:[%s4034_s12 + $0x1d0] sm:$0xff] }
  0xab   : > { %v3816_v29 = vld [vmem:[%s4831_s1 + $0x7d0] ss:$8 sps:$4 sm:$0xff]  }
  0xac   : > { %2340 = vmatpush1.bf16.msra.mxu1 %v3693_v44  ;;  %v297_v44 = vld [vmem:[%s4034_s12 + $0x1b0] sm:$0xff] }
  0xad   : > { %2632 = vmatpush1.bf16.msra.mxu0 %v3696_v45  ;;  %2341 = vmatprep.subr.bf16.mxu1 %v3701_v46  ;;  %v305_v45 = vld [vmem:[%s4034_s12 + $0x1f0] sm:$0xff]  ;;  %v3759_v46 = vld [vmem:[%s4831_s1 + $0x340] ss:$8 sps:$4 sm:$0xff]  }
  0xae   : > { %2633 = vmatprep.subr.bf16.mxu0 %v3704_v47  ;;  %v3762_v47 = vld [vmem:[%s4831_s1 + $0x740] ss:$8 sps:$4 sm:$0xff]  }
  0xb0   : > { %2342 = vmatpush1.bf16.msra.mxu1 %v3699_v48  ;;  %v3767_v48 = vld [vmem:[%s4831_s1 + $0x354] ss:$8 sps:$4 sm:$0xff]  }
  0xb1   : > { %2634 = vmatpush1.bf16.msra.mxu0 %v3702_v49  ;;  %2343 = vmatprep.subr.bf16.mxu1 %v3707_v50  ;;  %v3770_v49 = vld [vmem:[%s4831_s1 + $0x754] ss:$8 sps:$4 sm:$0xff]   ;;  %v3008_v50 = vcombine.high %v293_v40, %v301_v43 }
  0xb2   : > { %2635 = vmatprep.subr.bf16.mxu0 %v3710_v51  ;;  %v3016_v51 = vcombine.high %v297_v44, %v305_v45 }
  0xb4   : > { %2344 = vmatpush1.bf16.msra.mxu1 %v3705_v52  ;;  %v3765_v52 = vld [vmem:[%s4831_s1 + $0x350] ss:$8 sps:$4 sm:$0xff]  }
  0xb5   : > { %2636 = vmatpush1.bf16.msra.mxu0 %v3708_v53  ;;  %2345 = vmatprep.subr.bf16.mxu1 %v3713_v54  ;;  %v3768_v53 = vld [vmem:[%s4831_s1 + $0x750] ss:$8 sps:$4 sm:$0xff]   ;;  %v3773_v54 = vld [vmem:[%s4831_s1 + $0x364] ss:$8 sps:$4 sm:$0xff]  }
  0xb6   : > { %2637 = vmatprep.subr.bf16.mxu0 %v3716_v55  ;;  %v3776_v55 = vld [vmem:[%s4831_s1 + $0x764] ss:$8 sps:$4 sm:$0xff]  }
  0xb8   : > { %2346 = vmatpush1.bf16.msra.mxu1 %v3711_v56  ;;  %v4639_v56 = vld [vmem:[%s4034_s12 + $0x18] sm:$0xff] }
  0xb9   : > { %2638 = vmatpush1.bf16.msra.mxu0 %v3714_v57  ;;  %2347 = vmatprep.subr.bf16.mxu1 %v3719_v58  ;;  %v3007_v57 = vcombine.low %v293_v40, %v301_v43  ;;  %v3015_v58 = vcombine.low %v297_v44, %v305_v45  ;;  %v266_v40 = vld [vmem:[%s4034_s12 + $0xb8] sm:$0xff] }
  0xba   : > { %2639 = vmatprep.subr.bf16.mxu0 %v3722_v59  ;;  %v4642_v59 = vld [vmem:[%s4034_s12 + $0x58] sm:$0xff] }
  0xbc   : > { %2348 = vmatpush1.bf16.msra.mxu1 %v3717_v60  ;;  %v4645_v60 = vld [vmem:[%s4034_s12 + $0x38] sm:$0xff] }
  0xbd   : > { %2640 = vmatpush1.bf16.msra.mxu0 %v3720_v61  ;;  %2349 = vmatprep.subr.bf16.mxu1 %v3725_v62  ;;  %v4648_v61 = vld [vmem:[%s4034_s12 + $0x78] sm:$0xff]  ;;  %v3771_v62 = vld [vmem:[%s4831_s1 + $0x360] ss:$8 sps:$4 sm:$0xff]  }
  0xbe   : > { %2641 = vmatprep.subr.bf16.mxu0 %v3728_v63  ;;  %v3774_v63 = vld [vmem:[%s4831_s1 + $0x760] ss:$8 sps:$4 sm:$0xff]   ;;  %v2969_v43 = vcombine.low %v4645_v60, %v4648_v61 }
  0xc0   : > { %2350 = vmatpush1.bf16.msra.mxu1 %v3723_v0  ;;  %v3779_v0 = vld [vmem:[%s4831_s1 + $0x374] ss:$8 sps:$4 sm:$0xff]  }
  0xc1   : > { %2642 = vmatpush1.bf16.msra.mxu0 %v3726_v1  ;;  %2351 = vmatprep.subr.bf16.mxu1 %v3731_v2  ;;  %v3782_v1 = vld [vmem:[%s4831_s1 + $0x774] ss:$8 sps:$4 sm:$0xff]   ;;  %v2962_v2 = vcombine.high %v4639_v56, %v4642_v59 }
  0xc2   : > { %2643 = vmatprep.subr.bf16.mxu0 %v3734_v3  ;;  %v2970_v3 = vcombine.high %v4645_v60, %v4648_v61 }
  0xc4   : > { %2352 = vmatpush1.bf16.msra.mxu1 %v3729_v4  ;;  %v3777_v4 = vld [vmem:[%s4831_s1 + $0x370] ss:$8 sps:$4 sm:$0xff]  }
  0xc5   : > { %2644 = vmatpush1.bf16.msra.mxu0 %v3732_v5  ;;  %2394 = vmatprep.subr.bf16.mxu1 %v3737_v6  ;;  %v3780_v5 = vld [vmem:[%s4831_s1 + $0x770] ss:$8 sps:$4 sm:$0xff]   ;;  %v3785_v6 = vld [vmem:[%s4831_s1 + $0x384] ss:$8 sps:$4 sm:$0xff]  }
  0xc6   : > { %2686 = vmatprep.subr.bf16.mxu0 %v3740_v7  ;;  %v3788_v7 = vld [vmem:[%s4831_s1 + $0x784] ss:$8 sps:$4 sm:$0xff]  }
  0xc7   : > { %2354 = vmatmul.mubr.bf16.vlgmr.msra.gmra.mrb[0].mxu1 %v2959_v9  ;;  %v3786_v9 = vld [vmem:[%s4831_s1 + $0x780] ss:$8 sps:$4 sm:$0xff]  }
  0xc8   : > { %2646 = vmatmul.mubr.bf16.vlgmr.msra.gmra.mrb[0].mxu0 %v2967_v10  ;;  %2395 = vmatpush1.bf16.msra.mxu1 %v3735_v14  ;;  %v3791_v10 = vld [vmem:[%s4831_s1 + $0x394] ss:$8 sps:$4 sm:$0xff]   ;;  %v3797_v14 = vld [vmem:[%s4831_s1 + $0x3a4] ss:$8 sps:$4 sm:$0xff]  }
  0xc9   : > { %2687 = vmatpush1.bf16.msra.mxu0 %v3738_v15  ;;  %2396 = vmatprep.subr.bf16.mxu1 %v3743_v16  ;;  %v3800_v15 = vld [vmem:[%s4831_s1 + $0x7a4] ss:$8 sps:$4 sm:$0xff]   ;;  %v3795_v16 = vld [vmem:[%s4831_s1 + $0x3a0] ss:$8 sps:$4 sm:$0xff]  }
  0xca   : > { %2688 = vmatprep.subr.bf16.mxu0 %v3746_v17  ;;  %2363 = vmatprep.mubr.bf16.mxu1 %v2976_v18  ;;  %v3798_v17 = vld [vmem:[%s4831_s1 + $0x7a0] ss:$8 sps:$4 sm:$0xff]   ;;  %v3803_v18 = vld [vmem:[%s4831_s1 + $0x3b4] ss:$8 sps:$4 sm:$0xff]  }
  0xcb   : > { %2655 = vmatprep.mubr.bf16.mxu0 %v2984_v19  ;;  %v3806_v19 = vld [vmem:[%s4831_s1 + $0x7b4] ss:$8 sps:$4 sm:$0xff]  }
  0xcc   : > { %2397 = vmatpush1.bf16.msra.mxu1 %v3741_v20  ;;  %v3801_v20 = vld [vmem:[%s4831_s1 + $0x3b0] ss:$8 sps:$4 sm:$0xff]  }
  0xcd   : > { %2689 = vmatpush1.bf16.msra.mxu0 %v3744_v21  ;;  %2398 = vmatprep.subr.bf16.mxu1 %v3749_v22  ;;  %v3804_v21 = vld [vmem:[%s4831_s1 + $0x7b0] ss:$8 sps:$4 sm:$0xff]   ;;  %v3809_v22 = vld [vmem:[%s4831_s1 + $0x3c4] ss:$8 sps:$4 sm:$0xff]  }
  0xce   : > { %2690 = vmatprep.subr.bf16.mxu0 %v3752_v23  ;;  %v3812_v23 = vld [vmem:[%s4831_s1 + $0x7c4] ss:$8 sps:$4 sm:$0xff]  }
  0xcf   : > { %2364 = vmatmul.mubr.bf16.gmra.mrb[4].mxu1 %v2975_v25  ;;  %v3810_v25 = vld [vmem:[%s4831_s1 + $0x7c0] ss:$8 sps:$4 sm:$0xff]  }
  0xd0   : > { %2656 = vmatmul.mubr.bf16.gmra.mrb[4].mxu0 %v2983_v26  ;;  %2399 = vmatpush1.bf16.msra.mxu1 %v3747_v30  ;;  %v3815_v26 = vld [vmem:[%s4831_s1 + $0x3d4] ss:$8 sps:$4 sm:$0xff]   ;;  %v3821_v30 = vld [vmem:[%s4831_s1 + $0x3e4] ss:$8 sps:$4 sm:$0xff]  }
  0xd1   : > { %2691 = vmatpush1.bf16.msra.mxu0 %v3750_v31  ;;  %2400 = vmatprep.subr.bf16.mxu1 %v3755_v32  ;;  %v3824_v31 = vld [vmem:[%s4831_s1 + $0x7e4] ss:$8 sps:$4 sm:$0xff]   ;;  %v3819_v32 = vld [vmem:[%s4831_s1 + $0x3e0] ss:$8 sps:$4 sm:$0xff]  }
  0xd2   : > { %2692 = vmatprep.subr.bf16.mxu0 %v3758_v33  ;;  %2373 = vmatprep.mubr.bf16.mxu1 %v2992_v34  ;;  %v3822_v33 = vld [vmem:[%s4831_s1 + $0x7e0] ss:$8 sps:$4 sm:$0xff]   ;;  %v3827_v34 = vld [vmem:[%s4831_s1 + $0x3f4] ss:$8 sps:$4 sm:$0xff]  }
  0xd3   : > { %2665 = vmatprep.mubr.bf16.mxu0 %v3000_v35  ;;  %v3830_v35 = vld [vmem:[%s4831_s1 + $0x7f4] ss:$8 sps:$4 sm:$0xff]  }
  0xd4   : > { %2401 = vmatpush1.bf16.msra.mxu1 %v3753_v36  ;;  %v3825_v36 = vld [vmem:[%s4831_s1 + $0x3f0] ss:$8 sps:$4 sm:$0xff]  }
  0xd5   : > { %2693 = vmatpush1.bf16.msra.mxu0 %v3756_v37  ;;  %2402 = vmatprep.subr.bf16.mxu1 %v3761_v38  ;;  %v3828_v37 = vld [vmem:[%s4831_s1 + $0x7f0] ss:$8 sps:$4 sm:$0xff]  }
  0xd6   : > { %2694 = vmatprep.subr.bf16.mxu0 %v3764_v39  ;;  %v262_v38 = vld [vmem:[%s4034_s12 + $0x98] sm:$0xff] }
  0xd7   : > { %2374 = vmatmul.mubr.bf16.gmra.mrb[8].mxu1 %v2991_v41  ;;  %v270_v39 = vld [vmem:[%s4034_s12 + $0xd8] sm:$0xff] }
  0xd8   : > { %2666 = vmatmul.mubr.bf16.gmra.mrb[8].mxu0 %v2999_v42  ;;  %2403 = vmatpush1.bf16.msra.mxu1 %v3759_v46  ;;  %v274_v41 = vld [vmem:[%s4034_s12 + $0xf8] sm:$0xff]  ;;  %v2961_v42 = vcombine.low %v4639_v56, %v4642_v59  ;;  %v2978_v44 = vcombine.high %v262_v38, %v270_v39 }
  0xd9   : > { %2695 = vmatpush1.bf16.msra.mxu0 %v3762_v47  ;;  %2404 = vmatprep.subr.bf16.mxu1 %v3767_v48  ;;  %v2986_v45 = vcombine.high %v266_v40, %v274_v41  ;;  %v278_v46 = vld [vmem:[%s4034_s12 + $0x118] sm:$0xff] }
  0xda   : > { %2696 = vmatprep.subr.bf16.mxu0 %v3770_v49  ;;  %2383 = vmatprep.mubr.bf16.mxu1 %v3008_v50  ;;  %v286_v47 = vld [vmem:[%s4034_s12 + $0x158] sm:$0xff]  ;;  %v2977_v50 = vcombine.low %v262_v38, %v270_v39 }
  0xdb   : > { %2675 = vmatprep.mubr.bf16.mxu0 %v3016_v51  ;;  %v282_v48 = vld [vmem:[%s4034_s12 + $0x138] sm:$0xff]  ;;  %v2985_v51 = vcombine.low %v266_v40, %v274_v41 }
  0xdc   : > { %2405 = vmatpush1.bf16.msra.mxu1 %v3765_v52  ;;  %v290_v49 = vld [vmem:[%s4034_s12 + $0x178] sm:$0xff]  ;;  %v2994_v52 = vcombine.high %v278_v46, %v286_v47 }
  0xdd   : > { %2697 = vmatpush1.bf16.msra.mxu0 %v3768_v53  ;;  %2406 = vmatprep.subr.bf16.mxu1 %v3773_v54  ;;  %v3002_v53 = vcombine.high %v282_v48, %v290_v49  ;;  %v294_v54 = vld [vmem:[%s4034_s12 + $0x198] sm:$0xff]  ;;  %v3001_v59 = vcombine.low %v282_v48, %v290_v49 }
  0xde   : > { %2698 = vmatprep.subr.bf16.mxu0 %v3776_v55  ;;  %v302_v55 = vld [vmem:[%s4034_s12 + $0x1d8] sm:$0xff] }
  0xdf   : > { %2384 = vmatmul.mubr.bf16.gmra.mrb[12].mxu1 %v3007_v57  ;;  %v298_v56 = vld [vmem:[%s4034_s12 + $0x1b8] sm:$0xff]  ;;  %v3010_v60 = vcombine.high %v294_v54, %v302_v55 }
  0xe0   : > { %2676 = vmatmul.mubr.bf16.gmra.mrb[12].mxu0 %v3015_v58  ;;  %2407 = vmatpush1.bf16.msra.mxu1 %v3771_v62  ;;  %v306_v57 = vld [vmem:[%s4034_s12 + $0x1f8] sm:$0xff]  ;;  %v2993_v58 = vcombine.low %v278_v46, %v286_v47  ;;  %v3009_v62 = vcombine.low %v294_v54, %v302_v55  ;;  %s3286_s12 = sshll.u32 %s4839_s30, 3 }
  0xe1   : > { %2699 = vmatpush1.bf16.msra.mxu0 %v3774_v63  ;;  %2408 = vmatprep.subr.bf16.mxu1 %v3779_v0  ;;  %v3018_v61 = vcombine.high %v298_v56, %v306_v57  ;;  %v3017_v63 = vcombine.low %v298_v56, %v306_v57  ;;  %v565_v0 = vlaneseq  ;;  %s4799_s26 = scalar_lea.vmem %s4833_s3, %s3286_s12 }
  0xe2   : > { %2700 = vmatprep.subr.bf16.mxu0 %v3782_v1  ;;  %2426 = vmatprep.mubr.bf16.mxu1 %v2962_v2 }
  0xe3   : > { %2718 = vmatprep.mubr.bf16.mxu0 %v2970_v3  ;;  %v566_v1 = vshrl.u32 %v565_v0, 7  ;;  %v563_v3 = vld [vmem:[%s4832_s2] sm:$0x3] }
  0xe4   : > { %2409 = vmatpush1.bf16.msra.mxu1 %v3777_v4 }
  0xe5   : > { %2701 = vmatpush1.bf16.msra.mxu0 %v3780_v5  ;;  %2410 = vmatprep.subr.bf16.mxu1 %v3785_v6  ;;  %v567_v2 = vsub.s32 0, %v566_v1  ;;  %v571_v4 = vsub.s32 1, %v566_v1 }
  0xe6   : > { %2702 = vmatprep.subr.bf16.mxu0 %v3788_v7 }
  0xe7   : > { %v4787_v5 = vrot.slane %v563_v3, %v567_v2  ;;  %v4789_v6 = vrot.slane %v563_v3, %v571_v4 }
  0xe8   : > { %2411 = vmatpush1.bf16.msra.mxu1 %v3783_v8 }
  0xe9   : > { %2703 = vmatpush1.bf16.msra.mxu0 %v3786_v9  ;;  %2412 = vmatprep.subr.bf16.mxu1 %v3791_v10 }
  0xea   : > { %2704 = vmatprep.subr.bf16.mxu0 %v3794_v11 }
  0xec   : > { %2413 = vmatpush1.bf16.msra.mxu1 %v3789_v12 }
  0xed   : > { %2705 = vmatpush1.bf16.msra.mxu0 %v3792_v13  ;;  %2414 = vmatprep.subr.bf16.mxu1 %v3797_v14 }
  0xee   : > { %2706 = vmatprep.subr.bf16.mxu0 %v3800_v15 }
  0xf0   : > { %2415 = vmatpush1.bf16.msra.mxu1 %v3795_v16 }
  0xf1   : > { %2707 = vmatpush1.bf16.msra.mxu0 %v3798_v17  ;;  %2416 = vmatprep.subr.bf16.mxu1 %v3803_v18 }
  0xf2   : > { %2708 = vmatprep.subr.bf16.mxu0 %v3806_v19 }
  0xf4   : > { %2417 = vmatpush1.bf16.msra.mxu1 %v3801_v20 }
  0xf5   : > { %2709 = vmatpush1.bf16.msra.mxu0 %v3804_v21  ;;  %2418 = vmatprep.subr.bf16.mxu1 %v3809_v22 }
  0xf6   : > { %2710 = vmatprep.subr.bf16.mxu0 %v3812_v23 }
  0xf8   : > { %2419 = vmatpush1.bf16.msra.mxu1 %v3807_v24 }
  0xf9   : > { %2711 = vmatpush1.bf16.msra.mxu0 %v3810_v25  ;;  %2420 = vmatprep.subr.bf16.mxu1 %v3815_v26 }
  0xfa   : > { %2712 = vmatprep.subr.bf16.mxu0 %v3818_v27 }
  0xfc   : > { %2421 = vmatpush1.bf16.msra.mxu1 %v3813_v28 }
  0xfd   : > { %2713 = vmatpush1.bf16.msra.mxu0 %v3816_v29  ;;  %2422 = vmatprep.subr.bf16.mxu1 %v3821_v30 }
  0xfe   : > { %2714 = vmatprep.subr.bf16.mxu0 %v3824_v31 }
 0x100   : > { %2423 = vmatpush1.bf16.msra.mxu1 %v3819_v32 }
 0x101   : > { %2715 = vmatpush1.bf16.msra.mxu0 %v3822_v33  ;;  %2424 = vmatprep.subr.bf16.mxu1 %v3827_v34 }
 0x102   : > { %2716 = vmatprep.subr.bf16.mxu0 %v3830_v35 }
 0x104   : > { %2425 = vmatpush1.bf16.msra.mxu1 %v3825_v36 }
 0x105   : > { %2717 = vmatpush1.bf16.msra.mxu0 %v3828_v37 }
 0x107   : > { %2427 = vmatmul.mubr.bf16.vlgmr.msra.gmra.mrb[0].mxu1 %v2961_v42 }
 0x108   : > { %2719 = vmatmul.mubr.bf16.vlgmr.msra.gmra.mrb[0].mxu0 %v2969_v43  ;;  %2436 = vmatprep.mubr.bf16.mxu1 %v2978_v44 }
 0x109   : > { %2728 = vmatprep.mubr.bf16.mxu0 %v2986_v45 }
 0x10f   : > { %2437 = vmatmul.mubr.bf16.gmra.mrb[4].mxu1 %v2977_v50 }
 0x110   : > { %2729 = vmatmul.mubr.bf16.gmra.mrb[4].mxu0 %v2985_v51  ;;  %2446 = vmatprep.mubr.bf16.mxu1 %v2994_v52 }
 0x111   : > { %2738 = vmatprep.mubr.bf16.mxu0 %v3002_v53 }
 0x117   : > { %2447 = vmatmul.mubr.bf16.gmra.mrb[8].mxu1 %v2993_v58 }
 0x118   : > { %2739 = vmatmul.mubr.bf16.gmra.mrb[8].mxu0 %v3001_v59  ;;  %2456 = vmatprep.mubr.bf16.mxu1 %v3010_v60 }
 0x119   : > { %2748 = vmatprep.mubr.bf16.mxu0 %v3018_v61 }
 0x11f   : > { %2457 = vmatmul.mubr.bf16.gmra.mrb[12].mxu1 %v3009_v62 }
 0x120   : > { %2749 = vmatmul.mubr.bf16.gmra.mrb[12].mxu0 %v3017_v63 }
 0x1da   : > { %v2428_v7 = vpop.f32.mrb[0].mxu1 }
 0x1db   : > { %v2720_v8 = vpop.f32.mrb[0].mxu0  ;;  %v3295_v9 = vadd.f32 %v2428_v7, %v4787_v5  ;;  %v2430_v10 = vpop.f32.mrb[1].mxu1 }
 0x1dc   : > { %v2722_v11 = vpop.f32.mrb[1].mxu0  ;;  %v3297_v12 = vadd.f32 %v2430_v10, %v4789_v6  ;;  %v2432_v13 = vpop.f32.mrb[2].mxu1 }
 0x1dd   : > { %v2724_v14 = vpop.f32.mrb[2].mxu0  ;;  %v3296_v15 = vadd.f32 %v3295_v9, %v2720_v8  ;;  %v3299_v16 = vadd.f32 %v2432_v13, %v4787_v5  ;;  %v2434_v17 = vpop.f32.mrb[3].mxu1 }
 0x1de   : > { %v2726_v18 = vpop.f32.mrb[3].mxu0  ;;  %v3298_v19 = vadd.f32 %v3297_v12, %v2722_v11  ;;  %v3301_v20 = vadd.f32 %v2434_v17, %v4789_v6 }
 0x1df   : > { %v2759_v21 = vmax.f32 %v3296_v15, 0.0  ;;  %v3300_v22 = vadd.f32 %v3299_v16, %v2724_v14 }
 0x1e0   : > { %v2760_v23 = vmax.f32 %v3298_v19, 0.0  ;;  %v3302_v24 = vadd.f32 %v3301_v20, %v2726_v18 }
 0x1e1   : > { %v2761_v25 = vmax.f32 %v3300_v22, 0.0 }
 0x1e2   : > { %v3287_v26 = vpack.c.bf16 %v2760_v23, %v2759_v21  ;;  %v2762_v27 = vmax.f32 %v3302_v24, 0.0  ;;  %v2438_v28 = vpop.f32.mrb[4].mxu1 }
 0x1e3   : > { %v2730_v29 = vpop.f32.mrb[4].mxu0  ;;  %v3303_v30 = vadd.f32 %v2438_v28, %v4787_v5  ;;  %v2440_v31 = vpop.f32.mrb[5].mxu1 }
 0x1e4   : > { %v2732_v32 = vpop.f32.mrb[5].mxu0  ;;  %2823 = vst [vmem:[%s4799_s26] sm:$0xff] %v3287_v26  ;;  %v3288_v33 = vpack.c.bf16 %v2762_v27, %v2761_v25  ;;  %v3305_v34 = vadd.f32 %v2440_v31, %v4789_v6  ;;  %v2442_v35 = vpop.f32.mrb[6].mxu1 }
 0x1e5   : > { %v2734_v36 = vpop.f32.mrb[6].mxu0  ;;  %v3304_v37 = vadd.f32 %v3303_v30, %v2730_v29  ;;  %v3307_v38 = vadd.f32 %v2442_v35, %v4787_v5  ;;  %v2444_v39 = vpop.f32.mrb[7].mxu1 }
 0x1e6   : > { %v2736_v40 = vpop.f32.mrb[7].mxu0  ;;  %2824 = vst [vmem:[%s4799_s26 + $0x8] sm:$0xff] %v3288_v33  ;;  %v3306_v41 = vadd.f32 %v3305_v34, %v2732_v32  ;;  %v3309_v42 = vadd.f32 %v2444_v39, %v4789_v6 }
 0x1e7   : > { %v2763_v43 = vmax.f32 %v3304_v37, 0.0  ;;  %v3308_v44 = vadd.f32 %v3307_v38, %v2734_v36 }
 0x1e8   : > { %v2764_v45 = vmax.f32 %v3306_v41, 0.0  ;;  %v3310_v46 = vadd.f32 %v3309_v42, %v2736_v40 }
 0x1e9   : > { %v2765_v47 = vmax.f32 %v3308_v44, 0.0 }
 0x1ea   : > { %v3289_v48 = vpack.c.bf16 %v2764_v45, %v2763_v43  ;;  %v2766_v49 = vmax.f32 %v3310_v46, 0.0  ;;  %v2448_v50 = vpop.f32.mrb[8].mxu1 }
 0x1eb   : > { %v2740_v51 = vpop.f32.mrb[8].mxu0  ;;  %v3311_v52 = vadd.f32 %v2448_v50, %v4787_v5  ;;  %v2450_v53 = vpop.f32.mrb[9].mxu1 }
 0x1ec   : > { %v2742_v54 = vpop.f32.mrb[9].mxu0  ;;  %2825 = vst [vmem:[%s4799_s26 + $0x10] sm:$0xff] %v3289_v48  ;;  %v3290_v55 = vpack.c.bf16 %v2766_v49, %v2765_v47  ;;  %v3313_v56 = vadd.f32 %v2450_v53, %v4789_v6  ;;  %v2452_v57 = vpop.f32.mrb[10].mxu1 }
 0x1ed   : > { %v2744_v58 = vpop.f32.mrb[10].mxu0  ;;  %v3312_v59 = vadd.f32 %v3311_v52, %v2740_v51  ;;  %v3315_v60 = vadd.f32 %v2452_v57, %v4787_v5  ;;  %v2454_v61 = vpop.f32.mrb[11].mxu1 }
 0x1ee   : > { %v2746_v62 = vpop.f32.mrb[11].mxu0  ;;  %2826 = vst [vmem:[%s4799_s26 + $0x18] sm:$0xff] %v3290_v55  ;;  %v3314_v63 = vadd.f32 %v3313_v56, %v2742_v54  ;;  %v3317_v0 = vadd.f32 %v2454_v61, %v4789_v6 }
 0x1ef   : > { %v2767_v1 = vmax.f32 %v3312_v59, 0.0  ;;  %v3316_v2 = vadd.f32 %v3315_v60, %v2744_v58 }
 0x1f0   : > { %v2768_v3 = vmax.f32 %v3314_v63, 0.0  ;;  %v3318_v4 = vadd.f32 %v3317_v0, %v2746_v62 }
 0x1f1   : > { %v2769_v7 = vmax.f32 %v3316_v2, 0.0 }
 0x1f2   : > { %v3291_v8 = vpack.c.bf16 %v2768_v3, %v2767_v1  ;;  %v2770_v9 = vmax.f32 %v3318_v4, 0.0  ;;  %v2458_v10 = vpop.f32.mrb[12].mxu1 }
 0x1f3   : > { %v2750_v11 = vpop.f32.mrb[12].mxu0  ;;  %v3319_v12 = vadd.f32 %v2458_v10, %v4787_v5  ;;  %v2460_v13 = vpop.f32.mrb[13].mxu1 }
 0x1f4   : > { %v2752_v14 = vpop.f32.mrb[13].mxu0  ;;  %2827 = vst [vmem:[%s4799_s26 + $0x20] sm:$0xff] %v3291_v8  ;;  %v3292_v15 = vpack.c.bf16 %v2770_v9, %v2769_v7  ;;  %v3321_v16 = vadd.f32 %v2460_v13, %v4789_v6  ;;  %v2462_v17 = vpop.f32.mrb[14].mxu1 }
 0x1f5   : > { %v2754_v18 = vpop.f32.mrb[14].mxu0  ;;  %v3320_v19 = vadd.f32 %v3319_v12, %v2750_v11  ;;  %v3323_v20 = vadd.f32 %v2462_v17, %v4787_v5  ;;  %v2464_v21 = vpop.f32.mrb[15].mxu1 }
 0x1f6   : > { %v2756_v22 = vpop.f32.mrb[15].mxu0  ;;  %2828 = vst [vmem:[%s4799_s26 + $0x28] sm:$0xff] %v3292_v15  ;;  %v3322_v23 = vadd.f32 %v3321_v16, %v2752_v14  ;;  %v3325_v24 = vadd.f32 %v2464_v21, %v4789_v6 }
 0x1f7   : > { %v2771_v25 = vmax.f32 %v3320_v19, 0.0  ;;  %v3324_v26 = vadd.f32 %v3323_v20, %v2754_v18 }
 0x1f8   : > { %v2772_v27 = vmax.f32 %v3322_v23, 0.0  ;;  %v3326_v28 = vadd.f32 %v3325_v24, %v2756_v22 }
 0x1f9   : > { %v2773_v29 = vmax.f32 %v3324_v26, 0.0 }
 0x1fa   : > { %v3293_v30 = vpack.c.bf16 %v2772_v27, %v2771_v25  ;;  %v2774_v31 = vmax.f32 %v3326_v28, 0.0 }
 0x1fc   : > { %2829 = vst [vmem:[%s4799_s26 + $0x30] sm:$0xff] %v3293_v30  ;;  %v3294_v32 = vpack.c.bf16 %v2774_v31, %v2773_v29 }
 0x1fe   : > { %2830 = vst [vmem:[%s4799_s26 + $0x38] sm:$0xff] %v3294_v32 }
 0x1ff PF: > { %s13_s14 = sadd.s32 1, %s3853_s14   ;;  %s4834_s12 = smov %s3849_s13 }
 0x200   : > { %p10_p5 = scmp.ge.s32.totalorder %s13_s14, 4   ;;  %s4835_s13 = smov %s4837_s15 }
 0x202   :  { %12 = sbr.rel (!%p10_p5) target bundleno = 2 (0x2), region = 68 }

// kernel: discriminator_forward.8
= control target key start
LH: loop header
LB: loop body
LE: loop exit
PB: predicated region body
PF: predicated region fallthrough
CT: control target
= control target key end

     0   :  { %s10501_s12 = smov 0   ;;  %s10503_s13 = smov 0   ;;  %s12459_s0 = inlined_call_operand.vmem [shape: bf16[32,4096], index: 0, kind: input, shape index: {}]   ;;  %s12460_s1 = inlined_call_operand.vmem [shape: bf16[4096,512], index: 1, kind: input, shape index: {}]   ;;  %s12461_s2 = inlined_call_operand.vmem [shape: f32[1,512], index: 2, kind: input, shape index: {}]   ;;  %s12462_s3 = inlined_call_operand.vmem [shape: bf16[32,512], index: 3, kind: output, shape index: {}]  }
   0x1   :  { %s10505_s14 = smov 0   ;;  %s10507_s15 = smov 0  }
   0x2   :  { %s10509_s16 = smov 0  }
   0x3 LB: > { %s22_s17 = sadd.s32 1, %s10475_s15  ;;  %s8902_s18 = sadd.s32 4294967295, %s10479_s16   ;;  %s10479_s16 = sphi %s10509_s16, %s13_s16   ;;  %s10475_s15 = sphi %s10507_s15, %s12467_s15   ;;  %s10471_s14 = sphi %s10505_s14, %s12466_s14   ;;  %s10467_s13 = sphi %s10503_s13, %s12465_s13   ;;  %s10463_s12 = sphi %s10501_s12, %s12464_s12  }
   0x4   : > { %p23_p0 = scmp.ge.s32.totalorder %s22_s17, 2  ;;  %p65_p1 = scmp.ne.s32.totalorder %s10467_s13, %s10463_s12 }
   0x5   : > { %p66_p2 = scmp.eq.s32.totalorder %s10479_s16, 0  ;;  %p123_p4 = scmp.eq.s32.totalorder %s8902_s18, 1 }
   0x6   : > { %s12469_s17 = smov (%p23_p0, %s22_s17), 0  ;;  %s58_s20 = sadd.s32 1, %s10467_s13 }
   0x7   : > { %p67_p3 = por %p66_p2, %p65_p1  ;;  %s55_s19 = ssub.s32 %s10475_s15, %s12469_s17 }
   0x8   : > { %p56_p5 = scmp.eq.s32.totalorder %s55_s19, 0  ;;  %p10536_p6 = por %p123_p4, %p65_p1 }
   0x9   : > { %p8906_p7 = scmp.ge.s32.totalorder %s10479_s16, 2 }
   0xa   : > { %s10541_s22 = scalar_select %p56_p5, %s10467_s13, %s58_s20  }
   0xb   : > { %155 = sbr.rel (%p8906_p7) target bundleno = 278 (0x116), region = 20 }
  0x12   : > { %158 = sbr.rel (!%p67_p3) target bundleno = 278 (0x116), region = 24  ;;  %s160_s23 = sand.u32 (%p67_p3), 1, %s10467_s13  }
  0x13   : > { %s9499_s24 = sshll.u32 (%p67_p3), %s10475_s15, 3  ;;  %s8907_s25 = sshll.u32 (%p67_p3), %s160_s23, 12 }
  0x14   : > { %s10549_s28 = scalar_lea.vmem (%p67_p3), %s12460_s1, %s9499_s24  ;;  %s10554_s29 = scalar_lea.vmem (%p67_p3), [#allocation2], %s8907_s25 }
  0x15   : > { %v1218_v0 = vld [vmem:[%s10549_s28] sm:$0xff] (%p67_p3)  ;;  %v1220_v1 = vld [vmem:[%s10549_s28 + $0x10] sm:$0xff] (%p67_p3) }
  0x16   : > { %v1222_v2 = vld [vmem:[%s10549_s28 + $0x20] sm:$0xff] (%p67_p3)  ;;  %1219 = vst [vmem:[%s10554_s29] sm:$0xff] (%p67_p3), %v1218_v0  ;;  %1221 = vst [vmem:[%s10554_s29 + $0x8] sm:$0xff] (%p67_p3), %v1220_v1  ;;  %v1224_v3 = vld [vmem:[%s10549_s28 + $0x30] sm:$0xff] (%p67_p3) }
  0x17   : > { %1223 = vst [vmem:[%s10554_s29 + $0x10] sm:$0xff] (%p67_p3), %v1222_v2  ;;  %v1226_v4 = vld [vmem:[%s10549_s28 + $0x40] sm:$0xff] (%p67_p3)  ;;  %v1228_v5 = vld [vmem:[%s10549_s28 + $0x50] sm:$0xff] (%p67_p3)  ;;  %1225 = vst [vmem:[%s10554_s29 + $0x18] sm:$0xff] (%p67_p3), %v1224_v3 }
  0x18   : > { %1227 = vst [vmem:[%s10554_s29 + $0x20] sm:$0xff] (%p67_p3), %v1226_v4  ;;  %1229 = vst [vmem:[%s10554_s29 + $0x28] sm:$0xff] (%p67_p3), %v1228_v5  ;;  %v1230_v6 = vld [vmem:[%s10549_s28 + $0x60] sm:$0xff] (%p67_p3)  ;;  %v1232_v7 = vld [vmem:[%s10549_s28 + $0x70] sm:$0xff] (%p67_p3) }
  0x19   : > { %v1234_v8 = vld [vmem:[%s10549_s28 + $0x80] sm:$0xff]  ;;  %1231 = vst [vmem:[%s10554_s29 + $0x30] sm:$0xff] %v1230_v6  ;;  %1233 = vst [vmem:[%s10554_s29 + $0x38] sm:$0xff] %v1232_v7  ;;  %v1236_v9 = vld [vmem:[%s10549_s28 + $0x90] sm:$0xff] }
  0x1a   : > { %1235 = vst [vmem:[%s10554_s29 + $0x40] sm:$0xff] %v1234_v8  ;;  %v1238_v10 = vld [vmem:[%s10549_s28 + $0xa0] sm:$0xff]  ;;  %v1240_v11 = vld [vmem:[%s10549_s28 + $0xb0] sm:$0xff]  ;;  %1237 = vst [vmem:[%s10554_s29 + $0x48] sm:$0xff] %v1236_v9 }
  0x1b   : > { %1239 = vst [vmem:[%s10554_s29 + $0x50] sm:$0xff] %v1238_v10  ;;  %1241 = vst [vmem:[%s10554_s29 + $0x58] sm:$0xff] %v1240_v11  ;;  %v1242_v12 = vld [vmem:[%s10549_s28 + $0xc0] sm:$0xff]  ;;  %v1244_v13 = vld [vmem:[%s10549_s28 + $0xd0] sm:$0xff] }
  0x1c   : > { %v1246_v14 = vld [vmem:[%s10549_s28 + $0xe0] sm:$0xff]  ;;  %1243 = vst [vmem:[%s10554_s29 + $0x60] sm:$0xff] %v1242_v12  ;;  %1245 = vst [vmem:[%s10554_s29 + $0x68] sm:$0xff] %v1244_v13  ;;  %v1248_v15 = vld [vmem:[%s10549_s28 + $0xf0] sm:$0xff] }
  0x1d   : > { %1247 = vst [vmem:[%s10554_s29 + $0x70] sm:$0xff] %v1246_v14  ;;  %v1250_v16 = vld [vmem:[%s10549_s28 + $0x100] sm:$0xff]  ;;  %v1252_v17 = vld [vmem:[%s10549_s28 + $0x110] sm:$0xff]  ;;  %1249 = vst [vmem:[%s10554_s29 + $0x78] sm:$0xff] %v1248_v15 }
  0x1e   : > { %1251 = vst [vmem:[%s10554_s29 + $0x80] sm:$0xff] %v1250_v16  ;;  %1253 = vst [vmem:[%s10554_s29 + $0x88] sm:$0xff] %v1252_v17  ;;  %v1254_v18 = vld [vmem:[%s10549_s28 + $0x120] sm:$0xff]  ;;  %v1256_v19 = vld [vmem:[%s10549_s28 + $0x130] sm:$0xff] }
  0x1f   : > { %v1258_v20 = vld [vmem:[%s10549_s28 + $0x140] sm:$0xff]  ;;  %1255 = vst [vmem:[%s10554_s29 + $0x90] sm:$0xff] %v1254_v18  ;;  %1257 = vst [vmem:[%s10554_s29 + $0x98] sm:$0xff] %v1256_v19  ;;  %v1260_v21 = vld [vmem:[%s10549_s28 + $0x150] sm:$0xff] }
  0x20   : > { %1259 = vst [vmem:[%s10554_s29 + $0xa0] sm:$0xff] %v1258_v20  ;;  %v1262_v22 = vld [vmem:[%s10549_s28 + $0x160] sm:$0xff]  ;;  %v1264_v23 = vld [vmem:[%s10549_s28 + $0x170] sm:$0xff]  ;;  %1261 = vst [vmem:[%s10554_s29 + $0xa8] sm:$0xff] %v1260_v21 }
  0x21   : > { %1263 = vst [vmem:[%s10554_s29 + $0xb0] sm:$0xff] %v1262_v22  ;;  %1265 = vst [vmem:[%s10554_s29 + $0xb8] sm:$0xff] %v1264_v23  ;;  %v1266_v24 = vld [vmem:[%s10549_s28 + $0x180] sm:$0xff]  ;;  %v1268_v25 = vld [vmem:[%s10549_s28 + $0x190] sm:$0xff] }
  0x22   : > { %v1270_v26 = vld [vmem:[%s10549_s28 + $0x1a0] sm:$0xff]  ;;  %1267 = vst [vmem:[%s10554_s29 + $0xc0] sm:$0xff] %v1266_v24  ;;  %1269 = vst [vmem:[%s10554_s29 + $0xc8] sm:$0xff] %v1268_v25  ;;  %v1272_v27 = vld [vmem:[%s10549_s28 + $0x1b0] sm:$0xff] }
  0x23   : > { %1271 = vst [vmem:[%s10554_s29 + $0xd0] sm:$0xff] %v1270_v26  ;;  %v1274_v28 = vld [vmem:[%s10549_s28 + $0x1c0] sm:$0xff]  ;;  %v1276_v29 = vld [vmem:[%s10549_s28 + $0x1d0] sm:$0xff]  ;;  %1273 = vst [vmem:[%s10554_s29 + $0xd8] sm:$0xff] %v1272_v27 }
  0x24   : > { %1275 = vst [vmem:[%s10554_s29 + $0xe0] sm:$0xff] %v1274_v28  ;;  %1277 = vst [vmem:[%s10554_s29 + $0xe8] sm:$0xff] %v1276_v29  ;;  %v1278_v30 = vld [vmem:[%s10549_s28 + $0x1e0] sm:$0xff]  ;;  %v1280_v31 = vld [vmem:[%s10549_s28 + $0x1f0] sm:$0xff] }
  0x25   : > { %v1282_v32 = vld [vmem:[%s10549_s28 + $0x200] sm:$0xff]  ;;  %1279 = vst [vmem:[%s10554_s29 + $0xf0] sm:$0xff] %v1278_v30  ;;  %1281 = vst [vmem:[%s10554_s29 + $0xf8] sm:$0xff] %v1280_v31  ;;  %v1284_v33 = vld [vmem:[%s10549_s28 + $0x210] sm:$0xff] }
  0x26   : > { %1283 = vst [vmem:[%s10554_s29 + $0x100] sm:$0xff] %v1282_v32  ;;  %v1286_v34 = vld [vmem:[%s10549_s28 + $0x220] sm:$0xff]  ;;  %v1288_v35 = vld [vmem:[%s10549_s28 + $0x230] sm:$0xff]  ;;  %1285 = vst [vmem:[%s10554_s29 + $0x108] sm:$0xff] %v1284_v33 }
  0x27   : > { %1287 = vst [vmem:[%s10554_s29 + $0x110] sm:$0xff] %v1286_v34  ;;  %1289 = vst [vmem:[%s10554_s29 + $0x118] sm:$0xff] %v1288_v35  ;;  %v1290_v36 = vld [vmem:[%s10549_s28 + $0x240] sm:$0xff]  ;;  %v1292_v37 = vld [vmem:[%s10549_s28 + $0x250] sm:$0xff] }
  0x28   : > { %v1294_v38 = vld [vmem:[%s10549_s28 + $0x260] sm:$0xff]  ;;  %1291 = vst [vmem:[%s10554_s29 + $0x120] sm:$0xff] %v1290_v36  ;;  %1293 = vst [vmem:[%s10554_s29 + $0x128] sm:$0xff] %v1292_v37  ;;  %v1296_v39 = vld [vmem:[%s10549_s28 + $0x270] sm:$0xff] }
  0x29   : > { %1295 = vst [vmem:[%s10554_s29 + $0x130] sm:$0xff] %v1294_v38  ;;  %v1298_v40 = vld [vmem:[%s10549_s28 + $0x280] sm:$0xff]  ;;  %v1300_v41 = vld [vmem:[%s10549_s28 + $0x290] sm:$0xff]  ;;  %1297 = vst [vmem:[%s10554_s29 + $0x138] sm:$0xff] %v1296_v39 }
  0x2a   : > { %1299 = vst [vmem:[%s10554_s29 + $0x140] sm:$0xff] %v1298_v40  ;;  %1301 = vst [vmem:[%s10554_s29 + $0x148] sm:$0xff] %v1300_v41  ;;  %v1302_v42 = vld [vmem:[%s10549_s28 + $0x2a0] sm:$0xff]  ;;  %v1304_v43 = vld [vmem:[%s10549_s28 + $0x2b0] sm:$0xff] }
  0x2b   : > { %v1306_v44 = vld [vmem:[%s10549_s28 + $0x2c0] sm:$0xff]  ;;  %1303 = vst [vmem:[%s10554_s29 + $0x150] sm:$0xff] %v1302_v42  ;;  %1305 = vst [vmem:[%s10554_s29 + $0x158] sm:$0xff] %v1304_v43  ;;  %v1308_v45 = vld [vmem:[%s10549_s28 + $0x2d0] sm:$0xff] }
  0x2c   : > { %1307 = vst [vmem:[%s10554_s29 + $0x160] sm:$0xff] %v1306_v44  ;;  %v1310_v46 = vld [vmem:[%s10549_s28 + $0x2e0] sm:$0xff]  ;;  %v1312_v47 = vld [vmem:[%s10549_s28 + $0x2f0] sm:$0xff]  ;;  %1309 = vst [vmem:[%s10554_s29 + $0x168] sm:$0xff] %v1308_v45 }
  0x2d   : > { %1311 = vst [vmem:[%s10554_s29 + $0x170] sm:$0xff] %v1310_v46  ;;  %1313 = vst [vmem:[%s10554_s29 + $0x178] sm:$0xff] %v1312_v47  ;;  %v1314_v48 = vld [vmem:[%s10549_s28 + $0x300] sm:$0xff]  ;;  %v1316_v49 = vld [vmem:[%s10549_s28 + $0x310] sm:$0xff] }
  0x2e   : > { %v1318_v50 = vld [vmem:[%s10549_s28 + $0x320] sm:$0xff]  ;;  %1315 = vst [vmem:[%s10554_s29 + $0x180] sm:$0xff] %v1314_v48  ;;  %1317 = vst [vmem:[%s10554_s29 + $0x188] sm:$0xff] %v1316_v49  ;;  %v1320_v51 = vld [vmem:[%s10549_s28 + $0x330] sm:$0xff] }
  0x2f   : > { %1319 = vst [vmem:[%s10554_s29 + $0x190] sm:$0xff] %v1318_v50  ;;  %v1322_v52 = vld [vmem:[%s10549_s28 + $0x340] sm:$0xff]  ;;  %v1324_v53 = vld [vmem:[%s10549_s28 + $0x350] sm:$0xff]  ;;  %1321 = vst [vmem:[%s10554_s29 + $0x198] sm:$0xff] %v1320_v51 }
  0x30   : > { %1323 = vst [vmem:[%s10554_s29 + $0x1a0] sm:$0xff] %v1322_v52  ;;  %1325 = vst [vmem:[%s10554_s29 + $0x1a8] sm:$0xff] %v1324_v53  ;;  %v1326_v54 = vld [vmem:[%s10549_s28 + $0x360] sm:$0xff]  ;;  %v1328_v55 = vld [vmem:[%s10549_s28 + $0x370] sm:$0xff] }
  0x31   : > { %v1330_v56 = vld [vmem:[%s10549_s28 + $0x380] sm:$0xff]  ;;  %1327 = vst [vmem:[%s10554_s29 + $0x1b0] sm:$0xff] %v1326_v54  ;;  %1329 = vst [vmem:[%s10554_s29 + $0x1b8] sm:$0xff] %v1328_v55  ;;  %v1332_v57 = vld [vmem:[%s10549_s28 + $0x390] sm:$0xff] }
  0x32   : > { %1331 = vst [vmem:[%s10554_s29 + $0x1c0] sm:$0xff] %v1330_v56  ;;  %v1334_v58 = vld [vmem:[%s10549_s28 + $0x3a0] sm:$0xff]  ;;  %v1336_v59 = vld [vmem:[%s10549_s28 + $0x3b0] sm:$0xff]  ;;  %1333 = vst [vmem:[%s10554_s29 + $0x1c8] sm:$0xff] %v1332_v57 }
  0x33   : > { %1335 = vst [vmem:[%s10554_s29 + $0x1d0] sm:$0xff] %v1334_v58  ;;  %1337 = vst [vmem:[%s10554_s29 + $0x1d8] sm:$0xff] %v1336_v59  ;;  %v1338_v60 = vld [vmem:[%s10549_s28 + $0x3c0] sm:$0xff]  ;;  %v1340_v61 = vld [vmem:[%s10549_s28 + $0x3d0] sm:$0xff] }
  0x34   : > { %v1342_v62 = vld [vmem:[%s10549_s28 + $0x3e0] sm:$0xff]  ;;  %1339 = vst [vmem:[%s10554_s29 + $0x1e0] sm:$0xff] %v1338_v60  ;;  %1341 = vst [vmem:[%s10554_s29 + $0x1e8] sm:$0xff] %v1340_v61  ;;  %v1344_v63 = vld [vmem:[%s10549_s28 + $0x3f0] sm:$0xff] }
  0x35   : > { %1343 = vst [vmem:[%s10554_s29 + $0x1f0] sm:$0xff] %v1342_v62  ;;  %v1346_v0 = vld [vmem:[%s10549_s28 + $0x400] sm:$0xff]  ;;  %v1348_v1 = vld [vmem:[%s10549_s28 + $0x410] sm:$0xff]  ;;  %1345 = vst [vmem:[%s10554_s29 + $0x1f8] sm:$0xff] %v1344_v63 }
  0x36   : > { %1347 = vst [vmem:[%s10554_s29 + $0x200] sm:$0xff] %v1346_v0  ;;  %1349 = vst [vmem:[%s10554_s29 + $0x208] sm:$0xff] %v1348_v1  ;;  %v1350_v2 = vld [vmem:[%s10549_s28 + $0x420] sm:$0xff]  ;;  %v1352_v3 = vld [vmem:[%s10549_s28 + $0x430] sm:$0xff] }
  0x37   : > { %v1354_v4 = vld [vmem:[%s10549_s28 + $0x440] sm:$0xff]  ;;  %1351 = vst [vmem:[%s10554_s29 + $0x210] sm:$0xff] %v1350_v2  ;;  %1353 = vst [vmem:[%s10554_s29 + $0x218] sm:$0xff] %v1352_v3  ;;  %v1356_v5 = vld [vmem:[%s10549_s28 + $0x450] sm:$0xff] }
  0x38   : > { %1355 = vst [vmem:[%s10554_s29 + $0x220] sm:$0xff] %v1354_v4  ;;  %v1358_v6 = vld [vmem:[%s10549_s28 + $0x460] sm:$0xff]  ;;  %v1360_v7 = vld [vmem:[%s10549_s28 + $0x470] sm:$0xff]  ;;  %1357 = vst [vmem:[%s10554_s29 + $0x228] sm:$0xff] %v1356_v5 }
  0x39   : > { %1359 = vst [vmem:[%s10554_s29 + $0x230] sm:$0xff] %v1358_v6  ;;  %1361 = vst [vmem:[%s10554_s29 + $0x238] sm:$0xff] %v1360_v7  ;;  %v1362_v8 = vld [vmem:[%s10549_s28 + $0x480] sm:$0xff]  ;;  %v1364_v9 = vld [vmem:[%s10549_s28 + $0x490] sm:$0xff] }
  0x3a   : > { %v1366_v10 = vld [vmem:[%s10549_s28 + $0x4a0] sm:$0xff]  ;;  %1363 = vst [vmem:[%s10554_s29 + $0x240] sm:$0xff] %v1362_v8  ;;  %1365 = vst [vmem:[%s10554_s29 + $0x248] sm:$0xff] %v1364_v9  ;;  %v1368_v11 = vld [vmem:[%s10549_s28 + $0x4b0] sm:$0xff] }
  0x3b   : > { %1367 = vst [vmem:[%s10554_s29 + $0x250] sm:$0xff] %v1366_v10  ;;  %v1370_v12 = vld [vmem:[%s10549_s28 + $0x4c0] sm:$0xff]  ;;  %v1372_v13 = vld [vmem:[%s10549_s28 + $0x4d0] sm:$0xff]  ;;  %1369 = vst [vmem:[%s10554_s29 + $0x258] sm:$0xff] %v1368_v11 }
  0x3c   : > { %1371 = vst [vmem:[%s10554_s29 + $0x260] sm:$0xff] %v1370_v12  ;;  %1373 = vst [vmem:[%s10554_s29 + $0x268] sm:$0xff] %v1372_v13  ;;  %v1374_v14 = vld [vmem:[%s10549_s28 + $0x4e0] sm:$0xff]  ;;  %v1376_v15 = vld [vmem:[%s10549_s28 + $0x4f0] sm:$0xff] }
  0x3d   : > { %v1378_v16 = vld [vmem:[%s10549_s28 + $0x500] sm:$0xff]  ;;  %1375 = vst [vmem:[%s10554_s29 + $0x270] sm:$0xff] %v1374_v14  ;;  %1377 = vst [vmem:[%s10554_s29 + $0x278] sm:$0xff] %v1376_v15  ;;  %v1380_v17 = vld [vmem:[%s10549_s28 + $0x510] sm:$0xff] }
  0x3e   : > { %1379 = vst [vmem:[%s10554_s29 + $0x280] sm:$0xff] %v1378_v16  ;;  %v1382_v18 = vld [vmem:[%s10549_s28 + $0x520] sm:$0xff]  ;;  %v1384_v19 = vld [vmem:[%s10549_s28 + $0x530] sm:$0xff]  ;;  %1381 = vst [vmem:[%s10554_s29 + $0x288] sm:$0xff] %v1380_v17 }
  0x3f   : > { %1383 = vst [vmem:[%s10554_s29 + $0x290] sm:$0xff] %v1382_v18  ;;  %1385 = vst [vmem:[%s10554_s29 + $0x298] sm:$0xff] %v1384_v19  ;;  %v1386_v20 = vld [vmem:[%s10549_s28 + $0x540] sm:$0xff]  ;;  %v1388_v21 = vld [vmem:[%s10549_s28 + $0x550] sm:$0xff] }
  0x40   : > { %v1390_v22 = vld [vmem:[%s10549_s28 + $0x560] sm:$0xff]  ;;  %1387 = vst [vmem:[%s10554_s29 + $0x2a0] sm:$0xff] %v1386_v20  ;;  %1389 = vst [vmem:[%s10554_s29 + $0x2a8] sm:$0xff] %v1388_v21  ;;  %v1392_v23 = vld [vmem:[%s10549_s28 + $0x570] sm:$0xff] }
  0x41   : > { %1391 = vst [vmem:[%s10554_s29 + $0x2b0] sm:$0xff] %v1390_v22  ;;  %v1394_v24 = vld [vmem:[%s10549_s28 + $0x580] sm:$0xff]  ;;  %v1396_v25 = vld [vmem:[%s10549_s28 + $0x590] sm:$0xff]  ;;  %1393 = vst [vmem:[%s10554_s29 + $0x2b8] sm:$0xff] %v1392_v23 }
  0x42   : > { %1395 = vst [vmem:[%s10554_s29 + $0x2c0] sm:$0xff] %v1394_v24  ;;  %1397 = vst [vmem:[%s10554_s29 + $0x2c8] sm:$0xff] %v1396_v25  ;;  %v1398_v26 = vld [vmem:[%s10549_s28 + $0x5a0] sm:$0xff]  ;;  %v1400_v27 = vld [vmem:[%s10549_s28 + $0x5b0] sm:$0xff] }
  0x43   : > { %v1402_v28 = vld [vmem:[%s10549_s28 + $0x5c0] sm:$0xff]  ;;  %1399 = vst [vmem:[%s10554_s29 + $0x2d0] sm:$0xff] %v1398_v26  ;;  %1401 = vst [vmem:[%s10554_s29 + $0x2d8] sm:$0xff] %v1400_v27  ;;  %v1404_v29 = vld [vmem:[%s10549_s28 + $0x5d0] sm:$0xff] }
  0x44   : > { %1403 = vst [vmem:[%s10554_s29 + $0x2e0] sm:$0xff] %v1402_v28  ;;  %v1406_v30 = vld [vmem:[%s10549_s28 + $0x5e0] sm:$0xff]  ;;  %v1408_v31 = vld [vmem:[%s10549_s28 + $0x5f0] sm:$0xff]  ;;  %1405 = vst [vmem:[%s10554_s29 + $0x2e8] sm:$0xff] %v1404_v29 }
  0x45   : > { %1407 = vst [vmem:[%s10554_s29 + $0x2f0] sm:$0xff] %v1406_v30  ;;  %1409 = vst [vmem:[%s10554_s29 + $0x2f8] sm:$0xff] %v1408_v31  ;;  %v1410_v32 = vld [vmem:[%s10549_s28 + $0x600] sm:$0xff]  ;;  %v1412_v33 = vld [vmem:[%s10549_s28 + $0x610] sm:$0xff] }
  0x46   : > { %v1414_v34 = vld [vmem:[%s10549_s28 + $0x620] sm:$0xff]  ;;  %1411 = vst [vmem:[%s10554_s29 + $0x300] sm:$0xff] %v1410_v32  ;;  %1413 = vst [vmem:[%s10554_s29 + $0x308] sm:$0xff] %v1412_v33  ;;  %v1416_v35 = vld [vmem:[%s10549_s28 + $0x630] sm:$0xff] }
  0x47   : > { %1415 = vst [vmem:[%s10554_s29 + $0x310] sm:$0xff] %v1414_v34  ;;  %v1418_v36 = vld [vmem:[%s10549_s28 + $0x640] sm:$0xff]  ;;  %v1420_v37 = vld [vmem:[%s10549_s28 + $0x650] sm:$0xff]  ;;  %1417 = vst [vmem:[%s10554_s29 + $0x318] sm:$0xff] %v1416_v35 }
  0x48   : > { %1419 = vst [vmem:[%s10554_s29 + $0x320] sm:$0xff] %v1418_v36  ;;  %1421 = vst [vmem:[%s10554_s29 + $0x328] sm:$0xff] %v1420_v37  ;;  %v1422_v38 = vld [vmem:[%s10549_s28 + $0x660] sm:$0xff]  ;;  %v1424_v39 = vld [vmem:[%s10549_s28 + $0x670] sm:$0xff] }
  0x49   : > { %v1426_v40 = vld [vmem:[%s10549_s28 + $0x680] sm:$0xff]  ;;  %1423 = vst [vmem:[%s10554_s29 + $0x330] sm:$0xff] %v1422_v38  ;;  %1425 = vst [vmem:[%s10554_s29 + $0x338] sm:$0xff] %v1424_v39  ;;  %v1428_v41 = vld [vmem:[%s10549_s28 + $0x690] sm:$0xff] }
  0x4a   : > { %1427 = vst [vmem:[%s10554_s29 + $0x340] sm:$0xff] %v1426_v40  ;;  %v1430_v42 = vld [vmem:[%s10549_s28 + $0x6a0] sm:$0xff]  ;;  %v1432_v43 = vld [vmem:[%s10549_s28 + $0x6b0] sm:$0xff]  ;;  %1429 = vst [vmem:[%s10554_s29 + $0x348] sm:$0xff] %v1428_v41 }
  0x4b   : > { %1431 = vst [vmem:[%s10554_s29 + $0x350] sm:$0xff] %v1430_v42  ;;  %1433 = vst [vmem:[%s10554_s29 + $0x358] sm:$0xff] %v1432_v43  ;;  %v1434_v44 = vld [vmem:[%s10549_s28 + $0x6c0] sm:$0xff]  ;;  %v1436_v45 = vld [vmem:[%s10549_s28 + $0x6d0] sm:$0xff] }
  0x4c   : > { %v1438_v46 = vld [vmem:[%s10549_s28 + $0x6e0] sm:$0xff]  ;;  %1435 = vst [vmem:[%s10554_s29 + $0x360] sm:$0xff] %v1434_v44  ;;  %1437 = vst [vmem:[%s10554_s29 + $0x368] sm:$0xff] %v1436_v45  ;;  %v1440_v47 = vld [vmem:[%s10549_s28 + $0x6f0] sm:$0xff] }
  0x4d   : > { %1439 = vst [vmem:[%s10554_s29 + $0x370] sm:$0xff] %v1438_v46  ;;  %v1442_v48 = vld [vmem:[%s10549_s28 + $0x700] sm:$0xff]  ;;  %v1444_v49 = vld [vmem:[%s10549_s28 + $0x710] sm:$0xff]  ;;  %1441 = vst [vmem:[%s10554_s29 + $0x378] sm:$0xff] %v1440_v47 }
  0x4e   : > { %1443 = vst [vmem:[%s10554_s29 + $0x380] sm:$0xff] %v1442_v48  ;;  %1445 = vst [vmem:[%s10554_s29 + $0x388] sm:$0xff] %v1444_v49  ;;  %v1446_v50 = vld [vmem:[%s10549_s28 + $0x720] sm:$0xff]  ;;  %v1448_v51 = vld [vmem:[%s10549_s28 + $0x730] sm:$0xff] }
  0x4f   : > { %v1450_v52 = vld [vmem:[%s10549_s28 + $0x740] sm:$0xff]  ;;  %1447 = vst [vmem:[%s10554_s29 + $0x390] sm:$0xff] %v1446_v50  ;;  %1449 = vst [vmem:[%s10554_s29 + $0x398] sm:$0xff] %v1448_v51  ;;  %v1452_v53 = vld [vmem:[%s10549_s28 + $0x750] sm:$0xff] }
  0x50   : > { %1451 = vst [vmem:[%s10554_s29 + $0x3a0] sm:$0xff] %v1450_v52  ;;  %v1454_v54 = vld [vmem:[%s10549_s28 + $0x760] sm:$0xff]  ;;  %v1456_v55 = vld [vmem:[%s10549_s28 + $0x770] sm:$0xff]  ;;  %1453 = vst [vmem:[%s10554_s29 + $0x3a8] sm:$0xff] %v1452_v53 }
  0x51   : > { %1455 = vst [vmem:[%s10554_s29 + $0x3b0] sm:$0xff] %v1454_v54  ;;  %1457 = vst [vmem:[%s10554_s29 + $0x3b8] sm:$0xff] %v1456_v55  ;;  %v1458_v56 = vld [vmem:[%s10549_s28 + $0x780] sm:$0xff]  ;;  %v1460_v57 = vld [vmem:[%s10549_s28 + $0x790] sm:$0xff] }
  0x52   : > { %v1462_v58 = vld [vmem:[%s10549_s28 + $0x7a0] sm:$0xff]  ;;  %1459 = vst [vmem:[%s10554_s29 + $0x3c0] sm:$0xff] %v1458_v56  ;;  %1461 = vst [vmem:[%s10554_s29 + $0x3c8] sm:$0xff] %v1460_v57  ;;  %v1464_v59 = vld [vmem:[%s10549_s28 + $0x7b0] sm:$0xff] }
  0x53   : > { %1463 = vst [vmem:[%s10554_s29 + $0x3d0] sm:$0xff] %v1462_v58  ;;  %v1466_v60 = vld [vmem:[%s10549_s28 + $0x7c0] sm:$0xff]  ;;  %v1468_v61 = vld [vmem:[%s10549_s28 + $0x7d0] sm:$0xff]  ;;  %1465 = vst [vmem:[%s10554_s29 + $0x3d8] sm:$0xff] %v1464_v59 }
  0x54   : > { %1467 = vst [vmem:[%s10554_s29 + $0x3e0] sm:$0xff] %v1466_v60  ;;  %1469 = vst [vmem:[%s10554_s29 + $0x3e8] sm:$0xff] %v1468_v61  ;;  %v1470_v62 = vld [vmem:[%s10549_s28 + $0x7e0] sm:$0xff]  ;;  %v1472_v63 = vld [vmem:[%s10549_s28 + $0x7f0] sm:$0xff] }
  0x55   : > { %v1474_v0 = vld [vmem:[%s10549_s28 + $0x800] sm:$0xff]  ;;  %1471 = vst [vmem:[%s10554_s29 + $0x3f0] sm:$0xff] %v1470_v62  ;;  %1473 = vst [vmem:[%s10554_s29 + $0x3f8] sm:$0xff] %v1472_v63  ;;  %v1476_v1 = vld [vmem:[%s10549_s28 + $0x810] sm:$0xff] }
  0x56   : > { %1475 = vst [vmem:[%s10554_s29 + $0x400] sm:$0xff] %v1474_v0  ;;  %v1478_v2 = vld [vmem:[%s10549_s28 + $0x820] sm:$0xff]  ;;  %v1480_v3 = vld [vmem:[%s10549_s28 + $0x830] sm:$0xff]  ;;  %1477 = vst [vmem:[%s10554_s29 + $0x408] sm:$0xff] %v1476_v1 }
  0x57   : > { %1479 = vst [vmem:[%s10554_s29 + $0x410] sm:$0xff] %v1478_v2  ;;  %1481 = vst [vmem:[%s10554_s29 + $0x418] sm:$0xff] %v1480_v3  ;;  %v1482_v4 = vld [vmem:[%s10549_s28 + $0x840] sm:$0xff]  ;;  %v1484_v5 = vld [vmem:[%s10549_s28 + $0x850] sm:$0xff] }
  0x58   : > { %v1486_v6 = vld [vmem:[%s10549_s28 + $0x860] sm:$0xff]  ;;  %1483 = vst [vmem:[%s10554_s29 + $0x420] sm:$0xff] %v1482_v4  ;;  %1485 = vst [vmem:[%s10554_s29 + $0x428] sm:$0xff] %v1484_v5  ;;  %v1488_v7 = vld [vmem:[%s10549_s28 + $0x870] sm:$0xff] }
  0x59   : > { %1487 = vst [vmem:[%s10554_s29 + $0x430] sm:$0xff] %v1486_v6  ;;  %v1490_v8 = vld [vmem:[%s10549_s28 + $0x880] sm:$0xff]  ;;  %v1492_v9 = vld [vmem:[%s10549_s28 + $0x890] sm:$0xff]  ;;  %1489 = vst [vmem:[%s10554_s29 + $0x438] sm:$0xff] %v1488_v7 }
  0x5a   : > { %1491 = vst [vmem:[%s10554_s29 + $0x440] sm:$0xff] %v1490_v8  ;;  %1493 = vst [vmem:[%s10554_s29 + $0x448] sm:$0xff] %v1492_v9  ;;  %v1494_v10 = vld [vmem:[%s10549_s28 + $0x8a0] sm:$0xff]  ;;  %v1496_v11 = vld [vmem:[%s10549_s28 + $0x8b0] sm:$0xff] }
  0x5b   : > { %v1498_v12 = vld [vmem:[%s10549_s28 + $0x8c0] sm:$0xff]  ;;  %1495 = vst [vmem:[%s10554_s29 + $0x450] sm:$0xff] %v1494_v10  ;;  %1497 = vst [vmem:[%s10554_s29 + $0x458] sm:$0xff] %v1496_v11  ;;  %v1500_v13 = vld [vmem:[%s10549_s28 + $0x8d0] sm:$0xff] }
  0x5c   : > { %1499 = vst [vmem:[%s10554_s29 + $0x460] sm:$0xff] %v1498_v12  ;;  %v1502_v14 = vld [vmem:[%s10549_s28 + $0x8e0] sm:$0xff]  ;;  %v1504_v15 = vld [vmem:[%s10549_s28 + $0x8f0] sm:$0xff]  ;;  %1501 = vst [vmem:[%s10554_s29 + $0x468] sm:$0xff] %v1500_v13 }
  0x5d   : > { %1503 = vst [vmem:[%s10554_s29 + $0x470] sm:$0xff] %v1502_v14  ;;  %1505 = vst [vmem:[%s10554_s29 + $0x478] sm:$0xff] %v1504_v15  ;;  %v1506_v16 = vld [vmem:[%s10549_s28 + $0x900] sm:$0xff]  ;;  %v1508_v17 = vld [vmem:[%s10549_s28 + $0x910] sm:$0xff] }
  0x5e   : > { %v1510_v18 = vld [vmem:[%s10549_s28 + $0x920] sm:$0xff]  ;;  %1507 = vst [vmem:[%s10554_s29 + $0x480] sm:$0xff] %v1506_v16  ;;  %1509 = vst [vmem:[%s10554_s29 + $0x488] sm:$0xff] %v1508_v17  ;;  %v1512_v19 = vld [vmem:[%s10549_s28 + $0x930] sm:$0xff] }
  0x5f   : > { %1511 = vst [vmem:[%s10554_s29 + $0x490] sm:$0xff] %v1510_v18  ;;  %v1514_v20 = vld [vmem:[%s10549_s28 + $0x940] sm:$0xff]  ;;  %v1516_v21 = vld [vmem:[%s10549_s28 + $0x950] sm:$0xff]  ;;  %1513 = vst [vmem:[%s10554_s29 + $0x498] sm:$0xff] %v1512_v19 }
  0x60   : > { %1515 = vst [vmem:[%s10554_s29 + $0x4a0] sm:$0xff] %v1514_v20  ;;  %1517 = vst [vmem:[%s10554_s29 + $0x4a8] sm:$0xff] %v1516_v21  ;;  %v1518_v22 = vld [vmem:[%s10549_s28 + $0x960] sm:$0xff]  ;;  %v1520_v23 = vld [vmem:[%s10549_s28 + $0x970] sm:$0xff] }
  0x61   : > { %v1522_v24 = vld [vmem:[%s10549_s28 + $0x980] sm:$0xff]  ;;  %1519 = vst [vmem:[%s10554_s29 + $0x4b0] sm:$0xff] %v1518_v22  ;;  %1521 = vst [vmem:[%s10554_s29 + $0x4b8] sm:$0xff] %v1520_v23  ;;  %v1524_v25 = vld [vmem:[%s10549_s28 + $0x990] sm:$0xff] }
  0x62   : > { %1523 = vst [vmem:[%s10554_s29 + $0x4c0] sm:$0xff] %v1522_v24  ;;  %v1526_v26 = vld [vmem:[%s10549_s28 + $0x9a0] sm:$0xff]  ;;  %v1528_v27 = vld [vmem:[%s10549_s28 + $0x9b0] sm:$0xff]  ;;  %1525 = vst [vmem:[%s10554_s29 + $0x4c8] sm:$0xff] %v1524_v25 }
  0x63   : > { %1527 = vst [vmem:[%s10554_s29 + $0x4d0] sm:$0xff] %v1526_v26  ;;  %1529 = vst [vmem:[%s10554_s29 + $0x4d8] sm:$0xff] %v1528_v27  ;;  %v1530_v28 = vld [vmem:[%s10549_s28 + $0x9c0] sm:$0xff]  ;;  %v1532_v29 = vld [vmem:[%s10549_s28 + $0x9d0] sm:$0xff] }
  0x64   : > { %v1534_v30 = vld [vmem:[%s10549_s28 + $0x9e0] sm:$0xff]  ;;  %1531 = vst [vmem:[%s10554_s29 + $0x4e0] sm:$0xff] %v1530_v28  ;;  %1533 = vst [vmem:[%s10554_s29 + $0x4e8] sm:$0xff] %v1532_v29  ;;  %v1536_v31 = vld [vmem:[%s10549_s28 + $0x9f0] sm:$0xff] }
  0x65   : > { %1535 = vst [vmem:[%s10554_s29 + $0x4f0] sm:$0xff] %v1534_v30  ;;  %v1538_v32 = vld [vmem:[%s10549_s28 + $0xa00] sm:$0xff]  ;;  %v1540_v33 = vld [vmem:[%s10549_s28 + $0xa10] sm:$0xff]  ;;  %1537 = vst [vmem:[%s10554_s29 + $0x4f8] sm:$0xff] %v1536_v31 }
  0x66   : > { %1539 = vst [vmem:[%s10554_s29 + $0x500] sm:$0xff] %v1538_v32  ;;  %1541 = vst [vmem:[%s10554_s29 + $0x508] sm:$0xff] %v1540_v33  ;;  %v1542_v34 = vld [vmem:[%s10549_s28 + $0xa20] sm:$0xff]  ;;  %v1544_v35 = vld [vmem:[%s10549_s28 + $0xa30] sm:$0xff] }
  0x67   : > { %v1546_v36 = vld [vmem:[%s10549_s28 + $0xa40] sm:$0xff]  ;;  %1543 = vst [vmem:[%s10554_s29 + $0x510] sm:$0xff] %v1542_v34  ;;  %1545 = vst [vmem:[%s10554_s29 + $0x518] sm:$0xff] %v1544_v35  ;;  %v1548_v37 = vld [vmem:[%s10549_s28 + $0xa50] sm:$0xff] }
  0x68   : > { %1547 = vst [vmem:[%s10554_s29 + $0x520] sm:$0xff] %v1546_v36  ;;  %v1550_v38 = vld [vmem:[%s10549_s28 + $0xa60] sm:$0xff]  ;;  %v1552_v39 = vld [vmem:[%s10549_s28 + $0xa70] sm:$0xff]  ;;  %1549 = vst [vmem:[%s10554_s29 + $0x528] sm:$0xff] %v1548_v37 }
  0x69   : > { %1551 = vst [vmem:[%s10554_s29 + $0x530] sm:$0xff] %v1550_v38  ;;  %1553 = vst [vmem:[%s10554_s29 + $0x538] sm:$0xff] %v1552_v39  ;;  %v1554_v40 = vld [vmem:[%s10549_s28 + $0xa80] sm:$0xff]  ;;  %v1556_v41 = vld [vmem:[%s10549_s28 + $0xa90] sm:$0xff] }
  0x6a   : > { %v1558_v42 = vld [vmem:[%s10549_s28 + $0xaa0] sm:$0xff]  ;;  %1555 = vst [vmem:[%s10554_s29 + $0x540] sm:$0xff] %v1554_v40  ;;  %1557 = vst [vmem:[%s10554_s29 + $0x548] sm:$0xff] %v1556_v41  ;;  %v1560_v43 = vld [vmem:[%s10549_s28 + $0xab0] sm:$0xff] }
  0x6b   : > { %1559 = vst [vmem:[%s10554_s29 + $0x550] sm:$0xff] %v1558_v42  ;;  %v1562_v44 = vld [vmem:[%s10549_s28 + $0xac0] sm:$0xff]  ;;  %v1564_v45 = vld [vmem:[%s10549_s28 + $0xad0] sm:$0xff]  ;;  %1561 = vst [vmem:[%s10554_s29 + $0x558] sm:$0xff] %v1560_v43 }
  0x6c   : > { %1563 = vst [vmem:[%s10554_s29 + $0x560] sm:$0xff] %v1562_v44  ;;  %1565 = vst [vmem:[%s10554_s29 + $0x568] sm:$0xff] %v1564_v45  ;;  %v1566_v46 = vld [vmem:[%s10549_s28 + $0xae0] sm:$0xff]  ;;  %v1568_v47 = vld [vmem:[%s10549_s28 + $0xaf0] sm:$0xff] }
  0x6d   : > { %v1570_v48 = vld [vmem:[%s10549_s28 + $0xb00] sm:$0xff]  ;;  %1567 = vst [vmem:[%s10554_s29 + $0x570] sm:$0xff] %v1566_v46  ;;  %1569 = vst [vmem:[%s10554_s29 + $0x578] sm:$0xff] %v1568_v47  ;;  %v1572_v49 = vld [vmem:[%s10549_s28 + $0xb10] sm:$0xff] }
  0x6e   : > { %1571 = vst [vmem:[%s10554_s29 + $0x580] sm:$0xff] %v1570_v48  ;;  %v1574_v50 = vld [vmem:[%s10549_s28 + $0xb20] sm:$0xff]  ;;  %v1576_v51 = vld [vmem:[%s10549_s28 + $0xb30] sm:$0xff]  ;;  %1573 = vst [vmem:[%s10554_s29 + $0x588] sm:$0xff] %v1572_v49 }
  0x6f   : > { %1575 = vst [vmem:[%s10554_s29 + $0x590] sm:$0xff] %v1574_v50  ;;  %1577 = vst [vmem:[%s10554_s29 + $0x598] sm:$0xff] %v1576_v51  ;;  %v1578_v52 = vld [vmem:[%s10549_s28 + $0xb40] sm:$0xff]  ;;  %v1580_v53 = vld [vmem:[%s10549_s28 + $0xb50] sm:$0xff] }
  0x70   : > { %v1582_v54 = vld [vmem:[%s10549_s28 + $0xb60] sm:$0xff]  ;;  %1579 = vst [vmem:[%s10554_s29 + $0x5a0] sm:$0xff] %v1578_v52  ;;  %1581 = vst [vmem:[%s10554_s29 + $0x5a8] sm:$0xff] %v1580_v53  ;;  %v1584_v55 = vld [vmem:[%s10549_s28 + $0xb70] sm:$0xff] }
  0x71   : > { %1583 = vst [vmem:[%s10554_s29 + $0x5b0] sm:$0xff] %v1582_v54  ;;  %v1586_v56 = vld [vmem:[%s10549_s28 + $0xb80] sm:$0xff]  ;;  %v1588_v57 = vld [vmem:[%s10549_s28 + $0xb90] sm:$0xff]  ;;  %1585 = vst [vmem:[%s10554_s29 + $0x5b8] sm:$0xff] %v1584_v55 }
  0x72   : > { %1587 = vst [vmem:[%s10554_s29 + $0x5c0] sm:$0xff] %v1586_v56  ;;  %1589 = vst [vmem:[%s10554_s29 + $0x5c8] sm:$0xff] %v1588_v57  ;;  %v1590_v58 = vld [vmem:[%s10549_s28 + $0xba0] sm:$0xff]  ;;  %v1592_v59 = vld [vmem:[%s10549_s28 + $0xbb0] sm:$0xff] }
  0x73   : > { %v1594_v60 = vld [vmem:[%s10549_s28 + $0xbc0] sm:$0xff]  ;;  %1591 = vst [vmem:[%s10554_s29 + $0x5d0] sm:$0xff] %v1590_v58  ;;  %1593 = vst [vmem:[%s10554_s29 + $0x5d8] sm:$0xff] %v1592_v59  ;;  %v1596_v61 = vld [vmem:[%s10549_s28 + $0xbd0] sm:$0xff] }
  0x74   : > { %1595 = vst [vmem:[%s10554_s29 + $0x5e0] sm:$0xff] %v1594_v60  ;;  %v1598_v62 = vld [vmem:[%s10549_s28 + $0xbe0] sm:$0xff]  ;;  %v1600_v63 = vld [vmem:[%s10549_s28 + $0xbf0] sm:$0xff]  ;;  %1597 = vst [vmem:[%s10554_s29 + $0x5e8] sm:$0xff] %v1596_v61 }
  0x75   : > { %1599 = vst [vmem:[%s10554_s29 + $0x5f0] sm:$0xff] %v1598_v62  ;;  %1601 = vst [vmem:[%s10554_s29 + $0x5f8] sm:$0xff] %v1600_v63  ;;  %v1602_v0 = vld [vmem:[%s10549_s28 + $0xc00] sm:$0xff]  ;;  %v1604_v1 = vld [vmem:[%s10549_s28 + $0xc10] sm:$0xff] }
  0x76   : > { %v1606_v2 = vld [vmem:[%s10549_s28 + $0xc20] sm:$0xff]  ;;  %1603 = vst [vmem:[%s10554_s29 + $0x600] sm:$0xff] %v1602_v0  ;;  %1605 = vst [vmem:[%s10554_s29 + $0x608] sm:$0xff] %v1604_v1  ;;  %v1608_v3 = vld [vmem:[%s10549_s28 + $0xc30] sm:$0xff] }
  0x77   : > { %1607 = vst [vmem:[%s10554_s29 + $0x610] sm:$0xff] %v1606_v2  ;;  %v1610_v4 = vld [vmem:[%s10549_s28 + $0xc40] sm:$0xff]  ;;  %v1612_v5 = vld [vmem:[%s10549_s28 + $0xc50] sm:$0xff]  ;;  %1609 = vst [vmem:[%s10554_s29 + $0x618] sm:$0xff] %v1608_v3 }
  0x78   : > { %1611 = vst [vmem:[%s10554_s29 + $0x620] sm:$0xff] %v1610_v4  ;;  %1613 = vst [vmem:[%s10554_s29 + $0x628] sm:$0xff] %v1612_v5  ;;  %v1614_v6 = vld [vmem:[%s10549_s28 + $0xc60] sm:$0xff]  ;;  %v1616_v7 = vld [vmem:[%s10549_s28 + $0xc70] sm:$0xff] }
  0x79   : > { %v1618_v8 = vld [vmem:[%s10549_s28 + $0xc80] sm:$0xff]  ;;  %1615 = vst [vmem:[%s10554_s29 + $0x630] sm:$0xff] %v1614_v6  ;;  %1617 = vst [vmem:[%s10554_s29 + $0x638] sm:$0xff] %v1616_v7  ;;  %v1620_v9 = vld [vmem:[%s10549_s28 + $0xc90] sm:$0xff] }
  0x7a   : > { %1619 = vst [vmem:[%s10554_s29 + $0x640] sm:$0xff] %v1618_v8  ;;  %v1622_v10 = vld [vmem:[%s10549_s28 + $0xca0] sm:$0xff]  ;;  %v1624_v11 = vld [vmem:[%s10549_s28 + $0xcb0] sm:$0xff]  ;;  %1621 = vst [vmem:[%s10554_s29 + $0x648] sm:$0xff] %v1620_v9 }
  0x7b   : > { %1623 = vst [vmem:[%s10554_s29 + $0x650] sm:$0xff] %v1622_v10  ;;  %1625 = vst [vmem:[%s10554_s29 + $0x658] sm:$0xff] %v1624_v11  ;;  %v1626_v12 = vld [vmem:[%s10549_s28 + $0xcc0] sm:$0xff]  ;;  %v1628_v13 = vld [vmem:[%s10549_s28 + $0xcd0] sm:$0xff] }
  0x7c   : > { %v1630_v14 = vld [vmem:[%s10549_s28 + $0xce0] sm:$0xff]  ;;  %1627 = vst [vmem:[%s10554_s29 + $0x660] sm:$0xff] %v1626_v12  ;;  %1629 = vst [vmem:[%s10554_s29 + $0x668] sm:$0xff] %v1628_v13  ;;  %v1632_v15 = vld [vmem:[%s10549_s28 + $0xcf0] sm:$0xff] }
  0x7d   : > { %1631 = vst [vmem:[%s10554_s29 + $0x670] sm:$0xff] %v1630_v14  ;;  %v1634_v16 = vld [vmem:[%s10549_s28 + $0xd00] sm:$0xff]  ;;  %v1636_v17 = vld [vmem:[%s10549_s28 + $0xd10] sm:$0xff]  ;;  %1633 = vst [vmem:[%s10554_s29 + $0x678] sm:$0xff] %v1632_v15 }
  0x7e   : > { %1635 = vst [vmem:[%s10554_s29 + $0x680] sm:$0xff] %v1634_v16  ;;  %1637 = vst [vmem:[%s10554_s29 + $0x688] sm:$0xff] %v1636_v17  ;;  %v1638_v18 = vld [vmem:[%s10549_s28 + $0xd20] sm:$0xff]  ;;  %v1640_v19 = vld [vmem:[%s10549_s28 + $0xd30] sm:$0xff] }
  0x7f   : > { %v1642_v20 = vld [vmem:[%s10549_s28 + $0xd40] sm:$0xff]  ;;  %1639 = vst [vmem:[%s10554_s29 + $0x690] sm:$0xff] %v1638_v18  ;;  %1641 = vst [vmem:[%s10554_s29 + $0x698] sm:$0xff] %v1640_v19  ;;  %v1644_v21 = vld [vmem:[%s10549_s28 + $0xd50] sm:$0xff] }
  0x80   : > { %1643 = vst [vmem:[%s10554_s29 + $0x6a0] sm:$0xff] %v1642_v20  ;;  %v1646_v22 = vld [vmem:[%s10549_s28 + $0xd60] sm:$0xff]  ;;  %v1648_v23 = vld [vmem:[%s10549_s28 + $0xd70] sm:$0xff]  ;;  %1645 = vst [vmem:[%s10554_s29 + $0x6a8] sm:$0xff] %v1644_v21 }
  0x81   : > { %1647 = vst [vmem:[%s10554_s29 + $0x6b0] sm:$0xff] %v1646_v22  ;;  %1649 = vst [vmem:[%s10554_s29 + $0x6b8] sm:$0xff] %v1648_v23  ;;  %v1650_v24 = vld [vmem:[%s10549_s28 + $0xd80] sm:$0xff]  ;;  %v1652_v25 = vld [vmem:[%s10549_s28 + $0xd90] sm:$0xff] }
  0x82   : > { %v1654_v26 = vld [vmem:[%s10549_s28 + $0xda0] sm:$0xff]  ;;  %1651 = vst [vmem:[%s10554_s29 + $0x6c0] sm:$0xff] %v1650_v24  ;;  %1653 = vst [vmem:[%s10554_s29 + $0x6c8] sm:$0xff] %v1652_v25  ;;  %v1656_v27 = vld [vmem:[%s10549_s28 + $0xdb0] sm:$0xff] }
  0x83   : > { %1655 = vst [vmem:[%s10554_s29 + $0x6d0] sm:$0xff] %v1654_v26  ;;  %v1658_v28 = vld [vmem:[%s10549_s28 + $0xdc0] sm:$0xff]  ;;  %v1660_v29 = vld [vmem:[%s10549_s28 + $0xdd0] sm:$0xff]  ;;  %1657 = vst [vmem:[%s10554_s29 + $0x6d8] sm:$0xff] %v1656_v27 }
  0x84   : > { %1659 = vst [vmem:[%s10554_s29 + $0x6e0] sm:$0xff] %v1658_v28  ;;  %1661 = vst [vmem:[%s10554_s29 + $0x6e8] sm:$0xff] %v1660_v29  ;;  %v1662_v30 = vld [vmem:[%s10549_s28 + $0xde0] sm:$0xff]  ;;  %v1664_v31 = vld [vmem:[%s10549_s28 + $0xdf0] sm:$0xff] }
  0x85   : > { %v1666_v32 = vld [vmem:[%s10549_s28 + $0xe00] sm:$0xff]  ;;  %1663 = vst [vmem:[%s10554_s29 + $0x6f0] sm:$0xff] %v1662_v30  ;;  %1665 = vst [vmem:[%s10554_s29 + $0x6f8] sm:$0xff] %v1664_v31  ;;  %v1668_v33 = vld [vmem:[%s10549_s28 + $0xe10] sm:$0xff] }
  0x86   : > { %1667 = vst [vmem:[%s10554_s29 + $0x700] sm:$0xff] %v1666_v32  ;;  %v1670_v34 = vld [vmem:[%s10549_s28 + $0xe20] sm:$0xff]  ;;  %v1672_v35 = vld [vmem:[%s10549_s28 + $0xe30] sm:$0xff]  ;;  %1669 = vst [vmem:[%s10554_s29 + $0x708] sm:$0xff] %v1668_v33 }
  0x87   : > { %1671 = vst [vmem:[%s10554_s29 + $0x710] sm:$0xff] %v1670_v34  ;;  %1673 = vst [vmem:[%s10554_s29 + $0x718] sm:$0xff] %v1672_v35  ;;  %v1674_v36 = vld [vmem:[%s10549_s28 + $0xe40] sm:$0xff]  ;;  %v1676_v37 = vld [vmem:[%s10549_s28 + $0xe50] sm:$0xff] }
  0x88   : > { %v1678_v38 = vld [vmem:[%s10549_s28 + $0xe60] sm:$0xff]  ;;  %1675 = vst [vmem:[%s10554_s29 + $0x720] sm:$0xff] %v1674_v36  ;;  %1677 = vst [vmem:[%s10554_s29 + $0x728] sm:$0xff] %v1676_v37  ;;  %v1680_v39 = vld [vmem:[%s10549_s28 + $0xe70] sm:$0xff] }
  0x89   : > { %1679 = vst [vmem:[%s10554_s29 + $0x730] sm:$0xff] %v1678_v38  ;;  %v1682_v40 = vld [vmem:[%s10549_s28 + $0xe80] sm:$0xff]  ;;  %v1684_v41 = vld [vmem:[%s10549_s28 + $0xe90] sm:$0xff]  ;;  %1681 = vst [vmem:[%s10554_s29 + $0x738] sm:$0xff] %v1680_v39 }
  0x8a   : > { %1683 = vst [vmem:[%s10554_s29 + $0x740] sm:$0xff] %v1682_v40  ;;  %1685 = vst [vmem:[%s10554_s29 + $0x748] sm:$0xff] %v1684_v41  ;;  %v1686_v42 = vld [vmem:[%s10549_s28 + $0xea0] sm:$0xff]  ;;  %v1688_v43 = vld [vmem:[%s10549_s28 + $0xeb0] sm:$0xff] }
  0x8b   : > { %v1690_v44 = vld [vmem:[%s10549_s28 + $0xec0] sm:$0xff]  ;;  %1687 = vst [vmem:[%s10554_s29 + $0x750] sm:$0xff] %v1686_v42  ;;  %1689 = vst [vmem:[%s10554_s29 + $0x758] sm:$0xff] %v1688_v43  ;;  %v1692_v45 = vld [vmem:[%s10549_s28 + $0xed0] sm:$0xff] }
  0x8c   : > { %1691 = vst [vmem:[%s10554_s29 + $0x760] sm:$0xff] %v1690_v44  ;;  %v1694_v46 = vld [vmem:[%s10549_s28 + $0xee0] sm:$0xff]  ;;  %v1696_v47 = vld [vmem:[%s10549_s28 + $0xef0] sm:$0xff]  ;;  %1693 = vst [vmem:[%s10554_s29 + $0x768] sm:$0xff] %v1692_v45 }
  0x8d   : > { %1695 = vst [vmem:[%s10554_s29 + $0x770] sm:$0xff] %v1694_v46  ;;  %1697 = vst [vmem:[%s10554_s29 + $0x778] sm:$0xff] %v1696_v47  ;;  %v1698_v48 = vld [vmem:[%s10549_s28 + $0xf00] sm:$0xff]  ;;  %v1700_v49 = vld [vmem:[%s10549_s28 + $0xf10] sm:$0xff] }
  0x8e   : > { %v1702_v50 = vld [vmem:[%s10549_s28 + $0xf20] sm:$0xff]  ;;  %1699 = vst [vmem:[%s10554_s29 + $0x780] sm:$0xff] %v1698_v48  ;;  %1701 = vst [vmem:[%s10554_s29 + $0x788] sm:$0xff] %v1700_v49  ;;  %v1704_v51 = vld [vmem:[%s10549_s28 + $0xf30] sm:$0xff] }
  0x8f   : > { %1703 = vst [vmem:[%s10554_s29 + $0x790] sm:$0xff] %v1702_v50  ;;  %v1706_v52 = vld [vmem:[%s10549_s28 + $0xf40] sm:$0xff]  ;;  %v1708_v53 = vld [vmem:[%s10549_s28 + $0xf50] sm:$0xff]  ;;  %1705 = vst [vmem:[%s10554_s29 + $0x798] sm:$0xff] %v1704_v51 }
  0x90   : > { %1707 = vst [vmem:[%s10554_s29 + $0x7a0] sm:$0xff] %v1706_v52  ;;  %1709 = vst [vmem:[%s10554_s29 + $0x7a8] sm:$0xff] %v1708_v53  ;;  %v1710_v54 = vld [vmem:[%s10549_s28 + $0xf60] sm:$0xff]  ;;  %v1712_v55 = vld [vmem:[%s10549_s28 + $0xf70] sm:$0xff] }
  0x91   : > { %v1714_v56 = vld [vmem:[%s10549_s28 + $0xf80] sm:$0xff]  ;;  %1711 = vst [vmem:[%s10554_s29 + $0x7b0] sm:$0xff] %v1710_v54  ;;  %1713 = vst [vmem:[%s10554_s29 + $0x7b8] sm:$0xff] %v1712_v55  ;;  %v1716_v57 = vld [vmem:[%s10549_s28 + $0xf90] sm:$0xff] }
  0x92   : > { %1715 = vst [vmem:[%s10554_s29 + $0x7c0] sm:$0xff] %v1714_v56  ;;  %v1718_v58 = vld [vmem:[%s10549_s28 + $0xfa0] sm:$0xff]  ;;  %v1720_v59 = vld [vmem:[%s10549_s28 + $0xfb0] sm:$0xff]  ;;  %1717 = vst [vmem:[%s10554_s29 + $0x7c8] sm:$0xff] %v1716_v57 }
  0x93   : > { %1719 = vst [vmem:[%s10554_s29 + $0x7d0] sm:$0xff] %v1718_v58  ;;  %1721 = vst [vmem:[%s10554_s29 + $0x7d8] sm:$0xff] %v1720_v59  ;;  %v1722_v60 = vld [vmem:[%s10549_s28 + $0xfc0] sm:$0xff]  ;;  %v1724_v61 = vld [vmem:[%s10549_s28 + $0xfd0] sm:$0xff] }
  0x94   : > { %v1726_v62 = vld [vmem:[%s10549_s28 + $0xfe0] sm:$0xff]  ;;  %1723 = vst [vmem:[%s10554_s29 + $0x7e0] sm:$0xff] %v1722_v60  ;;  %1725 = vst [vmem:[%s10554_s29 + $0x7e8] sm:$0xff] %v1724_v61  ;;  %v1728_v63 = vld [vmem:[%s10549_s28 + $0xff0] sm:$0xff] }
  0x95   : > { %1727 = vst [vmem:[%s10554_s29 + $0x7f0] sm:$0xff] %v1726_v62  ;;  %v1730_v0 = vld [vmem:[%s10549_s28 + $0x1000] sm:$0xff]  ;;  %v1732_v1 = vld [vmem:[%s10549_s28 + $0x1010] sm:$0xff]  ;;  %1729 = vst [vmem:[%s10554_s29 + $0x7f8] sm:$0xff] %v1728_v63 }
  0x96   : > { %1731 = vst [vmem:[%s10554_s29 + $0x800] sm:$0xff] %v1730_v0  ;;  %1733 = vst [vmem:[%s10554_s29 + $0x808] sm:$0xff] %v1732_v1  ;;  %v1734_v2 = vld [vmem:[%s10549_s28 + $0x1020] sm:$0xff]  ;;  %v1736_v3 = vld [vmem:[%s10549_s28 + $0x1030] sm:$0xff] }
  0x97   : > { %v1738_v4 = vld [vmem:[%s10549_s28 + $0x1040] sm:$0xff]  ;;  %1735 = vst [vmem:[%s10554_s29 + $0x810] sm:$0xff] %v1734_v2  ;;  %1737 = vst [vmem:[%s10554_s29 + $0x818] sm:$0xff] %v1736_v3  ;;  %v1740_v5 = vld [vmem:[%s10549_s28 + $0x1050] sm:$0xff] }
  0x98   : > { %1739 = vst [vmem:[%s10554_s29 + $0x820] sm:$0xff] %v1738_v4  ;;  %v1742_v6 = vld [vmem:[%s10549_s28 + $0x1060] sm:$0xff]  ;;  %v1744_v7 = vld [vmem:[%s10549_s28 + $0x1070] sm:$0xff]  ;;  %1741 = vst [vmem:[%s10554_s29 + $0x828] sm:$0xff] %v1740_v5 }
  0x99   : > { %1743 = vst [vmem:[%s10554_s29 + $0x830] sm:$0xff] %v1742_v6  ;;  %1745 = vst [vmem:[%s10554_s29 + $0x838] sm:$0xff] %v1744_v7  ;;  %v1746_v8 = vld [vmem:[%s10549_s28 + $0x1080] sm:$0xff]  ;;  %v1748_v9 = vld [vmem:[%s10549_s28 + $0x1090] sm:$0xff] }
  0x9a   : > { %v1750_v10 = vld [vmem:[%s10549_s28 + $0x10a0] sm:$0xff]  ;;  %1747 = vst [vmem:[%s10554_s29 + $0x840] sm:$0xff] %v1746_v8  ;;  %1749 = vst [vmem:[%s10554_s29 + $0x848] sm:$0xff] %v1748_v9  ;;  %v1752_v11 = vld [vmem:[%s10549_s28 + $0x10b0] sm:$0xff] }
  0x9b   : > { %1751 = vst [vmem:[%s10554_s29 + $0x850] sm:$0xff] %v1750_v10  ;;  %v1754_v12 = vld [vmem:[%s10549_s28 + $0x10c0] sm:$0xff]  ;;  %v1756_v13 = vld [vmem:[%s10549_s28 + $0x10d0] sm:$0xff]  ;;  %1753 = vst [vmem:[%s10554_s29 + $0x858] sm:$0xff] %v1752_v11 }
  0x9c   : > { %1755 = vst [vmem:[%s10554_s29 + $0x860] sm:$0xff] %v1754_v12  ;;  %1757 = vst [vmem:[%s10554_s29 + $0x868] sm:$0xff] %v1756_v13  ;;  %v1758_v14 = vld [vmem:[%s10549_s28 + $0x10e0] sm:$0xff]  ;;  %v1760_v15 = vld [vmem:[%s10549_s28 + $0x10f0] sm:$0xff] }
  0x9d   : > { %v1762_v16 = vld [vmem:[%s10549_s28 + $0x1100] sm:$0xff]  ;;  %1759 = vst [vmem:[%s10554_s29 + $0x870] sm:$0xff] %v1758_v14  ;;  %1761 = vst [vmem:[%s10554_s29 + $0x878] sm:$0xff] %v1760_v15  ;;  %v1764_v17 = vld [vmem:[%s10549_s28 + $0x1110] sm:$0xff] }
  0x9e   : > { %1763 = vst [vmem:[%s10554_s29 + $0x880] sm:$0xff] %v1762_v16  ;;  %v1766_v18 = vld [vmem:[%s10549_s28 + $0x1120] sm:$0xff]  ;;  %v1768_v19 = vld [vmem:[%s10549_s28 + $0x1130] sm:$0xff]  ;;  %1765 = vst [vmem:[%s10554_s29 + $0x888] sm:$0xff] %v1764_v17 }
  0x9f   : > { %1767 = vst [vmem:[%s10554_s29 + $0x890] sm:$0xff] %v1766_v18  ;;  %1769 = vst [vmem:[%s10554_s29 + $0x898] sm:$0xff] %v1768_v19  ;;  %v1770_v20 = vld [vmem:[%s10549_s28 + $0x1140] sm:$0xff]  ;;  %v1772_v21 = vld [vmem:[%s10549_s28 + $0x1150] sm:$0xff] }
  0xa0   : > { %v1774_v22 = vld [vmem:[%s10549_s28 + $0x1160] sm:$0xff]  ;;  %1771 = vst [vmem:[%s10554_s29 + $0x8a0] sm:$0xff] %v1770_v20  ;;  %1773 = vst [vmem:[%s10554_s29 + $0x8a8] sm:$0xff] %v1772_v21  ;;  %v1776_v23 = vld [vmem:[%s10549_s28 + $0x1170] sm:$0xff] }
  0xa1   : > { %1775 = vst [vmem:[%s10554_s29 + $0x8b0] sm:$0xff] %v1774_v22  ;;  %v1778_v24 = vld [vmem:[%s10549_s28 + $0x1180] sm:$0xff]  ;;  %v1780_v25 = vld [vmem:[%s10549_s28 + $0x1190] sm:$0xff]  ;;  %1777 = vst [vmem:[%s10554_s29 + $0x8b8] sm:$0xff] %v1776_v23 }
  0xa2   : > { %1779 = vst [vmem:[%s10554_s29 + $0x8c0] sm:$0xff] %v1778_v24  ;;  %1781 = vst [vmem:[%s10554_s29 + $0x8c8] sm:$0xff] %v1780_v25  ;;  %v1782_v26 = vld [vmem:[%s10549_s28 + $0x11a0] sm:$0xff]  ;;  %v1784_v27 = vld [vmem:[%s10549_s28 + $0x11b0] sm:$0xff] }
  0xa3   : > { %v1786_v28 = vld [vmem:[%s10549_s28 + $0x11c0] sm:$0xff]  ;;  %1783 = vst [vmem:[%s10554_s29 + $0x8d0] sm:$0xff] %v1782_v26  ;;  %1785 = vst [vmem:[%s10554_s29 + $0x8d8] sm:$0xff] %v1784_v27  ;;  %v1788_v29 = vld [vmem:[%s10549_s28 + $0x11d0] sm:$0xff] }
  0xa4   : > { %1787 = vst [vmem:[%s10554_s29 + $0x8e0] sm:$0xff] %v1786_v28  ;;  %v1790_v30 = vld [vmem:[%s10549_s28 + $0x11e0] sm:$0xff]  ;;  %v1792_v31 = vld [vmem:[%s10549_s28 + $0x11f0] sm:$0xff]  ;;  %1789 = vst [vmem:[%s10554_s29 + $0x8e8] sm:$0xff] %v1788_v29 }
  0xa5   : > { %1791 = vst [vmem:[%s10554_s29 + $0x8f0] sm:$0xff] %v1790_v30  ;;  %1793 = vst [vmem:[%s10554_s29 + $0x8f8] sm:$0xff] %v1792_v31  ;;  %v1794_v32 = vld [vmem:[%s10549_s28 + $0x1200] sm:$0xff]  ;;  %v1796_v33 = vld [vmem:[%s10549_s28 + $0x1210] sm:$0xff] }
  0xa6   : > { %v1798_v34 = vld [vmem:[%s10549_s28 + $0x1220] sm:$0xff]  ;;  %1795 = vst [vmem:[%s10554_s29 + $0x900] sm:$0xff] %v1794_v32  ;;  %1797 = vst [vmem:[%s10554_s29 + $0x908] sm:$0xff] %v1796_v33  ;;  %v1800_v35 = vld [vmem:[%s10549_s28 + $0x1230] sm:$0xff] }
  0xa7   : > { %1799 = vst [vmem:[%s10554_s29 + $0x910] sm:$0xff] %v1798_v34  ;;  %v1802_v36 = vld [vmem:[%s10549_s28 + $0x1240] sm:$0xff]  ;;  %v1804_v37 = vld [vmem:[%s10549_s28 + $0x1250] sm:$0xff]  ;;  %1801 = vst [vmem:[%s10554_s29 + $0x918] sm:$0xff] %v1800_v35 }
  0xa8   : > { %1803 = vst [vmem:[%s10554_s29 + $0x920] sm:$0xff] %v1802_v36  ;;  %1805 = vst [vmem:[%s10554_s29 + $0x928] sm:$0xff] %v1804_v37  ;;  %v1806_v38 = vld [vmem:[%s10549_s28 + $0x1260] sm:$0xff]  ;;  %v1808_v39 = vld [vmem:[%s10549_s28 + $0x1270] sm:$0xff] }
  0xa9   : > { %v1810_v40 = vld [vmem:[%s10549_s28 + $0x1280] sm:$0xff]  ;;  %1807 = vst [vmem:[%s10554_s29 + $0x930] sm:$0xff] %v1806_v38  ;;  %1809 = vst [vmem:[%s10554_s29 + $0x938] sm:$0xff] %v1808_v39  ;;  %v1812_v41 = vld [vmem:[%s10549_s28 + $0x1290] sm:$0xff] }
  0xaa   : > { %1811 = vst [vmem:[%s10554_s29 + $0x940] sm:$0xff] %v1810_v40  ;;  %v1814_v42 = vld [vmem:[%s10549_s28 + $0x12a0] sm:$0xff]  ;;  %v1816_v43 = vld [vmem:[%s10549_s28 + $0x12b0] sm:$0xff]  ;;  %1813 = vst [vmem:[%s10554_s29 + $0x948] sm:$0xff] %v1812_v41 }
  0xab   : > { %1815 = vst [vmem:[%s10554_s29 + $0x950] sm:$0xff] %v1814_v42  ;;  %1817 = vst [vmem:[%s10554_s29 + $0x958] sm:$0xff] %v1816_v43  ;;  %v1818_v44 = vld [vmem:[%s10549_s28 + $0x12c0] sm:$0xff]  ;;  %v1820_v45 = vld [vmem:[%s10549_s28 + $0x12d0] sm:$0xff] }
  0xac   : > { %v1822_v46 = vld [vmem:[%s10549_s28 + $0x12e0] sm:$0xff]  ;;  %1819 = vst [vmem:[%s10554_s29 + $0x960] sm:$0xff] %v1818_v44  ;;  %1821 = vst [vmem:[%s10554_s29 + $0x968] sm:$0xff] %v1820_v45  ;;  %v1824_v47 = vld [vmem:[%s10549_s28 + $0x12f0] sm:$0xff] }
  0xad   : > { %1823 = vst [vmem:[%s10554_s29 + $0x970] sm:$0xff] %v1822_v46  ;;  %v1826_v48 = vld [vmem:[%s10549_s28 + $0x1300] sm:$0xff]  ;;  %v1828_v49 = vld [vmem:[%s10549_s28 + $0x1310] sm:$0xff]  ;;  %1825 = vst [vmem:[%s10554_s29 + $0x978] sm:$0xff] %v1824_v47 }
  0xae   : > { %1827 = vst [vmem:[%s10554_s29 + $0x980] sm:$0xff] %v1826_v48  ;;  %1829 = vst [vmem:[%s10554_s29 + $0x988] sm:$0xff] %v1828_v49  ;;  %v1830_v50 = vld [vmem:[%s10549_s28 + $0x1320] sm:$0xff]  ;;  %v1832_v51 = vld [vmem:[%s10549_s28 + $0x1330] sm:$0xff] }
  0xaf   : > { %v1834_v52 = vld [vmem:[%s10549_s28 + $0x1340] sm:$0xff]  ;;  %1831 = vst [vmem:[%s10554_s29 + $0x990] sm:$0xff] %v1830_v50  ;;  %1833 = vst [vmem:[%s10554_s29 + $0x998] sm:$0xff] %v1832_v51  ;;  %v1836_v53 = vld [vmem:[%s10549_s28 + $0x1350] sm:$0xff] }
  0xb0   : > { %1835 = vst [vmem:[%s10554_s29 + $0x9a0] sm:$0xff] %v1834_v52  ;;  %v1838_v54 = vld [vmem:[%s10549_s28 + $0x1360] sm:$0xff]  ;;  %v1840_v55 = vld [vmem:[%s10549_s28 + $0x1370] sm:$0xff]  ;;  %1837 = vst [vmem:[%s10554_s29 + $0x9a8] sm:$0xff] %v1836_v53 }
  0xb1   : > { %1839 = vst [vmem:[%s10554_s29 + $0x9b0] sm:$0xff] %v1838_v54  ;;  %1841 = vst [vmem:[%s10554_s29 + $0x9b8] sm:$0xff] %v1840_v55  ;;  %v1842_v56 = vld [vmem:[%s10549_s28 + $0x1380] sm:$0xff]  ;;  %v1844_v57 = vld [vmem:[%s10549_s28 + $0x1390] sm:$0xff] }
  0xb2   : > { %v1846_v58 = vld [vmem:[%s10549_s28 + $0x13a0] sm:$0xff]  ;;  %1843 = vst [vmem:[%s10554_s29 + $0x9c0] sm:$0xff] %v1842_v56  ;;  %1845 = vst [vmem:[%s10554_s29 + $0x9c8] sm:$0xff] %v1844_v57  ;;  %v1848_v59 = vld [vmem:[%s10549_s28 + $0x13b0] sm:$0xff] }
  0xb3   : > { %1847 = vst [vmem:[%s10554_s29 + $0x9d0] sm:$0xff] %v1846_v58  ;;  %v1850_v60 = vld [vmem:[%s10549_s28 + $0x13c0] sm:$0xff]  ;;  %v1852_v61 = vld [vmem:[%s10549_s28 + $0x13d0] sm:$0xff]  ;;  %1849 = vst [vmem:[%s10554_s29 + $0x9d8] sm:$0xff] %v1848_v59 }
  0xb4   : > { %1851 = vst [vmem:[%s10554_s29 + $0x9e0] sm:$0xff] %v1850_v60  ;;  %1853 = vst [vmem:[%s10554_s29 + $0x9e8] sm:$0xff] %v1852_v61  ;;  %v1854_v62 = vld [vmem:[%s10549_s28 + $0x13e0] sm:$0xff]  ;;  %v1856_v63 = vld [vmem:[%s10549_s28 + $0x13f0] sm:$0xff] }
  0xb5   : > { %v1858_v0 = vld [vmem:[%s10549_s28 + $0x1400] sm:$0xff]  ;;  %1855 = vst [vmem:[%s10554_s29 + $0x9f0] sm:$0xff] %v1854_v62  ;;  %1857 = vst [vmem:[%s10554_s29 + $0x9f8] sm:$0xff] %v1856_v63  ;;  %v1860_v1 = vld [vmem:[%s10549_s28 + $0x1410] sm:$0xff] }
  0xb6   : > { %1859 = vst [vmem:[%s10554_s29 + $0xa00] sm:$0xff] %v1858_v0  ;;  %v1862_v2 = vld [vmem:[%s10549_s28 + $0x1420] sm:$0xff]  ;;  %v1864_v3 = vld [vmem:[%s10549_s28 + $0x1430] sm:$0xff]  ;;  %1861 = vst [vmem:[%s10554_s29 + $0xa08] sm:$0xff] %v1860_v1 }
  0xb7   : > { %1863 = vst [vmem:[%s10554_s29 + $0xa10] sm:$0xff] %v1862_v2  ;;  %1865 = vst [vmem:[%s10554_s29 + $0xa18] sm:$0xff] %v1864_v3  ;;  %v1866_v4 = vld [vmem:[%s10549_s28 + $0x1440] sm:$0xff]  ;;  %v1868_v5 = vld [vmem:[%s10549_s28 + $0x1450] sm:$0xff] }
  0xb8   : > { %v1870_v6 = vld [vmem:[%s10549_s28 + $0x1460] sm:$0xff]  ;;  %1867 = vst [vmem:[%s10554_s29 + $0xa20] sm:$0xff] %v1866_v4  ;;  %1869 = vst [vmem:[%s10554_s29 + $0xa28] sm:$0xff] %v1868_v5  ;;  %v1872_v7 = vld [vmem:[%s10549_s28 + $0x1470] sm:$0xff] }
  0xb9   : > { %1871 = vst [vmem:[%s10554_s29 + $0xa30] sm:$0xff] %v1870_v6  ;;  %v1874_v8 = vld [vmem:[%s10549_s28 + $0x1480] sm:$0xff]  ;;  %v1876_v9 = vld [vmem:[%s10549_s28 + $0x1490] sm:$0xff]  ;;  %1873 = vst [vmem:[%s10554_s29 + $0xa38] sm:$0xff] %v1872_v7 }
  0xba   : > { %1875 = vst [vmem:[%s10554_s29 + $0xa40] sm:$0xff] %v1874_v8  ;;  %1877 = vst [vmem:[%s10554_s29 + $0xa48] sm:$0xff] %v1876_v9  ;;  %v1878_v10 = vld [vmem:[%s10549_s28 + $0x14a0] sm:$0xff]  ;;  %v1880_v11 = vld [vmem:[%s10549_s28 + $0x14b0] sm:$0xff] }
  0xbb   : > { %v1882_v12 = vld [vmem:[%s10549_s28 + $0x14c0] sm:$0xff]  ;;  %1879 = vst [vmem:[%s10554_s29 + $0xa50] sm:$0xff] %v1878_v10  ;;  %1881 = vst [vmem:[%s10554_s29 + $0xa58] sm:$0xff] %v1880_v11  ;;  %v1884_v13 = vld [vmem:[%s10549_s28 + $0x14d0] sm:$0xff] }
  0xbc   : > { %1883 = vst [vmem:[%s10554_s29 + $0xa60] sm:$0xff] %v1882_v12  ;;  %v1886_v14 = vld [vmem:[%s10549_s28 + $0x14e0] sm:$0xff]  ;;  %v1888_v15 = vld [vmem:[%s10549_s28 + $0x14f0] sm:$0xff]  ;;  %1885 = vst [vmem:[%s10554_s29 + $0xa68] sm:$0xff] %v1884_v13 }
  0xbd   : > { %1887 = vst [vmem:[%s10554_s29 + $0xa70] sm:$0xff] %v1886_v14  ;;  %1889 = vst [vmem:[%s10554_s29 + $0xa78] sm:$0xff] %v1888_v15  ;;  %v1890_v16 = vld [vmem:[%s10549_s28 + $0x1500] sm:$0xff]  ;;  %v1892_v17 = vld [vmem:[%s10549_s28 + $0x1510] sm:$0xff] }
  0xbe   : > { %v1894_v18 = vld [vmem:[%s10549_s28 + $0x1520] sm:$0xff]  ;;  %1891 = vst [vmem:[%s10554_s29 + $0xa80] sm:$0xff] %v1890_v16  ;;  %1893 = vst [vmem:[%s10554_s29 + $0xa88] sm:$0xff] %v1892_v17  ;;  %v1896_v19 = vld [vmem:[%s10549_s28 + $0x1530] sm:$0xff] }
  0xbf   : > { %1895 = vst [vmem:[%s10554_s29 + $0xa90] sm:$0xff] %v1894_v18  ;;  %v1898_v20 = vld [vmem:[%s10549_s28 + $0x1540] sm:$0xff]  ;;  %v1900_v21 = vld [vmem:[%s10549_s28 + $0x1550] sm:$0xff]  ;;  %1897 = vst [vmem:[%s10554_s29 + $0xa98] sm:$0xff] %v1896_v19 }
  0xc0   : > { %1899 = vst [vmem:[%s10554_s29 + $0xaa0] sm:$0xff] %v1898_v20  ;;  %1901 = vst [vmem:[%s10554_s29 + $0xaa8] sm:$0xff] %v1900_v21  ;;  %v1902_v22 = vld [vmem:[%s10549_s28 + $0x1560] sm:$0xff]  ;;  %v1904_v23 = vld [vmem:[%s10549_s28 + $0x1570] sm:$0xff] }
  0xc1   : > { %v1906_v24 = vld [vmem:[%s10549_s28 + $0x1580] sm:$0xff]  ;;  %1903 = vst [vmem:[%s10554_s29 + $0xab0] sm:$0xff] %v1902_v22  ;;  %1905 = vst [vmem:[%s10554_s29 + $0xab8] sm:$0xff] %v1904_v23  ;;  %v1908_v25 = vld [vmem:[%s10549_s28 + $0x1590] sm:$0xff] }
  0xc2   : > { %1907 = vst [vmem:[%s10554_s29 + $0xac0] sm:$0xff] %v1906_v24  ;;  %v1910_v26 = vld [vmem:[%s10549_s28 + $0x15a0] sm:$0xff]  ;;  %v1912_v27 = vld [vmem:[%s10549_s28 + $0x15b0] sm:$0xff]  ;;  %1909 = vst [vmem:[%s10554_s29 + $0xac8] sm:$0xff] %v1908_v25 }
  0xc3   : > { %1911 = vst [vmem:[%s10554_s29 + $0xad0] sm:$0xff] %v1910_v26  ;;  %1913 = vst [vmem:[%s10554_s29 + $0xad8] sm:$0xff] %v1912_v27  ;;  %v1914_v28 = vld [vmem:[%s10549_s28 + $0x15c0] sm:$0xff]  ;;  %v1916_v29 = vld [vmem:[%s10549_s28 + $0x15d0] sm:$0xff] }
  0xc4   : > { %v1918_v30 = vld [vmem:[%s10549_s28 + $0x15e0] sm:$0xff]  ;;  %1915 = vst [vmem:[%s10554_s29 + $0xae0] sm:$0xff] %v1914_v28  ;;  %1917 = vst [vmem:[%s10554_s29 + $0xae8] sm:$0xff] %v1916_v29  ;;  %v1920_v31 = vld [vmem:[%s10549_s28 + $0x15f0] sm:$0xff] }
  0xc5   : > { %1919 = vst [vmem:[%s10554_s29 + $0xaf0] sm:$0xff] %v1918_v30  ;;  %v1922_v32 = vld [vmem:[%s10549_s28 + $0x1600] sm:$0xff]  ;;  %v1924_v33 = vld [vmem:[%s10549_s28 + $0x1610] sm:$0xff]  ;;  %1921 = vst [vmem:[%s10554_s29 + $0xaf8] sm:$0xff] %v1920_v31 }
  0xc6   : > { %1923 = vst [vmem:[%s10554_s29 + $0xb00] sm:$0xff] %v1922_v32  ;;  %1925 = vst [vmem:[%s10554_s29 + $0xb08] sm:$0xff] %v1924_v33  ;;  %v1926_v34 = vld [vmem:[%s10549_s28 + $0x1620] sm:$0xff]  ;;  %v1928_v35 = vld [vmem:[%s10549_s28 + $0x1630] sm:$0xff] }
  0xc7   : > { %v1930_v36 = vld [vmem:[%s10549_s28 + $0x1640] sm:$0xff]  ;;  %1927 = vst [vmem:[%s10554_s29 + $0xb10] sm:$0xff] %v1926_v34  ;;  %1929 = vst [vmem:[%s10554_s29 + $0xb18] sm:$0xff] %v1928_v35  ;;  %v1932_v37 = vld [vmem:[%s10549_s28 + $0x1650] sm:$0xff] }
  0xc8   : > { %1931 = vst [vmem:[%s10554_s29 + $0xb20] sm:$0xff] %v1930_v36  ;;  %v1934_v38 = vld [vmem:[%s10549_s28 + $0x1660] sm:$0xff]  ;;  %v1936_v39 = vld [vmem:[%s10549_s28 + $0x1670] sm:$0xff]  ;;  %1933 = vst [vmem:[%s10554_s29 + $0xb28] sm:$0xff] %v1932_v37 }
  0xc9   : > { %1935 = vst [vmem:[%s10554_s29 + $0xb30] sm:$0xff] %v1934_v38  ;;  %1937 = vst [vmem:[%s10554_s29 + $0xb38] sm:$0xff] %v1936_v39  ;;  %v1938_v40 = vld [vmem:[%s10549_s28 + $0x1680] sm:$0xff]  ;;  %v1940_v41 = vld [vmem:[%s10549_s28 + $0x1690] sm:$0xff] }
  0xca   : > { %v1942_v42 = vld [vmem:[%s10549_s28 + $0x16a0] sm:$0xff]  ;;  %1939 = vst [vmem:[%s10554_s29 + $0xb40] sm:$0xff] %v1938_v40  ;;  %1941 = vst [vmem:[%s10554_s29 + $0xb48] sm:$0xff] %v1940_v41  ;;  %v1944_v43 = vld [vmem:[%s10549_s28 + $0x16b0] sm:$0xff] }
  0xcb   : > { %1943 = vst [vmem:[%s10554_s29 + $0xb50] sm:$0xff] %v1942_v42  ;;  %v1946_v44 = vld [vmem:[%s10549_s28 + $0x16c0] sm:$0xff]  ;;  %v1948_v45 = vld [vmem:[%s10549_s28 + $0x16d0] sm:$0xff]  ;;  %1945 = vst [vmem:[%s10554_s29 + $0xb58] sm:$0xff] %v1944_v43 }
  0xcc   : > { %1947 = vst [vmem:[%s10554_s29 + $0xb60] sm:$0xff] %v1946_v44  ;;  %1949 = vst [vmem:[%s10554_s29 + $0xb68] sm:$0xff] %v1948_v45  ;;  %v1950_v46 = vld [vmem:[%s10549_s28 + $0x16e0] sm:$0xff]  ;;  %v1952_v47 = vld [vmem:[%s10549_s28 + $0x16f0] sm:$0xff] }
  0xcd   : > { %v1954_v48 = vld [vmem:[%s10549_s28 + $0x1700] sm:$0xff]  ;;  %1951 = vst [vmem:[%s10554_s29 + $0xb70] sm:$0xff] %v1950_v46  ;;  %1953 = vst [vmem:[%s10554_s29 + $0xb78] sm:$0xff] %v1952_v47  ;;  %v1956_v49 = vld [vmem:[%s10549_s28 + $0x1710] sm:$0xff] }
  0xce   : > { %1955 = vst [vmem:[%s10554_s29 + $0xb80] sm:$0xff] %v1954_v48  ;;  %v1958_v50 = vld [vmem:[%s10549_s28 + $0x1720] sm:$0xff]  ;;  %v1960_v51 = vld [vmem:[%s10549_s28 + $0x1730] sm:$0xff]  ;;  %1957 = vst [vmem:[%s10554_s29 + $0xb88] sm:$0xff] %v1956_v49 }
  0xcf   : > { %1959 = vst [vmem:[%s10554_s29 + $0xb90] sm:$0xff] %v1958_v50  ;;  %1961 = vst [vmem:[%s10554_s29 + $0xb98] sm:$0xff] %v1960_v51  ;;  %v1962_v52 = vld [vmem:[%s10549_s28 + $0x1740] sm:$0xff]  ;;  %v1964_v53 = vld [vmem:[%s10549_s28 + $0x1750] sm:$0xff] }
  0xd0   : > { %v1966_v54 = vld [vmem:[%s10549_s28 + $0x1760] sm:$0xff]  ;;  %1963 = vst [vmem:[%s10554_s29 + $0xba0] sm:$0xff] %v1962_v52  ;;  %1965 = vst [vmem:[%s10554_s29 + $0xba8] sm:$0xff] %v1964_v53  ;;  %v1968_v55 = vld [vmem:[%s10549_s28 + $0x1770] sm:$0xff] }
  0xd1   : > { %1967 = vst [vmem:[%s10554_s29 + $0xbb0] sm:$0xff] %v1966_v54  ;;  %v1970_v56 = vld [vmem:[%s10549_s28 + $0x1780] sm:$0xff]  ;;  %v1972_v57 = vld [vmem:[%s10549_s28 + $0x1790] sm:$0xff]  ;;  %1969 = vst [vmem:[%s10554_s29 + $0xbb8] sm:$0xff] %v1968_v55 }
  0xd2   : > { %1971 = vst [vmem:[%s10554_s29 + $0xbc0] sm:$0xff] %v1970_v56  ;;  %1973 = vst [vmem:[%s10554_s29 + $0xbc8] sm:$0xff] %v1972_v57  ;;  %v1974_v58 = vld [vmem:[%s10549_s28 + $0x17a0] sm:$0xff]  ;;  %v1976_v59 = vld [vmem:[%s10549_s28 + $0x17b0] sm:$0xff] }
  0xd3   : > { %v1978_v60 = vld [vmem:[%s10549_s28 + $0x17c0] sm:$0xff]  ;;  %1975 = vst [vmem:[%s10554_s29 + $0xbd0] sm:$0xff] %v1974_v58  ;;  %1977 = vst [vmem:[%s10554_s29 + $0xbd8] sm:$0xff] %v1976_v59  ;;  %v1980_v61 = vld [vmem:[%s10549_s28 + $0x17d0] sm:$0xff] }
  0xd4   : > { %1979 = vst [vmem:[%s10554_s29 + $0xbe0] sm:$0xff] %v1978_v60  ;;  %v1982_v62 = vld [vmem:[%s10549_s28 + $0x17e0] sm:$0xff]  ;;  %v1984_v63 = vld [vmem:[%s10549_s28 + $0x17f0] sm:$0xff]  ;;  %1981 = vst [vmem:[%s10554_s29 + $0xbe8] sm:$0xff] %v1980_v61 }
  0xd5   : > { %1983 = vst [vmem:[%s10554_s29 + $0xbf0] sm:$0xff] %v1982_v62  ;;  %1985 = vst [vmem:[%s10554_s29 + $0xbf8] sm:$0xff] %v1984_v63  ;;  %v1986_v0 = vld [vmem:[%s10549_s28 + $0x1800] sm:$0xff]  ;;  %v1988_v1 = vld [vmem:[%s10549_s28 + $0x1810] sm:$0xff] }
  0xd6   : > { %v1990_v2 = vld [vmem:[%s10549_s28 + $0x1820] sm:$0xff]  ;;  %1987 = vst [vmem:[%s10554_s29 + $0xc00] sm:$0xff] %v1986_v0  ;;  %1989 = vst [vmem:[%s10554_s29 + $0xc08] sm:$0xff] %v1988_v1  ;;  %v1992_v3 = vld [vmem:[%s10549_s28 + $0x1830] sm:$0xff] }
  0xd7   : > { %1991 = vst [vmem:[%s10554_s29 + $0xc10] sm:$0xff] %v1990_v2  ;;  %v1994_v4 = vld [vmem:[%s10549_s28 + $0x1840] sm:$0xff]  ;;  %v1996_v5 = vld [vmem:[%s10549_s28 + $0x1850] sm:$0xff]  ;;  %1993 = vst [vmem:[%s10554_s29 + $0xc18] sm:$0xff] %v1992_v3 }
  0xd8   : > { %1995 = vst [vmem:[%s10554_s29 + $0xc20] sm:$0xff] %v1994_v4  ;;  %1997 = vst [vmem:[%s10554_s29 + $0xc28] sm:$0xff] %v1996_v5  ;;  %v1998_v6 = vld [vmem:[%s10549_s28 + $0x1860] sm:$0xff]  ;;  %v2000_v7 = vld [vmem:[%s10549_s28 + $0x1870] sm:$0xff] }
  0xd9   : > { %v2002_v8 = vld [vmem:[%s10549_s28 + $0x1880] sm:$0xff]  ;;  %1999 = vst [vmem:[%s10554_s29 + $0xc30] sm:$0xff] %v1998_v6  ;;  %2001 = vst [vmem:[%s10554_s29 + $0xc38] sm:$0xff] %v2000_v7  ;;  %v2004_v9 = vld [vmem:[%s10549_s28 + $0x1890] sm:$0xff] }
  0xda   : > { %2003 = vst [vmem:[%s10554_s29 + $0xc40] sm:$0xff] %v2002_v8  ;;  %v2006_v10 = vld [vmem:[%s10549_s28 + $0x18a0] sm:$0xff]  ;;  %v2008_v11 = vld [vmem:[%s10549_s28 + $0x18b0] sm:$0xff]  ;;  %2005 = vst [vmem:[%s10554_s29 + $0xc48] sm:$0xff] %v2004_v9 }
  0xdb   : > { %2007 = vst [vmem:[%s10554_s29 + $0xc50] sm:$0xff] %v2006_v10  ;;  %2009 = vst [vmem:[%s10554_s29 + $0xc58] sm:$0xff] %v2008_v11  ;;  %v2010_v12 = vld [vmem:[%s10549_s28 + $0x18c0] sm:$0xff]  ;;  %v2012_v13 = vld [vmem:[%s10549_s28 + $0x18d0] sm:$0xff] }
  0xdc   : > { %v2014_v14 = vld [vmem:[%s10549_s28 + $0x18e0] sm:$0xff]  ;;  %2011 = vst [vmem:[%s10554_s29 + $0xc60] sm:$0xff] %v2010_v12  ;;  %2013 = vst [vmem:[%s10554_s29 + $0xc68] sm:$0xff] %v2012_v13  ;;  %v2016_v15 = vld [vmem:[%s10549_s28 + $0x18f0] sm:$0xff] }
  0xdd   : > { %2015 = vst [vmem:[%s10554_s29 + $0xc70] sm:$0xff] %v2014_v14  ;;  %v2018_v16 = vld [vmem:[%s10549_s28 + $0x1900] sm:$0xff]  ;;  %v2020_v17 = vld [vmem:[%s10549_s28 + $0x1910] sm:$0xff]  ;;  %2017 = vst [vmem:[%s10554_s29 + $0xc78] sm:$0xff] %v2016_v15 }
  0xde   : > { %2019 = vst [vmem:[%s10554_s29 + $0xc80] sm:$0xff] %v2018_v16  ;;  %2021 = vst [vmem:[%s10554_s29 + $0xc88] sm:$0xff] %v2020_v17  ;;  %v2022_v18 = vld [vmem:[%s10549_s28 + $0x1920] sm:$0xff]  ;;  %v2024_v19 = vld [vmem:[%s10549_s28 + $0x1930] sm:$0xff] }
  0xdf   : > { %v2026_v20 = vld [vmem:[%s10549_s28 + $0x1940] sm:$0xff]  ;;  %2023 = vst [vmem:[%s10554_s29 + $0xc90] sm:$0xff] %v2022_v18  ;;  %2025 = vst [vmem:[%s10554_s29 + $0xc98] sm:$0xff] %v2024_v19  ;;  %v2028_v21 = vld [vmem:[%s10549_s28 + $0x1950] sm:$0xff] }
  0xe0   : > { %2027 = vst [vmem:[%s10554_s29 + $0xca0] sm:$0xff] %v2026_v20  ;;  %v2030_v22 = vld [vmem:[%s10549_s28 + $0x1960] sm:$0xff]  ;;  %v2032_v23 = vld [vmem:[%s10549_s28 + $0x1970] sm:$0xff]  ;;  %2029 = vst [vmem:[%s10554_s29 + $0xca8] sm:$0xff] %v2028_v21 }
  0xe1   : > { %2031 = vst [vmem:[%s10554_s29 + $0xcb0] sm:$0xff] %v2030_v22  ;;  %2033 = vst [vmem:[%s10554_s29 + $0xcb8] sm:$0xff] %v2032_v23  ;;  %v2034_v24 = vld [vmem:[%s10549_s28 + $0x1980] sm:$0xff]  ;;  %v2036_v25 = vld [vmem:[%s10549_s28 + $0x1990] sm:$0xff] }
  0xe2   : > { %v2038_v26 = vld [vmem:[%s10549_s28 + $0x19a0] sm:$0xff]  ;;  %2035 = vst [vmem:[%s10554_s29 + $0xcc0] sm:$0xff] %v2034_v24  ;;  %2037 = vst [vmem:[%s10554_s29 + $0xcc8] sm:$0xff] %v2036_v25  ;;  %v2040_v27 = vld [vmem:[%s10549_s28 + $0x19b0] sm:$0xff] }
  0xe3   : > { %2039 = vst [vmem:[%s10554_s29 + $0xcd0] sm:$0xff] %v2038_v26  ;;  %v2042_v28 = vld [vmem:[%s10549_s28 + $0x19c0] sm:$0xff]  ;;  %v2044_v29 = vld [vmem:[%s10549_s28 + $0x19d0] sm:$0xff]  ;;  %2041 = vst [vmem:[%s10554_s29 + $0xcd8] sm:$0xff] %v2040_v27 }
  0xe4   : > { %2043 = vst [vmem:[%s10554_s29 + $0xce0] sm:$0xff] %v2042_v28  ;;  %2045 = vst [vmem:[%s10554_s29 + $0xce8] sm:$0xff] %v2044_v29  ;;  %v2046_v30 = vld [vmem:[%s10549_s28 + $0x19e0] sm:$0xff]  ;;  %v2048_v31 = vld [vmem:[%s10549_s28 + $0x19f0] sm:$0xff] }
  0xe5   : > { %v2050_v32 = vld [vmem:[%s10549_s28 + $0x1a00] sm:$0xff]  ;;  %2047 = vst [vmem:[%s10554_s29 + $0xcf0] sm:$0xff] %v2046_v30  ;;  %2049 = vst [vmem:[%s10554_s29 + $0xcf8] sm:$0xff] %v2048_v31  ;;  %v2052_v33 = vld [vmem:[%s10549_s28 + $0x1a10] sm:$0xff] }
  0xe6   : > { %2051 = vst [vmem:[%s10554_s29 + $0xd00] sm:$0xff] %v2050_v32  ;;  %v2054_v34 = vld [vmem:[%s10549_s28 + $0x1a20] sm:$0xff]  ;;  %v2056_v35 = vld [vmem:[%s10549_s28 + $0x1a30] sm:$0xff]  ;;  %2053 = vst [vmem:[%s10554_s29 + $0xd08] sm:$0xff] %v2052_v33 }
  0xe7   : > { %2055 = vst [vmem:[%s10554_s29 + $0xd10] sm:$0xff] %v2054_v34  ;;  %2057 = vst [vmem:[%s10554_s29 + $0xd18] sm:$0xff] %v2056_v35  ;;  %v2058_v36 = vld [vmem:[%s10549_s28 + $0x1a40] sm:$0xff]  ;;  %v2060_v37 = vld [vmem:[%s10549_s28 + $0x1a50] sm:$0xff] }
  0xe8   : > { %v2062_v38 = vld [vmem:[%s10549_s28 + $0x1a60] sm:$0xff]  ;;  %2059 = vst [vmem:[%s10554_s29 + $0xd20] sm:$0xff] %v2058_v36  ;;  %2061 = vst [vmem:[%s10554_s29 + $0xd28] sm:$0xff] %v2060_v37  ;;  %v2064_v39 = vld [vmem:[%s10549_s28 + $0x1a70] sm:$0xff] }
  0xe9   : > { %2063 = vst [vmem:[%s10554_s29 + $0xd30] sm:$0xff] %v2062_v38  ;;  %v2066_v40 = vld [vmem:[%s10549_s28 + $0x1a80] sm:$0xff]  ;;  %v2068_v41 = vld [vmem:[%s10549_s28 + $0x1a90] sm:$0xff]  ;;  %2065 = vst [vmem:[%s10554_s29 + $0xd38] sm:$0xff] %v2064_v39 }
  0xea   : > { %2067 = vst [vmem:[%s10554_s29 + $0xd40] sm:$0xff] %v2066_v40  ;;  %2069 = vst [vmem:[%s10554_s29 + $0xd48] sm:$0xff] %v2068_v41  ;;  %v2070_v42 = vld [vmem:[%s10549_s28 + $0x1aa0] sm:$0xff]  ;;  %v2072_v43 = vld [vmem:[%s10549_s28 + $0x1ab0] sm:$0xff] }
  0xeb   : > { %v2074_v44 = vld [vmem:[%s10549_s28 + $0x1ac0] sm:$0xff]  ;;  %2071 = vst [vmem:[%s10554_s29 + $0xd50] sm:$0xff] %v2070_v42  ;;  %2073 = vst [vmem:[%s10554_s29 + $0xd58] sm:$0xff] %v2072_v43  ;;  %v2076_v45 = vld [vmem:[%s10549_s28 + $0x1ad0] sm:$0xff] }
  0xec   : > { %2075 = vst [vmem:[%s10554_s29 + $0xd60] sm:$0xff] %v2074_v44  ;;  %v2078_v46 = vld [vmem:[%s10549_s28 + $0x1ae0] sm:$0xff]  ;;  %v2080_v47 = vld [vmem:[%s10549_s28 + $0x1af0] sm:$0xff]  ;;  %2077 = vst [vmem:[%s10554_s29 + $0xd68] sm:$0xff] %v2076_v45 }
  0xed   : > { %2079 = vst [vmem:[%s10554_s29 + $0xd70] sm:$0xff] %v2078_v46  ;;  %2081 = vst [vmem:[%s10554_s29 + $0xd78] sm:$0xff] %v2080_v47  ;;  %v2082_v48 = vld [vmem:[%s10549_s28 + $0x1b00] sm:$0xff]  ;;  %v2084_v49 = vld [vmem:[%s10549_s28 + $0x1b10] sm:$0xff] }
  0xee   : > { %v2086_v50 = vld [vmem:[%s10549_s28 + $0x1b20] sm:$0xff]  ;;  %2083 = vst [vmem:[%s10554_s29 + $0xd80] sm:$0xff] %v2082_v48  ;;  %2085 = vst [vmem:[%s10554_s29 + $0xd88] sm:$0xff] %v2084_v49  ;;  %v2088_v51 = vld [vmem:[%s10549_s28 + $0x1b30] sm:$0xff] }
  0xef   : > { %2087 = vst [vmem:[%s10554_s29 + $0xd90] sm:$0xff] %v2086_v50  ;;  %v2090_v52 = vld [vmem:[%s10549_s28 + $0x1b40] sm:$0xff]  ;;  %v2092_v53 = vld [vmem:[%s10549_s28 + $0x1b50] sm:$0xff]  ;;  %2089 = vst [vmem:[%s10554_s29 + $0xd98] sm:$0xff] %v2088_v51 }
  0xf0   : > { %2091 = vst [vmem:[%s10554_s29 + $0xda0] sm:$0xff] %v2090_v52  ;;  %2093 = vst [vmem:[%s10554_s29 + $0xda8] sm:$0xff] %v2092_v53  ;;  %v2094_v54 = vld [vmem:[%s10549_s28 + $0x1b60] sm:$0xff]  ;;  %v2096_v55 = vld [vmem:[%s10549_s28 + $0x1b70] sm:$0xff] }
  0xf1   : > { %v2098_v56 = vld [vmem:[%s10549_s28 + $0x1b80] sm:$0xff]  ;;  %2095 = vst [vmem:[%s10554_s29 + $0xdb0] sm:$0xff] %v2094_v54  ;;  %2097 = vst [vmem:[%s10554_s29 + $0xdb8] sm:$0xff] %v2096_v55  ;;  %v2100_v57 = vld [vmem:[%s10549_s28 + $0x1b90] sm:$0xff] }
  0xf2   : > { %2099 = vst [vmem:[%s10554_s29 + $0xdc0] sm:$0xff] %v2098_v56  ;;  %v2102_v58 = vld [vmem:[%s10549_s28 + $0x1ba0] sm:$0xff]  ;;  %v2104_v59 = vld [vmem:[%s10549_s28 + $0x1bb0] sm:$0xff]  ;;  %2101 = vst [vmem:[%s10554_s29 + $0xdc8] sm:$0xff] %v2100_v57 }
  0xf3   : > { %2103 = vst [vmem:[%s10554_s29 + $0xdd0] sm:$0xff] %v2102_v58  ;;  %2105 = vst [vmem:[%s10554_s29 + $0xdd8] sm:$0xff] %v2104_v59  ;;  %v2106_v60 = vld [vmem:[%s10549_s28 + $0x1bc0] sm:$0xff]  ;;  %v2108_v61 = vld [vmem:[%s10549_s28 + $0x1bd0] sm:$0xff] }
  0xf4   : > { %v2110_v62 = vld [vmem:[%s10549_s28 + $0x1be0] sm:$0xff]  ;;  %2107 = vst [vmem:[%s10554_s29 + $0xde0] sm:$0xff] %v2106_v60  ;;  %2109 = vst [vmem:[%s10554_s29 + $0xde8] sm:$0xff] %v2108_v61  ;;  %v2112_v63 = vld [vmem:[%s10549_s28 + $0x1bf0] sm:$0xff] }
  0xf5   : > { %2111 = vst [vmem:[%s10554_s29 + $0xdf0] sm:$0xff] %v2110_v62  ;;  %v2114_v0 = vld [vmem:[%s10549_s28 + $0x1c00] sm:$0xff]  ;;  %v2116_v1 = vld [vmem:[%s10549_s28 + $0x1c10] sm:$0xff]  ;;  %2113 = vst [vmem:[%s10554_s29 + $0xdf8] sm:$0xff] %v2112_v63 }
  0xf6   : > { %2115 = vst [vmem:[%s10554_s29 + $0xe00] sm:$0xff] %v2114_v0  ;;  %2117 = vst [vmem:[%s10554_s29 + $0xe08] sm:$0xff] %v2116_v1  ;;  %v2118_v2 = vld [vmem:[%s10549_s28 + $0x1c20] sm:$0xff]  ;;  %v2120_v3 = vld [vmem:[%s10549_s28 + $0x1c30] sm:$0xff] }
  0xf7   : > { %v2122_v4 = vld [vmem:[%s10549_s28 + $0x1c40] sm:$0xff]  ;;  %2119 = vst [vmem:[%s10554_s29 + $0xe10] sm:$0xff] %v2118_v2  ;;  %2121 = vst [vmem:[%s10554_s29 + $0xe18] sm:$0xff] %v2120_v3  ;;  %v2124_v5 = vld [vmem:[%s10549_s28 + $0x1c50] sm:$0xff] }
  0xf8   : > { %2123 = vst [vmem:[%s10554_s29 + $0xe20] sm:$0xff] %v2122_v4  ;;  %v2126_v6 = vld [vmem:[%s10549_s28 + $0x1c60] sm:$0xff]  ;;  %v2128_v7 = vld [vmem:[%s10549_s28 + $0x1c70] sm:$0xff]  ;;  %2125 = vst [vmem:[%s10554_s29 + $0xe28] sm:$0xff] %v2124_v5 }
  0xf9   : > { %2127 = vst [vmem:[%s10554_s29 + $0xe30] sm:$0xff] %v2126_v6  ;;  %2129 = vst [vmem:[%s10554_s29 + $0xe38] sm:$0xff] %v2128_v7  ;;  %v2130_v8 = vld [vmem:[%s10549_s28 + $0x1c80] sm:$0xff]  ;;  %v2132_v9 = vld [vmem:[%s10549_s28 + $0x1c90] sm:$0xff] }
  0xfa   : > { %v2134_v10 = vld [vmem:[%s10549_s28 + $0x1ca0] sm:$0xff]  ;;  %2131 = vst [vmem:[%s10554_s29 + $0xe40] sm:$0xff] %v2130_v8  ;;  %2133 = vst [vmem:[%s10554_s29 + $0xe48] sm:$0xff] %v2132_v9  ;;  %v2136_v11 = vld [vmem:[%s10549_s28 + $0x1cb0] sm:$0xff] }
  0xfb   : > { %2135 = vst [vmem:[%s10554_s29 + $0xe50] sm:$0xff] %v2134_v10  ;;  %v2138_v12 = vld [vmem:[%s10549_s28 + $0x1cc0] sm:$0xff]  ;;  %v2140_v13 = vld [vmem:[%s10549_s28 + $0x1cd0] sm:$0xff]  ;;  %2137 = vst [vmem:[%s10554_s29 + $0xe58] sm:$0xff] %v2136_v11 }
  0xfc   : > { %2139 = vst [vmem:[%s10554_s29 + $0xe60] sm:$0xff] %v2138_v12  ;;  %2141 = vst [vmem:[%s10554_s29 + $0xe68] sm:$0xff] %v2140_v13  ;;  %v2142_v14 = vld [vmem:[%s10549_s28 + $0x1ce0] sm:$0xff]  ;;  %v2144_v15 = vld [vmem:[%s10549_s28 + $0x1cf0] sm:$0xff] }
  0xfd   : > { %v2146_v16 = vld [vmem:[%s10549_s28 + $0x1d00] sm:$0xff]  ;;  %2143 = vst [vmem:[%s10554_s29 + $0xe70] sm:$0xff] %v2142_v14  ;;  %2145 = vst [vmem:[%s10554_s29 + $0xe78] sm:$0xff] %v2144_v15  ;;  %v2148_v17 = vld [vmem:[%s10549_s28 + $0x1d10] sm:$0xff] }
  0xfe   : > { %2147 = vst [vmem:[%s10554_s29 + $0xe80] sm:$0xff] %v2146_v16  ;;  %v2150_v18 = vld [vmem:[%s10549_s28 + $0x1d20] sm:$0xff]  ;;  %v2152_v19 = vld [vmem:[%s10549_s28 + $0x1d30] sm:$0xff]  ;;  %2149 = vst [vmem:[%s10554_s29 + $0xe88] sm:$0xff] %v2148_v17 }
  0xff   : > { %2151 = vst [vmem:[%s10554_s29 + $0xe90] sm:$0xff] %v2150_v18  ;;  %2153 = vst [vmem:[%s10554_s29 + $0xe98] sm:$0xff] %v2152_v19  ;;  %v2154_v20 = vld [vmem:[%s10549_s28 + $0x1d40] sm:$0xff]  ;;  %v2156_v21 = vld [vmem:[%s10549_s28 + $0x1d50] sm:$0xff] }
 0x100   : > { %v2158_v22 = vld [vmem:[%s10549_s28 + $0x1d60] sm:$0xff]  ;;  %2155 = vst [vmem:[%s10554_s29 + $0xea0] sm:$0xff] %v2154_v20  ;;  %2157 = vst [vmem:[%s10554_s29 + $0xea8] sm:$0xff] %v2156_v21  ;;  %v2160_v23 = vld [vmem:[%s10549_s28 + $0x1d70] sm:$0xff] }
 0x101   : > { %2159 = vst [vmem:[%s10554_s29 + $0xeb0] sm:$0xff] %v2158_v22  ;;  %v2162_v24 = vld [vmem:[%s10549_s28 + $0x1d80] sm:$0xff]  ;;  %v2164_v25 = vld [vmem:[%s10549_s28 + $0x1d90] sm:$0xff]  ;;  %2161 = vst [vmem:[%s10554_s29 + $0xeb8] sm:$0xff] %v2160_v23 }
 0x102   : > { %2163 = vst [vmem:[%s10554_s29 + $0xec0] sm:$0xff] %v2162_v24  ;;  %2165 = vst [vmem:[%s10554_s29 + $0xec8] sm:$0xff] %v2164_v25  ;;  %v2166_v26 = vld [vmem:[%s10549_s28 + $0x1da0] sm:$0xff]  ;;  %v2168_v27 = vld [vmem:[%s10549_s28 + $0x1db0] sm:$0xff] }
 0x103   : > { %v2170_v28 = vld [vmem:[%s10549_s28 + $0x1dc0] sm:$0xff]  ;;  %2167 = vst [vmem:[%s10554_s29 + $0xed0] sm:$0xff] %v2166_v26  ;;  %2169 = vst [vmem:[%s10554_s29 + $0xed8] sm:$0xff] %v2168_v27  ;;  %v2172_v29 = vld [vmem:[%s10549_s28 + $0x1dd0] sm:$0xff] }
 0x104   : > { %2171 = vst [vmem:[%s10554_s29 + $0xee0] sm:$0xff] %v2170_v28  ;;  %v2174_v30 = vld [vmem:[%s10549_s28 + $0x1de0] sm:$0xff]  ;;  %v2176_v31 = vld [vmem:[%s10549_s28 + $0x1df0] sm:$0xff]  ;;  %2173 = vst [vmem:[%s10554_s29 + $0xee8] sm:$0xff] %v2172_v29 }
 0x105   : > { %2175 = vst [vmem:[%s10554_s29 + $0xef0] sm:$0xff] %v2174_v30  ;;  %2177 = vst [vmem:[%s10554_s29 + $0xef8] sm:$0xff] %v2176_v31  ;;  %v2178_v32 = vld [vmem:[%s10549_s28 + $0x1e00] sm:$0xff]  ;;  %v2180_v33 = vld [vmem:[%s10549_s28 + $0x1e10] sm:$0xff] }
 0x106   : > { %v2182_v34 = vld [vmem:[%s10549_s28 + $0x1e20] sm:$0xff]  ;;  %2179 = vst [vmem:[%s10554_s29 + $0xf00] sm:$0xff] %v2178_v32  ;;  %2181 = vst [vmem:[%s10554_s29 + $0xf08] sm:$0xff] %v2180_v33  ;;  %v2184_v35 = vld [vmem:[%s10549_s28 + $0x1e30] sm:$0xff] }
 0x107   : > { %2183 = vst [vmem:[%s10554_s29 + $0xf10] sm:$0xff] %v2182_v34  ;;  %v2186_v36 = vld [vmem:[%s10549_s28 + $0x1e40] sm:$0xff]  ;;  %v2188_v37 = vld [vmem:[%s10549_s28 + $0x1e50] sm:$0xff]  ;;  %2185 = vst [vmem:[%s10554_s29 + $0xf18] sm:$0xff] %v2184_v35 }
 0x108   : > { %2187 = vst [vmem:[%s10554_s29 + $0xf20] sm:$0xff] %v2186_v36  ;;  %2189 = vst [vmem:[%s10554_s29 + $0xf28] sm:$0xff] %v2188_v37  ;;  %v2190_v38 = vld [vmem:[%s10549_s28 + $0x1e60] sm:$0xff]  ;;  %v2192_v39 = vld [vmem:[%s10549_s28 + $0x1e70] sm:$0xff] }
 0x109   : > { %v2194_v40 = vld [vmem:[%s10549_s28 + $0x1e80] sm:$0xff]  ;;  %2191 = vst [vmem:[%s10554_s29 + $0xf30] sm:$0xff] %v2190_v38  ;;  %2193 = vst [vmem:[%s10554_s29 + $0xf38] sm:$0xff] %v2192_v39  ;;  %v2196_v41 = vld [vmem:[%s10549_s28 + $0x1e90] sm:$0xff] }
 0x10a   : > { %2195 = vst [vmem:[%s10554_s29 + $0xf40] sm:$0xff] %v2194_v40  ;;  %v2198_v42 = vld [vmem:[%s10549_s28 + $0x1ea0] sm:$0xff]  ;;  %v2200_v43 = vld [vmem:[%s10549_s28 + $0x1eb0] sm:$0xff]  ;;  %2197 = vst [vmem:[%s10554_s29 + $0xf48] sm:$0xff] %v2196_v41 }
 0x10b   : > { %2199 = vst [vmem:[%s10554_s29 + $0xf50] sm:$0xff] %v2198_v42  ;;  %2201 = vst [vmem:[%s10554_s29 + $0xf58] sm:$0xff] %v2200_v43  ;;  %v2202_v44 = vld [vmem:[%s10549_s28 + $0x1ec0] sm:$0xff]  ;;  %v2204_v45 = vld [vmem:[%s10549_s28 + $0x1ed0] sm:$0xff] }
 0x10c   : > { %v2206_v46 = vld [vmem:[%s10549_s28 + $0x1ee0] sm:$0xff]  ;;  %2203 = vst [vmem:[%s10554_s29 + $0xf60] sm:$0xff] %v2202_v44  ;;  %2205 = vst [vmem:[%s10554_s29 + $0xf68] sm:$0xff] %v2204_v45  ;;  %v2208_v47 = vld [vmem:[%s10549_s28 + $0x1ef0] sm:$0xff] }
 0x10d   : > { %2207 = vst [vmem:[%s10554_s29 + $0xf70] sm:$0xff] %v2206_v46  ;;  %v2210_v48 = vld [vmem:[%s10549_s28 + $0x1f00] sm:$0xff]  ;;  %v2212_v49 = vld [vmem:[%s10549_s28 + $0x1f10] sm:$0xff]  ;;  %2209 = vst [vmem:[%s10554_s29 + $0xf78] sm:$0xff] %v2208_v47 }
 0x10e   : > { %2211 = vst [vmem:[%s10554_s29 + $0xf80] sm:$0xff] %v2210_v48  ;;  %2213 = vst [vmem:[%s10554_s29 + $0xf88] sm:$0xff] %v2212_v49  ;;  %v2214_v50 = vld [vmem:[%s10549_s28 + $0x1f20] sm:$0xff]  ;;  %v2216_v51 = vld [vmem:[%s10549_s28 + $0x1f30] sm:$0xff] }
 0x10f   : > { %v2218_v52 = vld [vmem:[%s10549_s28 + $0x1f40] sm:$0xff]  ;;  %2215 = vst [vmem:[%s10554_s29 + $0xf90] sm:$0xff] %v2214_v50  ;;  %2217 = vst [vmem:[%s10554_s29 + $0xf98] sm:$0xff] %v2216_v51  ;;  %v2220_v53 = vld [vmem:[%s10549_s28 + $0x1f50] sm:$0xff] }
 0x110   : > { %2219 = vst [vmem:[%s10554_s29 + $0xfa0] sm:$0xff] %v2218_v52  ;;  %v2222_v54 = vld [vmem:[%s10549_s28 + $0x1f60] sm:$0xff]  ;;  %v2224_v55 = vld [vmem:[%s10549_s28 + $0x1f70] sm:$0xff]  ;;  %2221 = vst [vmem:[%s10554_s29 + $0xfa8] sm:$0xff] %v2220_v53 }
 0x111   : > { %2223 = vst [vmem:[%s10554_s29 + $0xfb0] sm:$0xff] %v2222_v54  ;;  %2225 = vst [vmem:[%s10554_s29 + $0xfb8] sm:$0xff] %v2224_v55  ;;  %v2226_v56 = vld [vmem:[%s10549_s28 + $0x1f80] sm:$0xff]  ;;  %v2228_v57 = vld [vmem:[%s10549_s28 + $0x1f90] sm:$0xff] }
 0x112   : > { %v2230_v58 = vld [vmem:[%s10549_s28 + $0x1fa0] sm:$0xff]  ;;  %2227 = vst [vmem:[%s10554_s29 + $0xfc0] sm:$0xff] %v2226_v56  ;;  %2229 = vst [vmem:[%s10554_s29 + $0xfc8] sm:$0xff] %v2228_v57  ;;  %v2232_v59 = vld [vmem:[%s10549_s28 + $0x1fb0] sm:$0xff] }
 0x113   : > { %2231 = vst [vmem:[%s10554_s29 + $0xfd0] sm:$0xff] %v2230_v58  ;;  %v2234_v60 = vld [vmem:[%s10549_s28 + $0x1fc0] sm:$0xff]  ;;  %v2236_v61 = vld [vmem:[%s10549_s28 + $0x1fd0] sm:$0xff]  ;;  %2233 = vst [vmem:[%s10554_s29 + $0xfd8] sm:$0xff] %v2232_v59 }
 0x114   : > { %2235 = vst [vmem:[%s10554_s29 + $0xfe0] sm:$0xff] %v2234_v60  ;;  %2237 = vst [vmem:[%s10554_s29 + $0xfe8] sm:$0xff] %v2236_v61  ;;  %v2238_v62 = vld [vmem:[%s10549_s28 + $0x1fe0] sm:$0xff]  ;;  %v2240_v63 = vld [vmem:[%s10549_s28 + $0x1ff0] sm:$0xff] }
 0x115   : > { %2239 = vst [vmem:[%s10554_s29 + $0xff0] sm:$0xff] %v2238_v62  ;;  %2241 = vst [vmem:[%s10554_s29 + $0xff8] sm:$0xff] %v2240_v63 }
 0x116 PF: > { %p8910_p8 = scmp.ge.s32.totalorder %s10479_s16, 1  ;;  %p4338_p9 = scmp.lt.s32.totalorder %s10479_s16, 3 }
 0x118   : > { %p4339_p10 = pnand %p8910_p8, %p4338_p9 }
 0x119   : > { %s4345_s30 = sand.u32 (!%p4339_p10), 1, %s10463_s12   ;;  %v11583_v0 = vld [vmem:[%s12459_s0] sm:$0xff] (!%p4339_p10) }
 0x11a   : > { %4342 = sbr.rel (%p4339_p10) target bundleno = 1039 (0x40f), region = 80  ;;  %v11588_v1 = vld [vmem:[%s12459_s0 + $0x80] sm:$0xff] (!%p4339_p10)  ;;  %s8911_s10 = sshll.u32 (!%p4339_p10), %s4345_s30, 12 }
 0x11b   : > { %v11593_v2 = vld [vmem:[%s12459_s0 + $0x40] sm:$0xff] (!%p4339_p10)  ;;  %v8914_v3 = vcombine.low (!%p4339_p10), %v11583_v0, %v11588_v1  ;;  %v8915_v4 = vcombine.high (!%p4339_p10), %v11583_v0, %v11588_v1  ;;  %s11610_s19 = scalar_lea.vmem (!%p4339_p10), [#allocation2], %s8911_s10  ;;  %s8912_s26 = sshll.u32 (!%p4339_p10), %s4345_s30, 5 }
 0x11c   : > { %v11604_v5 = vld [vmem:[%s12459_s0 + $0xc0] sm:$0xff] (!%p4339_p10)  ;;  %v9679_v12 = vld [vmem:[%s11610_s19 + $0x14] ss:$8 sps:$4 sm:$0xff] (!%p4339_p10)   ;;  %v9683_v14 = vld [vmem:[%s11610_s19 + $0x10] ss:$8 sps:$4 sm:$0xff] (!%p4339_p10)   ;;  %s12428_s27 = scalar_lea.vmem (!%p4339_p10), [#allocation3], %s8912_s26 }
 0x11d   : > { %v8930_v6 = vcombine.low (!%p4339_p10), %v11593_v2, %v11604_v5  ;;  %v8931_v7 = vcombine.high (!%p4339_p10), %v11593_v2, %v11604_v5  ;;  %v9673_v8 = vld [vmem:[%s11610_s19 + $0x4] ss:$8 sps:$4 sm:$0xff] (!%p4339_p10)   ;;  %7892 = vmatprep.mubr.bf16.mxu1 (!%p4339_p10), %v8915_v4  ;;  %v9677_v10 = vld [vmem:[%s11610_s19] ss:$8 sps:$4 sm:$0xff] (!%p4339_p10)   ;;  %v9681_v13 = vld [vmem:[%s11610_s19 + $0x814] ss:$8 sps:$4 sm:$0xff] (!%p4339_p10)  }
 0x11e   : > { %v9675_v9 = vld [vmem:[%s11610_s19 + $0x804] ss:$8 sps:$4 sm:$0xff] (!%p4339_p10)   ;;  %7860 = vmatprep.subr.bf16.mxu1 (!%p4339_p10), %v9673_v8  ;;  %v9678_v11 = vld [vmem:[%s11610_s19 + $0x800] ss:$8 sps:$4 sm:$0xff] (!%p4339_p10)   ;;  %v9684_v15 = vld [vmem:[%s11610_s19 + $0x810] ss:$8 sps:$4 sm:$0xff] (!%p4339_p10)  }
 0x11f   : > { %8316 = vmatprep.mubr.bf16.mxu0 (!%p4339_p10), %v8931_v7  ;;  %8284 = vmatprep.subr.bf16.mxu0 (!%p4339_p10), %v9675_v9  ;;  %v9685_v16 = vld [vmem:[%s11610_s19 + $0x24] ss:$8 sps:$4 sm:$0xff] (!%p4339_p10)   ;;  %v9689_v18 = vld [vmem:[%s11610_s19 + $0x20] ss:$8 sps:$4 sm:$0xff] (!%p4339_p10)   ;;  %v9691_v20 = vld [vmem:[%s11610_s19 + $0x34] ss:$8 sps:$4 sm:$0xff] (!%p4339_p10)  }
 0x120   : > { %7861 = vmatpush1.bf16.msra.mxu1 (!%p4339_p10), %v9677_v10  ;;  %8285 = vmatpush1.bf16.msra.mxu0 (!%p4339_p10), %v9678_v11  ;;  %v9687_v17 = vld [vmem:[%s11610_s19 + $0x824] ss:$8 sps:$4 sm:$0xff] (!%p4339_p10)   ;;  %v9690_v19 = vld [vmem:[%s11610_s19 + $0x820] ss:$8 sps:$4 sm:$0xff] (!%p4339_p10)   ;;  %v9693_v21 = vld [vmem:[%s11610_s19 + $0x834] ss:$8 sps:$4 sm:$0xff] (!%p4339_p10)  }
 0x121   : > { %7862 = vmatprep.subr.bf16.mxu1 %v9679_v12  ;;  %8286 = vmatprep.subr.bf16.mxu0 %v9681_v13  ;;  %v9695_v22 = vld [vmem:[%s11610_s19 + $0x30] ss:$8 sps:$4 sm:$0xff]   ;;  %v9697_v24 = vld [vmem:[%s11610_s19 + $0x44] ss:$8 sps:$4 sm:$0xff]   ;;  %v9701_v26 = vld [vmem:[%s11610_s19 + $0x40] ss:$8 sps:$4 sm:$0xff]  }
 0x122   : > { %v9696_v23 = vld [vmem:[%s11610_s19 + $0x830] ss:$8 sps:$4 sm:$0xff]   ;;  %v9699_v25 = vld [vmem:[%s11610_s19 + $0x844] ss:$8 sps:$4 sm:$0xff]   ;;  %v9702_v27 = vld [vmem:[%s11610_s19 + $0x840] ss:$8 sps:$4 sm:$0xff]  }
 0x123   : > { %v9703_v28 = vld [vmem:[%s11610_s19 + $0x54] ss:$8 sps:$4 sm:$0xff]   ;;  %v9707_v30 = vld [vmem:[%s11610_s19 + $0x50] ss:$8 sps:$4 sm:$0xff]   ;;  %v9709_v32 = vld [vmem:[%s11610_s19 + $0x64] ss:$8 sps:$4 sm:$0xff]  }
 0x124   : > { %7863 = vmatpush1.bf16.msra.mxu1 %v9683_v14  ;;  %8287 = vmatpush1.bf16.msra.mxu0 %v9684_v15  ;;  %v9705_v29 = vld [vmem:[%s11610_s19 + $0x854] ss:$8 sps:$4 sm:$0xff]   ;;  %v9708_v31 = vld [vmem:[%s11610_s19 + $0x850] ss:$8 sps:$4 sm:$0xff]   ;;  %v9711_v33 = vld [vmem:[%s11610_s19 + $0x864] ss:$8 sps:$4 sm:$0xff]  }
 0x125   : > { %7864 = vmatprep.subr.bf16.mxu1 %v9685_v16  ;;  %8288 = vmatprep.subr.bf16.mxu0 %v9687_v17  ;;  %v9713_v34 = vld [vmem:[%s11610_s19 + $0x60] ss:$8 sps:$4 sm:$0xff]   ;;  %v9715_v36 = vld [vmem:[%s11610_s19 + $0x74] ss:$8 sps:$4 sm:$0xff]   ;;  %v9719_v38 = vld [vmem:[%s11610_s19 + $0x70] ss:$8 sps:$4 sm:$0xff]  }
 0x126   : > { %v9714_v35 = vld [vmem:[%s11610_s19 + $0x860] ss:$8 sps:$4 sm:$0xff]   ;;  %v9717_v37 = vld [vmem:[%s11610_s19 + $0x874] ss:$8 sps:$4 sm:$0xff]   ;;  %v9720_v39 = vld [vmem:[%s11610_s19 + $0x870] ss:$8 sps:$4 sm:$0xff]  }
 0x127   : > { %v9721_v40 = vld [vmem:[%s11610_s19 + $0x84] ss:$8 sps:$4 sm:$0xff]   ;;  %v9725_v42 = vld [vmem:[%s11610_s19 + $0x80] ss:$8 sps:$4 sm:$0xff]   ;;  %v9727_v44 = vld [vmem:[%s11610_s19 + $0x94] ss:$8 sps:$4 sm:$0xff]  }
 0x128   : > { %7865 = vmatpush1.bf16.msra.mxu1 %v9689_v18  ;;  %8289 = vmatpush1.bf16.msra.mxu0 %v9690_v19  ;;  %v9723_v41 = vld [vmem:[%s11610_s19 + $0x884] ss:$8 sps:$4 sm:$0xff]   ;;  %v9726_v43 = vld [vmem:[%s11610_s19 + $0x880] ss:$8 sps:$4 sm:$0xff]   ;;  %v9729_v45 = vld [vmem:[%s11610_s19 + $0x894] ss:$8 sps:$4 sm:$0xff]  }
 0x129   : > { %7866 = vmatprep.subr.bf16.mxu1 %v9691_v20  ;;  %8290 = vmatprep.subr.bf16.mxu0 %v9693_v21  ;;  %v9731_v46 = vld [vmem:[%s11610_s19 + $0x90] ss:$8 sps:$4 sm:$0xff]   ;;  %v9733_v48 = vld [vmem:[%s11610_s19 + $0xa4] ss:$8 sps:$4 sm:$0xff]   ;;  %v9737_v50 = vld [vmem:[%s11610_s19 + $0xa0] ss:$8 sps:$4 sm:$0xff]  }
 0x12a   : > { %v9732_v47 = vld [vmem:[%s11610_s19 + $0x890] ss:$8 sps:$4 sm:$0xff]   ;;  %v9735_v49 = vld [vmem:[%s11610_s19 + $0x8a4] ss:$8 sps:$4 sm:$0xff]   ;;  %v9738_v51 = vld [vmem:[%s11610_s19 + $0x8a0] ss:$8 sps:$4 sm:$0xff]  }
 0x12b   : > { %v9739_v52 = vld [vmem:[%s11610_s19 + $0xb4] ss:$8 sps:$4 sm:$0xff]   ;;  %v9743_v54 = vld [vmem:[%s11610_s19 + $0xb0] ss:$8 sps:$4 sm:$0xff]   ;;  %v9745_v56 = vld [vmem:[%s11610_s19 + $0xc4] ss:$8 sps:$4 sm:$0xff]  }
 0x12c   : > { %7867 = vmatpush1.bf16.msra.mxu1 %v9695_v22  ;;  %8291 = vmatpush1.bf16.msra.mxu0 %v9696_v23  ;;  %v9741_v53 = vld [vmem:[%s11610_s19 + $0x8b4] ss:$8 sps:$4 sm:$0xff]   ;;  %v9744_v55 = vld [vmem:[%s11610_s19 + $0x8b0] ss:$8 sps:$4 sm:$0xff]   ;;  %v9747_v57 = vld [vmem:[%s11610_s19 + $0x8c4] ss:$8 sps:$4 sm:$0xff]  }
 0x12d   : > { %7868 = vmatprep.subr.bf16.mxu1 %v9697_v24  ;;  %8292 = vmatprep.subr.bf16.mxu0 %v9699_v25  ;;  %v9749_v58 = vld [vmem:[%s11610_s19 + $0xc0] ss:$8 sps:$4 sm:$0xff]   ;;  %v9751_v60 = vld [vmem:[%s11610_s19 + $0xd4] ss:$8 sps:$4 sm:$0xff]   ;;  %v9755_v62 = vld [vmem:[%s11610_s19 + $0xd0] ss:$8 sps:$4 sm:$0xff]  }
 0x12e   : > { %v9750_v59 = vld [vmem:[%s11610_s19 + $0x8c0] ss:$8 sps:$4 sm:$0xff]   ;;  %v9753_v61 = vld [vmem:[%s11610_s19 + $0x8d4] ss:$8 sps:$4 sm:$0xff]   ;;  %v9756_v63 = vld [vmem:[%s11610_s19 + $0x8d0] ss:$8 sps:$4 sm:$0xff]  }
 0x12f   : > { %v9757_v4 = vld [vmem:[%s11610_s19 + $0xe4] ss:$8 sps:$4 sm:$0xff]   ;;  %v9761_v8 = vld [vmem:[%s11610_s19 + $0xe0] ss:$8 sps:$4 sm:$0xff]   ;;  %v9763_v10 = vld [vmem:[%s11610_s19 + $0xf4] ss:$8 sps:$4 sm:$0xff]  }
 0x130   : > { %7869 = vmatpush1.bf16.msra.mxu1 %v9701_v26  ;;  %8293 = vmatpush1.bf16.msra.mxu0 %v9702_v27  ;;  %v9759_v7 = vld [vmem:[%s11610_s19 + $0x8e4] ss:$8 sps:$4 sm:$0xff]   ;;  %v9762_v9 = vld [vmem:[%s11610_s19 + $0x8e0] ss:$8 sps:$4 sm:$0xff]   ;;  %v9765_v11 = vld [vmem:[%s11610_s19 + $0x8f4] ss:$8 sps:$4 sm:$0xff]  }
 0x131   : > { %7870 = vmatprep.subr.bf16.mxu1 %v9703_v28  ;;  %8294 = vmatprep.subr.bf16.mxu0 %v9705_v29  ;;  %v9767_v12 = vld [vmem:[%s11610_s19 + $0xf0] ss:$8 sps:$4 sm:$0xff]   ;;  %v9771_v14 = vld [vmem:[%s11610_s19 + $0x104] ss:$8 sps:$4 sm:$0xff]   ;;  %v9769_v20 = vld [vmem:[%s11610_s19 + $0x100] ss:$8 sps:$4 sm:$0xff]  }
 0x132   : > { %v9768_v13 = vld [vmem:[%s11610_s19 + $0x8f0] ss:$8 sps:$4 sm:$0xff]   ;;  %v9774_v15 = vld [vmem:[%s11610_s19 + $0x904] ss:$8 sps:$4 sm:$0xff]   ;;  %v9772_v21 = vld [vmem:[%s11610_s19 + $0x900] ss:$8 sps:$4 sm:$0xff]  }
 0x133   : > { %v4424_v16 = vld [vmem:[%s12459_s0 + $0x100] sm:$0xff]  ;;  %v9777_v22 = vld [vmem:[%s11610_s19 + $0x114] ss:$8 sps:$4 sm:$0xff]   ;;  %v9775_v26 = vld [vmem:[%s11610_s19 + $0x110] ss:$8 sps:$4 sm:$0xff]   ;;  %s9504_s12 = sshll.u32 (%p10536_p6), %s10471_s14, 3 }
 0x134   : > { %7871 = vmatpush1.bf16.msra.mxu1 %v9707_v30  ;;  %8295 = vmatpush1.bf16.msra.mxu0 %v9708_v31  ;;  %v4440_v17 = vld [vmem:[%s12459_s0 + $0x180] sm:$0xff]  ;;  %v9780_v23 = vld [vmem:[%s11610_s19 + $0x914] ss:$8 sps:$4 sm:$0xff]   ;;  %v9778_v27 = vld [vmem:[%s11610_s19 + $0x910] ss:$8 sps:$4 sm:$0xff]   ;;  %s8756_s29 = scalar_lea.vmem (%p10536_p6), %s12462_s3, %s9504_s12 }
 0x135   : > { %7872 = vmatprep.subr.bf16.mxu1 %v9709_v32  ;;  %8296 = vmatprep.subr.bf16.mxu0 %v9711_v33  ;;  %v4432_v18 = vld [vmem:[%s12459_s0 + $0x140] sm:$0xff]  ;;  %v8947_v24 = vcombine.high %v4424_v16, %v4440_v17  ;;  %v9789_v5 = vld [vmem:[%s11610_s19 + $0x134] ss:$8 sps:$4 sm:$0xff]   ;;  %v9787_v30 = vld [vmem:[%s11610_s19 + $0x130] ss:$8 sps:$4 sm:$0xff]  }
 0x136   : > { %v4448_v19 = vld [vmem:[%s12459_s0 + $0x1c0] sm:$0xff]  ;;  %v9790_v31 = vld [vmem:[%s11610_s19 + $0x930] ss:$8 sps:$4 sm:$0xff]  }
 0x137   : > { %v8963_v25 = vcombine.high %v4432_v18, %v4448_v19  ;;  %v9783_v28 = vld [vmem:[%s11610_s19 + $0x124] ss:$8 sps:$4 sm:$0xff]   ;;  %v9781_v0 = vld [vmem:[%s11610_s19 + $0x120] ss:$8 sps:$4 sm:$0xff]   ;;  %v8962_v2 = vcombine.low %v4432_v18, %v4448_v19  ;;  %v9847_v18 = vld [vmem:[%s11610_s19 + $0x1d0] ss:$8 sps:$4 sm:$0xff]  }
 0x138   : > { %7873 = vmatpush1.bf16.msra.mxu1 %v9713_v34  ;;  %8297 = vmatpush1.bf16.msra.mxu0 %v9714_v35  ;;  %v9786_v29 = vld [vmem:[%s11610_s19 + $0x924] ss:$8 sps:$4 sm:$0xff]   ;;  %v9784_v1 = vld [vmem:[%s11610_s19 + $0x920] ss:$8 sps:$4 sm:$0xff]   ;;  %v9850_v19 = vld [vmem:[%s11610_s19 + $0x9d0] ss:$8 sps:$4 sm:$0xff]  }
 0x139   : > { %7874 = vmatprep.subr.bf16.mxu1 %v9715_v36  ;;  %8298 = vmatprep.subr.bf16.mxu0 %v9717_v37  ;;  %v9795_v32 = vld [vmem:[%s11610_s19 + $0x144] ss:$8 sps:$4 sm:$0xff]   ;;  %v9793_v34 = vld [vmem:[%s11610_s19 + $0x140] ss:$8 sps:$4 sm:$0xff]   ;;  %v9801_v36 = vld [vmem:[%s11610_s19 + $0x154] ss:$8 sps:$4 sm:$0xff]  }
 0x13a   : > { %v9798_v33 = vld [vmem:[%s11610_s19 + $0x944] ss:$8 sps:$4 sm:$0xff]   ;;  %v9796_v35 = vld [vmem:[%s11610_s19 + $0x940] ss:$8 sps:$4 sm:$0xff]   ;;  %v9804_v37 = vld [vmem:[%s11610_s19 + $0x954] ss:$8 sps:$4 sm:$0xff]  }
 0x13c   : > { %7875 = vmatpush1.bf16.msra.mxu1 %v9719_v38  ;;  %8299 = vmatpush1.bf16.msra.mxu0 %v9720_v39  ;;  %v9799_v38 = vld [vmem:[%s11610_s19 + $0x150] ss:$8 sps:$4 sm:$0xff]  }
 0x13d   : > { %7876 = vmatprep.subr.bf16.mxu1 %v9721_v40  ;;  %8300 = vmatprep.subr.bf16.mxu0 %v9723_v41  ;;  %v9802_v39 = vld [vmem:[%s11610_s19 + $0x950] ss:$8 sps:$4 sm:$0xff]   ;;  %v9807_v40 = vld [vmem:[%s11610_s19 + $0x164] ss:$8 sps:$4 sm:$0xff]  }
 0x13e   : > { %v9810_v41 = vld [vmem:[%s11610_s19 + $0x964] ss:$8 sps:$4 sm:$0xff]  }
 0x140   : > { %7877 = vmatpush1.bf16.msra.mxu1 %v9725_v42  ;;  %8301 = vmatpush1.bf16.msra.mxu0 %v9726_v43  ;;  %v11723_v42 = vld [vmem:[%s12459_s0 + $0x8] sm:$0xff] }
 0x141   : > { %7878 = vmatprep.subr.bf16.mxu1 %v9727_v44  ;;  %8302 = vmatprep.subr.bf16.mxu0 %v9729_v45  ;;  %v11728_v43 = vld [vmem:[%s12459_s0 + $0x88] sm:$0xff] }
 0x142   : > { %v9805_v44 = vld [vmem:[%s11610_s19 + $0x160] ss:$8 sps:$4 sm:$0xff]   ;;  %v8917_v45 = vcombine.high %v11723_v42, %v11728_v43 }
 0x144   : > { %7879 = vmatpush1.bf16.msra.mxu1 %v9731_v46  ;;  %8303 = vmatpush1.bf16.msra.mxu0 %v9732_v47  ;;  %v9808_v46 = vld [vmem:[%s11610_s19 + $0x960] ss:$8 sps:$4 sm:$0xff]  }
 0x145   : > { %7880 = vmatprep.subr.bf16.mxu1 %v9733_v48  ;;  %8304 = vmatprep.subr.bf16.mxu0 %v9735_v49  ;;  %v11737_v47 = vld [vmem:[%s12459_s0 + $0x48] sm:$0xff]  ;;  %v9813_v49 = vld [vmem:[%s11610_s19 + $0x174] ss:$8 sps:$4 sm:$0xff]  }
 0x146   : > { %v11742_v48 = vld [vmem:[%s12459_s0 + $0xc8] sm:$0xff] }
 0x148   : > { %7881 = vmatpush1.bf16.msra.mxu1 %v9737_v50  ;;  %8305 = vmatpush1.bf16.msra.mxu0 %v9738_v51  ;;  %v8933_v50 = vcombine.high %v11737_v47, %v11742_v48  ;;  %v9816_v51 = vld [vmem:[%s11610_s19 + $0x974] ss:$8 sps:$4 sm:$0xff]  }
 0x149   : > { %7882 = vmatprep.subr.bf16.mxu1 %v9739_v52  ;;  %8306 = vmatprep.subr.bf16.mxu0 %v9741_v53  ;;  %v9811_v52 = vld [vmem:[%s11610_s19 + $0x170] ss:$8 sps:$4 sm:$0xff]  }
 0x14a   : > { %v9814_v53 = vld [vmem:[%s11610_s19 + $0x970] ss:$8 sps:$4 sm:$0xff]  }
 0x14c   : > { %7883 = vmatpush1.bf16.msra.mxu1 %v9743_v54  ;;  %8307 = vmatpush1.bf16.msra.mxu0 %v9744_v55  ;;  %v9819_v54 = vld [vmem:[%s11610_s19 + $0x184] ss:$8 sps:$4 sm:$0xff]  }
 0x14d   : > { %7884 = vmatprep.subr.bf16.mxu1 %v9745_v56  ;;  %8308 = vmatprep.subr.bf16.mxu0 %v9747_v57  ;;  %v9822_v55 = vld [vmem:[%s11610_s19 + $0x984] ss:$8 sps:$4 sm:$0xff]   ;;  %v9817_v56 = vld [vmem:[%s11610_s19 + $0x180] ss:$8 sps:$4 sm:$0xff]  }
 0x14e   : > { %v9820_v57 = vld [vmem:[%s11610_s19 + $0x980] ss:$8 sps:$4 sm:$0xff]  }
 0x150   : > { %7885 = vmatpush1.bf16.msra.mxu1 %v9749_v58  ;;  %8309 = vmatpush1.bf16.msra.mxu0 %v9750_v59  ;;  %v9825_v58 = vld [vmem:[%s11610_s19 + $0x194] ss:$8 sps:$4 sm:$0xff]  }
 0x151   : > { %7886 = vmatprep.subr.bf16.mxu1 %v9751_v60  ;;  %8310 = vmatprep.subr.bf16.mxu0 %v9753_v61  ;;  %v9828_v59 = vld [vmem:[%s11610_s19 + $0x994] ss:$8 sps:$4 sm:$0xff]   ;;  %v9823_v60 = vld [vmem:[%s11610_s19 + $0x190] ss:$8 sps:$4 sm:$0xff]  }
 0x152   : > { %v9826_v61 = vld [vmem:[%s11610_s19 + $0x990] ss:$8 sps:$4 sm:$0xff]  }
 0x154   : > { %7887 = vmatpush1.bf16.msra.mxu1 %v9755_v62  ;;  %8311 = vmatpush1.bf16.msra.mxu0 %v9756_v63  ;;  %v9831_v62 = vld [vmem:[%s11610_s19 + $0x1a4] ss:$8 sps:$4 sm:$0xff]  }
 0x155   : > { %7888 = vmatprep.subr.bf16.mxu1 %v9757_v4  ;;  %8312 = vmatprep.subr.bf16.mxu0 %v9759_v7  ;;  %v9834_v63 = vld [vmem:[%s11610_s19 + $0x9a4] ss:$8 sps:$4 sm:$0xff]   ;;  %v9829_v4 = vld [vmem:[%s11610_s19 + $0x1a0] ss:$8 sps:$4 sm:$0xff]  }
 0x156   : > { %v9832_v7 = vld [vmem:[%s11610_s19 + $0x9a0] ss:$8 sps:$4 sm:$0xff]  }
 0x158   : > { %7889 = vmatpush1.bf16.msra.mxu1 %v9761_v8  ;;  %8313 = vmatpush1.bf16.msra.mxu0 %v9762_v9  ;;  %v9837_v8 = vld [vmem:[%s11610_s19 + $0x1b4] ss:$8 sps:$4 sm:$0xff]  }
 0x159   : > { %7890 = vmatprep.subr.bf16.mxu1 %v9763_v10  ;;  %8314 = vmatprep.subr.bf16.mxu0 %v9765_v11  ;;  %v9840_v9 = vld [vmem:[%s11610_s19 + $0x9b4] ss:$8 sps:$4 sm:$0xff]   ;;  %v9835_v10 = vld [vmem:[%s11610_s19 + $0x1b0] ss:$8 sps:$4 sm:$0xff]  }
 0x15a   : > { %v9838_v11 = vld [vmem:[%s11610_s19 + $0x9b0] ss:$8 sps:$4 sm:$0xff]  }
 0x15c   : > { %7891 = vmatpush1.bf16.msra.mxu1 %v9767_v12  ;;  %8315 = vmatpush1.bf16.msra.mxu0 %v9768_v13  ;;  %v9843_v12 = vld [vmem:[%s11610_s19 + $0x1c4] ss:$8 sps:$4 sm:$0xff]  }
 0x15d   : > { %7913 = vmatprep.subr.bf16.mxu1 %v9771_v14  ;;  %8337 = vmatprep.subr.bf16.mxu0 %v9774_v15  ;;  %v9846_v13 = vld [vmem:[%s11610_s19 + $0x9c4] ss:$8 sps:$4 sm:$0xff]   ;;  %v9841_v14 = vld [vmem:[%s11610_s19 + $0x1c0] ss:$8 sps:$4 sm:$0xff]  }
 0x15e   : > { %v9844_v15 = vld [vmem:[%s11610_s19 + $0x9c0] ss:$8 sps:$4 sm:$0xff]  }
 0x15f   : > { %7893 = vmatmul.mubr.bf16.vlgmr.msra.gmra.mrb[0].mxu1 %v8914_v3  ;;  %8317 = vmatmul.mubr.bf16.vlgmr.msra.gmra.mrb[0].mxu0 %v8930_v6  ;;  %v8946_v3 = vcombine.low %v4424_v16, %v4440_v17  ;;  %v9792_v6 = vld [vmem:[%s11610_s19 + $0x934] ss:$8 sps:$4 sm:$0xff]  }
 0x160   : > { %7914 = vmatpush1.bf16.msra.mxu1 %v9769_v20  ;;  %8338 = vmatpush1.bf16.msra.mxu0 %v9772_v21  ;;  %v9849_v16 = vld [vmem:[%s11610_s19 + $0x1d4] ss:$8 sps:$4 sm:$0xff]   ;;  %v9855_v20 = vld [vmem:[%s11610_s19 + $0x1e4] ss:$8 sps:$4 sm:$0xff]  }
 0x161   : > { %7915 = vmatprep.subr.bf16.mxu1 %v9777_v22  ;;  %8339 = vmatprep.subr.bf16.mxu0 %v9780_v23  ;;  %v9852_v17 = vld [vmem:[%s11610_s19 + $0x9d4] ss:$8 sps:$4 sm:$0xff]   ;;  %v9858_v21 = vld [vmem:[%s11610_s19 + $0x9e4] ss:$8 sps:$4 sm:$0xff]   ;;  %v9853_v22 = vld [vmem:[%s11610_s19 + $0x1e0] ss:$8 sps:$4 sm:$0xff]  }
 0x162   : > { %7902 = vmatprep.mubr.bf16.mxu1 %v8947_v24  ;;  %8326 = vmatprep.mubr.bf16.mxu0 %v8963_v25  ;;  %v9856_v23 = vld [vmem:[%s11610_s19 + $0x9e0] ss:$8 sps:$4 sm:$0xff]   ;;  %v9861_v24 = vld [vmem:[%s11610_s19 + $0x1f4] ss:$8 sps:$4 sm:$0xff]  }
 0x163   : > { %v9864_v25 = vld [vmem:[%s11610_s19 + $0x9f4] ss:$8 sps:$4 sm:$0xff]  }
 0x164   : > { %7916 = vmatpush1.bf16.msra.mxu1 %v9775_v26  ;;  %8340 = vmatpush1.bf16.msra.mxu0 %v9778_v27  ;;  %v9859_v26 = vld [vmem:[%s11610_s19 + $0x1f0] ss:$8 sps:$4 sm:$0xff]  }
 0x165   : > { %7917 = vmatprep.subr.bf16.mxu1 %v9783_v28  ;;  %8341 = vmatprep.subr.bf16.mxu0 %v9786_v29  ;;  %v9862_v27 = vld [vmem:[%s11610_s19 + $0x9f0] ss:$8 sps:$4 sm:$0xff]   ;;  %v9867_v28 = vld [vmem:[%s11610_s19 + $0x204] ss:$8 sps:$4 sm:$0xff]  }
 0x166   : > { %v9870_v29 = vld [vmem:[%s11610_s19 + $0xa04] ss:$8 sps:$4 sm:$0xff]  }
 0x167   : > { %7903 = vmatmul.mubr.bf16.gmra.mrb[4].mxu1 %v8946_v3  ;;  %8327 = vmatmul.mubr.bf16.gmra.mrb[4].mxu0 %v8962_v2  ;;  %v4425_v3 = vld [vmem:[%s12459_s0 + $0x108] sm:$0xff] }
 0x168   : > { %7918 = vmatpush1.bf16.msra.mxu1 %v9781_v0  ;;  %8342 = vmatpush1.bf16.msra.mxu0 %v9784_v1  ;;  %v9865_v0 = vld [vmem:[%s11610_s19 + $0x200] ss:$8 sps:$4 sm:$0xff]  }
 0x169   : > { %7919 = vmatprep.subr.bf16.mxu1 %v9789_v5  ;;  %8343 = vmatprep.subr.bf16.mxu0 %v9792_v6  ;;  %v9868_v1 = vld [vmem:[%s11610_s19 + $0xa00] ss:$8 sps:$4 sm:$0xff]   ;;  %v8916_v5 = vcombine.low %v11723_v42, %v11728_v43  ;;  %v8932_v6 = vcombine.low %v11737_v47, %v11742_v48  ;;  %v11813_v42 = vld [vmem:[%s12459_s0 + $0x10] sm:$0xff] }
 0x16a   : > { %7945 = vmatprep.mubr.bf16.mxu1 %v8917_v45  ;;  %8369 = vmatprep.mubr.bf16.mxu0 %v8933_v50  ;;  %v4441_v2 = vld [vmem:[%s12459_s0 + $0x188] sm:$0xff]  ;;  %v11818_v43 = vld [vmem:[%s12459_s0 + $0x90] sm:$0xff] }
 0x16b   : > { %v11828_v47 = vld [vmem:[%s12459_s0 + $0xd0] sm:$0xff]  ;;  %v8919_v50 = vcombine.high %v11813_v42, %v11818_v43 }
 0x16c   : > { %7920 = vmatpush1.bf16.msra.mxu1 %v9787_v30  ;;  %8344 = vmatpush1.bf16.msra.mxu0 %v9790_v31  ;;  %v4433_v30 = vld [vmem:[%s12459_s0 + $0x148] sm:$0xff]  ;;  %v9885_v48 = vld [vmem:[%s11610_s19 + $0x234] ss:$8 sps:$4 sm:$0xff]  }
 0x16d   : > { %7921 = vmatprep.subr.bf16.mxu1 %v9795_v32  ;;  %8345 = vmatprep.subr.bf16.mxu0 %v9798_v33  ;;  %v4449_v31 = vld [vmem:[%s12459_s0 + $0x1c8] sm:$0xff]  ;;  %v9873_v32 = vld [vmem:[%s11610_s19 + $0x214] ss:$8 sps:$4 sm:$0xff]  }
 0x16e   : > { %v9876_v33 = vld [vmem:[%s11610_s19 + $0xa14] ss:$8 sps:$4 sm:$0xff]   ;;  %v8964_v45 = vcombine.low %v4433_v30, %v4449_v31 }
 0x170   : > { %7922 = vmatpush1.bf16.msra.mxu1 %v9793_v34  ;;  %8346 = vmatpush1.bf16.msra.mxu0 %v9796_v35  ;;  %v8949_v34 = vcombine.high %v4425_v3, %v4441_v2  ;;  %v8965_v35 = vcombine.high %v4433_v30, %v4449_v31  ;;  %v9951_v30 = vld [vmem:[%s11610_s19 + $0x2e4] ss:$8 sps:$4 sm:$0xff]  }
 0x171   : > { %7923 = vmatprep.subr.bf16.mxu1 %v9801_v36  ;;  %8347 = vmatprep.subr.bf16.mxu0 %v9804_v37  ;;  %v9871_v36 = vld [vmem:[%s11610_s19 + $0x210] ss:$8 sps:$4 sm:$0xff]   ;;  %v9954_v31 = vld [vmem:[%s11610_s19 + $0xae4] ss:$8 sps:$4 sm:$0xff]  }
 0x172   : > { %v9874_v37 = vld [vmem:[%s11610_s19 + $0xa10] ss:$8 sps:$4 sm:$0xff]  }
 0x174   : > { %7924 = vmatpush1.bf16.msra.mxu1 %v9799_v38  ;;  %8348 = vmatpush1.bf16.msra.mxu0 %v9802_v39  ;;  %v9879_v38 = vld [vmem:[%s11610_s19 + $0x224] ss:$8 sps:$4 sm:$0xff]  }
 0x175   : > { %7925 = vmatprep.subr.bf16.mxu1 %v9807_v40  ;;  %8349 = vmatprep.subr.bf16.mxu0 %v9810_v41  ;;  %v9882_v39 = vld [vmem:[%s11610_s19 + $0xa24] ss:$8 sps:$4 sm:$0xff]   ;;  %v9877_v40 = vld [vmem:[%s11610_s19 + $0x220] ss:$8 sps:$4 sm:$0xff]  }
 0x176   : > { %v9880_v41 = vld [vmem:[%s11610_s19 + $0xa20] ss:$8 sps:$4 sm:$0xff]  }
 0x178   : > { %7926 = vmatpush1.bf16.msra.mxu1 %v9805_v44  ;;  %8350 = vmatpush1.bf16.msra.mxu0 %v9808_v46  ;;  %v8948_v44 = vcombine.low %v4425_v3, %v4441_v2  ;;  %v11823_v46 = vld [vmem:[%s12459_s0 + $0x50] sm:$0xff] }
 0x179   : > { %7927 = vmatprep.subr.bf16.mxu1 %v9813_v49  ;;  %8351 = vmatprep.subr.bf16.mxu0 %v9816_v51  ;;  %v9888_v49 = vld [vmem:[%s11610_s19 + $0xa34] ss:$8 sps:$4 sm:$0xff]   ;;  %v8935_v51 = vcombine.high %v11823_v46, %v11828_v47 }
 0x17a   : > { %v9945_v3 = vld [vmem:[%s11610_s19 + $0x2d4] ss:$8 sps:$4 sm:$0xff]  }
 0x17b   : > { %v9948_v2 = vld [vmem:[%s11610_s19 + $0xad4] ss:$8 sps:$4 sm:$0xff]  }
 0x17c   : > { %7928 = vmatpush1.bf16.msra.mxu1 %v9811_v52  ;;  %8352 = vmatpush1.bf16.msra.mxu0 %v9814_v53  ;;  %v9883_v52 = vld [vmem:[%s11610_s19 + $0x230] ss:$8 sps:$4 sm:$0xff]  }
 0x17d   : > { %7929 = vmatprep.subr.bf16.mxu1 %v9819_v54  ;;  %8353 = vmatprep.subr.bf16.mxu0 %v9822_v55  ;;  %v9886_v53 = vld [vmem:[%s11610_s19 + $0xa30] ss:$8 sps:$4 sm:$0xff]   ;;  %v9891_v54 = vld [vmem:[%s11610_s19 + $0x244] ss:$8 sps:$4 sm:$0xff]  }
 0x17e   : > { %v9894_v55 = vld [vmem:[%s11610_s19 + $0xa44] ss:$8 sps:$4 sm:$0xff]  }
 0x180   : > { %7930 = vmatpush1.bf16.msra.mxu1 %v9817_v56  ;;  %8354 = vmatpush1.bf16.msra.mxu0 %v9820_v57  ;;  %v9889_v56 = vld [vmem:[%s11610_s19 + $0x240] ss:$8 sps:$4 sm:$0xff]  }
 0x181   : > { %7931 = vmatprep.subr.bf16.mxu1 %v9825_v58  ;;  %8355 = vmatprep.subr.bf16.mxu0 %v9828_v59  ;;  %v9892_v57 = vld [vmem:[%s11610_s19 + $0xa40] ss:$8 sps:$4 sm:$0xff]   ;;  %v9897_v58 = vld [vmem:[%s11610_s19 + $0x254] ss:$8 sps:$4 sm:$0xff]  }
 0x182   : > { %v9900_v59 = vld [vmem:[%s11610_s19 + $0xa54] ss:$8 sps:$4 sm:$0xff]  }
 0x184   : > { %7932 = vmatpush1.bf16.msra.mxu1 %v9823_v60  ;;  %8356 = vmatpush1.bf16.msra.mxu0 %v9826_v61  ;;  %v9895_v60 = vld [vmem:[%s11610_s19 + $0x250] ss:$8 sps:$4 sm:$0xff]  }
 0x185   : > { %7933 = vmatprep.subr.bf16.mxu1 %v9831_v62  ;;  %8357 = vmatprep.subr.bf16.mxu0 %v9834_v63  ;;  %v9898_v61 = vld [vmem:[%s11610_s19 + $0xa50] ss:$8 sps:$4 sm:$0xff]   ;;  %v9903_v62 = vld [vmem:[%s11610_s19 + $0x264] ss:$8 sps:$4 sm:$0xff]  }
 0x186   : > { %v9906_v63 = vld [vmem:[%s11610_s19 + $0xa64] ss:$8 sps:$4 sm:$0xff]  }
 0x188   : > { %7934 = vmatpush1.bf16.msra.mxu1 %v9829_v4  ;;  %8358 = vmatpush1.bf16.msra.mxu0 %v9832_v7  ;;  %v9901_v4 = vld [vmem:[%s11610_s19 + $0x260] ss:$8 sps:$4 sm:$0xff]  }
 0x189   : > { %7935 = vmatprep.subr.bf16.mxu1 %v9837_v8  ;;  %8359 = vmatprep.subr.bf16.mxu0 %v9840_v9  ;;  %v9904_v7 = vld [vmem:[%s11610_s19 + $0xa60] ss:$8 sps:$4 sm:$0xff]   ;;  %v9909_v8 = vld [vmem:[%s11610_s19 + $0x274] ss:$8 sps:$4 sm:$0xff]  }
 0x18a   : > { %v9912_v9 = vld [vmem:[%s11610_s19 + $0xa74] ss:$8 sps:$4 sm:$0xff]  }
 0x18c   : > { %7936 = vmatpush1.bf16.msra.mxu1 %v9835_v10  ;;  %8360 = vmatpush1.bf16.msra.mxu0 %v9838_v11  ;;  %v9907_v10 = vld [vmem:[%s11610_s19 + $0x270] ss:$8 sps:$4 sm:$0xff]  }
 0x18d   : > { %7937 = vmatprep.subr.bf16.mxu1 %v9843_v12  ;;  %8361 = vmatprep.subr.bf16.mxu0 %v9846_v13  ;;  %v9910_v11 = vld [vmem:[%s11610_s19 + $0xa70] ss:$8 sps:$4 sm:$0xff]   ;;  %v9915_v12 = vld [vmem:[%s11610_s19 + $0x284] ss:$8 sps:$4 sm:$0xff]  }
 0x18e   : > { %v9918_v13 = vld [vmem:[%s11610_s19 + $0xa84] ss:$8 sps:$4 sm:$0xff]  }
 0x190   : > { %7938 = vmatpush1.bf16.msra.mxu1 %v9841_v14  ;;  %8362 = vmatpush1.bf16.msra.mxu0 %v9844_v15  ;;  %v9913_v14 = vld [vmem:[%s11610_s19 + $0x280] ss:$8 sps:$4 sm:$0xff]  }
 0x191   : > { %7939 = vmatprep.subr.bf16.mxu1 %v9849_v16  ;;  %8363 = vmatprep.subr.bf16.mxu0 %v9852_v17  ;;  %v9916_v15 = vld [vmem:[%s11610_s19 + $0xa80] ss:$8 sps:$4 sm:$0xff]   ;;  %v9921_v16 = vld [vmem:[%s11610_s19 + $0x294] ss:$8 sps:$4 sm:$0xff]  }
 0x192   : > { %v9924_v17 = vld [vmem:[%s11610_s19 + $0xa94] ss:$8 sps:$4 sm:$0xff]  }
 0x194   : > { %7940 = vmatpush1.bf16.msra.mxu1 %v9847_v18  ;;  %8364 = vmatpush1.bf16.msra.mxu0 %v9850_v19  ;;  %v9919_v18 = vld [vmem:[%s11610_s19 + $0x290] ss:$8 sps:$4 sm:$0xff]  }
 0x195   : > { %7941 = vmatprep.subr.bf16.mxu1 %v9855_v20  ;;  %8365 = vmatprep.subr.bf16.mxu0 %v9858_v21  ;;  %v9922_v19 = vld [vmem:[%s11610_s19 + $0xa90] ss:$8 sps:$4 sm:$0xff]   ;;  %v9927_v20 = vld [vmem:[%s11610_s19 + $0x2a4] ss:$8 sps:$4 sm:$0xff]  }
 0x196   : > { %v9930_v21 = vld [vmem:[%s11610_s19 + $0xaa4] ss:$8 sps:$4 sm:$0xff]  }
 0x198   : > { %7942 = vmatpush1.bf16.msra.mxu1 %v9853_v22  ;;  %8366 = vmatpush1.bf16.msra.mxu0 %v9856_v23  ;;  %v9925_v22 = vld [vmem:[%s11610_s19 + $0x2a0] ss:$8 sps:$4 sm:$0xff]  }
 0x199   : > { %7943 = vmatprep.subr.bf16.mxu1 %v9861_v24  ;;  %8367 = vmatprep.subr.bf16.mxu0 %v9864_v25  ;;  %v9928_v23 = vld [vmem:[%s11610_s19 + $0xaa0] ss:$8 sps:$4 sm:$0xff]   ;;  %v9933_v24 = vld [vmem:[%s11610_s19 + $0x2b4] ss:$8 sps:$4 sm:$0xff]  }
 0x19a   : > { %v9936_v25 = vld [vmem:[%s11610_s19 + $0xab4] ss:$8 sps:$4 sm:$0xff]  }
 0x19c   : > { %7944 = vmatpush1.bf16.msra.mxu1 %v9859_v26  ;;  %8368 = vmatpush1.bf16.msra.mxu0 %v9862_v27  ;;  %v9931_v26 = vld [vmem:[%s11610_s19 + $0x2b0] ss:$8 sps:$4 sm:$0xff]  }
 0x19d   : > { %7966 = vmatprep.subr.bf16.mxu1 %v9867_v28  ;;  %8390 = vmatprep.subr.bf16.mxu0 %v9870_v29  ;;  %v9934_v27 = vld [vmem:[%s11610_s19 + $0xab0] ss:$8 sps:$4 sm:$0xff]   ;;  %v9939_v28 = vld [vmem:[%s11610_s19 + $0x2c4] ss:$8 sps:$4 sm:$0xff]  }
 0x19e   : > { %v9942_v29 = vld [vmem:[%s11610_s19 + $0xac4] ss:$8 sps:$4 sm:$0xff]  }
 0x19f   : > { %7946 = vmatmul.mubr.bf16.vlgmr.msra.gmra.mrb[0].mxu1 %v8916_v5  ;;  %8370 = vmatmul.mubr.bf16.vlgmr.msra.gmra.mrb[0].mxu0 %v8932_v6  ;;  %v9943_v5 = vld [vmem:[%s11610_s19 + $0x2d0] ss:$8 sps:$4 sm:$0xff]  }
 0x1a0   : > { %7967 = vmatpush1.bf16.msra.mxu1 %v9865_v0  ;;  %8391 = vmatpush1.bf16.msra.mxu0 %v9868_v1  ;;  %v9937_v0 = vld [vmem:[%s11610_s19 + $0x2c0] ss:$8 sps:$4 sm:$0xff]   ;;  %v9946_v6 = vld [vmem:[%s11610_s19 + $0xad0] ss:$8 sps:$4 sm:$0xff]  }
 0x1a1   : > { %7968 = vmatprep.subr.bf16.mxu1 %v9873_v32  ;;  %8392 = vmatprep.subr.bf16.mxu0 %v9876_v33  ;;  %v9940_v1 = vld [vmem:[%s11610_s19 + $0xac0] ss:$8 sps:$4 sm:$0xff]  }
 0x1a2   : > { %7955 = vmatprep.mubr.bf16.mxu1 %v8949_v34  ;;  %8379 = vmatprep.mubr.bf16.mxu0 %v8965_v35  ;;  %v9949_v32 = vld [vmem:[%s11610_s19 + $0x2e0] ss:$8 sps:$4 sm:$0xff]   ;;  %v9957_v34 = vld [vmem:[%s11610_s19 + $0x2f4] ss:$8 sps:$4 sm:$0xff]  }
 0x1a3   : > { %v9952_v33 = vld [vmem:[%s11610_s19 + $0xae0] ss:$8 sps:$4 sm:$0xff]   ;;  %v9960_v35 = vld [vmem:[%s11610_s19 + $0xaf4] ss:$8 sps:$4 sm:$0xff]  }
 0x1a4   : > { %7969 = vmatpush1.bf16.msra.mxu1 %v9871_v36  ;;  %8393 = vmatpush1.bf16.msra.mxu0 %v9874_v37  ;;  %v9955_v36 = vld [vmem:[%s11610_s19 + $0x2f0] ss:$8 sps:$4 sm:$0xff]  }
 0x1a5   : > { %7970 = vmatprep.subr.bf16.mxu1 %v9879_v38  ;;  %8394 = vmatprep.subr.bf16.mxu0 %v9882_v39  ;;  %v9958_v37 = vld [vmem:[%s11610_s19 + $0xaf0] ss:$8 sps:$4 sm:$0xff]   ;;  %v9963_v38 = vld [vmem:[%s11610_s19 + $0x304] ss:$8 sps:$4 sm:$0xff]  }
 0x1a6   : > { %v9966_v39 = vld [vmem:[%s11610_s19 + $0xb04] ss:$8 sps:$4 sm:$0xff]  }
 0x1a7   : > { %7956 = vmatmul.mubr.bf16.gmra.mrb[4].mxu1 %v8948_v44  ;;  %8380 = vmatmul.mubr.bf16.gmra.mrb[4].mxu0 %v8964_v45  ;;  %v4426_v44 = vld [vmem:[%s12459_s0 + $0x110] sm:$0xff] }
 0x1a8   : > { %7971 = vmatpush1.bf16.msra.mxu1 %v9877_v40  ;;  %8395 = vmatpush1.bf16.msra.mxu0 %v9880_v41  ;;  %v9961_v40 = vld [vmem:[%s11610_s19 + $0x300] ss:$8 sps:$4 sm:$0xff]   ;;  %v4442_v45 = vld [vmem:[%s12459_s0 + $0x190] sm:$0xff] }
 0x1a9   : > { %7972 = vmatprep.subr.bf16.mxu1 %v9885_v48  ;;  %8396 = vmatprep.subr.bf16.mxu0 %v9888_v49  ;;  %v9964_v41 = vld [vmem:[%s11610_s19 + $0xb00] ss:$8 sps:$4 sm:$0xff]   ;;  %v8918_v48 = vcombine.low %v11813_v42, %v11818_v43  ;;  %v8934_v49 = vcombine.low %v11823_v46, %v11828_v47  ;;  %v9972_v42 = vld [vmem:[%s11610_s19 + $0xb14] ss:$8 sps:$4 sm:$0xff]   ;;  %v8951_v43 = vcombine.high %v4426_v44, %v4442_v45  ;;  %v9967_v47 = vld [vmem:[%s11610_s19 + $0x310] ss:$8 sps:$4 sm:$0xff]  }
 0x1aa   : > { %7998 = vmatprep.mubr.bf16.mxu1 %v8919_v50  ;;  %8422 = vmatprep.mubr.bf16.mxu0 %v8935_v51  ;;  %v4434_v50 = vld [vmem:[%s12459_s0 + $0x150] sm:$0xff] }
 0x1ab   : > { %v4450_v51 = vld [vmem:[%s12459_s0 + $0x1d0] sm:$0xff] }
 0x1ac   : > { %7973 = vmatpush1.bf16.msra.mxu1 %v9883_v52  ;;  %8397 = vmatpush1.bf16.msra.mxu0 %v9886_v53  ;;  %v9969_v52 = vld [vmem:[%s11610_s19 + $0x314] ss:$8 sps:$4 sm:$0xff]   ;;  %v8967_v46 = vcombine.high %v4434_v50, %v4450_v51  ;;  %v9970_v53 = vld [vmem:[%s11610_s19 + $0xb10] ss:$8 sps:$4 sm:$0xff]  }
 0x1ad   : > { %7974 = vmatprep.subr.bf16.mxu1 %v9891_v54  ;;  %8398 = vmatprep.subr.bf16.mxu0 %v9894_v55  ;;  %v9975_v54 = vld [vmem:[%s11610_s19 + $0x324] ss:$8 sps:$4 sm:$0xff]  }
 0x1ae   : > { %v9978_v55 = vld [vmem:[%s11610_s19 + $0xb24] ss:$8 sps:$4 sm:$0xff]  }
 0x1b0   : > { %7975 = vmatpush1.bf16.msra.mxu1 %v9889_v56  ;;  %8399 = vmatpush1.bf16.msra.mxu0 %v9892_v57  ;;  %v9973_v56 = vld [vmem:[%s11610_s19 + $0x320] ss:$8 sps:$4 sm:$0xff]  }
 0x1b1   : > { %7976 = vmatprep.subr.bf16.mxu1 %v9897_v58  ;;  %8400 = vmatprep.subr.bf16.mxu0 %v9900_v59  ;;  %v9976_v57 = vld [vmem:[%s11610_s19 + $0xb20] ss:$8 sps:$4 sm:$0xff]   ;;  %v11917_v58 = vld [vmem:[%s12459_s0 + $0x18] sm:$0xff] }
 0x1b2   : > { %v11922_v59 = vld [vmem:[%s12459_s0 + $0x98] sm:$0xff] }
 0x1b4   : > { %7977 = vmatpush1.bf16.msra.mxu1 %v9895_v60  ;;  %8401 = vmatpush1.bf16.msra.mxu0 %v9898_v61  ;;  %v8950_v60 = vcombine.low %v4426_v44, %v4442_v45  ;;  %v8966_v61 = vcombine.low %v4434_v50, %v4450_v51  ;;  %v10041_v44 = vld [vmem:[%s11610_s19 + $0x3d4] ss:$8 sps:$4 sm:$0xff]   ;;  %v10047_v50 = vld [vmem:[%s11610_s19 + $0x3e4] ss:$8 sps:$4 sm:$0xff]  }
 0x1b5   : > { %7978 = vmatprep.subr.bf16.mxu1 %v9903_v62  ;;  %8402 = vmatprep.subr.bf16.mxu0 %v9906_v63  ;;  %v11927_v62 = vld [vmem:[%s12459_s0 + $0x58] sm:$0xff]  ;;  %v10050_v51 = vld [vmem:[%s11610_s19 + $0xbe4] ss:$8 sps:$4 sm:$0xff]  }
 0x1b6   : > { %v11932_v63 = vld [vmem:[%s12459_s0 + $0xd8] sm:$0xff] }
 0x1b7   : > { %v10044_v45 = vld [vmem:[%s11610_s19 + $0xbd4] ss:$8 sps:$4 sm:$0xff]  }
 0x1b8   : > { %7979 = vmatpush1.bf16.msra.mxu1 %v9901_v4  ;;  %8403 = vmatpush1.bf16.msra.mxu0 %v9904_v7  ;;  %v9981_v4 = vld [vmem:[%s11610_s19 + $0x334] ss:$8 sps:$4 sm:$0xff]  }
 0x1b9   : > { %7980 = vmatprep.subr.bf16.mxu1 %v9909_v8  ;;  %8404 = vmatprep.subr.bf16.mxu0 %v9912_v9  ;;  %v9984_v7 = vld [vmem:[%s11610_s19 + $0xb34] ss:$8 sps:$4 sm:$0xff]   ;;  %v8921_v8 = vcombine.high %v11917_v58, %v11922_v59  ;;  %v8937_v9 = vcombine.high %v11927_v62, %v11932_v63 }
 0x1bc   : > { %7981 = vmatpush1.bf16.msra.mxu1 %v9907_v10  ;;  %8405 = vmatpush1.bf16.msra.mxu0 %v9910_v11  ;;  %v9979_v10 = vld [vmem:[%s11610_s19 + $0x330] ss:$8 sps:$4 sm:$0xff]  }
 0x1bd   : > { %7982 = vmatprep.subr.bf16.mxu1 %v9915_v12  ;;  %8406 = vmatprep.subr.bf16.mxu0 %v9918_v13  ;;  %v9982_v11 = vld [vmem:[%s11610_s19 + $0xb30] ss:$8 sps:$4 sm:$0xff]   ;;  %v9987_v12 = vld [vmem:[%s11610_s19 + $0x344] ss:$8 sps:$4 sm:$0xff]  }
 0x1be   : > { %v9990_v13 = vld [vmem:[%s11610_s19 + $0xb44] ss:$8 sps:$4 sm:$0xff]  }
 0x1c0   : > { %7983 = vmatpush1.bf16.msra.mxu1 %v9913_v14  ;;  %8407 = vmatpush1.bf16.msra.mxu0 %v9916_v15  ;;  %v9985_v14 = vld [vmem:[%s11610_s19 + $0x340] ss:$8 sps:$4 sm:$0xff]  }
 0x1c1   : > { %7984 = vmatprep.subr.bf16.mxu1 %v9921_v16  ;;  %8408 = vmatprep.subr.bf16.mxu0 %v9924_v17  ;;  %v9988_v15 = vld [vmem:[%s11610_s19 + $0xb40] ss:$8 sps:$4 sm:$0xff]   ;;  %v9993_v16 = vld [vmem:[%s11610_s19 + $0x354] ss:$8 sps:$4 sm:$0xff]  }
 0x1c2   : > { %v9996_v17 = vld [vmem:[%s11610_s19 + $0xb54] ss:$8 sps:$4 sm:$0xff]  }
 0x1c4   : > { %7985 = vmatpush1.bf16.msra.mxu1 %v9919_v18  ;;  %8409 = vmatpush1.bf16.msra.mxu0 %v9922_v19  ;;  %v9991_v18 = vld [vmem:[%s11610_s19 + $0x350] ss:$8 sps:$4 sm:$0xff]  }
 0x1c5   : > { %7986 = vmatprep.subr.bf16.mxu1 %v9927_v20  ;;  %8410 = vmatprep.subr.bf16.mxu0 %v9930_v21  ;;  %v9994_v19 = vld [vmem:[%s11610_s19 + $0xb50] ss:$8 sps:$4 sm:$0xff]   ;;  %v9999_v20 = vld [vmem:[%s11610_s19 + $0x364] ss:$8 sps:$4 sm:$0xff]  }
 0x1c6   : > { %v10002_v21 = vld [vmem:[%s11610_s19 + $0xb64] ss:$8 sps:$4 sm:$0xff]  }
 0x1c8   : > { %7987 = vmatpush1.bf16.msra.mxu1 %v9925_v22  ;;  %8411 = vmatpush1.bf16.msra.mxu0 %v9928_v23  ;;  %v9997_v22 = vld [vmem:[%s11610_s19 + $0x360] ss:$8 sps:$4 sm:$0xff]  }
 0x1c9   : > { %7988 = vmatprep.subr.bf16.mxu1 %v9933_v24  ;;  %8412 = vmatprep.subr.bf16.mxu0 %v9936_v25  ;;  %v10000_v23 = vld [vmem:[%s11610_s19 + $0xb60] ss:$8 sps:$4 sm:$0xff]   ;;  %v10005_v24 = vld [vmem:[%s11610_s19 + $0x374] ss:$8 sps:$4 sm:$0xff]  }
 0x1ca   : > { %v10008_v25 = vld [vmem:[%s11610_s19 + $0xb74] ss:$8 sps:$4 sm:$0xff]  }
 0x1cc   : > { %7989 = vmatpush1.bf16.msra.mxu1 %v9931_v26  ;;  %8413 = vmatpush1.bf16.msra.mxu0 %v9934_v27  ;;  %v10003_v26 = vld [vmem:[%s11610_s19 + $0x370] ss:$8 sps:$4 sm:$0xff]  }
 0x1cd   : > { %7990 = vmatprep.subr.bf16.mxu1 %v9939_v28  ;;  %8414 = vmatprep.subr.bf16.mxu0 %v9942_v29  ;;  %v10006_v27 = vld [vmem:[%s11610_s19 + $0xb70] ss:$8 sps:$4 sm:$0xff]   ;;  %v10011_v28 = vld [vmem:[%s11610_s19 + $0x384] ss:$8 sps:$4 sm:$0xff]  }
 0x1ce   : > { %v10014_v29 = vld [vmem:[%s11610_s19 + $0xb84] ss:$8 sps:$4 sm:$0xff]  }
 0x1d0   : > { %7991 = vmatpush1.bf16.msra.mxu1 %v9937_v0  ;;  %8415 = vmatpush1.bf16.msra.mxu0 %v9940_v1  ;;  %v10009_v0 = vld [vmem:[%s11610_s19 + $0x380] ss:$8 sps:$4 sm:$0xff]  }
 0x1d1   : > { %7992 = vmatprep.subr.bf16.mxu1 %v9945_v3  ;;  %8416 = vmatprep.subr.bf16.mxu0 %v9948_v2  ;;  %v10012_v1 = vld [vmem:[%s11610_s19 + $0xb80] ss:$8 sps:$4 sm:$0xff]   ;;  %v10017_v3 = vld [vmem:[%s11610_s19 + $0x394] ss:$8 sps:$4 sm:$0xff]  }
 0x1d2   : > { %v10020_v2 = vld [vmem:[%s11610_s19 + $0xb94] ss:$8 sps:$4 sm:$0xff]  }
 0x1d4   : > { %7993 = vmatpush1.bf16.msra.mxu1 %v9943_v5  ;;  %8417 = vmatpush1.bf16.msra.mxu0 %v9946_v6  ;;  %v10015_v5 = vld [vmem:[%s11610_s19 + $0x390] ss:$8 sps:$4 sm:$0xff]  }
 0x1d5   : > { %7994 = vmatprep.subr.bf16.mxu1 %v9951_v30  ;;  %8418 = vmatprep.subr.bf16.mxu0 %v9954_v31  ;;  %v10018_v6 = vld [vmem:[%s11610_s19 + $0xb90] ss:$8 sps:$4 sm:$0xff]   ;;  %v10023_v30 = vld [vmem:[%s11610_s19 + $0x3a4] ss:$8 sps:$4 sm:$0xff]  }
 0x1d6   : > { %v10026_v31 = vld [vmem:[%s11610_s19 + $0xba4] ss:$8 sps:$4 sm:$0xff]  }
 0x1d8   : > { %7995 = vmatpush1.bf16.msra.mxu1 %v9949_v32  ;;  %8419 = vmatpush1.bf16.msra.mxu0 %v9952_v33  ;;  %v10021_v32 = vld [vmem:[%s11610_s19 + $0x3a0] ss:$8 sps:$4 sm:$0xff]  }
 0x1d9   : > { %7996 = vmatprep.subr.bf16.mxu1 %v9957_v34  ;;  %8420 = vmatprep.subr.bf16.mxu0 %v9960_v35  ;;  %v10024_v33 = vld [vmem:[%s11610_s19 + $0xba0] ss:$8 sps:$4 sm:$0xff]   ;;  %v10029_v34 = vld [vmem:[%s11610_s19 + $0x3b4] ss:$8 sps:$4 sm:$0xff]  }
 0x1da   : > { %v10032_v35 = vld [vmem:[%s11610_s19 + $0xbb4] ss:$8 sps:$4 sm:$0xff]  }
 0x1dc   : > { %7997 = vmatpush1.bf16.msra.mxu1 %v9955_v36  ;;  %8421 = vmatpush1.bf16.msra.mxu0 %v9958_v37  ;;  %v10027_v36 = vld [vmem:[%s11610_s19 + $0x3b0] ss:$8 sps:$4 sm:$0xff]  }
 0x1dd   : > { %8019 = vmatprep.subr.bf16.mxu1 %v9963_v38  ;;  %8443 = vmatprep.subr.bf16.mxu0 %v9966_v39  ;;  %v10030_v37 = vld [vmem:[%s11610_s19 + $0xbb0] ss:$8 sps:$4 sm:$0xff]   ;;  %v10035_v38 = vld [vmem:[%s11610_s19 + $0x3c4] ss:$8 sps:$4 sm:$0xff]  }
 0x1de   : > { %v10038_v39 = vld [vmem:[%s11610_s19 + $0xbc4] ss:$8 sps:$4 sm:$0xff]  }
 0x1df   : > { %7999 = vmatmul.mubr.bf16.vlgmr.msra.gmra.mrb[0].mxu1 %v8918_v48  ;;  %8423 = vmatmul.mubr.bf16.vlgmr.msra.gmra.mrb[0].mxu0 %v8934_v49  ;;  %v10039_v48 = vld [vmem:[%s11610_s19 + $0x3d0] ss:$8 sps:$4 sm:$0xff]  }
 0x1e0   : > { %8020 = vmatpush1.bf16.msra.mxu1 %v9961_v40  ;;  %8444 = vmatpush1.bf16.msra.mxu0 %v9964_v41  ;;  %v10033_v40 = vld [vmem:[%s11610_s19 + $0x3c0] ss:$8 sps:$4 sm:$0xff]   ;;  %v10042_v49 = vld [vmem:[%s11610_s19 + $0xbd0] ss:$8 sps:$4 sm:$0xff]  }
 0x1e1   : > { %8021 = vmatprep.subr.bf16.mxu1 %v9969_v52  ;;  %8445 = vmatprep.subr.bf16.mxu0 %v9972_v42  ;;  %v10036_v41 = vld [vmem:[%s11610_s19 + $0xbc0] ss:$8 sps:$4 sm:$0xff]  }
 0x1e2   : > { %8008 = vmatprep.mubr.bf16.mxu1 %v8951_v43  ;;  %8432 = vmatprep.mubr.bf16.mxu0 %v8967_v46  ;;  %v10045_v52 = vld [vmem:[%s11610_s19 + $0x3e0] ss:$8 sps:$4 sm:$0xff]   ;;  %v10053_v43 = vld [vmem:[%s11610_s19 + $0x3f4] ss:$8 sps:$4 sm:$0xff]  }
 0x1e3   : > { %v10048_v42 = vld [vmem:[%s11610_s19 + $0xbe0] ss:$8 sps:$4 sm:$0xff]   ;;  %v10056_v46 = vld [vmem:[%s11610_s19 + $0xbf4] ss:$8 sps:$4 sm:$0xff]  }
 0x1e4   : > { %8022 = vmatpush1.bf16.msra.mxu1 %v9967_v47  ;;  %8446 = vmatpush1.bf16.msra.mxu0 %v9970_v53  ;;  %v10051_v47 = vld [vmem:[%s11610_s19 + $0x3f0] ss:$8 sps:$4 sm:$0xff]  }
 0x1e5   : > { %8023 = vmatprep.subr.bf16.mxu1 %v9975_v54  ;;  %8447 = vmatprep.subr.bf16.mxu0 %v9978_v55  ;;  %v10054_v53 = vld [vmem:[%s11610_s19 + $0xbf0] ss:$8 sps:$4 sm:$0xff]   ;;  %v10059_v54 = vld [vmem:[%s11610_s19 + $0x404] ss:$8 sps:$4 sm:$0xff]  }
 0x1e6   : > { %v10062_v55 = vld [vmem:[%s11610_s19 + $0xc04] ss:$8 sps:$4 sm:$0xff]  }
 0x1e7   : > { %8009 = vmatmul.mubr.bf16.gmra.mrb[4].mxu1 %v8950_v60  ;;  %8433 = vmatmul.mubr.bf16.gmra.mrb[4].mxu0 %v8966_v61  ;;  %v4427_v60 = vld [vmem:[%s12459_s0 + $0x118] sm:$0xff] }
 0x1e8   : > { %8024 = vmatpush1.bf16.msra.mxu1 %v9973_v56  ;;  %8448 = vmatpush1.bf16.msra.mxu0 %v9976_v57  ;;  %v10057_v56 = vld [vmem:[%s11610_s19 + $0x400] ss:$8 sps:$4 sm:$0xff]   ;;  %v4443_v61 = vld [vmem:[%s12459_s0 + $0x198] sm:$0xff] }
 0x1e9   : > { %8025 = vmatprep.subr.bf16.mxu1 %v9981_v4  ;;  %8449 = vmatprep.subr.bf16.mxu0 %v9984_v7  ;;  %v10060_v57 = vld [vmem:[%s11610_s19 + $0xc00] ss:$8 sps:$4 sm:$0xff]   ;;  %v8920_v4 = vcombine.low %v11917_v58, %v11922_v59  ;;  %v8936_v7 = vcombine.low %v11927_v62, %v11932_v63  ;;  %v10068_v58 = vld [vmem:[%s11610_s19 + $0xc14] ss:$8 sps:$4 sm:$0xff]   ;;  %v8953_v59 = vcombine.high %v4427_v60, %v4443_v61  ;;  %v10063_v63 = vld [vmem:[%s11610_s19 + $0x410] ss:$8 sps:$4 sm:$0xff]  }
 0x1ea   : > { %8051 = vmatprep.mubr.bf16.mxu1 %v8921_v8  ;;  %8475 = vmatprep.mubr.bf16.mxu0 %v8937_v9  ;;  %v4435_v8 = vld [vmem:[%s12459_s0 + $0x158] sm:$0xff] }
 0x1eb   : > { %v4451_v9 = vld [vmem:[%s12459_s0 + $0x1d8] sm:$0xff] }
 0x1ec   : > { %8026 = vmatpush1.bf16.msra.mxu1 %v9979_v10  ;;  %8450 = vmatpush1.bf16.msra.mxu0 %v9982_v11  ;;  %v10065_v10 = vld [vmem:[%s11610_s19 + $0x414] ss:$8 sps:$4 sm:$0xff]   ;;  %v8969_v62 = vcombine.high %v4435_v8, %v4451_v9  ;;  %v10066_v11 = vld [vmem:[%s11610_s19 + $0xc10] ss:$8 sps:$4 sm:$0xff]  }
 0x1ed   : > { %8027 = vmatprep.subr.bf16.mxu1 %v9987_v12  ;;  %8451 = vmatprep.subr.bf16.mxu0 %v9990_v13  ;;  %v10071_v12 = vld [vmem:[%s11610_s19 + $0x424] ss:$8 sps:$4 sm:$0xff]  }
 0x1ee   : > { %v10074_v13 = vld [vmem:[%s11610_s19 + $0xc24] ss:$8 sps:$4 sm:$0xff]  }
 0x1f0   : > { %8028 = vmatpush1.bf16.msra.mxu1 %v9985_v14  ;;  %8452 = vmatpush1.bf16.msra.mxu0 %v9988_v15  ;;  %v10069_v14 = vld [vmem:[%s11610_s19 + $0x420] ss:$8 sps:$4 sm:$0xff]  }
 0x1f1   : > { %8029 = vmatprep.subr.bf16.mxu1 %v9993_v16  ;;  %8453 = vmatprep.subr.bf16.mxu0 %v9996_v17  ;;  %v10072_v15 = vld [vmem:[%s11610_s19 + $0xc20] ss:$8 sps:$4 sm:$0xff]  }
 0x1f2   : > { %v12021_v16 = vld [vmem:[%s12459_s0 + $0x20] sm:$0xff] }
 0x1f3   : > { %v12026_v17 = vld [vmem:[%s12459_s0 + $0xa0] sm:$0xff] }
 0x1f4   : > { %8030 = vmatpush1.bf16.msra.mxu1 %v9991_v18  ;;  %8454 = vmatpush1.bf16.msra.mxu0 %v9994_v19  ;;  %v8952_v18 = vcombine.low %v4427_v60, %v4443_v61  ;;  %v8968_v19 = vcombine.low %v4435_v8, %v4451_v9  ;;  %v10137_v60 = vld [vmem:[%s11610_s19 + $0x4d4] ss:$8 sps:$4 sm:$0xff]   ;;  %v10143_v8 = vld [vmem:[%s11610_s19 + $0x4e4] ss:$8 sps:$4 sm:$0xff]  }
 0x1f5   : > { %8031 = vmatprep.subr.bf16.mxu1 %v9999_v20  ;;  %8455 = vmatprep.subr.bf16.mxu0 %v10002_v21  ;;  %v12031_v20 = vld [vmem:[%s12459_s0 + $0x60] sm:$0xff]  ;;  %v10140_v61 = vld [vmem:[%s11610_s19 + $0xcd4] ss:$8 sps:$4 sm:$0xff]  }
 0x1f6   : > { %v12036_v21 = vld [vmem:[%s12459_s0 + $0xe0] sm:$0xff] }
 0x1f7   : > { %v10146_v9 = vld [vmem:[%s11610_s19 + $0xce4] ss:$8 sps:$4 sm:$0xff]  }
 0x1f8   : > { %8032 = vmatpush1.bf16.msra.mxu1 %v9997_v22  ;;  %8456 = vmatpush1.bf16.msra.mxu0 %v10000_v23  ;;  %v10077_v22 = vld [vmem:[%s11610_s19 + $0x434] ss:$8 sps:$4 sm:$0xff]  }
 0x1f9   : > { %8033 = vmatprep.subr.bf16.mxu1 %v10005_v24  ;;  %8457 = vmatprep.subr.bf16.mxu0 %v10008_v25  ;;  %v10080_v23 = vld [vmem:[%s11610_s19 + $0xc34] ss:$8 sps:$4 sm:$0xff]   ;;  %v8923_v24 = vcombine.high %v12021_v16, %v12026_v17  ;;  %v8939_v25 = vcombine.high %v12031_v20, %v12036_v21 }
 0x1fc   : > { %8034 = vmatpush1.bf16.msra.mxu1 %v10003_v26  ;;  %8458 = vmatpush1.bf16.msra.mxu0 %v10006_v27  ;;  %v10075_v26 = vld [vmem:[%s11610_s19 + $0x430] ss:$8 sps:$4 sm:$0xff]  }
 0x1fd   : > { %8035 = vmatprep.subr.bf16.mxu1 %v10011_v28  ;;  %8459 = vmatprep.subr.bf16.mxu0 %v10014_v29  ;;  %v10078_v27 = vld [vmem:[%s11610_s19 + $0xc30] ss:$8 sps:$4 sm:$0xff]   ;;  %v10083_v28 = vld [vmem:[%s11610_s19 + $0x444] ss:$8 sps:$4 sm:$0xff]  }
 0x1fe   : > { %v10086_v29 = vld [vmem:[%s11610_s19 + $0xc44] ss:$8 sps:$4 sm:$0xff]  }
 0x200   : > { %8036 = vmatpush1.bf16.msra.mxu1 %v10009_v0  ;;  %8460 = vmatpush1.bf16.msra.mxu0 %v10012_v1  ;;  %v10081_v0 = vld [vmem:[%s11610_s19 + $0x440] ss:$8 sps:$4 sm:$0xff]  }
 0x201   : > { %8037 = vmatprep.subr.bf16.mxu1 %v10017_v3  ;;  %8461 = vmatprep.subr.bf16.mxu0 %v10020_v2  ;;  %v10084_v1 = vld [vmem:[%s11610_s19 + $0xc40] ss:$8 sps:$4 sm:$0xff]   ;;  %v10089_v3 = vld [vmem:[%s11610_s19 + $0x454] ss:$8 sps:$4 sm:$0xff]  }
 0x202   : > { %v10092_v2 = vld [vmem:[%s11610_s19 + $0xc54] ss:$8 sps:$4 sm:$0xff]  }
 0x204   : > { %8038 = vmatpush1.bf16.msra.mxu1 %v10015_v5  ;;  %8462 = vmatpush1.bf16.msra.mxu0 %v10018_v6  ;;  %v10087_v5 = vld [vmem:[%s11610_s19 + $0x450] ss:$8 sps:$4 sm:$0xff]  }
 0x205   : > { %8039 = vmatprep.subr.bf16.mxu1 %v10023_v30  ;;  %8463 = vmatprep.subr.bf16.mxu0 %v10026_v31  ;;  %v10090_v6 = vld [vmem:[%s11610_s19 + $0xc50] ss:$8 sps:$4 sm:$0xff]   ;;  %v10095_v30 = vld [vmem:[%s11610_s19 + $0x464] ss:$8 sps:$4 sm:$0xff]  }
 0x206   : > { %v10098_v31 = vld [vmem:[%s11610_s19 + $0xc64] ss:$8 sps:$4 sm:$0xff]  }
 0x208   : > { %8040 = vmatpush1.bf16.msra.mxu1 %v10021_v32  ;;  %8464 = vmatpush1.bf16.msra.mxu0 %v10024_v33  ;;  %v10093_v32 = vld [vmem:[%s11610_s19 + $0x460] ss:$8 sps:$4 sm:$0xff]  }
 0x209   : > { %8041 = vmatprep.subr.bf16.mxu1 %v10029_v34  ;;  %8465 = vmatprep.subr.bf16.mxu0 %v10032_v35  ;;  %v10096_v33 = vld [vmem:[%s11610_s19 + $0xc60] ss:$8 sps:$4 sm:$0xff]   ;;  %v10101_v34 = vld [vmem:[%s11610_s19 + $0x474] ss:$8 sps:$4 sm:$0xff]  }
 0x20a   : > { %v10104_v35 = vld [vmem:[%s11610_s19 + $0xc74] ss:$8 sps:$4 sm:$0xff]  }
 0x20c   : > { %8042 = vmatpush1.bf16.msra.mxu1 %v10027_v36  ;;  %8466 = vmatpush1.bf16.msra.mxu0 %v10030_v37  ;;  %v10099_v36 = vld [vmem:[%s11610_s19 + $0x470] ss:$8 sps:$4 sm:$0xff]  }
 0x20d   : > { %8043 = vmatprep.subr.bf16.mxu1 %v10035_v38  ;;  %8467 = vmatprep.subr.bf16.mxu0 %v10038_v39  ;;  %v10102_v37 = vld [vmem:[%s11610_s19 + $0xc70] ss:$8 sps:$4 sm:$0xff]   ;;  %v10107_v38 = vld [vmem:[%s11610_s19 + $0x484] ss:$8 sps:$4 sm:$0xff]  }
 0x20e   : > { %v10110_v39 = vld [vmem:[%s11610_s19 + $0xc84] ss:$8 sps:$4 sm:$0xff]  }
 0x210   : > { %8044 = vmatpush1.bf16.msra.mxu1 %v10033_v40  ;;  %8468 = vmatpush1.bf16.msra.mxu0 %v10036_v41  ;;  %v10105_v40 = vld [vmem:[%s11610_s19 + $0x480] ss:$8 sps:$4 sm:$0xff]  }
 0x211   : > { %8045 = vmatprep.subr.bf16.mxu1 %v10041_v44  ;;  %8469 = vmatprep.subr.bf16.mxu0 %v10044_v45  ;;  %v10108_v41 = vld [vmem:[%s11610_s19 + $0xc80] ss:$8 sps:$4 sm:$0xff]   ;;  %v10113_v44 = vld [vmem:[%s11610_s19 + $0x494] ss:$8 sps:$4 sm:$0xff]  }
 0x212   : > { %v10116_v45 = vld [vmem:[%s11610_s19 + $0xc94] ss:$8 sps:$4 sm:$0xff]  }
 0x214   : > { %8046 = vmatpush1.bf16.msra.mxu1 %v10039_v48  ;;  %8470 = vmatpush1.bf16.msra.mxu0 %v10042_v49  ;;  %v10111_v48 = vld [vmem:[%s11610_s19 + $0x490] ss:$8 sps:$4 sm:$0xff]  }
 0x215   : > { %8047 = vmatprep.subr.bf16.mxu1 %v10047_v50  ;;  %8471 = vmatprep.subr.bf16.mxu0 %v10050_v51  ;;  %v10114_v49 = vld [vmem:[%s11610_s19 + $0xc90] ss:$8 sps:$4 sm:$0xff]   ;;  %v10119_v50 = vld [vmem:[%s11610_s19 + $0x4a4] ss:$8 sps:$4 sm:$0xff]  }
 0x216   : > { %v10122_v51 = vld [vmem:[%s11610_s19 + $0xca4] ss:$8 sps:$4 sm:$0xff]  }
 0x218   : > { %8048 = vmatpush1.bf16.msra.mxu1 %v10045_v52  ;;  %8472 = vmatpush1.bf16.msra.mxu0 %v10048_v42  ;;  %v10117_v52 = vld [vmem:[%s11610_s19 + $0x4a0] ss:$8 sps:$4 sm:$0xff]  }
 0x219   : > { %8049 = vmatprep.subr.bf16.mxu1 %v10053_v43  ;;  %8473 = vmatprep.subr.bf16.mxu0 %v10056_v46  ;;  %v10120_v42 = vld [vmem:[%s11610_s19 + $0xca0] ss:$8 sps:$4 sm:$0xff]   ;;  %v10125_v43 = vld [vmem:[%s11610_s19 + $0x4b4] ss:$8 sps:$4 sm:$0xff]  }
 0x21a   : > { %v10128_v46 = vld [vmem:[%s11610_s19 + $0xcb4] ss:$8 sps:$4 sm:$0xff]  }
 0x21c   : > { %8050 = vmatpush1.bf16.msra.mxu1 %v10051_v47  ;;  %8474 = vmatpush1.bf16.msra.mxu0 %v10054_v53  ;;  %v10123_v47 = vld [vmem:[%s11610_s19 + $0x4b0] ss:$8 sps:$4 sm:$0xff]  }
 0x21d   : > { %8072 = vmatprep.subr.bf16.mxu1 %v10059_v54  ;;  %8496 = vmatprep.subr.bf16.mxu0 %v10062_v55  ;;  %v10126_v53 = vld [vmem:[%s11610_s19 + $0xcb0] ss:$8 sps:$4 sm:$0xff]   ;;  %v10131_v54 = vld [vmem:[%s11610_s19 + $0x4c4] ss:$8 sps:$4 sm:$0xff]  }
 0x21e   : > { %v10134_v55 = vld [vmem:[%s11610_s19 + $0xcc4] ss:$8 sps:$4 sm:$0xff]  }
 0x21f   : > { %8052 = vmatmul.mubr.bf16.vlgmr.msra.gmra.mrb[0].mxu1 %v8920_v4  ;;  %8476 = vmatmul.mubr.bf16.vlgmr.msra.gmra.mrb[0].mxu0 %v8936_v7  ;;  %v10135_v4 = vld [vmem:[%s11610_s19 + $0x4d0] ss:$8 sps:$4 sm:$0xff]  }
 0x220   : > { %8073 = vmatpush1.bf16.msra.mxu1 %v10057_v56  ;;  %8497 = vmatpush1.bf16.msra.mxu0 %v10060_v57  ;;  %v10129_v56 = vld [vmem:[%s11610_s19 + $0x4c0] ss:$8 sps:$4 sm:$0xff]   ;;  %v10138_v7 = vld [vmem:[%s11610_s19 + $0xcd0] ss:$8 sps:$4 sm:$0xff]  }
 0x221   : > { %8074 = vmatprep.subr.bf16.mxu1 %v10065_v10  ;;  %8498 = vmatprep.subr.bf16.mxu0 %v10068_v58  ;;  %v10132_v57 = vld [vmem:[%s11610_s19 + $0xcc0] ss:$8 sps:$4 sm:$0xff]  }
 0x222   : > { %8061 = vmatprep.mubr.bf16.mxu1 %v8953_v59  ;;  %8485 = vmatprep.mubr.bf16.mxu0 %v8969_v62  ;;  %v10141_v10 = vld [vmem:[%s11610_s19 + $0x4e0] ss:$8 sps:$4 sm:$0xff]   ;;  %v10149_v59 = vld [vmem:[%s11610_s19 + $0x4f4] ss:$8 sps:$4 sm:$0xff]  }
 0x223   : > { %v10144_v58 = vld [vmem:[%s11610_s19 + $0xce0] ss:$8 sps:$4 sm:$0xff]   ;;  %v10152_v62 = vld [vmem:[%s11610_s19 + $0xcf4] ss:$8 sps:$4 sm:$0xff]  }
 0x224   : > { %8075 = vmatpush1.bf16.msra.mxu1 %v10063_v63  ;;  %8499 = vmatpush1.bf16.msra.mxu0 %v10066_v11  ;;  %v10147_v63 = vld [vmem:[%s11610_s19 + $0x4f0] ss:$8 sps:$4 sm:$0xff]  }
 0x225   : > { %8076 = vmatprep.subr.bf16.mxu1 %v10071_v12  ;;  %8500 = vmatprep.subr.bf16.mxu0 %v10074_v13  ;;  %v10150_v11 = vld [vmem:[%s11610_s19 + $0xcf0] ss:$8 sps:$4 sm:$0xff]   ;;  %v10155_v12 = vld [vmem:[%s11610_s19 + $0x504] ss:$8 sps:$4 sm:$0xff]  }
 0x226   : > { %v10158_v13 = vld [vmem:[%s11610_s19 + $0xd04] ss:$8 sps:$4 sm:$0xff]  }
 0x227   : > { %8062 = vmatmul.mubr.bf16.gmra.mrb[4].mxu1 %v8952_v18  ;;  %8486 = vmatmul.mubr.bf16.gmra.mrb[4].mxu0 %v8968_v19  ;;  %v4436_v18 = vld [vmem:[%s12459_s0 + $0x160] sm:$0xff] }
 0x228   : > { %8077 = vmatpush1.bf16.msra.mxu1 %v10069_v14  ;;  %8501 = vmatpush1.bf16.msra.mxu0 %v10072_v15  ;;  %v4428_v14 = vld [vmem:[%s12459_s0 + $0x120] sm:$0xff] }
 0x229   : > { %8078 = vmatprep.subr.bf16.mxu1 %v10077_v22  ;;  %8502 = vmatprep.subr.bf16.mxu0 %v10080_v23  ;;  %v4444_v15 = vld [vmem:[%s12459_s0 + $0x1a0] sm:$0xff]  ;;  %v8922_v22 = vcombine.low %v12021_v16, %v12026_v17  ;;  %v8938_v23 = vcombine.low %v12031_v20, %v12036_v21  ;;  %v12123_v20 = vld [vmem:[%s12459_s0 + $0x28] sm:$0xff] }
 0x22a   : > { %8104 = vmatprep.mubr.bf16.mxu1 %v8923_v24  ;;  %8528 = vmatprep.mubr.bf16.mxu0 %v8939_v25  ;;  %v4452_v19 = vld [vmem:[%s12459_s0 + $0x1e0] sm:$0xff]  ;;  %v12128_v21 = vld [vmem:[%s12459_s0 + $0xa8] sm:$0xff] }
 0x22b   : > { %v10153_v24 = vld [vmem:[%s11610_s19 + $0x500] ss:$8 sps:$4 sm:$0xff]   ;;  %v10167_v16 = vld [vmem:[%s11610_s19 + $0x524] ss:$8 sps:$4 sm:$0xff]  }
 0x22c   : > { %8079 = vmatpush1.bf16.msra.mxu1 %v10075_v26  ;;  %8503 = vmatpush1.bf16.msra.mxu0 %v10078_v27  ;;  %v10156_v25 = vld [vmem:[%s11610_s19 + $0xd00] ss:$8 sps:$4 sm:$0xff]   ;;  %v10161_v26 = vld [vmem:[%s11610_s19 + $0x514] ss:$8 sps:$4 sm:$0xff]   ;;  %v10170_v17 = vld [vmem:[%s11610_s19 + $0xd24] ss:$8 sps:$4 sm:$0xff]  }
 0x22d   : > { %8080 = vmatprep.subr.bf16.mxu1 %v10083_v28  ;;  %8504 = vmatprep.subr.bf16.mxu0 %v10086_v29  ;;  %v10164_v27 = vld [vmem:[%s11610_s19 + $0xd14] ss:$8 sps:$4 sm:$0xff]   ;;  %v10159_v28 = vld [vmem:[%s11610_s19 + $0x510] ss:$8 sps:$4 sm:$0xff]  }
 0x22e   : > { %v10162_v29 = vld [vmem:[%s11610_s19 + $0xd10] ss:$8 sps:$4 sm:$0xff]  }
 0x230   : > { %8081 = vmatpush1.bf16.msra.mxu1 %v10081_v0  ;;  %8505 = vmatpush1.bf16.msra.mxu0 %v10084_v1  ;;  %v8955_v0 = vcombine.high %v4428_v14, %v4444_v15  ;;  %v8971_v1 = vcombine.high %v4436_v18, %v4452_v19 }
 0x231   : > { %8082 = vmatprep.subr.bf16.mxu1 %v10089_v3  ;;  %8506 = vmatprep.subr.bf16.mxu0 %v10092_v2  ;;  %v12133_v3 = vld [vmem:[%s12459_s0 + $0x68] sm:$0xff] }
 0x232   : > { %v12138_v2 = vld [vmem:[%s12459_s0 + $0xe8] sm:$0xff] }
 0x234   : > { %8083 = vmatpush1.bf16.msra.mxu1 %v10087_v5  ;;  %8507 = vmatpush1.bf16.msra.mxu0 %v10090_v6  ;;  %v8954_v5 = vcombine.low %v4428_v14, %v4444_v15  ;;  %v8970_v6 = vcombine.low %v4436_v18, %v4452_v19  ;;  %v10225_v14 = vld [vmem:[%s11610_s19 + $0x5c0] ss:$8 sps:$4 sm:$0xff]   ;;  %v10233_v18 = vld [vmem:[%s11610_s19 + $0x5d4] ss:$8 sps:$4 sm:$0xff]  }
 0x235   : > { %8084 = vmatprep.subr.bf16.mxu1 %v10095_v30  ;;  %8508 = vmatprep.subr.bf16.mxu0 %v10098_v31  ;;  %v10165_v30 = vld [vmem:[%s11610_s19 + $0x520] ss:$8 sps:$4 sm:$0xff]   ;;  %v10236_v19 = vld [vmem:[%s11610_s19 + $0xdd4] ss:$8 sps:$4 sm:$0xff]  }
 0x236   : > { %v10168_v31 = vld [vmem:[%s11610_s19 + $0xd20] ss:$8 sps:$4 sm:$0xff]  }
 0x237   : > { %v10228_v15 = vld [vmem:[%s11610_s19 + $0xdc0] ss:$8 sps:$4 sm:$0xff]  }
 0x238   : > { %8085 = vmatpush1.bf16.msra.mxu1 %v10093_v32  ;;  %8509 = vmatpush1.bf16.msra.mxu0 %v10096_v33  ;;  %v10173_v32 = vld [vmem:[%s11610_s19 + $0x534] ss:$8 sps:$4 sm:$0xff]  }
 0x239   : > { %8086 = vmatprep.subr.bf16.mxu1 %v10101_v34  ;;  %8510 = vmatprep.subr.bf16.mxu0 %v10104_v35  ;;  %v10176_v33 = vld [vmem:[%s11610_s19 + $0xd34] ss:$8 sps:$4 sm:$0xff]   ;;  %v8925_v34 = vcombine.high %v12123_v20, %v12128_v21  ;;  %v8941_v35 = vcombine.high %v12133_v3, %v12138_v2 }
 0x23c   : > { %8087 = vmatpush1.bf16.msra.mxu1 %v10099_v36  ;;  %8511 = vmatpush1.bf16.msra.mxu0 %v10102_v37  ;;  %v10171_v36 = vld [vmem:[%s11610_s19 + $0x530] ss:$8 sps:$4 sm:$0xff]  }
 0x23d   : > { %8088 = vmatprep.subr.bf16.mxu1 %v10107_v38  ;;  %8512 = vmatprep.subr.bf16.mxu0 %v10110_v39  ;;  %v10174_v37 = vld [vmem:[%s11610_s19 + $0xd30] ss:$8 sps:$4 sm:$0xff]   ;;  %v10179_v38 = vld [vmem:[%s11610_s19 + $0x544] ss:$8 sps:$4 sm:$0xff]  }
 0x23e   : > { %v10182_v39 = vld [vmem:[%s11610_s19 + $0xd44] ss:$8 sps:$4 sm:$0xff]  }
 0x240   : > { %8089 = vmatpush1.bf16.msra.mxu1 %v10105_v40  ;;  %8513 = vmatpush1.bf16.msra.mxu0 %v10108_v41  ;;  %v10177_v40 = vld [vmem:[%s11610_s19 + $0x540] ss:$8 sps:$4 sm:$0xff]  }
 0x241   : > { %8090 = vmatprep.subr.bf16.mxu1 %v10113_v44  ;;  %8514 = vmatprep.subr.bf16.mxu0 %v10116_v45  ;;  %v10180_v41 = vld [vmem:[%s11610_s19 + $0xd40] ss:$8 sps:$4 sm:$0xff]   ;;  %v10185_v44 = vld [vmem:[%s11610_s19 + $0x554] ss:$8 sps:$4 sm:$0xff]  }
 0x242   : > { %v10188_v45 = vld [vmem:[%s11610_s19 + $0xd54] ss:$8 sps:$4 sm:$0xff]  }
 0x244   : > { %8091 = vmatpush1.bf16.msra.mxu1 %v10111_v48  ;;  %8515 = vmatpush1.bf16.msra.mxu0 %v10114_v49  ;;  %v10183_v48 = vld [vmem:[%s11610_s19 + $0x550] ss:$8 sps:$4 sm:$0xff]  }
 0x245   : > { %8092 = vmatprep.subr.bf16.mxu1 %v10119_v50  ;;  %8516 = vmatprep.subr.bf16.mxu0 %v10122_v51  ;;  %v10186_v49 = vld [vmem:[%s11610_s19 + $0xd50] ss:$8 sps:$4 sm:$0xff]   ;;  %v10191_v50 = vld [vmem:[%s11610_s19 + $0x564] ss:$8 sps:$4 sm:$0xff]  }
 0x246   : > { %v10194_v51 = vld [vmem:[%s11610_s19 + $0xd64] ss:$8 sps:$4 sm:$0xff]  }
 0x248   : > { %8093 = vmatpush1.bf16.msra.mxu1 %v10117_v52  ;;  %8517 = vmatpush1.bf16.msra.mxu0 %v10120_v42  ;;  %v10189_v52 = vld [vmem:[%s11610_s19 + $0x560] ss:$8 sps:$4 sm:$0xff]  }
 0x249   : > { %8094 = vmatprep.subr.bf16.mxu1 %v10125_v43  ;;  %8518 = vmatprep.subr.bf16.mxu0 %v10128_v46  ;;  %v10192_v42 = vld [vmem:[%s11610_s19 + $0xd60] ss:$8 sps:$4 sm:$0xff]   ;;  %v10197_v43 = vld [vmem:[%s11610_s19 + $0x574] ss:$8 sps:$4 sm:$0xff]  }
 0x24a   : > { %v10200_v46 = vld [vmem:[%s11610_s19 + $0xd74] ss:$8 sps:$4 sm:$0xff]  }
 0x24c   : > { %8095 = vmatpush1.bf16.msra.mxu1 %v10123_v47  ;;  %8519 = vmatpush1.bf16.msra.mxu0 %v10126_v53  ;;  %v10195_v47 = vld [vmem:[%s11610_s19 + $0x570] ss:$8 sps:$4 sm:$0xff]  }
 0x24d   : > { %8096 = vmatprep.subr.bf16.mxu1 %v10131_v54  ;;  %8520 = vmatprep.subr.bf16.mxu0 %v10134_v55  ;;  %v10198_v53 = vld [vmem:[%s11610_s19 + $0xd70] ss:$8 sps:$4 sm:$0xff]   ;;  %v10203_v54 = vld [vmem:[%s11610_s19 + $0x584] ss:$8 sps:$4 sm:$0xff]  }
 0x24e   : > { %v10206_v55 = vld [vmem:[%s11610_s19 + $0xd84] ss:$8 sps:$4 sm:$0xff]  }
 0x250   : > { %8097 = vmatpush1.bf16.msra.mxu1 %v10129_v56  ;;  %8521 = vmatpush1.bf16.msra.mxu0 %v10132_v57  ;;  %v10201_v56 = vld [vmem:[%s11610_s19 + $0x580] ss:$8 sps:$4 sm:$0xff]  }
 0x251   : > { %8098 = vmatprep.subr.bf16.mxu1 %v10137_v60  ;;  %8522 = vmatprep.subr.bf16.mxu0 %v10140_v61  ;;  %v10204_v57 = vld [vmem:[%s11610_s19 + $0xd80] ss:$8 sps:$4 sm:$0xff]   ;;  %v10209_v60 = vld [vmem:[%s11610_s19 + $0x594] ss:$8 sps:$4 sm:$0xff]  }
 0x252   : > { %v10212_v61 = vld [vmem:[%s11610_s19 + $0xd94] ss:$8 sps:$4 sm:$0xff]  }
 0x254   : > { %8099 = vmatpush1.bf16.msra.mxu1 %v10135_v4  ;;  %8523 = vmatpush1.bf16.msra.mxu0 %v10138_v7  ;;  %v10207_v4 = vld [vmem:[%s11610_s19 + $0x590] ss:$8 sps:$4 sm:$0xff]  }
 0x255   : > { %8100 = vmatprep.subr.bf16.mxu1 %v10143_v8  ;;  %8524 = vmatprep.subr.bf16.mxu0 %v10146_v9  ;;  %v10210_v7 = vld [vmem:[%s11610_s19 + $0xd90] ss:$8 sps:$4 sm:$0xff]   ;;  %v10215_v8 = vld [vmem:[%s11610_s19 + $0x5a4] ss:$8 sps:$4 sm:$0xff]  }
 0x256   : > { %v10218_v9 = vld [vmem:[%s11610_s19 + $0xda4] ss:$8 sps:$4 sm:$0xff]  }
 0x258   : > { %8101 = vmatpush1.bf16.msra.mxu1 %v10141_v10  ;;  %8525 = vmatpush1.bf16.msra.mxu0 %v10144_v58  ;;  %v10213_v10 = vld [vmem:[%s11610_s19 + $0x5a0] ss:$8 sps:$4 sm:$0xff]  }
 0x259   : > { %8102 = vmatprep.subr.bf16.mxu1 %v10149_v59  ;;  %8526 = vmatprep.subr.bf16.mxu0 %v10152_v62  ;;  %v10216_v58 = vld [vmem:[%s11610_s19 + $0xda0] ss:$8 sps:$4 sm:$0xff]   ;;  %v10221_v59 = vld [vmem:[%s11610_s19 + $0x5b4] ss:$8 sps:$4 sm:$0xff]  }
 0x25a   : > { %v10224_v62 = vld [vmem:[%s11610_s19 + $0xdb4] ss:$8 sps:$4 sm:$0xff]  }
 0x25c   : > { %8103 = vmatpush1.bf16.msra.mxu1 %v10147_v63  ;;  %8527 = vmatpush1.bf16.msra.mxu0 %v10150_v11  ;;  %v10219_v63 = vld [vmem:[%s11610_s19 + $0x5b0] ss:$8 sps:$4 sm:$0xff]  }
 0x25d   : > { %8125 = vmatprep.subr.bf16.mxu1 %v10155_v12  ;;  %8549 = vmatprep.subr.bf16.mxu0 %v10158_v13  ;;  %v10222_v11 = vld [vmem:[%s11610_s19 + $0xdb0] ss:$8 sps:$4 sm:$0xff]   ;;  %v10227_v12 = vld [vmem:[%s11610_s19 + $0x5c4] ss:$8 sps:$4 sm:$0xff]  }
 0x25e   : > { %v10230_v13 = vld [vmem:[%s11610_s19 + $0xdc4] ss:$8 sps:$4 sm:$0xff]  }
 0x25f   : > { %8105 = vmatmul.mubr.bf16.vlgmr.msra.gmra.mrb[0].mxu1 %v8922_v22  ;;  %8529 = vmatmul.mubr.bf16.vlgmr.msra.gmra.mrb[0].mxu0 %v8938_v23  ;;  %v10231_v22 = vld [vmem:[%s11610_s19 + $0x5d0] ss:$8 sps:$4 sm:$0xff]  }
 0x260   : > { %8126 = vmatpush1.bf16.msra.mxu1 %v10153_v24  ;;  %8550 = vmatpush1.bf16.msra.mxu0 %v10156_v25  ;;  %v10234_v23 = vld [vmem:[%s11610_s19 + $0xdd0] ss:$8 sps:$4 sm:$0xff]   ;;  %v10239_v24 = vld [vmem:[%s11610_s19 + $0x5e4] ss:$8 sps:$4 sm:$0xff]  }
 0x261   : > { %8127 = vmatprep.subr.bf16.mxu1 %v10161_v26  ;;  %8551 = vmatprep.subr.bf16.mxu0 %v10164_v27  ;;  %v10242_v25 = vld [vmem:[%s11610_s19 + $0xde4] ss:$8 sps:$4 sm:$0xff]   ;;  %v10237_v26 = vld [vmem:[%s11610_s19 + $0x5e0] ss:$8 sps:$4 sm:$0xff]  }
 0x262   : > { %8114 = vmatprep.mubr.bf16.mxu1 %v8955_v0  ;;  %8538 = vmatprep.mubr.bf16.mxu0 %v8971_v1  ;;  %v10240_v27 = vld [vmem:[%s11610_s19 + $0xde0] ss:$8 sps:$4 sm:$0xff]   ;;  %v10243_v0 = vld [vmem:[%s11610_s19 + $0x5f0] ss:$8 sps:$4 sm:$0xff]  }
 0x263   : > { %v10246_v1 = vld [vmem:[%s11610_s19 + $0xdf0] ss:$8 sps:$4 sm:$0xff]  }
 0x264   : > { %8128 = vmatpush1.bf16.msra.mxu1 %v10159_v28  ;;  %8552 = vmatpush1.bf16.msra.mxu0 %v10162_v29  ;;  %v10245_v28 = vld [vmem:[%s11610_s19 + $0x5f4] ss:$8 sps:$4 sm:$0xff]  }
 0x265   : > { %8129 = vmatprep.subr.bf16.mxu1 %v10167_v16  ;;  %8553 = vmatprep.subr.bf16.mxu0 %v10170_v17  ;;  %v10248_v29 = vld [vmem:[%s11610_s19 + $0xdf4] ss:$8 sps:$4 sm:$0xff]   ;;  %v10251_v16 = vld [vmem:[%s11610_s19 + $0x604] ss:$8 sps:$4 sm:$0xff]  }
 0x266   : > { %v10254_v17 = vld [vmem:[%s11610_s19 + $0xe04] ss:$8 sps:$4 sm:$0xff]  }
 0x267   : > { %8115 = vmatmul.mubr.bf16.gmra.mrb[4].mxu1 %v8954_v5  ;;  %8539 = vmatmul.mubr.bf16.gmra.mrb[4].mxu0 %v8970_v6  ;;  %v4429_v5 = vld [vmem:[%s12459_s0 + $0x128] sm:$0xff]  ;;  %v8924_v6 = vcombine.low %v12123_v20, %v12128_v21 }
 0x268   : > { %8130 = vmatpush1.bf16.msra.mxu1 %v10165_v30  ;;  %8554 = vmatpush1.bf16.msra.mxu0 %v10168_v31  ;;  %v8940_v30 = vcombine.low %v12133_v3, %v12138_v2  ;;  %v4445_v31 = vld [vmem:[%s12459_s0 + $0x1a8] sm:$0xff]  ;;  %v10257_v3 = vld [vmem:[%s11610_s19 + $0x614] ss:$8 sps:$4 sm:$0xff]  }
 0x269   : > { %8131 = vmatprep.subr.bf16.mxu1 %v10173_v32  ;;  %8555 = vmatprep.subr.bf16.mxu0 %v10176_v33  ;;  %v4437_v32 = vld [vmem:[%s12459_s0 + $0x168] sm:$0xff]  ;;  %v10260_v2 = vld [vmem:[%s11610_s19 + $0xe14] ss:$8 sps:$4 sm:$0xff]  }
 0x26a   : > { %8157 = vmatprep.mubr.bf16.mxu1 %v8925_v34  ;;  %8581 = vmatprep.mubr.bf16.mxu0 %v8941_v35  ;;  %v4453_v33 = vld [vmem:[%s12459_s0 + $0x1e8] sm:$0xff]  ;;  %v8957_v34 = vcombine.high %v4429_v5, %v4445_v31 }
 0x26b   : > { %v10249_v20 = vld [vmem:[%s11610_s19 + $0x600] ss:$8 sps:$4 sm:$0xff]   ;;  %v8973_v35 = vcombine.high %v4437_v32, %v4453_v33 }
 0x26c   : > { %8132 = vmatpush1.bf16.msra.mxu1 %v10171_v36  ;;  %8556 = vmatpush1.bf16.msra.mxu0 %v10174_v37  ;;  %v10252_v21 = vld [vmem:[%s11610_s19 + $0xe00] ss:$8 sps:$4 sm:$0xff]   ;;  %v10255_v36 = vld [vmem:[%s11610_s19 + $0x610] ss:$8 sps:$4 sm:$0xff]  }
 0x26d   : > { %8133 = vmatprep.subr.bf16.mxu1 %v10179_v38  ;;  %8557 = vmatprep.subr.bf16.mxu0 %v10182_v39  ;;  %v10258_v37 = vld [vmem:[%s11610_s19 + $0xe10] ss:$8 sps:$4 sm:$0xff]   ;;  %v10263_v38 = vld [vmem:[%s11610_s19 + $0x624] ss:$8 sps:$4 sm:$0xff]  }
 0x26e   : > { %v10266_v39 = vld [vmem:[%s11610_s19 + $0xe24] ss:$8 sps:$4 sm:$0xff]  }
 0x270   : > { %8134 = vmatpush1.bf16.msra.mxu1 %v10177_v40  ;;  %8558 = vmatpush1.bf16.msra.mxu0 %v10180_v41  ;;  %v12227_v40 = vld [vmem:[%s12459_s0 + $0x30] sm:$0xff]  ;;  %v8956_v41 = vcombine.low %v4429_v5, %v4445_v31  ;;  %v10321_v5 = vld [vmem:[%s11610_s19 + $0x6c0] ss:$8 sps:$4 sm:$0xff]  }
 0x271   : > { %8135 = vmatprep.subr.bf16.mxu1 %v10185_v44  ;;  %8559 = vmatprep.subr.bf16.mxu0 %v10188_v45  ;;  %v8972_v44 = vcombine.low %v4437_v32, %v4453_v33  ;;  %v12232_v45 = vld [vmem:[%s12459_s0 + $0xb0] sm:$0xff] }
 0x272   : > { %v10332_v31 = vld [vmem:[%s11610_s19 + $0xed4] ss:$8 sps:$4 sm:$0xff]   ;;  %v10327_v32 = vld [vmem:[%s11610_s19 + $0x6d0] ss:$8 sps:$4 sm:$0xff]  }
 0x273   : > { %v10330_v33 = vld [vmem:[%s11610_s19 + $0xed0] ss:$8 sps:$4 sm:$0xff]  }
 0x274   : > { %8136 = vmatpush1.bf16.msra.mxu1 %v10183_v48  ;;  %8560 = vmatpush1.bf16.msra.mxu0 %v10186_v49  ;;  %v12237_v48 = vld [vmem:[%s12459_s0 + $0x70] sm:$0xff] }
 0x275   : > { %8137 = vmatprep.subr.bf16.mxu1 %v10191_v50  ;;  %8561 = vmatprep.subr.bf16.mxu0 %v10194_v51  ;;  %v12242_v49 = vld [vmem:[%s12459_s0 + $0xf0] sm:$0xff]  ;;  %v10261_v50 = vld [vmem:[%s11610_s19 + $0x620] ss:$8 sps:$4 sm:$0xff]  }
 0x276   : > { %v10264_v51 = vld [vmem:[%s11610_s19 + $0xe20] ss:$8 sps:$4 sm:$0xff]  }
 0x278   : > { %8138 = vmatpush1.bf16.msra.mxu1 %v10189_v52  ;;  %8562 = vmatpush1.bf16.msra.mxu0 %v10192_v42  ;;  %v10269_v52 = vld [vmem:[%s11610_s19 + $0x634] ss:$8 sps:$4 sm:$0xff]  }
 0x279   : > { %8139 = vmatprep.subr.bf16.mxu1 %v10197_v43  ;;  %8563 = vmatprep.subr.bf16.mxu0 %v10200_v46  ;;  %v10272_v42 = vld [vmem:[%s11610_s19 + $0xe34] ss:$8 sps:$4 sm:$0xff]   ;;  %v8927_v43 = vcombine.high %v12227_v40, %v12232_v45  ;;  %v8943_v46 = vcombine.high %v12237_v48, %v12242_v49 }
 0x27c   : > { %8140 = vmatpush1.bf16.msra.mxu1 %v10195_v47  ;;  %8564 = vmatpush1.bf16.msra.mxu0 %v10198_v53  ;;  %v10267_v47 = vld [vmem:[%s11610_s19 + $0x630] ss:$8 sps:$4 sm:$0xff]  }
 0x27d   : > { %8141 = vmatprep.subr.bf16.mxu1 %v10203_v54  ;;  %8565 = vmatprep.subr.bf16.mxu0 %v10206_v55  ;;  %v10270_v53 = vld [vmem:[%s11610_s19 + $0xe30] ss:$8 sps:$4 sm:$0xff]   ;;  %v10275_v54 = vld [vmem:[%s11610_s19 + $0x644] ss:$8 sps:$4 sm:$0xff]  }
 0x27e   : > { %v10278_v55 = vld [vmem:[%s11610_s19 + $0xe44] ss:$8 sps:$4 sm:$0xff]  }
 0x280   : > { %8142 = vmatpush1.bf16.msra.mxu1 %v10201_v56  ;;  %8566 = vmatpush1.bf16.msra.mxu0 %v10204_v57  ;;  %v10273_v56 = vld [vmem:[%s11610_s19 + $0x640] ss:$8 sps:$4 sm:$0xff]  }
 0x281   : > { %8143 = vmatprep.subr.bf16.mxu1 %v10209_v60  ;;  %8567 = vmatprep.subr.bf16.mxu0 %v10212_v61  ;;  %v10276_v57 = vld [vmem:[%s11610_s19 + $0xe40] ss:$8 sps:$4 sm:$0xff]   ;;  %v10281_v60 = vld [vmem:[%s11610_s19 + $0x654] ss:$8 sps:$4 sm:$0xff]  }
 0x282   : > { %v10284_v61 = vld [vmem:[%s11610_s19 + $0xe54] ss:$8 sps:$4 sm:$0xff]  }
 0x284   : > { %8144 = vmatpush1.bf16.msra.mxu1 %v10207_v4  ;;  %8568 = vmatpush1.bf16.msra.mxu0 %v10210_v7  ;;  %v10279_v4 = vld [vmem:[%s11610_s19 + $0x650] ss:$8 sps:$4 sm:$0xff]  }
 0x285   : > { %8145 = vmatprep.subr.bf16.mxu1 %v10215_v8  ;;  %8569 = vmatprep.subr.bf16.mxu0 %v10218_v9  ;;  %v10282_v7 = vld [vmem:[%s11610_s19 + $0xe50] ss:$8 sps:$4 sm:$0xff]   ;;  %v10287_v8 = vld [vmem:[%s11610_s19 + $0x664] ss:$8 sps:$4 sm:$0xff]  }
 0x286   : > { %v10290_v9 = vld [vmem:[%s11610_s19 + $0xe64] ss:$8 sps:$4 sm:$0xff]  }
 0x288   : > { %8146 = vmatpush1.bf16.msra.mxu1 %v10213_v10  ;;  %8570 = vmatpush1.bf16.msra.mxu0 %v10216_v58  ;;  %v10285_v10 = vld [vmem:[%s11610_s19 + $0x660] ss:$8 sps:$4 sm:$0xff]  }
 0x289   : > { %8147 = vmatprep.subr.bf16.mxu1 %v10221_v59  ;;  %8571 = vmatprep.subr.bf16.mxu0 %v10224_v62  ;;  %v10288_v58 = vld [vmem:[%s11610_s19 + $0xe60] ss:$8 sps:$4 sm:$0xff]   ;;  %v10293_v59 = vld [vmem:[%s11610_s19 + $0x674] ss:$8 sps:$4 sm:$0xff]  }
 0x28a   : > { %v10296_v62 = vld [vmem:[%s11610_s19 + $0xe74] ss:$8 sps:$4 sm:$0xff]  }
 0x28c   : > { %8148 = vmatpush1.bf16.msra.mxu1 %v10219_v63  ;;  %8572 = vmatpush1.bf16.msra.mxu0 %v10222_v11  ;;  %v10291_v63 = vld [vmem:[%s11610_s19 + $0x670] ss:$8 sps:$4 sm:$0xff]  }
 0x28d   : > { %8149 = vmatprep.subr.bf16.mxu1 %v10227_v12  ;;  %8573 = vmatprep.subr.bf16.mxu0 %v10230_v13  ;;  %v10294_v11 = vld [vmem:[%s11610_s19 + $0xe70] ss:$8 sps:$4 sm:$0xff]   ;;  %v10299_v12 = vld [vmem:[%s11610_s19 + $0x684] ss:$8 sps:$4 sm:$0xff]  }
 0x28e   : > { %v10302_v13 = vld [vmem:[%s11610_s19 + $0xe84] ss:$8 sps:$4 sm:$0xff]  }
 0x290   : > { %8150 = vmatpush1.bf16.msra.mxu1 %v10225_v14  ;;  %8574 = vmatpush1.bf16.msra.mxu0 %v10228_v15  ;;  %v10297_v14 = vld [vmem:[%s11610_s19 + $0x680] ss:$8 sps:$4 sm:$0xff]  }
 0x291   : > { %8151 = vmatprep.subr.bf16.mxu1 %v10233_v18  ;;  %8575 = vmatprep.subr.bf16.mxu0 %v10236_v19  ;;  %v10300_v15 = vld [vmem:[%s11610_s19 + $0xe80] ss:$8 sps:$4 sm:$0xff]   ;;  %v10305_v18 = vld [vmem:[%s11610_s19 + $0x694] ss:$8 sps:$4 sm:$0xff]  }
 0x292   : > { %v10308_v19 = vld [vmem:[%s11610_s19 + $0xe94] ss:$8 sps:$4 sm:$0xff]  }
 0x294   : > { %8152 = vmatpush1.bf16.msra.mxu1 %v10231_v22  ;;  %8576 = vmatpush1.bf16.msra.mxu0 %v10234_v23  ;;  %v10303_v22 = vld [vmem:[%s11610_s19 + $0x690] ss:$8 sps:$4 sm:$0xff]  }
 0x295   : > { %8153 = vmatprep.subr.bf16.mxu1 %v10239_v24  ;;  %8577 = vmatprep.subr.bf16.mxu0 %v10242_v25  ;;  %v10306_v23 = vld [vmem:[%s11610_s19 + $0xe90] ss:$8 sps:$4 sm:$0xff]   ;;  %v10311_v24 = vld [vmem:[%s11610_s19 + $0x6a4] ss:$8 sps:$4 sm:$0xff]  }
 0x296   : > { %v10314_v25 = vld [vmem:[%s11610_s19 + $0xea4] ss:$8 sps:$4 sm:$0xff]  }
 0x298   : > { %8154 = vmatpush1.bf16.msra.mxu1 %v10237_v26  ;;  %8578 = vmatpush1.bf16.msra.mxu0 %v10240_v27  ;;  %v10309_v26 = vld [vmem:[%s11610_s19 + $0x6a0] ss:$8 sps:$4 sm:$0xff]  }
 0x299   : > { %8155 = vmatprep.subr.bf16.mxu1 %v10245_v28  ;;  %8579 = vmatprep.subr.bf16.mxu0 %v10248_v29  ;;  %v10312_v27 = vld [vmem:[%s11610_s19 + $0xea0] ss:$8 sps:$4 sm:$0xff]   ;;  %v10317_v28 = vld [vmem:[%s11610_s19 + $0x6b4] ss:$8 sps:$4 sm:$0xff]  }
 0x29a   : > { %v10320_v29 = vld [vmem:[%s11610_s19 + $0xeb4] ss:$8 sps:$4 sm:$0xff]  }
 0x29c   : > { %8156 = vmatpush1.bf16.msra.mxu1 %v10243_v0  ;;  %8580 = vmatpush1.bf16.msra.mxu0 %v10246_v1  ;;  %v10315_v0 = vld [vmem:[%s11610_s19 + $0x6b0] ss:$8 sps:$4 sm:$0xff]  }
 0x29d   : > { %8178 = vmatprep.subr.bf16.mxu1 %v10251_v16  ;;  %8602 = vmatprep.subr.bf16.mxu0 %v10254_v17  ;;  %v10318_v1 = vld [vmem:[%s11610_s19 + $0xeb0] ss:$8 sps:$4 sm:$0xff]   ;;  %v10323_v16 = vld [vmem:[%s11610_s19 + $0x6c4] ss:$8 sps:$4 sm:$0xff]  }
 0x29e   : > { %v10326_v17 = vld [vmem:[%s11610_s19 + $0xec4] ss:$8 sps:$4 sm:$0xff]  }
 0x29f   : > { %8158 = vmatmul.mubr.bf16.vlgmr.msra.gmra.mrb[0].mxu1 %v8924_v6  ;;  %8582 = vmatmul.mubr.bf16.vlgmr.msra.gmra.mrb[0].mxu0 %v8940_v30  ;;  %v10324_v6 = vld [vmem:[%s11610_s19 + $0xec0] ss:$8 sps:$4 sm:$0xff]   ;;  %v10329_v30 = vld [vmem:[%s11610_s19 + $0x6d4] ss:$8 sps:$4 sm:$0xff]  }
 0x2a0   : > { %8179 = vmatpush1.bf16.msra.mxu1 %v10249_v20  ;;  %8603 = vmatpush1.bf16.msra.mxu0 %v10252_v21  ;;  %v10335_v20 = vld [vmem:[%s11610_s19 + $0x6e4] ss:$8 sps:$4 sm:$0xff]  }
 0x2a1   : > { %8180 = vmatprep.subr.bf16.mxu1 %v10257_v3  ;;  %8604 = vmatprep.subr.bf16.mxu0 %v10260_v2  ;;  %v10338_v21 = vld [vmem:[%s11610_s19 + $0xee4] ss:$8 sps:$4 sm:$0xff]   ;;  %v10333_v3 = vld [vmem:[%s11610_s19 + $0x6e0] ss:$8 sps:$4 sm:$0xff]  }
 0x2a2   : > { %8167 = vmatprep.mubr.bf16.mxu1 %v8957_v34  ;;  %8591 = vmatprep.mubr.bf16.mxu0 %v8973_v35  ;;  %v10336_v2 = vld [vmem:[%s11610_s19 + $0xee0] ss:$8 sps:$4 sm:$0xff]   ;;  %v10341_v34 = vld [vmem:[%s11610_s19 + $0x6f4] ss:$8 sps:$4 sm:$0xff]  }
 0x2a3   : > { %v10344_v35 = vld [vmem:[%s11610_s19 + $0xef4] ss:$8 sps:$4 sm:$0xff]  }
 0x2a4   : > { %8181 = vmatpush1.bf16.msra.mxu1 %v10255_v36  ;;  %8605 = vmatpush1.bf16.msra.mxu0 %v10258_v37  ;;  %v10339_v36 = vld [vmem:[%s11610_s19 + $0x6f0] ss:$8 sps:$4 sm:$0xff]  }
 0x2a5   : > { %8182 = vmatprep.subr.bf16.mxu1 %v10263_v38  ;;  %8606 = vmatprep.subr.bf16.mxu0 %v10266_v39  ;;  %v10342_v37 = vld [vmem:[%s11610_s19 + $0xef0] ss:$8 sps:$4 sm:$0xff]   ;;  %v10347_v38 = vld [vmem:[%s11610_s19 + $0x704] ss:$8 sps:$4 sm:$0xff]  }
 0x2a6   : > { %v10350_v39 = vld [vmem:[%s11610_s19 + $0xf04] ss:$8 sps:$4 sm:$0xff]  }
 0x2a7   : > { %8168 = vmatmul.mubr.bf16.gmra.mrb[4].mxu1 %v8956_v41  ;;  %8592 = vmatmul.mubr.bf16.gmra.mrb[4].mxu0 %v8972_v44  ;;  %v4430_v41 = vld [vmem:[%s12459_s0 + $0x130] sm:$0xff]  ;;  %v8926_v44 = vcombine.low %v12227_v40, %v12232_v45  ;;  %v10345_v40 = vld [vmem:[%s11610_s19 + $0x700] ss:$8 sps:$4 sm:$0xff]  }
 0x2a8   : > { %8183 = vmatpush1.bf16.msra.mxu1 %v10261_v50  ;;  %8607 = vmatpush1.bf16.msra.mxu0 %v10264_v51  ;;  %v8942_v50 = vcombine.low %v12237_v48, %v12242_v49  ;;  %v4446_v51 = vld [vmem:[%s12459_s0 + $0x1b0] sm:$0xff]  ;;  %v10348_v45 = vld [vmem:[%s11610_s19 + $0xf00] ss:$8 sps:$4 sm:$0xff]  }
 0x2a9   : > { %8184 = vmatprep.subr.bf16.mxu1 %v10269_v52  ;;  %8608 = vmatprep.subr.bf16.mxu0 %v10272_v42  ;;  %v4438_v52 = vld [vmem:[%s12459_s0 + $0x170] sm:$0xff] }
 0x2aa   : > { %8210 = vmatprep.mubr.bf16.mxu1 %v8927_v43  ;;  %8634 = vmatprep.mubr.bf16.mxu0 %v8943_v46  ;;  %v4454_v42 = vld [vmem:[%s12459_s0 + $0x1f0] sm:$0xff]  ;;  %v8959_v43 = vcombine.high %v4430_v41, %v4446_v51 }
 0x2ab   : > { %v10353_v48 = vld [vmem:[%s11610_s19 + $0x714] ss:$8 sps:$4 sm:$0xff]   ;;  %v8975_v46 = vcombine.high %v4438_v52, %v4454_v42 }
 0x2ac   : > { %8185 = vmatpush1.bf16.msra.mxu1 %v10267_v47  ;;  %8609 = vmatpush1.bf16.msra.mxu0 %v10270_v53  ;;  %v10356_v49 = vld [vmem:[%s11610_s19 + $0xf14] ss:$8 sps:$4 sm:$0xff]   ;;  %v10351_v47 = vld [vmem:[%s11610_s19 + $0x710] ss:$8 sps:$4 sm:$0xff]  }
 0x2ad   : > { %8186 = vmatprep.subr.bf16.mxu1 %v10275_v54  ;;  %8610 = vmatprep.subr.bf16.mxu0 %v10278_v55  ;;  %v10354_v53 = vld [vmem:[%s11610_s19 + $0xf10] ss:$8 sps:$4 sm:$0xff]   ;;  %v10359_v54 = vld [vmem:[%s11610_s19 + $0x724] ss:$8 sps:$4 sm:$0xff]  }
 0x2ae   : > { %v10362_v55 = vld [vmem:[%s11610_s19 + $0xf24] ss:$8 sps:$4 sm:$0xff]  }
 0x2b0   : > { %8187 = vmatpush1.bf16.msra.mxu1 %v10273_v56  ;;  %8611 = vmatpush1.bf16.msra.mxu0 %v10276_v57  ;;  %v12331_v56 = vld [vmem:[%s12459_s0 + $0x38] sm:$0xff]  ;;  %v8958_v57 = vcombine.low %v4430_v41, %v4446_v51  ;;  %v10417_v41 = vld [vmem:[%s11610_s19 + $0x7c0] ss:$8 sps:$4 sm:$0xff]  }
 0x2b1   : > { %8188 = vmatprep.subr.bf16.mxu1 %v10281_v60  ;;  %8612 = vmatprep.subr.bf16.mxu0 %v10284_v61  ;;  %v8974_v60 = vcombine.low %v4438_v52, %v4454_v42  ;;  %v12336_v61 = vld [vmem:[%s12459_s0 + $0xb8] sm:$0xff] }
 0x2b2   : > { %v10428_v51 = vld [vmem:[%s11610_s19 + $0xfd4] ss:$8 sps:$4 sm:$0xff]   ;;  %v10423_v52 = vld [vmem:[%s11610_s19 + $0x7d0] ss:$8 sps:$4 sm:$0xff]  }
 0x2b3   : > { %v10426_v42 = vld [vmem:[%s11610_s19 + $0xfd0] ss:$8 sps:$4 sm:$0xff]  }
 0x2b4   : > { %8189 = vmatpush1.bf16.msra.mxu1 %v10279_v4  ;;  %8613 = vmatpush1.bf16.msra.mxu0 %v10282_v7  ;;  %v12341_v4 = vld [vmem:[%s12459_s0 + $0x78] sm:$0xff] }
 0x2b5   : > { %8190 = vmatprep.subr.bf16.mxu1 %v10287_v8  ;;  %8614 = vmatprep.subr.bf16.mxu0 %v10290_v9  ;;  %v12346_v7 = vld [vmem:[%s12459_s0 + $0xf8] sm:$0xff]  ;;  %v10357_v8 = vld [vmem:[%s11610_s19 + $0x720] ss:$8 sps:$4 sm:$0xff]  }
 0x2b6   : > { %v10360_v9 = vld [vmem:[%s11610_s19 + $0xf20] ss:$8 sps:$4 sm:$0xff]  }
 0x2b8   : > { %8191 = vmatpush1.bf16.msra.mxu1 %v10285_v10  ;;  %8615 = vmatpush1.bf16.msra.mxu0 %v10288_v58  ;;  %v10365_v10 = vld [vmem:[%s11610_s19 + $0x734] ss:$8 sps:$4 sm:$0xff]  }
 0x2b9   : > { %8192 = vmatprep.subr.bf16.mxu1 %v10293_v59  ;;  %8616 = vmatprep.subr.bf16.mxu0 %v10296_v62  ;;  %v10368_v58 = vld [vmem:[%s11610_s19 + $0xf34] ss:$8 sps:$4 sm:$0xff]   ;;  %v8929_v59 = vcombine.high %v12331_v56, %v12336_v61  ;;  %v8945_v62 = vcombine.high %v12341_v4, %v12346_v7 }
 0x2bc   : > { %8193 = vmatpush1.bf16.msra.mxu1 %v10291_v63  ;;  %8617 = vmatpush1.bf16.msra.mxu0 %v10294_v11  ;;  %v10363_v63 = vld [vmem:[%s11610_s19 + $0x730] ss:$8 sps:$4 sm:$0xff]  }
 0x2bd   : > { %8194 = vmatprep.subr.bf16.mxu1 %v10299_v12  ;;  %8618 = vmatprep.subr.bf16.mxu0 %v10302_v13  ;;  %v10366_v11 = vld [vmem:[%s11610_s19 + $0xf30] ss:$8 sps:$4 sm:$0xff]   ;;  %v10371_v12 = vld [vmem:[%s11610_s19 + $0x744] ss:$8 sps:$4 sm:$0xff]  }
 0x2be   : > { %v10374_v13 = vld [vmem:[%s11610_s19 + $0xf44] ss:$8 sps:$4 sm:$0xff]  }
 0x2c0   : > { %8195 = vmatpush1.bf16.msra.mxu1 %v10297_v14  ;;  %8619 = vmatpush1.bf16.msra.mxu0 %v10300_v15  ;;  %v10369_v14 = vld [vmem:[%s11610_s19 + $0x740] ss:$8 sps:$4 sm:$0xff]  }
 0x2c1   : > { %8196 = vmatprep.subr.bf16.mxu1 %v10305_v18  ;;  %8620 = vmatprep.subr.bf16.mxu0 %v10308_v19  ;;  %v10372_v15 = vld [vmem:[%s11610_s19 + $0xf40] ss:$8 sps:$4 sm:$0xff]   ;;  %v10377_v18 = vld [vmem:[%s11610_s19 + $0x754] ss:$8 sps:$4 sm:$0xff]  }
 0x2c2   : > { %v10380_v19 = vld [vmem:[%s11610_s19 + $0xf54] ss:$8 sps:$4 sm:$0xff]  }
 0x2c4   : > { %8197 = vmatpush1.bf16.msra.mxu1 %v10303_v22  ;;  %8621 = vmatpush1.bf16.msra.mxu0 %v10306_v23  ;;  %v10375_v22 = vld [vmem:[%s11610_s19 + $0x750] ss:$8 sps:$4 sm:$0xff]  }
 0x2c5   : > { %8198 = vmatprep.subr.bf16.mxu1 %v10311_v24  ;;  %8622 = vmatprep.subr.bf16.mxu0 %v10314_v25  ;;  %v10378_v23 = vld [vmem:[%s11610_s19 + $0xf50] ss:$8 sps:$4 sm:$0xff]   ;;  %v10383_v24 = vld [vmem:[%s11610_s19 + $0x764] ss:$8 sps:$4 sm:$0xff]  }
 0x2c6   : > { %v10386_v25 = vld [vmem:[%s11610_s19 + $0xf64] ss:$8 sps:$4 sm:$0xff]  }
 0x2c8   : > { %8199 = vmatpush1.bf16.msra.mxu1 %v10309_v26  ;;  %8623 = vmatpush1.bf16.msra.mxu0 %v10312_v27  ;;  %v10381_v26 = vld [vmem:[%s11610_s19 + $0x760] ss:$8 sps:$4 sm:$0xff]  }
 0x2c9   : > { %8200 = vmatprep.subr.bf16.mxu1 %v10317_v28  ;;  %8624 = vmatprep.subr.bf16.mxu0 %v10320_v29  ;;  %v10384_v27 = vld [vmem:[%s11610_s19 + $0xf60] ss:$8 sps:$4 sm:$0xff]   ;;  %v10389_v28 = vld [vmem:[%s11610_s19 + $0x774] ss:$8 sps:$4 sm:$0xff]  }
 0x2ca   : > { %v10392_v29 = vld [vmem:[%s11610_s19 + $0xf74] ss:$8 sps:$4 sm:$0xff]  }
 0x2cc   : > { %8201 = vmatpush1.bf16.msra.mxu1 %v10315_v0  ;;  %8625 = vmatpush1.bf16.msra.mxu0 %v10318_v1  ;;  %v10387_v0 = vld [vmem:[%s11610_s19 + $0x770] ss:$8 sps:$4 sm:$0xff]  }
 0x2cd   : > { %8202 = vmatprep.subr.bf16.mxu1 %v10323_v16  ;;  %8626 = vmatprep.subr.bf16.mxu0 %v10326_v17  ;;  %v10390_v1 = vld [vmem:[%s11610_s19 + $0xf70] ss:$8 sps:$4 sm:$0xff]   ;;  %v10395_v16 = vld [vmem:[%s11610_s19 + $0x784] ss:$8 sps:$4 sm:$0xff]  }
 0x2ce   : > { %v10398_v17 = vld [vmem:[%s11610_s19 + $0xf84] ss:$8 sps:$4 sm:$0xff]  }
 0x2d0   : > { %8203 = vmatpush1.bf16.msra.mxu1 %v10321_v5  ;;  %8627 = vmatpush1.bf16.msra.mxu0 %v10324_v6  ;;  %v10393_v5 = vld [vmem:[%s11610_s19 + $0x780] ss:$8 sps:$4 sm:$0xff]  }
 0x2d1   : > { %8204 = vmatprep.subr.bf16.mxu1 %v10329_v30  ;;  %8628 = vmatprep.subr.bf16.mxu0 %v10332_v31  ;;  %v10396_v6 = vld [vmem:[%s11610_s19 + $0xf80] ss:$8 sps:$4 sm:$0xff]   ;;  %v10401_v30 = vld [vmem:[%s11610_s19 + $0x794] ss:$8 sps:$4 sm:$0xff]  }
 0x2d2   : > { %v10404_v31 = vld [vmem:[%s11610_s19 + $0xf94] ss:$8 sps:$4 sm:$0xff]  }
 0x2d4   : > { %8205 = vmatpush1.bf16.msra.mxu1 %v10327_v32  ;;  %8629 = vmatpush1.bf16.msra.mxu0 %v10330_v33  ;;  %v10399_v32 = vld [vmem:[%s11610_s19 + $0x790] ss:$8 sps:$4 sm:$0xff]  }
 0x2d5   : > { %8206 = vmatprep.subr.bf16.mxu1 %v10335_v20  ;;  %8630 = vmatprep.subr.bf16.mxu0 %v10338_v21  ;;  %v10402_v33 = vld [vmem:[%s11610_s19 + $0xf90] ss:$8 sps:$4 sm:$0xff]   ;;  %v10407_v20 = vld [vmem:[%s11610_s19 + $0x7a4] ss:$8 sps:$4 sm:$0xff]  }
 0x2d6   : > { %v10410_v21 = vld [vmem:[%s11610_s19 + $0xfa4] ss:$8 sps:$4 sm:$0xff]  }
 0x2d8   : > { %8207 = vmatpush1.bf16.msra.mxu1 %v10333_v3  ;;  %8631 = vmatpush1.bf16.msra.mxu0 %v10336_v2  ;;  %v10405_v3 = vld [vmem:[%s11610_s19 + $0x7a0] ss:$8 sps:$4 sm:$0xff]  }
 0x2d9   : > { %8208 = vmatprep.subr.bf16.mxu1 %v10341_v34  ;;  %8632 = vmatprep.subr.bf16.mxu0 %v10344_v35  ;;  %v10408_v2 = vld [vmem:[%s11610_s19 + $0xfa0] ss:$8 sps:$4 sm:$0xff]   ;;  %v10413_v34 = vld [vmem:[%s11610_s19 + $0x7b4] ss:$8 sps:$4 sm:$0xff]  }
 0x2da   : > { %v10416_v35 = vld [vmem:[%s11610_s19 + $0xfb4] ss:$8 sps:$4 sm:$0xff]  }
 0x2dc   : > { %8209 = vmatpush1.bf16.msra.mxu1 %v10339_v36  ;;  %8633 = vmatpush1.bf16.msra.mxu0 %v10342_v37  ;;  %v10411_v36 = vld [vmem:[%s11610_s19 + $0x7b0] ss:$8 sps:$4 sm:$0xff]  }
 0x2dd   : > { %8231 = vmatprep.subr.bf16.mxu1 %v10347_v38  ;;  %8655 = vmatprep.subr.bf16.mxu0 %v10350_v39  ;;  %v10414_v37 = vld [vmem:[%s11610_s19 + $0xfb0] ss:$8 sps:$4 sm:$0xff]   ;;  %v10419_v38 = vld [vmem:[%s11610_s19 + $0x7c4] ss:$8 sps:$4 sm:$0xff]  }
 0x2de   : > { %v10422_v39 = vld [vmem:[%s11610_s19 + $0xfc4] ss:$8 sps:$4 sm:$0xff]  }
 0x2df   : > { %8211 = vmatmul.mubr.bf16.vlgmr.msra.gmra.mrb[0].mxu1 %v8926_v44  ;;  %8635 = vmatmul.mubr.bf16.vlgmr.msra.gmra.mrb[0].mxu0 %v8942_v50  ;;  %v10420_v44 = vld [vmem:[%s11610_s19 + $0xfc0] ss:$8 sps:$4 sm:$0xff]   ;;  %v10425_v50 = vld [vmem:[%s11610_s19 + $0x7d4] ss:$8 sps:$4 sm:$0xff]  }
 0x2e0   : > { %8232 = vmatpush1.bf16.msra.mxu1 %v10345_v40  ;;  %8656 = vmatpush1.bf16.msra.mxu0 %v10348_v45  ;;  %v10431_v40 = vld [vmem:[%s11610_s19 + $0x7e4] ss:$8 sps:$4 sm:$0xff]  }
 0x2e1   : > { %8233 = vmatprep.subr.bf16.mxu1 %v10353_v48  ;;  %8657 = vmatprep.subr.bf16.mxu0 %v10356_v49  ;;  %v10434_v45 = vld [vmem:[%s11610_s19 + $0xfe4] ss:$8 sps:$4 sm:$0xff]   ;;  %v10429_v48 = vld [vmem:[%s11610_s19 + $0x7e0] ss:$8 sps:$4 sm:$0xff]  }
 0x2e2   : > { %8220 = vmatprep.mubr.bf16.mxu1 %v8959_v43  ;;  %8644 = vmatprep.mubr.bf16.mxu0 %v8975_v46  ;;  %v10432_v49 = vld [vmem:[%s11610_s19 + $0xfe0] ss:$8 sps:$4 sm:$0xff]   ;;  %v10437_v43 = vld [vmem:[%s11610_s19 + $0x7f4] ss:$8 sps:$4 sm:$0xff]  }
 0x2e3   : > { %v10440_v46 = vld [vmem:[%s11610_s19 + $0xff4] ss:$8 sps:$4 sm:$0xff]  }
 0x2e4   : > { %8234 = vmatpush1.bf16.msra.mxu1 %v10351_v47  ;;  %8658 = vmatpush1.bf16.msra.mxu0 %v10354_v53  ;;  %v10435_v47 = vld [vmem:[%s11610_s19 + $0x7f0] ss:$8 sps:$4 sm:$0xff]  }
 0x2e5   : > { %8235 = vmatprep.subr.bf16.mxu1 %v10359_v54  ;;  %8659 = vmatprep.subr.bf16.mxu0 %v10362_v55  ;;  %v10438_v53 = vld [vmem:[%s11610_s19 + $0xff0] ss:$8 sps:$4 sm:$0xff]   ;;  %s8913_s19 = sshll.u32 %s10471_s14, 1 }
 0x2e6   : > { %v4431_v54 = vld [vmem:[%s12459_s0 + $0x138] sm:$0xff]  ;;  %p4386_p11 = scmp.lt.s32.totalorder %s8913_s19, 3 }
 0x2e7   : > { %8221 = vmatmul.mubr.bf16.gmra.mrb[4].mxu1 %v8958_v57  ;;  %8645 = vmatmul.mubr.bf16.gmra.mrb[4].mxu0 %v8974_v60  ;;  %v4447_v55 = vld [vmem:[%s12459_s0 + $0x1b8] sm:$0xff] }
 0x2e8   : > { %8236 = vmatpush1.bf16.msra.mxu1 %v10357_v8  ;;  %8660 = vmatpush1.bf16.msra.mxu0 %v10360_v9  ;;  %v4439_v57 = vld [vmem:[%s12459_s0 + $0x178] sm:$0xff]  ;;  %v8928_v8 = vcombine.low %v12331_v56, %v12336_v61  ;;  %v8944_v9 = vcombine.low %v12341_v4, %v12346_v7  ;;  %s12471_s19 = smov (!%p4386_p11, %s8913_s19), 3 }
 0x2e9   : > { %8237 = vmatprep.subr.bf16.mxu1 %v10365_v10  ;;  %8661 = vmatprep.subr.bf16.mxu0 %v10368_v58  ;;  %v4455_v60 = vld [vmem:[%s12459_s0 + $0x1f8] sm:$0xff]  ;;  %v8961_v10 = vcombine.high %v4431_v54, %v4447_v55  ;;  %s4388_s25 = scalar_lea.vmem %s12461_s2, %s12471_s19 }
 0x2ea   : > { %8263 = vmatprep.mubr.bf16.mxu1 %v8929_v59  ;;  %8687 = vmatprep.mubr.bf16.mxu0 %v8945_v62  ;;  %v8977_v58 = vcombine.high %v4439_v57, %v4455_v60  ;;  %v8960_v59 = vcombine.low %v4431_v54, %v4447_v55  ;;  %v8976_v62 = vcombine.low %v4439_v57, %v4455_v60  ;;  %v4968_v4 = vld [vmem:[%s4388_s25] sm:$0x3] }
 0x2ec   : > { %8238 = vmatpush1.bf16.msra.mxu1 %v10363_v63  ;;  %8662 = vmatpush1.bf16.msra.mxu0 %v10366_v11  ;;  %v4970_v63 = vlaneseq }
 0x2ed   : > { %8239 = vmatprep.subr.bf16.mxu1 %v10371_v12  ;;  %8663 = vmatprep.subr.bf16.mxu0 %v10374_v13 }
 0x2ee   : > { %v4971_v56 = vshrl.u32 %v4970_v63, 7 }
 0x2f0   : > { %8240 = vmatpush1.bf16.msra.mxu1 %v10369_v14  ;;  %8664 = vmatpush1.bf16.msra.mxu0 %v10372_v15  ;;  %v4972_v61 = vsub.s32 0, %v4971_v56  ;;  %v4976_v7 = vsub.s32 1, %v4971_v56 }
 0x2f1   : > { %8241 = vmatprep.subr.bf16.mxu1 %v10377_v18  ;;  %8665 = vmatprep.subr.bf16.mxu0 %v10380_v19 }
 0x2f2   : > { %v4973_v11 = vrot.slane %v4968_v4, %v4972_v61  ;;  %v4977_v12 = vrot.slane %v4968_v4, %v4976_v7 }
 0x2f4   : > { %8242 = vmatpush1.bf16.msra.mxu1 %v10375_v22  ;;  %8666 = vmatpush1.bf16.msra.mxu0 %v10378_v23 }
 0x2f5   : > { %8243 = vmatprep.subr.bf16.mxu1 %v10383_v24  ;;  %8667 = vmatprep.subr.bf16.mxu0 %v10386_v25 }
 0x2f8   : > { %8244 = vmatpush1.bf16.msra.mxu1 %v10381_v26  ;;  %8668 = vmatpush1.bf16.msra.mxu0 %v10384_v27 }
 0x2f9   : > { %8245 = vmatprep.subr.bf16.mxu1 %v10389_v28  ;;  %8669 = vmatprep.subr.bf16.mxu0 %v10392_v29 }
 0x2fc   : > { %8246 = vmatpush1.bf16.msra.mxu1 %v10387_v0  ;;  %8670 = vmatpush1.bf16.msra.mxu0 %v10390_v1 }
 0x2fd   : > { %8247 = vmatprep.subr.bf16.mxu1 %v10395_v16  ;;  %8671 = vmatprep.subr.bf16.mxu0 %v10398_v17 }
 0x300   : > { %8248 = vmatpush1.bf16.msra.mxu1 %v10393_v5  ;;  %8672 = vmatpush1.bf16.msra.mxu0 %v10396_v6 }
 0x301   : > { %8249 = vmatprep.subr.bf16.mxu1 %v10401_v30  ;;  %8673 = vmatprep.subr.bf16.mxu0 %v10404_v31 }
 0x304   : > { %8250 = vmatpush1.bf16.msra.mxu1 %v10399_v32  ;;  %8674 = vmatpush1.bf16.msra.mxu0 %v10402_v33 }
 0x305   : > { %8251 = vmatprep.subr.bf16.mxu1 %v10407_v20  ;;  %8675 = vmatprep.subr.bf16.mxu0 %v10410_v21 }
 0x308   : > { %8252 = vmatpush1.bf16.msra.mxu1 %v10405_v3  ;;  %8676 = vmatpush1.bf16.msra.mxu0 %v10408_v2 }
 0x309   : > { %8253 = vmatprep.subr.bf16.mxu1 %v10413_v34  ;;  %8677 = vmatprep.subr.bf16.mxu0 %v10416_v35 }
 0x30c   : > { %8254 = vmatpush1.bf16.msra.mxu1 %v10411_v36  ;;  %8678 = vmatpush1.bf16.msra.mxu0 %v10414_v37 }
 0x30d   : > { %8255 = vmatprep.subr.bf16.mxu1 %v10419_v38  ;;  %8679 = vmatprep.subr.bf16.mxu0 %v10422_v39 }
 0x310   : > { %8256 = vmatpush1.bf16.msra.mxu1 %v10417_v41  ;;  %8680 = vmatpush1.bf16.msra.mxu0 %v10420_v44 }
 0x311   : > { %8257 = vmatprep.subr.bf16.mxu1 %v10425_v50  ;;  %8681 = vmatprep.subr.bf16.mxu0 %v10428_v51 }
 0x314   : > { %8258 = vmatpush1.bf16.msra.mxu1 %v10423_v52  ;;  %8682 = vmatpush1.bf16.msra.mxu0 %v10426_v42 }
 0x315   : > { %8259 = vmatprep.subr.bf16.mxu1 %v10431_v40  ;;  %8683 = vmatprep.subr.bf16.mxu0 %v10434_v45 }
 0x318   : > { %8260 = vmatpush1.bf16.msra.mxu1 %v10429_v48  ;;  %8684 = vmatpush1.bf16.msra.mxu0 %v10432_v49 }
 0x319   : > { %8261 = vmatprep.subr.bf16.mxu1 %v10437_v43  ;;  %8685 = vmatprep.subr.bf16.mxu0 %v10440_v46 }
 0x31c   : > { %8262 = vmatpush1.bf16.msra.mxu1 %v10435_v47  ;;  %8686 = vmatpush1.bf16.msra.mxu0 %v10438_v53 }
 0x31f   : > { %8264 = vmatmul.mubr.bf16.vlgmr.msra.gmra.mrb[0].mxu1 %v8928_v8  ;;  %8688 = vmatmul.mubr.bf16.vlgmr.msra.gmra.mrb[0].mxu0 %v8944_v9 }
 0x320   : > { %8273 = vmatprep.mubr.bf16.mxu1 %v8961_v10  ;;  %8697 = vmatprep.mubr.bf16.mxu0 %v8977_v58 }
 0x327   : > { %8274 = vmatmul.mubr.bf16.gmra.mrb[4].mxu1 %v8960_v59  ;;  %8698 = vmatmul.mubr.bf16.gmra.mrb[4].mxu0 %v8976_v62 }
 0x3f2   : > { %v8265_v13 = vpop.f32.mrb[0].mxu1  ;;  %v8689_v14 = vpop.f32.mrb[0].mxu0 }
 0x3f3   : > { %v9505_v15 = vadd.f32 %v8265_v13, %v4973_v11  ;;  %v8267_v18 = vpop.f32.mrb[1].mxu1  ;;  %v8691_v19 = vpop.f32.mrb[1].mxu0 }
 0x3f4   : > { %v9507_v22 = vadd.f32 %v8267_v18, %v4977_v12  ;;  %v8269_v23 = vpop.f32.mrb[2].mxu1  ;;  %v8693_v24 = vpop.f32.mrb[2].mxu0 }
 0x3f5   : > { %v9506_v25 = vadd.f32 %v9505_v15, %v8689_v14  ;;  %v9509_v26 = vadd.f32 %v8269_v23, %v4973_v11  ;;  %v8271_v27 = vpop.f32.mrb[3].mxu1  ;;  %v8695_v28 = vpop.f32.mrb[3].mxu0 }
 0x3f6   : > { %v9508_v29 = vadd.f32 %v9507_v22, %v8691_v19  ;;  %v9511_v0 = vadd.f32 %v8271_v27, %v4977_v12 }
 0x3f7   : > { %v8708_v1 = vmax.f32 %v9506_v25, 0.0  ;;  %v9510_v16 = vadd.f32 %v9509_v26, %v8693_v24 }
 0x3f8   : > { %v8709_v17 = vmax.f32 %v9508_v29, 0.0  ;;  %v9512_v5 = vadd.f32 %v9511_v0, %v8695_v28 }
 0x3f9   : > { %v8710_v6 = vmax.f32 %v9510_v16, 0.0 }
 0x3fa   : > { %v9500_v30 = vpack.c.bf16 %v8709_v17, %v8708_v1  ;;  %v8711_v31 = vmax.f32 %v9512_v5, 0.0  ;;  %v8275_v32 = vpop.f32.mrb[4].mxu1  ;;  %v8699_v33 = vpop.f32.mrb[4].mxu0 }
 0x3fb   : > { %v9513_v20 = vadd.f32 %v8275_v32, %v4973_v11  ;;  %v8277_v21 = vpop.f32.mrb[5].mxu1  ;;  %v8701_v3 = vpop.f32.mrb[5].mxu0 }
 0x3fc   : > { %8740 = vst [vmem:[%s12428_s27] sm:$0xff] %v9500_v30  ;;  %v9501_v2 = vpack.c.bf16 %v8711_v31, %v8710_v6  ;;  %v9515_v34 = vadd.f32 %v8277_v21, %v4977_v12  ;;  %v8279_v35 = vpop.f32.mrb[6].mxu1  ;;  %v8703_v36 = vpop.f32.mrb[6].mxu0 }
 0x3fd   : > { %v9514_v37 = vadd.f32 %v9513_v20, %v8699_v33  ;;  %v9517_v38 = vadd.f32 %v8279_v35, %v4973_v11  ;;  %v8281_v39 = vpop.f32.mrb[7].mxu1  ;;  %v8705_v41 = vpop.f32.mrb[7].mxu0 }
 0x3fe   : > { %8741 = vst [vmem:[%s12428_s27 + $0x8] sm:$0xff] %v9501_v2  ;;  %v9516_v44 = vadd.f32 %v9515_v34, %v8701_v3  ;;  %v9519_v50 = vadd.f32 %v8281_v39, %v4977_v12 }
 0x3ff   : > { %v8712_v51 = vmax.f32 %v9514_v37, 0.0  ;;  %v9518_v52 = vadd.f32 %v9517_v38, %v8703_v36 }
 0x400   : > { %v8713_v42 = vmax.f32 %v9516_v44, 0.0  ;;  %v9520_v40 = vadd.f32 %v9519_v50, %v8705_v41  ;;  %8750 = sbr.rel (!%p10536_p6) target bundleno = 1039 (0x40f), region = 88 }
 0x401   : > { %v8714_v45 = vmax.f32 %v9518_v52, 0.0 }
 0x402   : > { %v9502_v48 = vpack.c.bf16 %v8713_v42, %v8712_v51  ;;  %v8715_v49 = vmax.f32 %v9520_v40, 0.0 }
 0x403   : > { %v8790_v46 = vld [vmem:[%s12428_s27] sm:$0xff] (%p10536_p6) }
 0x404   : > { %8742 = vst [vmem:[%s12428_s27 + $0x10] sm:$0xff] %v9502_v48  ;;  %v9503_v43 = vpack.c.bf16 %v8715_v49, %v8714_v45  ;;  %8791 = vst [vmem:[%s8756_s29] sm:$0xff] (%p10536_p6), %v8790_v46 }
 0x405   : > { %v8792_v47 = vld [vmem:[%s12428_s27 + $0x8] sm:$0xff] (%p10536_p6) }
 0x406   : > { %8743 = vst [vmem:[%s12428_s27 + $0x18] sm:$0xff] %v9503_v43  ;;  %8793 = vst [vmem:[%s8756_s29 + $0x10] sm:$0xff] (%p10536_p6), %v8792_v47 }
 0x40b   : > { %v8794_v53 = vld [vmem:[%s12428_s27 + $0x10] sm:$0xff] }
 0x40c   : > { %8795 = vst [vmem:[%s8756_s29 + $0x20] sm:$0xff] %v8794_v53 }
 0x40d   : > { %v8796_v54 = vld [vmem:[%s12428_s27 + $0x18] sm:$0xff] }
 0x40e   : > { %8797 = vst [vmem:[%s8756_s29 + $0x30] sm:$0xff] %v8796_v54 }
 0x40f PF: > { %s13_s16 = sadd.s32 1, %s10479_s16   ;;  %s12464_s12 = smov %s10467_s13 }
 0x410   : > { %p10_p12 = scmp.ge.s32.totalorder %s13_s16, 4   ;;  %s12465_s13 = smov %s10541_s22 }
 0x411   : > { %s12466_s14 = smov %s10475_s15  ;;  %s12467_s15 = smov %s12469_s17 }
 0x412   :  { %12 = sbr.rel (!%p10_p12) target bundleno = 3 (0x3), region = 169 }

// kernel: discriminator_forward.9
= control target key start
LH: loop header
LB: loop body
LE: loop exit
PB: predicated region body
PF: predicated region fallthrough
CT: control target
= control target key end

     0   :  { %s9209_s1 = inlined_call_operand.vmem [shape: bf16[8192,128], index: 1, kind: input, shape index: {}]   ;;  %s9210_s0 = inlined_call_operand.vmem [shape: bf16[8,8192], index: 0, kind: input, shape index: {}]   ;;  %s9211_s2 = inlined_call_operand.vmem [shape: f32[1,128], index: 2, kind: input, shape index: {}]   ;;  %s9212_s3 = inlined_call_operand.vmem [shape: f32[8,128], index: 3, kind: output, shape index: {}]  }
   0x1   :  { %v6947_v0 = vld [vmem:[%s9209_s1 + $0x40] sm:$0xff]   ;;  %v6951_v4 = vld [vmem:[%s9209_s1 + $0x48] sm:$0xff]   ;;  %v6955_v8 = vld [vmem:[%s9209_s1 + $0x50] sm:$0xff]  }
   0x2   :  { %v6948_v1 = vld [vmem:[%s9209_s1 + $0xc0] sm:$0xff]   ;;  %6243 = vmatprep.subr.bf16.mxu0 %v6947_v0  ;;  %v6952_v5 = vld [vmem:[%s9209_s1 + $0xc8] sm:$0xff]   ;;  %v6956_v9 = vld [vmem:[%s9209_s1 + $0xd0] sm:$0xff]  }
   0x3   :  { %v6949_v2 = vld [vmem:[%s9209_s1] sm:$0xff]   ;;  %6265 = vmatprep.subr.bf16.mxu1 %v6948_v1  ;;  %v6953_v6 = vld [vmem:[%s9209_s1 + $0x8] sm:$0xff]   ;;  %v6957_v10 = vld [vmem:[%s9209_s1 + $0x10] sm:$0xff]  }
   0x4   :  { %v6950_v3 = vld [vmem:[%s9209_s1 + $0x80] sm:$0xff]   ;;  %6244 = vmatpush3.bf16.msra.mxu0 %v6949_v2  ;;  %v6954_v7 = vld [vmem:[%s9209_s1 + $0x88] sm:$0xff]   ;;  %v6958_v11 = vld [vmem:[%s9209_s1 + $0x90] sm:$0xff]  }
   0x5   :  { %6266 = vmatpush3.bf16.msra.mxu1 %v6950_v3  ;;  %6245 = vmatprep.subr.bf16.mxu0 %v6951_v4  ;;  %v6959_v12 = vld [vmem:[%s9209_s1 + $0x58] sm:$0xff]   ;;  %v6963_v16 = vld [vmem:[%s9209_s1 + $0x60] sm:$0xff]   ;;  %v6967_v20 = vld [vmem:[%s9209_s1 + $0x68] sm:$0xff]  }
   0x6   :  { %6267 = vmatprep.subr.bf16.mxu1 %v6952_v5  ;;  %v6960_v13 = vld [vmem:[%s9209_s1 + $0xd8] sm:$0xff]   ;;  %v6964_v17 = vld [vmem:[%s9209_s1 + $0xe0] sm:$0xff]   ;;  %v6968_v21 = vld [vmem:[%s9209_s1 + $0xe8] sm:$0xff]  }
   0x7   :  { %v6961_v14 = vld [vmem:[%s9209_s1 + $0x18] sm:$0xff]   ;;  %v6965_v18 = vld [vmem:[%s9209_s1 + $0x20] sm:$0xff]   ;;  %v6969_v22 = vld [vmem:[%s9209_s1 + $0x28] sm:$0xff]  }
   0x8   :  { %6246 = vmatpush3.bf16.msra.mxu0 %v6953_v6  ;;  %v6962_v15 = vld [vmem:[%s9209_s1 + $0x98] sm:$0xff]   ;;  %v6966_v19 = vld [vmem:[%s9209_s1 + $0xa0] sm:$0xff]   ;;  %v6970_v23 = vld [vmem:[%s9209_s1 + $0xa8] sm:$0xff]  }
   0x9   :  { %6268 = vmatpush3.bf16.msra.mxu1 %v6954_v7  ;;  %6247 = vmatprep.subr.bf16.mxu0 %v6955_v8  ;;  %v6971_v24 = vld [vmem:[%s9209_s1 + $0x70] sm:$0xff]   ;;  %v6975_v28 = vld [vmem:[%s9209_s1 + $0x78] sm:$0xff]   ;;  %v15_v32 = vld [vmem:[%s9210_s0] sm:$0xff] }
   0xa   :  { %6269 = vmatprep.subr.bf16.mxu1 %v6956_v9  ;;  %v6972_v25 = vld [vmem:[%s9209_s1 + $0xf0] sm:$0xff]   ;;  %v6976_v29 = vld [vmem:[%s9209_s1 + $0xf8] sm:$0xff]   ;;  %v16_v33 = vld [vmem:[%s9210_s0 + $0x8] sm:$0xff]  ;;  %v5666_v34 = vcombine.low %v15_v32, %v15_v32  ;;  %v5667_v35 = vcombine.high %v15_v32, %v15_v32 }
   0xb   :  { %v6973_v26 = vld [vmem:[%s9209_s1 + $0x30] sm:$0xff]   ;;  %v6977_v30 = vld [vmem:[%s9209_s1 + $0x38] sm:$0xff]   ;;  %v5668_v36 = vcombine.low %v16_v33, %v16_v33  ;;  %v5669_v37 = vcombine.high %v16_v33, %v16_v33  ;;  %v6983_v38 = vld [vmem:[%s9209_s1 + $0x140] sm:$0xff]  }
   0xc   :  { %6248 = vmatpush3.bf16.msra.mxu0 %v6957_v10  ;;  %v6974_v27 = vld [vmem:[%s9209_s1 + $0xb0] sm:$0xff]   ;;  %v6978_v31 = vld [vmem:[%s9209_s1 + $0xb8] sm:$0xff]   ;;  %v6984_v39 = vld [vmem:[%s9209_s1 + $0x1c0] sm:$0xff]   ;;  %4406 = vmatprep.mubr.bf16.mxu0 %v5667_v35 }
   0xd   :  { %6270 = vmatpush3.bf16.msra.mxu1 %v6958_v11  ;;  %6249 = vmatprep.subr.bf16.mxu0 %v6959_v12  ;;  %v6985_v40 = vld [vmem:[%s9209_s1 + $0x100] sm:$0xff]   ;;  %v6987_v42 = vld [vmem:[%s9209_s1 + $0x148] sm:$0xff]   ;;  %v6991_v46 = vld [vmem:[%s9209_s1 + $0x150] sm:$0xff]  }
   0xe   :  { %6271 = vmatprep.subr.bf16.mxu1 %v6960_v13  ;;  %4446 = vmatprep.mubr.bf16.mxu1 %v5669_v37  ;;  %v6986_v41 = vld [vmem:[%s9209_s1 + $0x180] sm:$0xff]   ;;  %v6988_v43 = vld [vmem:[%s9209_s1 + $0x1c8] sm:$0xff]   ;;  %v6992_v47 = vld [vmem:[%s9209_s1 + $0x1d0] sm:$0xff]  }
   0xf   :  { %v6989_v44 = vld [vmem:[%s9209_s1 + $0x108] sm:$0xff]   ;;  %v6993_v48 = vld [vmem:[%s9209_s1 + $0x110] sm:$0xff]   ;;  %v6995_v50 = vld [vmem:[%s9209_s1 + $0x158] sm:$0xff]  }
  0x10   :  { %6250 = vmatpush3.bf16.msra.mxu0 %v6961_v14  ;;  %v6990_v45 = vld [vmem:[%s9209_s1 + $0x188] sm:$0xff]   ;;  %v6994_v49 = vld [vmem:[%s9209_s1 + $0x190] sm:$0xff]   ;;  %v6996_v51 = vld [vmem:[%s9209_s1 + $0x1d8] sm:$0xff]  }
  0x11   :  { %6272 = vmatpush3.bf16.msra.mxu1 %v6962_v15  ;;  %6251 = vmatprep.subr.bf16.mxu0 %v6963_v16  ;;  %v6997_v52 = vld [vmem:[%s9209_s1 + $0x118] sm:$0xff]   ;;  %v6999_v54 = vld [vmem:[%s9209_s1 + $0x160] sm:$0xff]   ;;  %v7003_v58 = vld [vmem:[%s9209_s1 + $0x168] sm:$0xff]  }
  0x12   :  { %6273 = vmatprep.subr.bf16.mxu1 %v6964_v17  ;;  %v6998_v53 = vld [vmem:[%s9209_s1 + $0x198] sm:$0xff]   ;;  %v7000_v55 = vld [vmem:[%s9209_s1 + $0x1e0] sm:$0xff]   ;;  %v7004_v59 = vld [vmem:[%s9209_s1 + $0x1e8] sm:$0xff]  }
  0x13   :  { %v7001_v56 = vld [vmem:[%s9209_s1 + $0x120] sm:$0xff]   ;;  %v7005_v60 = vld [vmem:[%s9209_s1 + $0x128] sm:$0xff]   ;;  %v7007_v62 = vld [vmem:[%s9209_s1 + $0x170] sm:$0xff]  }
  0x14   :  { %6252 = vmatpush3.bf16.msra.mxu0 %v6965_v18  ;;  %v7002_v57 = vld [vmem:[%s9209_s1 + $0x1a0] sm:$0xff]   ;;  %v7006_v61 = vld [vmem:[%s9209_s1 + $0x1a8] sm:$0xff]   ;;  %v7008_v63 = vld [vmem:[%s9209_s1 + $0x1f0] sm:$0xff]  }
  0x15   :  { %6274 = vmatpush3.bf16.msra.mxu1 %v6966_v19  ;;  %6253 = vmatprep.subr.bf16.mxu0 %v6967_v20  ;;  %v7009_v0 = vld [vmem:[%s9209_s1 + $0x130] sm:$0xff]   ;;  %v7011_v2 = vld [vmem:[%s9209_s1 + $0x178] sm:$0xff]   ;;  %v7019_v12 = vld [vmem:[%s9209_s1 + $0x240] sm:$0xff]  }
  0x16   :  { %6275 = vmatprep.subr.bf16.mxu1 %v6968_v21  ;;  %v7010_v1 = vld [vmem:[%s9209_s1 + $0x1b0] sm:$0xff]   ;;  %v7012_v3 = vld [vmem:[%s9209_s1 + $0x1f8] sm:$0xff]   ;;  %v7020_v13 = vld [vmem:[%s9209_s1 + $0x2c0] sm:$0xff]  }
  0x17   :  { %v7013_v4 = vld [vmem:[%s9209_s1 + $0x138] sm:$0xff]   ;;  %v17_v6 = vld [vmem:[%s9210_s0 + $0x10] sm:$0xff]  ;;  %v7021_v14 = vld [vmem:[%s9209_s1 + $0x200] sm:$0xff]  }
  0x18   :  { %6254 = vmatpush3.bf16.msra.mxu0 %v6969_v22  ;;  %v7014_v5 = vld [vmem:[%s9209_s1 + $0x1b8] sm:$0xff]   ;;  %v5670_v7 = vcombine.low %v17_v6, %v17_v6  ;;  %v5671_v8 = vcombine.high %v17_v6, %v17_v6  ;;  %v7022_v15 = vld [vmem:[%s9209_s1 + $0x280] sm:$0xff]   ;;  %v7023_v16 = vld [vmem:[%s9209_s1 + $0x248] sm:$0xff]  }
  0x19   :  { %6276 = vmatpush3.bf16.msra.mxu1 %v6970_v23  ;;  %6255 = vmatprep.subr.bf16.mxu0 %v6971_v24  ;;  %v18_v9 = vld [vmem:[%s9210_s0 + $0x18] sm:$0xff]  ;;  %v7024_v17 = vld [vmem:[%s9209_s1 + $0x2c8] sm:$0xff]   ;;  %v7027_v20 = vld [vmem:[%s9209_s1 + $0x250] sm:$0xff]  }
  0x1a   :  { %6277 = vmatprep.subr.bf16.mxu1 %v6972_v25  ;;  %v5672_v10 = vcombine.low %v18_v9, %v18_v9  ;;  %v5673_v11 = vcombine.high %v18_v9, %v18_v9  ;;  %v7025_v18 = vld [vmem:[%s9209_s1 + $0x208] sm:$0xff]   ;;  %v7028_v21 = vld [vmem:[%s9209_s1 + $0x2d0] sm:$0xff]   ;;  %v7031_v24 = vld [vmem:[%s9209_s1 + $0x258] sm:$0xff]  }
  0x1b   :  { %v7026_v19 = vld [vmem:[%s9209_s1 + $0x288] sm:$0xff]   ;;  %v7029_v22 = vld [vmem:[%s9209_s1 + $0x210] sm:$0xff]   ;;  %v7032_v25 = vld [vmem:[%s9209_s1 + $0x2d8] sm:$0xff]  }
  0x1c   :  { %6256 = vmatpush3.bf16.msra.mxu0 %v6973_v26  ;;  %v7030_v23 = vld [vmem:[%s9209_s1 + $0x290] sm:$0xff]   ;;  %v7033_v26 = vld [vmem:[%s9209_s1 + $0x218] sm:$0xff]   ;;  %v7039_v32 = vld [vmem:[%s9209_s1 + $0x268] sm:$0xff]  }
  0x1d   :  { %6278 = vmatpush3.bf16.msra.mxu1 %v6974_v27  ;;  %6257 = vmatprep.subr.bf16.mxu0 %v6975_v28  ;;  %v7034_v27 = vld [vmem:[%s9209_s1 + $0x298] sm:$0xff]   ;;  %v7035_v28 = vld [vmem:[%s9209_s1 + $0x260] sm:$0xff]   ;;  %v7040_v33 = vld [vmem:[%s9209_s1 + $0x2e8] sm:$0xff]  }
  0x1e   :  { %6279 = vmatprep.subr.bf16.mxu1 %v6976_v29  ;;  %v7036_v29 = vld [vmem:[%s9209_s1 + $0x2e0] sm:$0xff]   ;;  %v7042_v35 = vld [vmem:[%s9209_s1 + $0x2a8] sm:$0xff]   ;;  %v7044_v37 = vld [vmem:[%s9209_s1 + $0x2f0] sm:$0xff]  }
  0x1f   :  { %v7075_v6 = vld [vmem:[%s9209_s1 + $0x368] sm:$0xff]  }
  0x20   :  { %6258 = vmatpush3.bf16.msra.mxu0 %v6977_v30  ;;  %v7037_v30 = vld [vmem:[%s9209_s1 + $0x220] sm:$0xff]   ;;  %v7078_v9 = vld [vmem:[%s9209_s1 + $0x3a8] sm:$0xff]  }
  0x21   :  { %6280 = vmatpush3.bf16.msra.mxu1 %v6978_v31  ;;  %6287 = vmatprep.subr.bf16.mxu0 %v6983_v38  ;;  %v7038_v31 = vld [vmem:[%s9209_s1 + $0x2a0] sm:$0xff]   ;;  %v7045_v38 = vld [vmem:[%s9209_s1 + $0x230] sm:$0xff]  }
  0x22   :  { %6309 = vmatprep.subr.bf16.mxu1 %v6984_v39  ;;  %v7046_v39 = vld [vmem:[%s9209_s1 + $0x2b0] sm:$0xff]  }
  0x23   :  { %4407 = vmatmul.mubr.bf16.vlgmr.msra.gmra.mrb[0].mxu0 %v5666_v34  ;;  %v7041_v34 = vld [vmem:[%s9209_s1 + $0x228] sm:$0xff]  }
  0x24   :  { %4447 = vmatmul.mubr.bf16.vlgmr.msra.gmra.mrb[0].mxu1 %v5668_v36  ;;  %6288 = vmatpush3.bf16.msra.mxu0 %v6985_v40  ;;  %v7043_v36 = vld [vmem:[%s9209_s1 + $0x270] sm:$0xff]   ;;  %v7047_v40 = vld [vmem:[%s9209_s1 + $0x278] sm:$0xff]  }
  0x25   :  { %6310 = vmatpush3.bf16.msra.mxu1 %v6986_v41  ;;  %6289 = vmatprep.subr.bf16.mxu0 %v6987_v42  ;;  %v7048_v41 = vld [vmem:[%s9209_s1 + $0x2f8] sm:$0xff]  }
  0x26   :  { %6311 = vmatprep.subr.bf16.mxu1 %v6988_v43  ;;  %4486 = vmatprep.mubr.bf16.mxu0 %v5671_v8  ;;  %v7049_v42 = vld [vmem:[%s9209_s1 + $0x238] sm:$0xff]   ;;  %v7077_v8 = vld [vmem:[%s9209_s1 + $0x328] sm:$0xff]  }
  0x27   :  { %4526 = vmatprep.mubr.bf16.mxu1 %v5673_v11  ;;  %v7050_v43 = vld [vmem:[%s9209_s1 + $0x2b8] sm:$0xff]   ;;  %v7080_v11 = vld [vmem:[%s9209_s1 + $0x3f0] sm:$0xff]  }
  0x28   :  { %6290 = vmatpush3.bf16.msra.mxu0 %v6989_v44  ;;  %v19_v44 = vld [vmem:[%s9210_s0 + $0x20] sm:$0xff] }
  0x29   :  { %6312 = vmatpush3.bf16.msra.mxu1 %v6990_v45  ;;  %6291 = vmatprep.subr.bf16.mxu0 %v6991_v46  ;;  %v20_v45 = vld [vmem:[%s9210_s0 + $0x28] sm:$0xff]  ;;  %v5674_v46 = vcombine.low %v19_v44, %v19_v44 }
  0x2a   :  { %6313 = vmatprep.subr.bf16.mxu1 %v6992_v47  ;;  %v5675_v47 = vcombine.high %v19_v44, %v19_v44  ;;  %v7111_v44 = vld [vmem:[%s9209_s1 + $0x468] sm:$0xff]  }
  0x2c   :  { %6292 = vmatpush3.bf16.msra.mxu0 %v6993_v48  ;;  %v5676_v48 = vcombine.low %v20_v45, %v20_v45 }
  0x2d   :  { %6314 = vmatpush3.bf16.msra.mxu1 %v6994_v49  ;;  %6293 = vmatprep.subr.bf16.mxu0 %v6995_v50  ;;  %v5677_v49 = vcombine.high %v20_v45, %v20_v45  ;;  %v7055_v50 = vld [vmem:[%s9209_s1 + $0x340] sm:$0xff]   ;;  %v7112_v45 = vld [vmem:[%s9209_s1 + $0x4e8] sm:$0xff]  }
  0x2e   :  { %6315 = vmatprep.subr.bf16.mxu1 %v6996_v51  ;;  %v7056_v51 = vld [vmem:[%s9209_s1 + $0x3c0] sm:$0xff]  }
  0x30   :  { %6294 = vmatpush3.bf16.msra.mxu0 %v6997_v52  ;;  %v7057_v52 = vld [vmem:[%s9209_s1 + $0x300] sm:$0xff]  }
  0x31   :  { %6316 = vmatpush3.bf16.msra.mxu1 %v6998_v53  ;;  %6295 = vmatprep.subr.bf16.mxu0 %v6999_v54  ;;  %v7058_v53 = vld [vmem:[%s9209_s1 + $0x380] sm:$0xff]   ;;  %v7059_v54 = vld [vmem:[%s9209_s1 + $0x348] sm:$0xff]  }
  0x32   :  { %6317 = vmatprep.subr.bf16.mxu1 %v7000_v55  ;;  %v7060_v55 = vld [vmem:[%s9209_s1 + $0x3c8] sm:$0xff]  }
  0x34   :  { %6296 = vmatpush3.bf16.msra.mxu0 %v7001_v56  ;;  %v7061_v56 = vld [vmem:[%s9209_s1 + $0x308] sm:$0xff]  }
  0x35   :  { %6318 = vmatpush3.bf16.msra.mxu1 %v7002_v57  ;;  %6297 = vmatprep.subr.bf16.mxu0 %v7003_v58  ;;  %v7062_v57 = vld [vmem:[%s9209_s1 + $0x388] sm:$0xff]   ;;  %v7063_v58 = vld [vmem:[%s9209_s1 + $0x350] sm:$0xff]  }
  0x36   :  { %6319 = vmatprep.subr.bf16.mxu1 %v7004_v59  ;;  %v7064_v59 = vld [vmem:[%s9209_s1 + $0x3d0] sm:$0xff]  }
  0x38   :  { %6298 = vmatpush3.bf16.msra.mxu0 %v7005_v60  ;;  %v7065_v60 = vld [vmem:[%s9209_s1 + $0x310] sm:$0xff]  }
  0x39   :  { %6320 = vmatpush3.bf16.msra.mxu1 %v7006_v61  ;;  %6299 = vmatprep.subr.bf16.mxu0 %v7007_v62  ;;  %v7066_v61 = vld [vmem:[%s9209_s1 + $0x390] sm:$0xff]   ;;  %v7067_v62 = vld [vmem:[%s9209_s1 + $0x358] sm:$0xff]  }
  0x3a   :  { %6321 = vmatprep.subr.bf16.mxu1 %v7008_v63  ;;  %v7068_v63 = vld [vmem:[%s9209_s1 + $0x3d8] sm:$0xff]  }
  0x3c   :  { %6300 = vmatpush3.bf16.msra.mxu0 %v7009_v0  ;;  %v7069_v0 = vld [vmem:[%s9209_s1 + $0x318] sm:$0xff]  }
  0x3d   :  { %6322 = vmatpush3.bf16.msra.mxu1 %v7010_v1  ;;  %6301 = vmatprep.subr.bf16.mxu0 %v7011_v2  ;;  %v7070_v1 = vld [vmem:[%s9209_s1 + $0x398] sm:$0xff]   ;;  %v7071_v2 = vld [vmem:[%s9209_s1 + $0x360] sm:$0xff]  }
  0x3e   :  { %6323 = vmatprep.subr.bf16.mxu1 %v7012_v3  ;;  %v7072_v3 = vld [vmem:[%s9209_s1 + $0x3e0] sm:$0xff]  }
  0x40   :  { %6302 = vmatpush3.bf16.msra.mxu0 %v7013_v4  ;;  %v7073_v4 = vld [vmem:[%s9209_s1 + $0x320] sm:$0xff]  }
  0x41   :  { %6324 = vmatpush3.bf16.msra.mxu1 %v7014_v5  ;;  %6331 = vmatprep.subr.bf16.mxu0 %v7019_v12  ;;  %v7074_v5 = vld [vmem:[%s9209_s1 + $0x3a0] sm:$0xff]   ;;  %v7081_v12 = vld [vmem:[%s9209_s1 + $0x330] sm:$0xff]  }
  0x42   :  { %6353 = vmatprep.subr.bf16.mxu1 %v7020_v13  ;;  %v7082_v13 = vld [vmem:[%s9209_s1 + $0x3b0] sm:$0xff]  }
  0x43   :  { %4487 = vmatmul.mubr.bf16.vlgmr.msra.gmra.mrb[4].mxu0 %v5670_v7  ;;  %v7076_v7 = vld [vmem:[%s9209_s1 + $0x3e8] sm:$0xff]  }
  0x44   :  { %4527 = vmatmul.mubr.bf16.vlgmr.msra.gmra.mrb[4].mxu1 %v5672_v10  ;;  %6332 = vmatpush3.bf16.msra.mxu0 %v7021_v14  ;;  %v7079_v10 = vld [vmem:[%s9209_s1 + $0x370] sm:$0xff]   ;;  %v7083_v14 = vld [vmem:[%s9209_s1 + $0x378] sm:$0xff]  }
  0x45   :  { %6354 = vmatpush3.bf16.msra.mxu1 %v7022_v15  ;;  %6333 = vmatprep.subr.bf16.mxu0 %v7023_v16  ;;  %v7084_v15 = vld [vmem:[%s9209_s1 + $0x3f8] sm:$0xff]  }
  0x46   :  { %6355 = vmatprep.subr.bf16.mxu1 %v7024_v17  ;;  %4566 = vmatprep.mubr.bf16.mxu0 %v5675_v47  ;;  %v7085_v16 = vld [vmem:[%s9209_s1 + $0x338] sm:$0xff]   ;;  %v7114_v47 = vld [vmem:[%s9209_s1 + $0x4a8] sm:$0xff]  }
  0x47   :  { %4606 = vmatprep.mubr.bf16.mxu1 %v5677_v49  ;;  %v7086_v17 = vld [vmem:[%s9209_s1 + $0x3b8] sm:$0xff]   ;;  %v7116_v49 = vld [vmem:[%s9209_s1 + $0x4f0] sm:$0xff]  }
  0x48   :  { %6334 = vmatpush3.bf16.msra.mxu0 %v7025_v18  ;;  %v21_v18 = vld [vmem:[%s9210_s0 + $0x30] sm:$0xff] }
  0x49   :  { %6356 = vmatpush3.bf16.msra.mxu1 %v7026_v19  ;;  %6335 = vmatprep.subr.bf16.mxu0 %v7027_v20  ;;  %v22_v19 = vld [vmem:[%s9210_s0 + $0x38] sm:$0xff]  ;;  %v5678_v20 = vcombine.low %v21_v18, %v21_v18 }
  0x4a   :  { %6357 = vmatprep.subr.bf16.mxu1 %v7028_v21  ;;  %v5679_v21 = vcombine.high %v21_v18, %v21_v18  ;;  %v7147_v18 = vld [vmem:[%s9209_s1 + $0x568] sm:$0xff]  }
  0x4c   :  { %6336 = vmatpush3.bf16.msra.mxu0 %v7029_v22  ;;  %v5680_v22 = vcombine.low %v22_v19, %v22_v19 }
  0x4d   :  { %6358 = vmatpush3.bf16.msra.mxu1 %v7030_v23  ;;  %6337 = vmatprep.subr.bf16.mxu0 %v7031_v24  ;;  %v7091_v23 = vld [vmem:[%s9209_s1 + $0x440] sm:$0xff]   ;;  %v5681_v24 = vcombine.high %v22_v19, %v22_v19  ;;  %v7148_v19 = vld [vmem:[%s9209_s1 + $0x5e8] sm:$0xff]  }
  0x4e   :  { %6359 = vmatprep.subr.bf16.mxu1 %v7032_v25  ;;  %v7092_v25 = vld [vmem:[%s9209_s1 + $0x4c0] sm:$0xff]  }
  0x50   :  { %6338 = vmatpush3.bf16.msra.mxu0 %v7033_v26  ;;  %v7093_v26 = vld [vmem:[%s9209_s1 + $0x400] sm:$0xff]  }
  0x51   :  { %6360 = vmatpush3.bf16.msra.mxu1 %v7034_v27  ;;  %6339 = vmatprep.subr.bf16.mxu0 %v7035_v28  ;;  %v7094_v27 = vld [vmem:[%s9209_s1 + $0x480] sm:$0xff]   ;;  %v7095_v28 = vld [vmem:[%s9209_s1 + $0x448] sm:$0xff]  }
  0x52   :  { %6361 = vmatprep.subr.bf16.mxu1 %v7036_v29  ;;  %v7096_v29 = vld [vmem:[%s9209_s1 + $0x4c8] sm:$0xff]  }
  0x54   :  { %6340 = vmatpush3.bf16.msra.mxu0 %v7037_v30  ;;  %v7097_v30 = vld [vmem:[%s9209_s1 + $0x408] sm:$0xff]  }
  0x55   :  { %6362 = vmatpush3.bf16.msra.mxu1 %v7038_v31  ;;  %6341 = vmatprep.subr.bf16.mxu0 %v7039_v32  ;;  %v7098_v31 = vld [vmem:[%s9209_s1 + $0x488] sm:$0xff]   ;;  %v7099_v32 = vld [vmem:[%s9209_s1 + $0x450] sm:$0xff]  }
  0x56   :  { %6363 = vmatprep.subr.bf16.mxu1 %v7040_v33  ;;  %v7100_v33 = vld [vmem:[%s9209_s1 + $0x4d0] sm:$0xff]  }
  0x58   :  { %6342 = vmatpush3.bf16.msra.mxu0 %v7041_v34  ;;  %v7101_v34 = vld [vmem:[%s9209_s1 + $0x410] sm:$0xff]  }
  0x59   :  { %6364 = vmatpush3.bf16.msra.mxu1 %v7042_v35  ;;  %6343 = vmatprep.subr.bf16.mxu0 %v7043_v36  ;;  %v7102_v35 = vld [vmem:[%s9209_s1 + $0x490] sm:$0xff]   ;;  %v7103_v36 = vld [vmem:[%s9209_s1 + $0x458] sm:$0xff]  }
  0x5a   :  { %6365 = vmatprep.subr.bf16.mxu1 %v7044_v37  ;;  %v7104_v37 = vld [vmem:[%s9209_s1 + $0x4d8] sm:$0xff]  }
  0x5c   :  { %6344 = vmatpush3.bf16.msra.mxu0 %v7045_v38  ;;  %v7105_v38 = vld [vmem:[%s9209_s1 + $0x418] sm:$0xff]  }
  0x5d   :  { %6366 = vmatpush3.bf16.msra.mxu1 %v7046_v39  ;;  %6345 = vmatprep.subr.bf16.mxu0 %v7047_v40  ;;  %v7106_v39 = vld [vmem:[%s9209_s1 + $0x498] sm:$0xff]   ;;  %v7107_v40 = vld [vmem:[%s9209_s1 + $0x460] sm:$0xff]  }
  0x5e   :  { %6367 = vmatprep.subr.bf16.mxu1 %v7048_v41  ;;  %v7108_v41 = vld [vmem:[%s9209_s1 + $0x4e0] sm:$0xff]  }
  0x60   :  { %6346 = vmatpush3.bf16.msra.mxu0 %v7049_v42  ;;  %v7109_v42 = vld [vmem:[%s9209_s1 + $0x420] sm:$0xff]  }
  0x61   :  { %6368 = vmatpush3.bf16.msra.mxu1 %v7050_v43  ;;  %6375 = vmatprep.subr.bf16.mxu0 %v7055_v50  ;;  %v7110_v43 = vld [vmem:[%s9209_s1 + $0x4a0] sm:$0xff]   ;;  %v7117_v50 = vld [vmem:[%s9209_s1 + $0x430] sm:$0xff]  }
  0x62   :  { %6397 = vmatprep.subr.bf16.mxu1 %v7056_v51  ;;  %v7118_v51 = vld [vmem:[%s9209_s1 + $0x4b0] sm:$0xff]  }
  0x63   :  { %4567 = vmatmul.mubr.bf16.vlgmr.msra.gmra.mrb[8].mxu0 %v5674_v46  ;;  %v7113_v46 = vld [vmem:[%s9209_s1 + $0x428] sm:$0xff]  }
  0x64   :  { %4607 = vmatmul.mubr.bf16.vlgmr.msra.gmra.mrb[8].mxu1 %v5676_v48  ;;  %6376 = vmatpush3.bf16.msra.mxu0 %v7057_v52  ;;  %v7115_v48 = vld [vmem:[%s9209_s1 + $0x470] sm:$0xff]   ;;  %v7119_v52 = vld [vmem:[%s9209_s1 + $0x478] sm:$0xff]  }
  0x65   :  { %6398 = vmatpush3.bf16.msra.mxu1 %v7058_v53  ;;  %6377 = vmatprep.subr.bf16.mxu0 %v7059_v54  ;;  %v7120_v53 = vld [vmem:[%s9209_s1 + $0x4f8] sm:$0xff]  }
  0x66   :  { %6399 = vmatprep.subr.bf16.mxu1 %v7060_v55  ;;  %4646 = vmatprep.mubr.bf16.mxu0 %v5679_v21  ;;  %v7121_v54 = vld [vmem:[%s9209_s1 + $0x438] sm:$0xff]   ;;  %v7150_v21 = vld [vmem:[%s9209_s1 + $0x5a8] sm:$0xff]  }
  0x67   :  { %4686 = vmatprep.mubr.bf16.mxu1 %v5681_v24  ;;  %v7122_v55 = vld [vmem:[%s9209_s1 + $0x4b8] sm:$0xff]   ;;  %v7153_v24 = vld [vmem:[%s9209_s1 + $0x530] sm:$0xff]  }
  0x68   :  { %6378 = vmatpush3.bf16.msra.mxu0 %v7061_v56  ;;  %v23_v56 = vld [vmem:[%s9210_s0 + $0x40] sm:$0xff] }
  0x69   :  { %6400 = vmatpush3.bf16.msra.mxu1 %v7062_v57  ;;  %6379 = vmatprep.subr.bf16.mxu0 %v7063_v58  ;;  %v5682_v57 = vcombine.low %v23_v56, %v23_v56  ;;  %v5683_v58 = vcombine.high %v23_v56, %v23_v56  ;;  %v7183_v56 = vld [vmem:[%s9209_s1 + $0x668] sm:$0xff]  }
  0x6a   :  { %6401 = vmatprep.subr.bf16.mxu1 %v7064_v59  ;;  %v24_v59 = vld [vmem:[%s9210_s0 + $0x48] sm:$0xff] }
  0x6c   :  { %6380 = vmatpush3.bf16.msra.mxu0 %v7065_v60  ;;  %v5684_v60 = vcombine.low %v24_v59, %v24_v59 }
  0x6d   :  { %6402 = vmatpush3.bf16.msra.mxu1 %v7066_v61  ;;  %6381 = vmatprep.subr.bf16.mxu0 %v7067_v62  ;;  %v5685_v61 = vcombine.high %v24_v59, %v24_v59  ;;  %v7127_v62 = vld [vmem:[%s9209_s1 + $0x540] sm:$0xff]   ;;  %v7186_v59 = vld [vmem:[%s9209_s1 + $0x6a8] sm:$0xff]  }
  0x6e   :  { %6403 = vmatprep.subr.bf16.mxu1 %v7068_v63  ;;  %v7128_v63 = vld [vmem:[%s9209_s1 + $0x5c0] sm:$0xff]  }
  0x70   :  { %6382 = vmatpush3.bf16.msra.mxu0 %v7069_v0  ;;  %v7129_v0 = vld [vmem:[%s9209_s1 + $0x500] sm:$0xff]  }
  0x71   :  { %6404 = vmatpush3.bf16.msra.mxu1 %v7070_v1  ;;  %6383 = vmatprep.subr.bf16.mxu0 %v7071_v2  ;;  %v7130_v1 = vld [vmem:[%s9209_s1 + $0x580] sm:$0xff]   ;;  %v7131_v2 = vld [vmem:[%s9209_s1 + $0x548] sm:$0xff]  }
  0x72   :  { %6405 = vmatprep.subr.bf16.mxu1 %v7072_v3  ;;  %v7132_v3 = vld [vmem:[%s9209_s1 + $0x5c8] sm:$0xff]  }
  0x74   :  { %6384 = vmatpush3.bf16.msra.mxu0 %v7073_v4  ;;  %v7133_v4 = vld [vmem:[%s9209_s1 + $0x508] sm:$0xff]  }
  0x75   :  { %6406 = vmatpush3.bf16.msra.mxu1 %v7074_v5  ;;  %6385 = vmatprep.subr.bf16.mxu0 %v7075_v6  ;;  %v7134_v5 = vld [vmem:[%s9209_s1 + $0x588] sm:$0xff]   ;;  %v7135_v6 = vld [vmem:[%s9209_s1 + $0x550] sm:$0xff]  }
  0x76   :  { %6407 = vmatprep.subr.bf16.mxu1 %v7076_v7  ;;  %v7136_v7 = vld [vmem:[%s9209_s1 + $0x5d0] sm:$0xff]  }
  0x78   :  { %6386 = vmatpush3.bf16.msra.mxu0 %v7077_v8  ;;  %v7137_v8 = vld [vmem:[%s9209_s1 + $0x510] sm:$0xff]  }
  0x79   :  { %6408 = vmatpush3.bf16.msra.mxu1 %v7078_v9  ;;  %6387 = vmatprep.subr.bf16.mxu0 %v7079_v10  ;;  %v7138_v9 = vld [vmem:[%s9209_s1 + $0x590] sm:$0xff]   ;;  %v7139_v10 = vld [vmem:[%s9209_s1 + $0x558] sm:$0xff]  }
  0x7a   :  { %6409 = vmatprep.subr.bf16.mxu1 %v7080_v11  ;;  %v7140_v11 = vld [vmem:[%s9209_s1 + $0x5d8] sm:$0xff]  }
  0x7c   :  { %6388 = vmatpush3.bf16.msra.mxu0 %v7081_v12  ;;  %v7141_v12 = vld [vmem:[%s9209_s1 + $0x518] sm:$0xff]  }
  0x7d   :  { %6410 = vmatpush3.bf16.msra.mxu1 %v7082_v13  ;;  %6389 = vmatprep.subr.bf16.mxu0 %v7083_v14  ;;  %v7142_v13 = vld [vmem:[%s9209_s1 + $0x598] sm:$0xff]   ;;  %v7143_v14 = vld [vmem:[%s9209_s1 + $0x560] sm:$0xff]  }
  0x7e   :  { %6411 = vmatprep.subr.bf16.mxu1 %v7084_v15  ;;  %v7144_v15 = vld [vmem:[%s9209_s1 + $0x5e0] sm:$0xff]  }
  0x80   :  { %6390 = vmatpush3.bf16.msra.mxu0 %v7085_v16  ;;  %v7145_v16 = vld [vmem:[%s9209_s1 + $0x520] sm:$0xff]  }
  0x81   :  { %6412 = vmatpush3.bf16.msra.mxu1 %v7086_v17  ;;  %6419 = vmatprep.subr.bf16.mxu0 %v7091_v23  ;;  %v7146_v17 = vld [vmem:[%s9209_s1 + $0x5a0] sm:$0xff]   ;;  %v7152_v23 = vld [vmem:[%s9209_s1 + $0x5f0] sm:$0xff]  }
  0x82   :  { %6441 = vmatprep.subr.bf16.mxu1 %v7092_v25  ;;  %v7154_v25 = vld [vmem:[%s9209_s1 + $0x5b0] sm:$0xff]  }
  0x83   :  { %4647 = vmatmul.mubr.bf16.vlgmr.msra.gmra.mrb[12].mxu0 %v5678_v20  ;;  %v7149_v20 = vld [vmem:[%s9209_s1 + $0x528] sm:$0xff]  }
  0x84   :  { %4687 = vmatmul.mubr.bf16.vlgmr.msra.gmra.mrb[12].mxu1 %v5680_v22  ;;  %6420 = vmatpush3.bf16.msra.mxu0 %v7093_v26  ;;  %v7151_v22 = vld [vmem:[%s9209_s1 + $0x570] sm:$0xff]   ;;  %v7155_v26 = vld [vmem:[%s9209_s1 + $0x578] sm:$0xff]  }
  0x85   :  { %6442 = vmatpush3.bf16.msra.mxu1 %v7094_v27  ;;  %6421 = vmatprep.subr.bf16.mxu0 %v7095_v28  ;;  %v7156_v27 = vld [vmem:[%s9209_s1 + $0x5f8] sm:$0xff]  }
  0x86   :  { %6443 = vmatprep.subr.bf16.mxu1 %v7096_v29  ;;  %4726 = vmatprep.mubr.bf16.mxu0 %v5683_v58  ;;  %v7157_v28 = vld [vmem:[%s9209_s1 + $0x538] sm:$0xff]   ;;  %v7185_v58 = vld [vmem:[%s9209_s1 + $0x628] sm:$0xff]  }
  0x87   :  { %4766 = vmatprep.mubr.bf16.mxu1 %v5685_v61  ;;  %v7158_v29 = vld [vmem:[%s9209_s1 + $0x5b8] sm:$0xff]   ;;  %v7188_v61 = vld [vmem:[%s9209_s1 + $0x6f0] sm:$0xff]  }
  0x88   :  { %6422 = vmatpush3.bf16.msra.mxu0 %v7097_v30  ;;  %v25_v30 = vld [vmem:[%s9210_s0 + $0x50] sm:$0xff] }
  0x89   :  { %6444 = vmatpush3.bf16.msra.mxu1 %v7098_v31  ;;  %6423 = vmatprep.subr.bf16.mxu0 %v7099_v32  ;;  %v26_v31 = vld [vmem:[%s9210_s0 + $0x58] sm:$0xff]  ;;  %v5686_v32 = vcombine.low %v25_v30, %v25_v30 }
  0x8a   :  { %6445 = vmatprep.subr.bf16.mxu1 %v7100_v33  ;;  %v5687_v33 = vcombine.high %v25_v30, %v25_v30  ;;  %v7218_v30 = vld [vmem:[%s9209_s1 + $0x7a0] sm:$0xff]  }
  0x8c   :  { %6424 = vmatpush3.bf16.msra.mxu0 %v7101_v34  ;;  %v5688_v34 = vcombine.low %v26_v31, %v26_v31 }
  0x8d   :  { %6446 = vmatpush3.bf16.msra.mxu1 %v7102_v35  ;;  %6425 = vmatprep.subr.bf16.mxu0 %v7103_v36  ;;  %v5689_v35 = vcombine.high %v26_v31, %v26_v31  ;;  %v7163_v36 = vld [vmem:[%s9209_s1 + $0x640] sm:$0xff]  }
  0x8e   :  { %6447 = vmatprep.subr.bf16.mxu1 %v7104_v37  ;;  %v7164_v37 = vld [vmem:[%s9209_s1 + $0x6c0] sm:$0xff]  }
  0x90   :  { %6426 = vmatpush3.bf16.msra.mxu0 %v7105_v38  ;;  %v7165_v38 = vld [vmem:[%s9209_s1 + $0x600] sm:$0xff]  }
  0x91   :  { %6448 = vmatpush3.bf16.msra.mxu1 %v7106_v39  ;;  %6427 = vmatprep.subr.bf16.mxu0 %v7107_v40  ;;  %v7166_v39 = vld [vmem:[%s9209_s1 + $0x680] sm:$0xff]   ;;  %v7167_v40 = vld [vmem:[%s9209_s1 + $0x648] sm:$0xff]  }
  0x92   :  { %6449 = vmatprep.subr.bf16.mxu1 %v7108_v41  ;;  %v7168_v41 = vld [vmem:[%s9209_s1 + $0x6c8] sm:$0xff]  }
  0x94   :  { %6428 = vmatpush3.bf16.msra.mxu0 %v7109_v42  ;;  %v7169_v42 = vld [vmem:[%s9209_s1 + $0x608] sm:$0xff]  }
  0x95   :  { %6450 = vmatpush3.bf16.msra.mxu1 %v7110_v43  ;;  %6429 = vmatprep.subr.bf16.mxu0 %v7111_v44  ;;  %v7170_v43 = vld [vmem:[%s9209_s1 + $0x688] sm:$0xff]   ;;  %v7171_v44 = vld [vmem:[%s9209_s1 + $0x650] sm:$0xff]  }
  0x96   :  { %6451 = vmatprep.subr.bf16.mxu1 %v7112_v45  ;;  %v7172_v45 = vld [vmem:[%s9209_s1 + $0x6d0] sm:$0xff]  }
  0x98   :  { %6430 = vmatpush3.bf16.msra.mxu0 %v7113_v46  ;;  %v7173_v46 = vld [vmem:[%s9209_s1 + $0x610] sm:$0xff]  }
  0x99   :  { %6452 = vmatpush3.bf16.msra.mxu1 %v7114_v47  ;;  %6431 = vmatprep.subr.bf16.mxu0 %v7115_v48  ;;  %v7174_v47 = vld [vmem:[%s9209_s1 + $0x690] sm:$0xff]   ;;  %v7175_v48 = vld [vmem:[%s9209_s1 + $0x658] sm:$0xff]  }
  0x9a   :  { %6453 = vmatprep.subr.bf16.mxu1 %v7116_v49  ;;  %v7176_v49 = vld [vmem:[%s9209_s1 + $0x6d8] sm:$0xff]  }
  0x9c   :  { %6432 = vmatpush3.bf16.msra.mxu0 %v7117_v50  ;;  %v7177_v50 = vld [vmem:[%s9209_s1 + $0x618] sm:$0xff]  }
  0x9d   :  { %6454 = vmatpush3.bf16.msra.mxu1 %v7118_v51  ;;  %6433 = vmatprep.subr.bf16.mxu0 %v7119_v52  ;;  %v7178_v51 = vld [vmem:[%s9209_s1 + $0x698] sm:$0xff]   ;;  %v7179_v52 = vld [vmem:[%s9209_s1 + $0x660] sm:$0xff]  }
  0x9e   :  { %6455 = vmatprep.subr.bf16.mxu1 %v7120_v53  ;;  %v7180_v53 = vld [vmem:[%s9209_s1 + $0x6e0] sm:$0xff]  }
  0xa0   :  { %6434 = vmatpush3.bf16.msra.mxu0 %v7121_v54  ;;  %v7181_v54 = vld [vmem:[%s9209_s1 + $0x620] sm:$0xff]  }
  0xa1   :  { %6456 = vmatpush3.bf16.msra.mxu1 %v7122_v55  ;;  %6463 = vmatprep.subr.bf16.mxu0 %v7127_v62  ;;  %v7182_v55 = vld [vmem:[%s9209_s1 + $0x6a0] sm:$0xff]   ;;  %v7189_v62 = vld [vmem:[%s9209_s1 + $0x630] sm:$0xff]  }
  0xa2   :  { %6485 = vmatprep.subr.bf16.mxu1 %v7128_v63  ;;  %v7190_v63 = vld [vmem:[%s9209_s1 + $0x6b0] sm:$0xff]  }
  0xa3   :  { %4727 = vmatmul.mubr.bf16.vlgmr.msra.gmra.mrb[16].mxu0 %v5682_v57  ;;  %v7184_v57 = vld [vmem:[%s9209_s1 + $0x6e8] sm:$0xff]  }
  0xa4   :  { %4767 = vmatmul.mubr.bf16.vlgmr.msra.gmra.mrb[16].mxu1 %v5684_v60  ;;  %6464 = vmatpush3.bf16.msra.mxu0 %v7129_v0  ;;  %v7187_v60 = vld [vmem:[%s9209_s1 + $0x670] sm:$0xff]   ;;  %v7191_v0 = vld [vmem:[%s9209_s1 + $0x678] sm:$0xff]  }
  0xa5   :  { %6486 = vmatpush3.bf16.msra.mxu1 %v7130_v1  ;;  %6465 = vmatprep.subr.bf16.mxu0 %v7131_v2  ;;  %v7192_v1 = vld [vmem:[%s9209_s1 + $0x6f8] sm:$0xff]  }
  0xa6   :  { %6487 = vmatprep.subr.bf16.mxu1 %v7132_v3  ;;  %4806 = vmatprep.mubr.bf16.mxu0 %v5687_v33  ;;  %v7193_v2 = vld [vmem:[%s9209_s1 + $0x638] sm:$0xff]  }
  0xa7   :  { %4846 = vmatprep.mubr.bf16.mxu1 %v5689_v35  ;;  %v7194_v3 = vld [vmem:[%s9209_s1 + $0x6b8] sm:$0xff]  }
  0xa8   :  { %6466 = vmatpush3.bf16.msra.mxu0 %v7133_v4  ;;  %v27_v4 = vld [vmem:[%s9210_s0 + $0x60] sm:$0xff] }
  0xa9   :  { %6488 = vmatpush3.bf16.msra.mxu1 %v7134_v5  ;;  %6467 = vmatprep.subr.bf16.mxu0 %v7135_v6  ;;  %v28_v5 = vld [vmem:[%s9210_s0 + $0x68] sm:$0xff]  ;;  %v5690_v6 = vcombine.low %v27_v4, %v27_v4 }
  0xaa   :  { %6489 = vmatprep.subr.bf16.mxu1 %v7136_v7  ;;  %v5691_v7 = vcombine.high %v27_v4, %v27_v4  ;;  %v7242_v4 = vld [vmem:[%s9209_s1 + $0x888] sm:$0xff]  }
  0xac   :  { %6468 = vmatpush3.bf16.msra.mxu0 %v7137_v8  ;;  %v5692_v8 = vcombine.low %v28_v5, %v28_v5 }
  0xad   :  { %6490 = vmatpush3.bf16.msra.mxu1 %v7138_v9  ;;  %6469 = vmatprep.subr.bf16.mxu0 %v7139_v10  ;;  %v7199_v9 = vld [vmem:[%s9209_s1 + $0x740] sm:$0xff]   ;;  %v5693_v10 = vcombine.high %v28_v5, %v28_v5  ;;  %v7243_v5 = vld [vmem:[%s9209_s1 + $0x850] sm:$0xff]  }
  0xae   :  { %6491 = vmatprep.subr.bf16.mxu1 %v7140_v11  ;;  %v7200_v11 = vld [vmem:[%s9209_s1 + $0x7c0] sm:$0xff]  }
  0xb0   :  { %6470 = vmatpush3.bf16.msra.mxu0 %v7141_v12  ;;  %v7201_v12 = vld [vmem:[%s9209_s1 + $0x700] sm:$0xff]  }
  0xb1   :  { %6492 = vmatpush3.bf16.msra.mxu1 %v7142_v13  ;;  %6471 = vmatprep.subr.bf16.mxu0 %v7143_v14  ;;  %v7202_v13 = vld [vmem:[%s9209_s1 + $0x780] sm:$0xff]   ;;  %v7203_v14 = vld [vmem:[%s9209_s1 + $0x748] sm:$0xff]  }
  0xb2   :  { %6493 = vmatprep.subr.bf16.mxu1 %v7144_v15  ;;  %v7204_v15 = vld [vmem:[%s9209_s1 + $0x7c8] sm:$0xff]  }
  0xb4   :  { %6472 = vmatpush3.bf16.msra.mxu0 %v7145_v16  ;;  %v7205_v16 = vld [vmem:[%s9209_s1 + $0x708] sm:$0xff]  }
  0xb5   :  { %6494 = vmatpush3.bf16.msra.mxu1 %v7146_v17  ;;  %6473 = vmatprep.subr.bf16.mxu0 %v7147_v18  ;;  %v7206_v17 = vld [vmem:[%s9209_s1 + $0x788] sm:$0xff]   ;;  %v7207_v18 = vld [vmem:[%s9209_s1 + $0x750] sm:$0xff]  }
  0xb6   :  { %6495 = vmatprep.subr.bf16.mxu1 %v7148_v19  ;;  %v7208_v19 = vld [vmem:[%s9209_s1 + $0x7d0] sm:$0xff]  }
  0xb8   :  { %6474 = vmatpush3.bf16.msra.mxu0 %v7149_v20  ;;  %v7209_v20 = vld [vmem:[%s9209_s1 + $0x710] sm:$0xff]  }
  0xb9   :  { %6496 = vmatpush3.bf16.msra.mxu1 %v7150_v21  ;;  %6475 = vmatprep.subr.bf16.mxu0 %v7151_v22  ;;  %v7210_v21 = vld [vmem:[%s9209_s1 + $0x790] sm:$0xff]   ;;  %v7211_v22 = vld [vmem:[%s9209_s1 + $0x758] sm:$0xff]  }
  0xba   :  { %6497 = vmatprep.subr.bf16.mxu1 %v7152_v23  ;;  %v7212_v23 = vld [vmem:[%s9209_s1 + $0x7d8] sm:$0xff]  }
  0xbc   :  { %6476 = vmatpush3.bf16.msra.mxu0 %v7153_v24  ;;  %v7213_v24 = vld [vmem:[%s9209_s1 + $0x718] sm:$0xff]  }
  0xbd   :  { %6498 = vmatpush3.bf16.msra.mxu1 %v7154_v25  ;;  %6477 = vmatprep.subr.bf16.mxu0 %v7155_v26  ;;  %v7214_v25 = vld [vmem:[%s9209_s1 + $0x798] sm:$0xff]   ;;  %v7215_v26 = vld [vmem:[%s9209_s1 + $0x760] sm:$0xff]  }
  0xbe   :  { %6499 = vmatprep.subr.bf16.mxu1 %v7156_v27  ;;  %v7216_v27 = vld [vmem:[%s9209_s1 + $0x7e0] sm:$0xff]  }
  0xc0   :  { %6478 = vmatpush3.bf16.msra.mxu0 %v7157_v28  ;;  %v7217_v28 = vld [vmem:[%s9209_s1 + $0x720] sm:$0xff]  }
  0xc1   :  { %6500 = vmatpush3.bf16.msra.mxu1 %v7158_v29  ;;  %6507 = vmatprep.subr.bf16.mxu0 %v7163_v36 }
  0xc2   :  { %6529 = vmatprep.subr.bf16.mxu1 %v7164_v37  ;;  %v7219_v37 = vld [vmem:[%s9209_s1 + $0x768] sm:$0xff]  }
  0xc3   :  { %4807 = vmatmul.mubr.bf16.vlgmr.msra.gmra.mrb[20].mxu0 %v5686_v32  ;;  %v5665_v32 = vld [vmem:[%s9211_s2] ss:$0 sm:$0xff] }
  0xc4   :  { %4847 = vmatmul.mubr.bf16.vlgmr.msra.gmra.mrb[20].mxu1 %v5688_v34  ;;  %6508 = vmatpush3.bf16.msra.mxu0 %v7165_v38 }
  0xc5   :  { %6530 = vmatpush3.bf16.msra.mxu1 %v7166_v39  ;;  %6509 = vmatprep.subr.bf16.mxu0 %v7167_v40  ;;  %v7220_v39 = vld [vmem:[%s9209_s1 + $0x7e8] sm:$0xff]  }
  0xc6   :  { %6531 = vmatprep.subr.bf16.mxu1 %v7168_v41  ;;  %4886 = vmatprep.mubr.bf16.mxu0 %v5691_v7  ;;  %v7245_v7 = vld [vmem:[%s9209_s1 + $0x810] sm:$0xff]  }
  0xc7   :  { %4926 = vmatprep.mubr.bf16.mxu1 %v5693_v10  ;;  %v7248_v10 = vld [vmem:[%s9209_s1 + $0x8d8] sm:$0xff]  }
  0xc8   :  { %6510 = vmatpush3.bf16.msra.mxu0 %v7169_v42  ;;  %v7221_v42 = vld [vmem:[%s9209_s1 + $0x728] sm:$0xff]  }
  0xc9   :  { %6532 = vmatpush3.bf16.msra.mxu1 %v7170_v43  ;;  %6511 = vmatprep.subr.bf16.mxu0 %v7171_v44  ;;  %v7222_v44 = vld [vmem:[%s9209_s1 + $0x7a8] sm:$0xff]  }
  0xca   :  { %6533 = vmatprep.subr.bf16.mxu1 %v7172_v45 }
  0xcc   :  { %6512 = vmatpush3.bf16.msra.mxu0 %v7173_v46 }
  0xcd   :  { %6534 = vmatpush3.bf16.msra.mxu1 %v7174_v47  ;;  %6513 = vmatprep.subr.bf16.mxu0 %v7175_v48  ;;  %v7223_v47 = vld [vmem:[%s9209_s1 + $0x770] sm:$0xff]  }
  0xce   :  { %6535 = vmatprep.subr.bf16.mxu1 %v7176_v49  ;;  %v7224_v48 = vld [vmem:[%s9209_s1 + $0x7f0] sm:$0xff]  }
  0xcf   :  { %v7225_v49 = vld [vmem:[%s9209_s1 + $0x730] sm:$0xff]  }
  0xd0   :  { %6514 = vmatpush3.bf16.msra.mxu0 %v7177_v50  ;;  %v7226_v50 = vld [vmem:[%s9209_s1 + $0x7b0] sm:$0xff]  }
  0xd1   :  { %6536 = vmatpush3.bf16.msra.mxu1 %v7178_v51  ;;  %6515 = vmatprep.subr.bf16.mxu0 %v7179_v52  ;;  %v7227_v51 = vld [vmem:[%s9209_s1 + $0x778] sm:$0xff]  }
  0xd2   :  { %6537 = vmatprep.subr.bf16.mxu1 %v7180_v53  ;;  %v7228_v52 = vld [vmem:[%s9209_s1 + $0x7f8] sm:$0xff]  }
  0xd3   :  { %v7229_v53 = vld [vmem:[%s9209_s1 + $0x738] sm:$0xff]  }
  0xd4   :  { %6516 = vmatpush3.bf16.msra.mxu0 %v7181_v54  ;;  %v7230_v54 = vld [vmem:[%s9209_s1 + $0x7b8] sm:$0xff]  }
  0xd5   :  { %6538 = vmatpush3.bf16.msra.mxu1 %v7182_v55  ;;  %6517 = vmatprep.subr.bf16.mxu0 %v7183_v56  ;;  %v29_v55 = vld [vmem:[%s9210_s0 + $0x70] sm:$0xff]  ;;  %v30_v56 = vld [vmem:[%s9210_s0 + $0x78] sm:$0xff] }
  0xd6   :  { %6539 = vmatprep.subr.bf16.mxu1 %v7184_v57  ;;  %v5694_v57 = vcombine.low %v29_v55, %v29_v55 }
  0xd8   :  { %6518 = vmatpush3.bf16.msra.mxu0 %v7185_v58  ;;  %v5695_v58 = vcombine.high %v29_v55, %v29_v55  ;;  %v7279_v55 = vld [vmem:[%s9209_s1 + $0x950] sm:$0xff]  }
  0xd9   :  { %6540 = vmatpush3.bf16.msra.mxu1 %v7186_v59  ;;  %6519 = vmatprep.subr.bf16.mxu0 %v7187_v60  ;;  %v5696_v59 = vcombine.low %v30_v56, %v30_v56  ;;  %v5697_v60 = vcombine.high %v30_v56, %v30_v56  ;;  %v7280_v56 = vld [vmem:[%s9209_s1 + $0x9d0] sm:$0xff]  }
  0xda   :  { %6541 = vmatprep.subr.bf16.mxu1 %v7188_v61  ;;  %v7235_v61 = vld [vmem:[%s9209_s1 + $0x840] sm:$0xff]  }
  0xdc   :  { %6520 = vmatpush3.bf16.msra.mxu0 %v7189_v62  ;;  %v7236_v62 = vld [vmem:[%s9209_s1 + $0x8c0] sm:$0xff]  }
  0xdd   :  { %6542 = vmatpush3.bf16.msra.mxu1 %v7190_v63  ;;  %6521 = vmatprep.subr.bf16.mxu0 %v7191_v0  ;;  %v7237_v63 = vld [vmem:[%s9209_s1 + $0x800] sm:$0xff]  }
  0xde   :  { %6543 = vmatprep.subr.bf16.mxu1 %v7192_v1  ;;  %v7238_v0 = vld [vmem:[%s9209_s1 + $0x880] sm:$0xff]   ;;  %v7239_v1 = vld [vmem:[%s9209_s1 + $0x848] sm:$0xff]  }
  0xe0   :  { %6522 = vmatpush3.bf16.msra.mxu0 %v7193_v2  ;;  %v7240_v2 = vld [vmem:[%s9209_s1 + $0x8c8] sm:$0xff]  }
  0xe1   :  { %6544 = vmatpush3.bf16.msra.mxu1 %v7194_v3  ;;  %6551 = vmatprep.subr.bf16.mxu0 %v7199_v9  ;;  %v7241_v3 = vld [vmem:[%s9209_s1 + $0x808] sm:$0xff]   ;;  %v7247_v9 = vld [vmem:[%s9209_s1 + $0x858] sm:$0xff]  }
  0xe2   :  { %6573 = vmatprep.subr.bf16.mxu1 %v7200_v11  ;;  %v7249_v11 = vld [vmem:[%s9209_s1 + $0x818] sm:$0xff]  }
  0xe3   :  { %4887 = vmatmul.mubr.bf16.vlgmr.msra.gmra.mrb[24].mxu0 %v5690_v6  ;;  %v7244_v6 = vld [vmem:[%s9209_s1 + $0x8d0] sm:$0xff]  }
  0xe4   :  { %4927 = vmatmul.mubr.bf16.vlgmr.msra.gmra.mrb[24].mxu1 %v5692_v8  ;;  %6552 = vmatpush3.bf16.msra.mxu0 %v7201_v12  ;;  %v7246_v8 = vld [vmem:[%s9209_s1 + $0x890] sm:$0xff]   ;;  %v7250_v12 = vld [vmem:[%s9209_s1 + $0x898] sm:$0xff]  }
  0xe5   :  { %6574 = vmatpush3.bf16.msra.mxu1 %v7202_v13  ;;  %6553 = vmatprep.subr.bf16.mxu0 %v7203_v14  ;;  %v7251_v13 = vld [vmem:[%s9209_s1 + $0x860] sm:$0xff]  }
  0xe6   :  { %6575 = vmatprep.subr.bf16.mxu1 %v7204_v15  ;;  %4966 = vmatprep.mubr.bf16.mxu0 %v5695_v58  ;;  %v7252_v14 = vld [vmem:[%s9209_s1 + $0x8e0] sm:$0xff]   ;;  %v7282_v58 = vld [vmem:[%s9209_s1 + $0x990] sm:$0xff]  }
  0xe7   :  { %5006 = vmatprep.mubr.bf16.mxu1 %v5697_v60  ;;  %v7253_v15 = vld [vmem:[%s9209_s1 + $0x820] sm:$0xff]   ;;  %v7284_v60 = vld [vmem:[%s9209_s1 + $0x9d8] sm:$0xff]  }
  0xe8   :  { %6554 = vmatpush3.bf16.msra.mxu0 %v7205_v16 }
  0xe9   :  { %6576 = vmatpush3.bf16.msra.mxu1 %v7206_v17  ;;  %6555 = vmatprep.subr.bf16.mxu0 %v7207_v18  ;;  %v7254_v17 = vld [vmem:[%s9209_s1 + $0x8a0] sm:$0xff]  }
  0xea   :  { %6577 = vmatprep.subr.bf16.mxu1 %v7208_v19 }
  0xec   :  { %6556 = vmatpush3.bf16.msra.mxu0 %v7209_v20 }
  0xed   :  { %6578 = vmatpush3.bf16.msra.mxu1 %v7210_v21  ;;  %6557 = vmatprep.subr.bf16.mxu0 %v7211_v22 }
  0xee   :  { %6579 = vmatprep.subr.bf16.mxu1 %v7212_v23  ;;  %v7255_v23 = vld [vmem:[%s9209_s1 + $0x868] sm:$0xff]  }
  0xf0   :  { %6558 = vmatpush3.bf16.msra.mxu0 %v7213_v24 }
  0xf1   :  { %6580 = vmatpush3.bf16.msra.mxu1 %v7214_v25  ;;  %6559 = vmatprep.subr.bf16.mxu0 %v7215_v26  ;;  %v7256_v25 = vld [vmem:[%s9209_s1 + $0x8e8] sm:$0xff]  }
  0xf2   :  { %6581 = vmatprep.subr.bf16.mxu1 %v7216_v27 }
  0xf4   :  { %6560 = vmatpush3.bf16.msra.mxu0 %v7217_v28  ;;  %v7257_v28 = vld [vmem:[%s9209_s1 + $0x828] sm:$0xff]  }
  0xf5   :  { %6582 = vmatpush3.bf16.msra.mxu1 %v7218_v30  ;;  %6561 = vmatprep.subr.bf16.mxu0 %v7219_v37  ;;  %v7258_v30 = vld [vmem:[%s9209_s1 + $0x8a8] sm:$0xff]   ;;  %v7263_v37 = vld [vmem:[%s9209_s1 + $0x878] sm:$0xff]  }
  0xf6   :  { %v6259_v29 = vpop.f32.mrb[0].mxu0  ;;  %6583 = vmatprep.subr.bf16.mxu1 %v7220_v39  ;;  %v7265_v39 = vld [vmem:[%s9209_s1 + $0x838] sm:$0xff]  }
  0xf7   :  { %v6281_v31 = vpop.f32.mrb[0].mxu1  ;;  %v6260_v33 = vpop.f32.mrb[1].mxu0 }
  0xf8   :  { %v6282_v34 = vpop.f32.mrb[1].mxu1  ;;  %v6261_v35 = vadd.f32 %v6260_v33, %v6259_v29  ;;  %v6262_v38 = vpop.f32.mrb[2].mxu0  ;;  %6562 = vmatpush3.bf16.msra.mxu0 %v7221_v42  ;;  %v7259_v33 = vld [vmem:[%s9209_s1 + $0x870] sm:$0xff]   ;;  %v32_v42 = vld [vmem:[%s9210_s0 + $0x88] sm:$0xff] }
  0xf9   :  { %v6283_v36 = vadd.f32 %v6282_v34, %v6281_v31  ;;  %v6284_v40 = vpop.f32.mrb[2].mxu1  ;;  %v6263_v43 = vpop.f32.mrb[3].mxu0  ;;  %6584 = vmatpush3.bf16.msra.mxu1 %v7222_v44  ;;  %6563 = vmatprep.subr.bf16.mxu0 %v7223_v47  ;;  %v7260_v34 = vld [vmem:[%s9209_s1 + $0x8f0] sm:$0xff]   ;;  %v7264_v38 = vld [vmem:[%s9209_s1 + $0x8f8] sm:$0xff]   ;;  %v7271_v47 = vld [vmem:[%s9209_s1 + $0x940] sm:$0xff]  }
  0xfa   :  { %v4409_v41 = vadd.f32 %v6261_v35, %v5665_v32  ;;  %v6285_v45 = vpop.f32.mrb[3].mxu1  ;;  %6585 = vmatprep.subr.bf16.mxu1 %v7224_v48  ;;  %v7261_v35 = vld [vmem:[%s9209_s1 + $0x830] sm:$0xff]   ;;  %v7266_v40 = vld [vmem:[%s9209_s1 + $0x8b8] sm:$0xff]   ;;  %v7272_v48 = vld [vmem:[%s9209_s1 + $0x9c0] sm:$0xff]  }
  0xfb   :  { %v5700_v45 = vcombine.low %v32_v42, %v32_v42 }
  0xfc   :  { %v8336_v46 = vadd.f32 %v6283_v36, %v4409_v41  ;;  %6564 = vmatpush3.bf16.msra.mxu0 %v7225_v49  ;;  %v7262_v36 = vld [vmem:[%s9209_s1 + $0x8b0] sm:$0xff]   ;;  %v31_v41 = vld [vmem:[%s9210_s0 + $0x80] sm:$0xff] }
  0xfd   :  { %6586 = vmatpush3.bf16.msra.mxu1 %v7226_v50  ;;  %6565 = vmatprep.subr.bf16.mxu0 %v7227_v51  ;;  %v5698_v43 = vcombine.low %v31_v41, %v31_v41  ;;  %v5699_v44 = vcombine.high %v31_v41, %v31_v41  ;;  %v7273_v49 = vld [vmem:[%s9209_s1 + $0x900] sm:$0xff]   ;;  %v7275_v51 = vld [vmem:[%s9209_s1 + $0x948] sm:$0xff]   ;;  %v7315_v41 = vld [vmem:[%s9209_s1 + $0xa50] sm:$0xff]  }
  0xfe   :  { %6587 = vmatprep.subr.bf16.mxu1 %v7228_v52  ;;  %v7274_v50 = vld [vmem:[%s9209_s1 + $0x980] sm:$0xff]   ;;  %v7276_v52 = vld [vmem:[%s9209_s1 + $0x9c8] sm:$0xff]  }
 0x100   :  { %6566 = vmatpush3.bf16.msra.mxu0 %v7229_v53  ;;  %v7277_v53 = vld [vmem:[%s9209_s1 + $0x908] sm:$0xff]  }
 0x101   :  { %6588 = vmatpush3.bf16.msra.mxu1 %v7230_v54  ;;  %6595 = vmatprep.subr.bf16.mxu0 %v7235_v61  ;;  %v7278_v54 = vld [vmem:[%s9209_s1 + $0x988] sm:$0xff]   ;;  %v7285_v61 = vld [vmem:[%s9209_s1 + $0x918] sm:$0xff]  }
 0x102   :  { %6617 = vmatprep.subr.bf16.mxu1 %v7236_v62  ;;  %v7286_v62 = vld [vmem:[%s9209_s1 + $0x998] sm:$0xff]  }
 0x103   :  { %4967 = vmatmul.mubr.bf16.vlgmr.msra.gmra.mrb[28].mxu0 %v5694_v57  ;;  %v7281_v57 = vld [vmem:[%s9209_s1 + $0x910] sm:$0xff]  }
 0x104   :  { %5007 = vmatmul.mubr.bf16.vlgmr.msra.gmra.mrb[28].mxu1 %v5696_v59  ;;  %6596 = vmatpush3.bf16.msra.mxu0 %v7237_v63  ;;  %v7283_v59 = vld [vmem:[%s9209_s1 + $0x958] sm:$0xff]   ;;  %v7287_v63 = vld [vmem:[%s9209_s1 + $0x960] sm:$0xff]  }
 0x105   :  { %6618 = vmatpush3.bf16.msra.mxu1 %v7238_v0  ;;  %6597 = vmatprep.subr.bf16.mxu0 %v7239_v1  ;;  %v7288_v0 = vld [vmem:[%s9209_s1 + $0x9e0] sm:$0xff]  }
 0x106   :  { %6619 = vmatprep.subr.bf16.mxu1 %v7240_v2  ;;  %5046 = vmatprep.mubr.bf16.mxu0 %v5699_v44  ;;  %v7289_v2 = vld [vmem:[%s9209_s1 + $0x920] sm:$0xff]   ;;  %v7318_v44 = vld [vmem:[%s9209_s1 + $0xa90] sm:$0xff]  }
 0x108   :  { %6598 = vmatpush3.bf16.msra.mxu0 %v7241_v3 }
 0x109   :  { %6620 = vmatpush3.bf16.msra.mxu1 %v7242_v4  ;;  %6599 = vmatprep.subr.bf16.mxu0 %v7243_v5  ;;  %v7290_v4 = vld [vmem:[%s9209_s1 + $0x9a0] sm:$0xff]  }
 0x10a   :  { %6621 = vmatprep.subr.bf16.mxu1 %v7244_v6 }
 0x10c   :  { %6600 = vmatpush3.bf16.msra.mxu0 %v7245_v7 }
 0x10d   :  { %6622 = vmatpush3.bf16.msra.mxu1 %v7246_v8  ;;  %6601 = vmatprep.subr.bf16.mxu0 %v7247_v9  ;;  %v7291_v8 = vld [vmem:[%s9209_s1 + $0x968] sm:$0xff]  }
 0x10e   :  { %6623 = vmatprep.subr.bf16.mxu1 %v7248_v10  ;;  %v7292_v10 = vld [vmem:[%s9209_s1 + $0x9e8] sm:$0xff]  }
 0x110   :  { %6602 = vmatpush3.bf16.msra.mxu0 %v7249_v11 }
 0x111   :  { %6624 = vmatpush3.bf16.msra.mxu1 %v7250_v12  ;;  %6603 = vmatprep.subr.bf16.mxu0 %v7251_v13 }
 0x112   :  { %6625 = vmatprep.subr.bf16.mxu1 %v7252_v14  ;;  %v7293_v14 = vld [vmem:[%s9209_s1 + $0x928] sm:$0xff]  }
 0x114   :  { %6604 = vmatpush3.bf16.msra.mxu0 %v7253_v15  ;;  %v7294_v15 = vld [vmem:[%s9209_s1 + $0x9a8] sm:$0xff]  }
 0x115   :  { %6626 = vmatpush3.bf16.msra.mxu1 %v7254_v17  ;;  %6605 = vmatprep.subr.bf16.mxu0 %v7255_v23  ;;  %v7299_v23 = vld [vmem:[%s9209_s1 + $0x978] sm:$0xff]  }
 0x116   :  { %v6303_v16 = vpop.f32.mrb[4].mxu0  ;;  %6627 = vmatprep.subr.bf16.mxu1 %v7256_v25  ;;  %v7301_v25 = vld [vmem:[%s9209_s1 + $0x938] sm:$0xff]  }
 0x117   :  { %v6325_v18 = vpop.f32.mrb[4].mxu1  ;;  %v6304_v19 = vpop.f32.mrb[5].mxu0 }
 0x118   :  { %v6326_v20 = vpop.f32.mrb[5].mxu1  ;;  %v6305_v21 = vadd.f32 %v6304_v19, %v6303_v16  ;;  %v6306_v24 = vpop.f32.mrb[6].mxu0  ;;  %6606 = vmatpush3.bf16.msra.mxu0 %v7257_v28  ;;  %v7295_v19 = vld [vmem:[%s9209_s1 + $0x970] sm:$0xff]   ;;  %v34_v28 = vld [vmem:[%s9210_s0 + $0x98] sm:$0xff] }
 0x119   :  { %v6327_v22 = vadd.f32 %v6326_v20, %v6325_v18  ;;  %v6328_v26 = vpop.f32.mrb[6].mxu1  ;;  %v6307_v29 = vpop.f32.mrb[7].mxu0  ;;  %6628 = vmatpush3.bf16.msra.mxu1 %v7258_v30  ;;  %6607 = vmatprep.subr.bf16.mxu0 %v7259_v33  ;;  %v7296_v20 = vld [vmem:[%s9209_s1 + $0x9f0] sm:$0xff]   ;;  %v7300_v24 = vld [vmem:[%s9209_s1 + $0x9f8] sm:$0xff]   ;;  %v5705_v33 = vcombine.high %v34_v28, %v34_v28 }
 0x11a   :  { %v4489_v27 = vadd.f32 %v6305_v21, %v8336_v46  ;;  %v6329_v31 = vpop.f32.mrb[7].mxu1  ;;  %6629 = vmatprep.subr.bf16.mxu1 %v7260_v34  ;;  %v5701_v46 = vcombine.high %v32_v42, %v32_v42  ;;  %v7297_v21 = vld [vmem:[%s9209_s1 + $0x930] sm:$0xff]   ;;  %v7302_v26 = vld [vmem:[%s9209_s1 + $0x9b8] sm:$0xff]   ;;  %v7308_v34 = vld [vmem:[%s9209_s1 + $0xac0] sm:$0xff]  }
 0x11b   :  { %v5704_v31 = vcombine.low %v34_v28, %v34_v28  ;;  %v7316_v42 = vld [vmem:[%s9209_s1 + $0xad0] sm:$0xff]  }
 0x11c   :  { %v8441_v32 = vadd.f32 %v6327_v22, %v4489_v27  ;;  %6608 = vmatpush3.bf16.msra.mxu0 %v7261_v35  ;;  %5086 = vmatprep.mubr.bf16.mxu1 %v5701_v46  ;;  %v7298_v22 = vld [vmem:[%s9209_s1 + $0x9b0] sm:$0xff]   ;;  %v7309_v35 = vld [vmem:[%s9209_s1 + $0xa00] sm:$0xff]   ;;  %v7320_v46 = vld [vmem:[%s9209_s1 + $0xad8] sm:$0xff]  }
 0x11d   :  { %6630 = vmatpush3.bf16.msra.mxu1 %v7262_v36  ;;  %6609 = vmatprep.subr.bf16.mxu0 %v7263_v37  ;;  %v33_v27 = vld [vmem:[%s9210_s0 + $0x90] sm:$0xff]  ;;  %v7310_v36 = vld [vmem:[%s9209_s1 + $0xa80] sm:$0xff]   ;;  %v7311_v37 = vld [vmem:[%s9209_s1 + $0xa48] sm:$0xff]  }
 0x11e   :  { %6631 = vmatprep.subr.bf16.mxu1 %v7264_v38  ;;  %v5702_v29 = vcombine.low %v33_v27, %v33_v27  ;;  %v5703_v30 = vcombine.high %v33_v27, %v33_v27  ;;  %v7312_v38 = vld [vmem:[%s9209_s1 + $0xac8] sm:$0xff]   ;;  %v7351_v27 = vld [vmem:[%s9209_s1 + $0xb50] sm:$0xff]  }
 0x11f   :  { %v7352_v28 = vld [vmem:[%s9209_s1 + $0xbd0] sm:$0xff]  }
 0x120   :  { %6610 = vmatpush3.bf16.msra.mxu0 %v7265_v39  ;;  %v7313_v39 = vld [vmem:[%s9209_s1 + $0xa08] sm:$0xff]  }
 0x121   :  { %6632 = vmatpush3.bf16.msra.mxu1 %v7266_v40  ;;  %6639 = vmatprep.subr.bf16.mxu0 %v7271_v47  ;;  %v7314_v40 = vld [vmem:[%s9209_s1 + $0xa88] sm:$0xff]   ;;  %v7321_v47 = vld [vmem:[%s9209_s1 + $0xa18] sm:$0xff]  }
 0x122   :  { %6661 = vmatprep.subr.bf16.mxu1 %v7272_v48  ;;  %v7322_v48 = vld [vmem:[%s9209_s1 + $0xa98] sm:$0xff]  }
 0x123   :  { %5047 = vmatmul.mubr.bf16.vlgmr.msra.gmra.mrb[32].mxu0 %v5698_v43  ;;  %v7317_v43 = vld [vmem:[%s9209_s1 + $0xa10] sm:$0xff]  }
 0x124   :  { %5087 = vmatmul.mubr.bf16.vlgmr.msra.gmra.mrb[32].mxu1 %v5700_v45  ;;  %6640 = vmatpush3.bf16.msra.mxu0 %v7273_v49  ;;  %v7319_v45 = vld [vmem:[%s9209_s1 + $0xa58] sm:$0xff]   ;;  %v7323_v49 = vld [vmem:[%s9209_s1 + $0xa60] sm:$0xff]  }
 0x125   :  { %6662 = vmatpush3.bf16.msra.mxu1 %v7274_v50  ;;  %6641 = vmatprep.subr.bf16.mxu0 %v7275_v51  ;;  %v7324_v50 = vld [vmem:[%s9209_s1 + $0xae0] sm:$0xff]  }
 0x126   :  { %6663 = vmatprep.subr.bf16.mxu1 %v7276_v52  ;;  %5126 = vmatprep.mubr.bf16.mxu0 %v5703_v30  ;;  %v7325_v52 = vld [vmem:[%s9209_s1 + $0xa20] sm:$0xff]   ;;  %v7354_v30 = vld [vmem:[%s9209_s1 + $0xb90] sm:$0xff]  }
 0x127   :  { %5166 = vmatprep.mubr.bf16.mxu1 %v5705_v33  ;;  %v7357_v33 = vld [vmem:[%s9209_s1 + $0xb18] sm:$0xff]  }
 0x128   :  { %6642 = vmatpush3.bf16.msra.mxu0 %v7277_v53 }
 0x129   :  { %6664 = vmatpush3.bf16.msra.mxu1 %v7278_v54  ;;  %6643 = vmatprep.subr.bf16.mxu0 %v7279_v55  ;;  %v7326_v54 = vld [vmem:[%s9209_s1 + $0xaa0] sm:$0xff]  }
 0x12a   :  { %6665 = vmatprep.subr.bf16.mxu1 %v7280_v56 }
 0x12c   :  { %6644 = vmatpush3.bf16.msra.mxu0 %v7281_v57  ;;  %v7327_v57 = vld [vmem:[%s9209_s1 + $0xa68] sm:$0xff]  }
 0x12d   :  { %6666 = vmatpush3.bf16.msra.mxu1 %v7282_v58  ;;  %6645 = vmatprep.subr.bf16.mxu0 %v7283_v59 }
 0x12e   :  { %6667 = vmatprep.subr.bf16.mxu1 %v7284_v60  ;;  %v7328_v60 = vld [vmem:[%s9209_s1 + $0xae8] sm:$0xff]  }
 0x130   :  { %6646 = vmatpush3.bf16.msra.mxu0 %v7285_v61 }
 0x131   :  { %6668 = vmatpush3.bf16.msra.mxu1 %v7286_v62  ;;  %6647 = vmatprep.subr.bf16.mxu0 %v7287_v63  ;;  %v7329_v63 = vld [vmem:[%s9209_s1 + $0xa28] sm:$0xff]  }
 0x132   :  { %6669 = vmatprep.subr.bf16.mxu1 %v7288_v0 }
 0x134   :  { %6648 = vmatpush3.bf16.msra.mxu0 %v7289_v2 }
 0x135   :  { %6670 = vmatpush3.bf16.msra.mxu1 %v7290_v4  ;;  %6649 = vmatprep.subr.bf16.mxu0 %v7291_v8  ;;  %v7331_v4 = vld [vmem:[%s9209_s1 + $0xa70] sm:$0xff]  }
 0x136   :  { %v6347_v1 = vpop.f32.mrb[8].mxu0  ;;  %6671 = vmatprep.subr.bf16.mxu1 %v7292_v10  ;;  %v7334_v8 = vld [vmem:[%s9209_s1 + $0xab0] sm:$0xff]   ;;  %v7336_v10 = vld [vmem:[%s9209_s1 + $0xaf8] sm:$0xff]  }
 0x137   :  { %v6369_v3 = vpop.f32.mrb[8].mxu1  ;;  %v6348_v5 = vpop.f32.mrb[9].mxu0 }
 0x138   :  { %v6349_v6 = vadd.f32 %v6348_v5, %v6347_v1  ;;  %v6370_v7 = vpop.f32.mrb[9].mxu1  ;;  %v6350_v11 = vpop.f32.mrb[10].mxu0  ;;  %6650 = vmatpush3.bf16.msra.mxu0 %v7293_v14  ;;  %v7330_v1 = vld [vmem:[%s9209_s1 + $0xaa8] sm:$0xff]  }
 0x139   :  { %v6371_v9 = vadd.f32 %v6370_v7, %v6369_v3  ;;  %v6372_v13 = vpop.f32.mrb[10].mxu1  ;;  %v6351_v16 = vpop.f32.mrb[11].mxu0  ;;  %6672 = vmatpush3.bf16.msra.mxu1 %v7294_v15  ;;  %6651 = vmatprep.subr.bf16.mxu0 %v7295_v19  ;;  %v7333_v7 = vld [vmem:[%s9209_s1 + $0xa30] sm:$0xff]   ;;  %v7337_v11 = vld [vmem:[%s9209_s1 + $0xa38] sm:$0xff]   ;;  %v7343_v19 = vld [vmem:[%s9209_s1 + $0xb40] sm:$0xff]  }
 0x13a   :  { %v4569_v12 = vadd.f32 %v6349_v6, %v8441_v32  ;;  %v6373_v18 = vpop.f32.mrb[11].mxu1  ;;  %6673 = vmatprep.subr.bf16.mxu1 %v7296_v20  ;;  %v7307_v32 = vld [vmem:[%s9209_s1 + $0xa40] sm:$0xff]   ;;  %v7332_v6 = vld [vmem:[%s9209_s1 + $0xaf0] sm:$0xff]   ;;  %v36_v16 = vld [vmem:[%s9210_s0 + $0xa8] sm:$0xff] }
 0x13b   :  { %v35_v13 = vld [vmem:[%s9210_s0 + $0xa0] sm:$0xff]  ;;  %v5709_v18 = vcombine.high %v36_v16, %v36_v16 }
 0x13c   :  { %v8546_v17 = vadd.f32 %v6371_v9, %v4569_v12  ;;  %6652 = vmatpush3.bf16.msra.mxu0 %v7297_v21  ;;  %v7335_v9 = vld [vmem:[%s9209_s1 + $0xa78] sm:$0xff]   ;;  %v5706_v14 = vcombine.low %v35_v13, %v35_v13  ;;  %v5707_v15 = vcombine.high %v35_v13, %v35_v13  ;;  %v7344_v20 = vld [vmem:[%s9209_s1 + $0xbc0] sm:$0xff]   ;;  %v7387_v13 = vld [vmem:[%s9209_s1 + $0xc50] sm:$0xff]  }
 0x13d   :  { %6674 = vmatpush3.bf16.msra.mxu1 %v7298_v22  ;;  %6653 = vmatprep.subr.bf16.mxu0 %v7299_v23  ;;  %v7338_v12 = vld [vmem:[%s9209_s1 + $0xab8] sm:$0xff]   ;;  %v7345_v21 = vld [vmem:[%s9209_s1 + $0xb00] sm:$0xff]   ;;  %v7347_v23 = vld [vmem:[%s9209_s1 + $0xb48] sm:$0xff]  }
 0x13e   :  { %6675 = vmatprep.subr.bf16.mxu1 %v7300_v24  ;;  %v7346_v22 = vld [vmem:[%s9209_s1 + $0xb80] sm:$0xff]   ;;  %v7348_v24 = vld [vmem:[%s9209_s1 + $0xbc8] sm:$0xff]  }
 0x140   :  { %6654 = vmatpush3.bf16.msra.mxu0 %v7301_v25  ;;  %v7349_v25 = vld [vmem:[%s9209_s1 + $0xb08] sm:$0xff]  }
 0x141   :  { %6676 = vmatpush3.bf16.msra.mxu1 %v7302_v26  ;;  %6683 = vmatprep.subr.bf16.mxu0 %v7307_v32  ;;  %v7350_v26 = vld [vmem:[%s9209_s1 + $0xb88] sm:$0xff]   ;;  %v7356_v32 = vld [vmem:[%s9209_s1 + $0xbd8] sm:$0xff]  }
 0x142   :  { %6705 = vmatprep.subr.bf16.mxu1 %v7308_v34  ;;  %v7358_v34 = vld [vmem:[%s9209_s1 + $0xb98] sm:$0xff]  }
 0x143   :  { %5127 = vmatmul.mubr.bf16.vlgmr.msra.gmra.mrb[36].mxu0 %v5702_v29  ;;  %v7353_v29 = vld [vmem:[%s9209_s1 + $0xb10] sm:$0xff]  }
 0x144   :  { %5167 = vmatmul.mubr.bf16.vlgmr.msra.gmra.mrb[36].mxu1 %v5704_v31  ;;  %6684 = vmatpush3.bf16.msra.mxu0 %v7309_v35  ;;  %v7355_v31 = vld [vmem:[%s9209_s1 + $0xb58] sm:$0xff]   ;;  %v7359_v35 = vld [vmem:[%s9209_s1 + $0xb60] sm:$0xff]  }
 0x145   :  { %6706 = vmatpush3.bf16.msra.mxu1 %v7310_v36  ;;  %6685 = vmatprep.subr.bf16.mxu0 %v7311_v37  ;;  %v7360_v36 = vld [vmem:[%s9209_s1 + $0xbe0] sm:$0xff]  }
 0x146   :  { %6707 = vmatprep.subr.bf16.mxu1 %v7312_v38  ;;  %5206 = vmatprep.mubr.bf16.mxu0 %v5707_v15  ;;  %v7361_v38 = vld [vmem:[%s9209_s1 + $0xb20] sm:$0xff]   ;;  %v7389_v15 = vld [vmem:[%s9209_s1 + $0xc10] sm:$0xff]  }
 0x147   :  { %5246 = vmatprep.mubr.bf16.mxu1 %v5709_v18  ;;  %v7392_v18 = vld [vmem:[%s9209_s1 + $0xcd8] sm:$0xff]  }
 0x148   :  { %6686 = vmatpush3.bf16.msra.mxu0 %v7313_v39 }
 0x149   :  { %6708 = vmatpush3.bf16.msra.mxu1 %v7314_v40  ;;  %6687 = vmatprep.subr.bf16.mxu0 %v7315_v41  ;;  %v7362_v40 = vld [vmem:[%s9209_s1 + $0xba0] sm:$0xff]  }
 0x14a   :  { %6709 = vmatprep.subr.bf16.mxu1 %v7316_v42 }
 0x14c   :  { %6688 = vmatpush3.bf16.msra.mxu0 %v7317_v43  ;;  %v7363_v43 = vld [vmem:[%s9209_s1 + $0xb68] sm:$0xff]  }
 0x14d   :  { %6710 = vmatpush3.bf16.msra.mxu1 %v7318_v44  ;;  %6689 = vmatprep.subr.bf16.mxu0 %v7319_v45 }
 0x14e   :  { %6711 = vmatprep.subr.bf16.mxu1 %v7320_v46  ;;  %v7364_v46 = vld [vmem:[%s9209_s1 + $0xbe8] sm:$0xff]  }
 0x150   :  { %6690 = vmatpush3.bf16.msra.mxu0 %v7321_v47 }
 0x151   :  { %6712 = vmatpush3.bf16.msra.mxu1 %v7322_v48  ;;  %6691 = vmatprep.subr.bf16.mxu0 %v7323_v49  ;;  %v7365_v49 = vld [vmem:[%s9209_s1 + $0xb28] sm:$0xff]  }
 0x152   :  { %6713 = vmatprep.subr.bf16.mxu1 %v7324_v50 }
 0x154   :  { %6692 = vmatpush3.bf16.msra.mxu0 %v7325_v52 }
 0x155   :  { %6714 = vmatpush3.bf16.msra.mxu1 %v7326_v54  ;;  %6693 = vmatprep.subr.bf16.mxu0 %v7327_v57  ;;  %v7367_v54 = vld [vmem:[%s9209_s1 + $0xb70] sm:$0xff]  }
 0x156   :  { %v6391_v51 = vpop.f32.mrb[12].mxu0  ;;  %6715 = vmatprep.subr.bf16.mxu1 %v7328_v60  ;;  %v7369_v57 = vld [vmem:[%s9209_s1 + $0xb30] sm:$0xff]   ;;  %v7372_v60 = vld [vmem:[%s9209_s1 + $0xbf8] sm:$0xff]  }
 0x157   :  { %v6413_v53 = vpop.f32.mrb[12].mxu1  ;;  %v6392_v55 = vpop.f32.mrb[13].mxu0 }
 0x158   :  { %v6414_v56 = vpop.f32.mrb[13].mxu1  ;;  %v6393_v58 = vadd.f32 %v6392_v55, %v6391_v51  ;;  %v6394_v61 = vpop.f32.mrb[14].mxu0  ;;  %6694 = vmatpush3.bf16.msra.mxu0 %v7329_v63  ;;  %v7366_v51 = vld [vmem:[%s9209_s1 + $0xba8] sm:$0xff]   ;;  %v37_v63 = vld [vmem:[%s9210_s0 + $0xb0] sm:$0xff] }
 0x159   :  { %v6415_v59 = vadd.f32 %v6414_v56, %v6413_v53  ;;  %v6416_v62 = vpop.f32.mrb[14].mxu1  ;;  %v6395_v2 = vpop.f32.mrb[15].mxu0  ;;  %6716 = vmatpush3.bf16.msra.mxu1 %v7330_v1  ;;  %6695 = vmatprep.subr.bf16.mxu0 %v7331_v4  ;;  %v7368_v56 = vld [vmem:[%s9209_s1 + $0xbf0] sm:$0xff]   ;;  %v7373_v61 = vld [vmem:[%s9209_s1 + $0xb38] sm:$0xff]   ;;  %v5710_v1 = vcombine.low %v37_v63, %v37_v63 }
 0x15a   :  { %v4649_v0 = vadd.f32 %v6393_v58, %v8546_v17  ;;  %v6417_v3 = vpop.f32.mrb[15].mxu1  ;;  %6717 = vmatprep.subr.bf16.mxu1 %v7332_v6  ;;  %v5708_v17 = vcombine.low %v36_v16, %v36_v16  ;;  %v7370_v58 = vld [vmem:[%s9209_s1 + $0xbb0] sm:$0xff]   ;;  %v7374_v62 = vld [vmem:[%s9209_s1 + $0xbb8] sm:$0xff]   ;;  %v5711_v2 = vcombine.high %v37_v63, %v37_v63  ;;  %v7380_v6 = vld [vmem:[%s9209_s1 + $0xcc0] sm:$0xff]  }
 0x15b   :  { %v7390_v16 = vld [vmem:[%s9209_s1 + $0xc90] sm:$0xff]  }
 0x15c   :  { %v8654_v5 = vadd.f32 %v6415_v59, %v4649_v0  ;;  %6696 = vmatpush3.bf16.msra.mxu0 %v7333_v7  ;;  %v7371_v59 = vld [vmem:[%s9209_s1 + $0xb78] sm:$0xff]   ;;  %v7381_v7 = vld [vmem:[%s9209_s1 + $0xc00] sm:$0xff]   ;;  %v7423_v63 = vld [vmem:[%s9209_s1 + $0xd50] sm:$0xff]  }
 0x15d   :  { %6718 = vmatpush3.bf16.msra.mxu1 %v7334_v8  ;;  %6697 = vmatprep.subr.bf16.mxu0 %v7335_v9  ;;  %v38_v0 = vld [vmem:[%s9210_s0 + $0xb8] sm:$0xff]  ;;  %v7382_v8 = vld [vmem:[%s9209_s1 + $0xc80] sm:$0xff]   ;;  %v7383_v9 = vld [vmem:[%s9209_s1 + $0xc48] sm:$0xff]  }
 0x15e   :  { %6719 = vmatprep.subr.bf16.mxu1 %v7336_v10  ;;  %v5712_v3 = vcombine.low %v38_v0, %v38_v0  ;;  %v5713_v4 = vcombine.high %v38_v0, %v38_v0  ;;  %v7384_v10 = vld [vmem:[%s9209_s1 + $0xcc8] sm:$0xff]   ;;  %v7424_v0 = vld [vmem:[%s9209_s1 + $0xdd0] sm:$0xff]  }
 0x160   :  { %6698 = vmatpush3.bf16.msra.mxu0 %v7337_v11  ;;  %v7385_v11 = vld [vmem:[%s9209_s1 + $0xc08] sm:$0xff]  }
 0x161   :  { %6720 = vmatpush3.bf16.msra.mxu1 %v7338_v12  ;;  %6727 = vmatprep.subr.bf16.mxu0 %v7343_v19  ;;  %v7386_v12 = vld [vmem:[%s9209_s1 + $0xc88] sm:$0xff]   ;;  %v7393_v19 = vld [vmem:[%s9209_s1 + $0xc18] sm:$0xff]  }
 0x162   :  { %6749 = vmatprep.subr.bf16.mxu1 %v7344_v20  ;;  %v7394_v20 = vld [vmem:[%s9209_s1 + $0xc98] sm:$0xff]  }
 0x163   :  { %5207 = vmatmul.mubr.bf16.vlgmr.msra.gmra.mrb[40].mxu0 %v5706_v14  ;;  %v7388_v14 = vld [vmem:[%s9209_s1 + $0xcd0] sm:$0xff]  }
 0x164   :  { %5247 = vmatmul.mubr.bf16.vlgmr.msra.gmra.mrb[40].mxu1 %v5708_v17  ;;  %6728 = vmatpush3.bf16.msra.mxu0 %v7345_v21  ;;  %v7391_v17 = vld [vmem:[%s9209_s1 + $0xc58] sm:$0xff]   ;;  %v7395_v21 = vld [vmem:[%s9209_s1 + $0xc60] sm:$0xff]  }
 0x165   :  { %6750 = vmatpush3.bf16.msra.mxu1 %v7346_v22  ;;  %6729 = vmatprep.subr.bf16.mxu0 %v7347_v23  ;;  %v7396_v22 = vld [vmem:[%s9209_s1 + $0xce0] sm:$0xff]  }
 0x166   :  { %6751 = vmatprep.subr.bf16.mxu1 %v7348_v24  ;;  %5286 = vmatprep.mubr.bf16.mxu0 %v5711_v2  ;;  %v7397_v24 = vld [vmem:[%s9209_s1 + $0xc20] sm:$0xff]   ;;  %v7426_v2 = vld [vmem:[%s9209_s1 + $0xd90] sm:$0xff]  }
 0x167   :  { %5326 = vmatprep.mubr.bf16.mxu1 %v5713_v4  ;;  %v7428_v4 = vld [vmem:[%s9209_s1 + $0xdd8] sm:$0xff]  }
 0x168   :  { %6730 = vmatpush3.bf16.msra.mxu0 %v7349_v25 }
 0x169   :  { %6752 = vmatpush3.bf16.msra.mxu1 %v7350_v26  ;;  %6731 = vmatprep.subr.bf16.mxu0 %v7351_v27  ;;  %v7398_v26 = vld [vmem:[%s9209_s1 + $0xca0] sm:$0xff]  }
 0x16a   :  { %6753 = vmatprep.subr.bf16.mxu1 %v7352_v28 }
 0x16c   :  { %6732 = vmatpush3.bf16.msra.mxu0 %v7353_v29 }
 0x16d   :  { %6754 = vmatpush3.bf16.msra.mxu1 %v7354_v30  ;;  %6733 = vmatprep.subr.bf16.mxu0 %v7355_v31  ;;  %v7399_v30 = vld [vmem:[%s9209_s1 + $0xc68] sm:$0xff]  }
 0x16e   :  { %6755 = vmatprep.subr.bf16.mxu1 %v7356_v32  ;;  %v7400_v32 = vld [vmem:[%s9209_s1 + $0xce8] sm:$0xff]  }
 0x170   :  { %6734 = vmatpush3.bf16.msra.mxu0 %v7357_v33 }
 0x171   :  { %6756 = vmatpush3.bf16.msra.mxu1 %v7358_v34  ;;  %6735 = vmatprep.subr.bf16.mxu0 %v7359_v35 }
 0x172   :  { %6757 = vmatprep.subr.bf16.mxu1 %v7360_v36  ;;  %v7401_v36 = vld [vmem:[%s9209_s1 + $0xc28] sm:$0xff]  }
 0x174   :  { %6736 = vmatpush3.bf16.msra.mxu0 %v7361_v38 }
 0x175   :  { %6758 = vmatpush3.bf16.msra.mxu1 %v7362_v40  ;;  %6737 = vmatprep.subr.bf16.mxu0 %v7363_v43  ;;  %v7405_v43 = vld [vmem:[%s9209_s1 + $0xc30] sm:$0xff]  }
 0x176   :  { %v6435_v37 = vpop.f32.mrb[16].mxu0  ;;  %6759 = vmatprep.subr.bf16.mxu1 %v7364_v46  ;;  %v7408_v46 = vld [vmem:[%s9209_s1 + $0xcf8] sm:$0xff]  }
 0x177   :  { %v6457_v39 = vpop.f32.mrb[16].mxu1  ;;  %v6436_v41 = vpop.f32.mrb[17].mxu0 }
 0x178   :  { %v6458_v42 = vpop.f32.mrb[17].mxu1  ;;  %v6437_v44 = vadd.f32 %v6436_v41, %v6435_v37  ;;  %v6438_v47 = vpop.f32.mrb[18].mxu0  ;;  %6738 = vmatpush3.bf16.msra.mxu0 %v7365_v49  ;;  %v7402_v37 = vld [vmem:[%s9209_s1 + $0xca8] sm:$0xff]   ;;  %v7403_v41 = vld [vmem:[%s9209_s1 + $0xc70] sm:$0xff]   ;;  %v39_v49 = vld [vmem:[%s9210_s0 + $0xc0] sm:$0xff] }
 0x179   :  { %v6459_v45 = vadd.f32 %v6458_v42, %v6457_v39  ;;  %v6460_v48 = vpop.f32.mrb[18].mxu1  ;;  %v6439_v52 = vpop.f32.mrb[19].mxu0  ;;  %6760 = vmatpush3.bf16.msra.mxu1 %v7366_v51  ;;  %6739 = vmatprep.subr.bf16.mxu0 %v7367_v54  ;;  %v7404_v42 = vld [vmem:[%s9209_s1 + $0xcf0] sm:$0xff]   ;;  %v7409_v47 = vld [vmem:[%s9209_s1 + $0xc38] sm:$0xff]   ;;  %v5714_v51 = vcombine.low %v39_v49, %v39_v49  ;;  %v7415_v54 = vld [vmem:[%s9209_s1 + $0xd40] sm:$0xff]  }
 0x17a   :  { %v4729_v50 = vadd.f32 %v6437_v44, %v8654_v5  ;;  %v6461_v53 = vpop.f32.mrb[19].mxu1  ;;  %6761 = vmatprep.subr.bf16.mxu1 %v7368_v56  ;;  %v7379_v5 = vld [vmem:[%s9209_s1 + $0xc40] sm:$0xff]   ;;  %v7406_v44 = vld [vmem:[%s9209_s1 + $0xcb0] sm:$0xff]   ;;  %v7410_v48 = vld [vmem:[%s9209_s1 + $0xcb8] sm:$0xff]   ;;  %v5715_v52 = vcombine.high %v39_v49, %v39_v49 }
 0x17b   :  { %v7416_v56 = vld [vmem:[%s9209_s1 + $0xdc0] sm:$0xff]   ;;  %v7459_v49 = vld [vmem:[%s9209_s1 + $0xe50] sm:$0xff]  }
 0x17c   :  { %v8759_v55 = vadd.f32 %v6459_v45, %v4729_v50  ;;  %6740 = vmatpush3.bf16.msra.mxu0 %v7369_v57  ;;  %v7407_v45 = vld [vmem:[%s9209_s1 + $0xc78] sm:$0xff]   ;;  %v40_v50 = vld [vmem:[%s9210_s0 + $0xc8] sm:$0xff]  ;;  %v7417_v57 = vld [vmem:[%s9209_s1 + $0xd00] sm:$0xff]  }
 0x17d   :  { %6762 = vmatpush3.bf16.msra.mxu1 %v7370_v58  ;;  %6741 = vmatprep.subr.bf16.mxu0 %v7371_v59  ;;  %v5716_v53 = vcombine.low %v40_v50, %v40_v50  ;;  %v7418_v58 = vld [vmem:[%s9209_s1 + $0xd80] sm:$0xff]   ;;  %v7419_v59 = vld [vmem:[%s9209_s1 + $0xd48] sm:$0xff]  }
 0x17e   :  { %6763 = vmatprep.subr.bf16.mxu1 %v7372_v60  ;;  %v7420_v60 = vld [vmem:[%s9209_s1 + $0xdc8] sm:$0xff]  }
 0x180   :  { %6742 = vmatpush3.bf16.msra.mxu0 %v7373_v61  ;;  %v7421_v61 = vld [vmem:[%s9209_s1 + $0xd08] sm:$0xff]  }
 0x181   :  { %6764 = vmatpush3.bf16.msra.mxu1 %v7374_v62  ;;  %6771 = vmatprep.subr.bf16.mxu0 %v7379_v5  ;;  %v7422_v62 = vld [vmem:[%s9209_s1 + $0xd88] sm:$0xff]   ;;  %v7429_v5 = vld [vmem:[%s9209_s1 + $0xd18] sm:$0xff]  }
 0x182   :  { %6793 = vmatprep.subr.bf16.mxu1 %v7380_v6  ;;  %v7430_v6 = vld [vmem:[%s9209_s1 + $0xd98] sm:$0xff]  }
 0x183   :  { %5287 = vmatmul.mubr.bf16.vlgmr.msra.gmra.mrb[44].mxu0 %v5710_v1  ;;  %v7425_v1 = vld [vmem:[%s9209_s1 + $0xd10] sm:$0xff]  }
 0x184   :  { %5327 = vmatmul.mubr.bf16.vlgmr.msra.gmra.mrb[44].mxu1 %v5712_v3  ;;  %6772 = vmatpush3.bf16.msra.mxu0 %v7381_v7  ;;  %v7427_v3 = vld [vmem:[%s9209_s1 + $0xd58] sm:$0xff]   ;;  %v7431_v7 = vld [vmem:[%s9209_s1 + $0xd60] sm:$0xff]  }
 0x185   :  { %6794 = vmatpush3.bf16.msra.mxu1 %v7382_v8  ;;  %6773 = vmatprep.subr.bf16.mxu0 %v7383_v9  ;;  %v7432_v8 = vld [vmem:[%s9209_s1 + $0xde0] sm:$0xff]  }
 0x186   :  { %6795 = vmatprep.subr.bf16.mxu1 %v7384_v10  ;;  %5366 = vmatprep.mubr.bf16.mxu0 %v5715_v52  ;;  %v7433_v10 = vld [vmem:[%s9209_s1 + $0xd20] sm:$0xff]   ;;  %v7462_v52 = vld [vmem:[%s9209_s1 + $0xe90] sm:$0xff]  }
 0x188   :  { %6774 = vmatpush3.bf16.msra.mxu0 %v7385_v11 }
 0x189   :  { %6796 = vmatpush3.bf16.msra.mxu1 %v7386_v12  ;;  %6775 = vmatprep.subr.bf16.mxu0 %v7387_v13  ;;  %v7434_v12 = vld [vmem:[%s9209_s1 + $0xda0] sm:$0xff]  }
 0x18a   :  { %6797 = vmatprep.subr.bf16.mxu1 %v7388_v14 }
 0x18c   :  { %6776 = vmatpush3.bf16.msra.mxu0 %v7389_v15  ;;  %v7435_v15 = vld [vmem:[%s9209_s1 + $0xd68] sm:$0xff]  }
 0x18d   :  { %6798 = vmatpush3.bf16.msra.mxu1 %v7390_v16  ;;  %6777 = vmatprep.subr.bf16.mxu0 %v7391_v17 }
 0x18e   :  { %6799 = vmatprep.subr.bf16.mxu1 %v7392_v18  ;;  %v7436_v18 = vld [vmem:[%s9209_s1 + $0xde8] sm:$0xff]  }
 0x190   :  { %6778 = vmatpush3.bf16.msra.mxu0 %v7393_v19 }
 0x191   :  { %6800 = vmatpush3.bf16.msra.mxu1 %v7394_v20  ;;  %6779 = vmatprep.subr.bf16.mxu0 %v7395_v21  ;;  %v7437_v21 = vld [vmem:[%s9209_s1 + $0xd28] sm:$0xff]  }
 0x192   :  { %6801 = vmatprep.subr.bf16.mxu1 %v7396_v22 }
 0x194   :  { %6780 = vmatpush3.bf16.msra.mxu0 %v7397_v24 }
 0x195   :  { %6802 = vmatpush3.bf16.msra.mxu1 %v7398_v26  ;;  %6781 = vmatprep.subr.bf16.mxu0 %v7399_v30  ;;  %v7439_v26 = vld [vmem:[%s9209_s1 + $0xd70] sm:$0xff]  }
 0x196   :  { %v6479_v23 = vpop.f32.mrb[20].mxu0  ;;  %6803 = vmatprep.subr.bf16.mxu1 %v7400_v32  ;;  %v7442_v30 = vld [vmem:[%s9209_s1 + $0xdb0] sm:$0xff]   ;;  %v7444_v32 = vld [vmem:[%s9209_s1 + $0xdf8] sm:$0xff]  }
 0x197   :  { %v6501_v25 = vpop.f32.mrb[20].mxu1  ;;  %v6480_v27 = vpop.f32.mrb[21].mxu0 }
 0x198   :  { %v6481_v28 = vadd.f32 %v6480_v27, %v6479_v23  ;;  %v6502_v29 = vpop.f32.mrb[21].mxu1  ;;  %v6482_v33 = vpop.f32.mrb[22].mxu0  ;;  %6782 = vmatpush3.bf16.msra.mxu0 %v7401_v36  ;;  %v7438_v23 = vld [vmem:[%s9209_s1 + $0xda8] sm:$0xff]  }
 0x199   :  { %v6503_v31 = vadd.f32 %v6502_v29, %v6501_v25  ;;  %v6504_v35 = vpop.f32.mrb[22].mxu1  ;;  %v6483_v38 = vpop.f32.mrb[23].mxu0  ;;  %6804 = vmatpush3.bf16.msra.mxu1 %v7402_v37  ;;  %6783 = vmatprep.subr.bf16.mxu0 %v7403_v41  ;;  %v7441_v29 = vld [vmem:[%s9209_s1 + $0xd30] sm:$0xff]   ;;  %v7445_v33 = vld [vmem:[%s9209_s1 + $0xd38] sm:$0xff]   ;;  %v7451_v41 = vld [vmem:[%s9209_s1 + $0xe40] sm:$0xff]  }
 0x19a   :  { %v4809_v34 = vadd.f32 %v6481_v28, %v8759_v55  ;;  %v6505_v40 = vpop.f32.mrb[23].mxu1  ;;  %6805 = vmatprep.subr.bf16.mxu1 %v7404_v42  ;;  %v5717_v55 = vcombine.high %v40_v50, %v40_v50  ;;  %v7440_v28 = vld [vmem:[%s9209_s1 + $0xdf0] sm:$0xff]   ;;  %v42_v38 = vld [vmem:[%s9210_s0 + $0xd8] sm:$0xff]  ;;  %v7452_v42 = vld [vmem:[%s9209_s1 + $0xec0] sm:$0xff]  }
 0x19b   :  { %v41_v35 = vld [vmem:[%s9210_s0 + $0xd0] sm:$0xff]  ;;  %v5721_v40 = vcombine.high %v42_v38, %v42_v38 }
 0x19c   :  { %v8861_v39 = vadd.f32 %v6503_v31, %v4809_v34  ;;  %6784 = vmatpush3.bf16.msra.mxu0 %v7405_v43  ;;  %5406 = vmatprep.mubr.bf16.mxu1 %v5717_v55  ;;  %v7443_v31 = vld [vmem:[%s9209_s1 + $0xd78] sm:$0xff]   ;;  %v5718_v36 = vcombine.low %v41_v35, %v41_v35  ;;  %v5719_v37 = vcombine.high %v41_v35, %v41_v35  ;;  %v7453_v43 = vld [vmem:[%s9209_s1 + $0xe00] sm:$0xff]   ;;  %v7460_v50 = vld [vmem:[%s9209_s1 + $0xed0] sm:$0xff]  }
 0x19d   :  { %6806 = vmatpush3.bf16.msra.mxu1 %v7406_v44  ;;  %6785 = vmatprep.subr.bf16.mxu0 %v7407_v45  ;;  %v7446_v34 = vld [vmem:[%s9209_s1 + $0xdb8] sm:$0xff]   ;;  %v7454_v44 = vld [vmem:[%s9209_s1 + $0xe80] sm:$0xff]   ;;  %v7455_v45 = vld [vmem:[%s9209_s1 + $0xe48] sm:$0xff]  }
 0x19e   :  { %6807 = vmatprep.subr.bf16.mxu1 %v7408_v46  ;;  %v7456_v46 = vld [vmem:[%s9209_s1 + $0xec8] sm:$0xff]   ;;  %v7465_v55 = vld [vmem:[%s9209_s1 + $0xe18] sm:$0xff]   ;;  %v7495_v35 = vld [vmem:[%s9209_s1 + $0xf50] sm:$0xff]  }
 0x1a0   :  { %6786 = vmatpush3.bf16.msra.mxu0 %v7409_v47  ;;  %v7457_v47 = vld [vmem:[%s9209_s1 + $0xe08] sm:$0xff]  }
 0x1a1   :  { %6808 = vmatpush3.bf16.msra.mxu1 %v7410_v48  ;;  %6815 = vmatprep.subr.bf16.mxu0 %v7415_v54  ;;  %v7458_v48 = vld [vmem:[%s9209_s1 + $0xe88] sm:$0xff]   ;;  %v7464_v54 = vld [vmem:[%s9209_s1 + $0xed8] sm:$0xff]  }
 0x1a2   :  { %6837 = vmatprep.subr.bf16.mxu1 %v7416_v56  ;;  %v7466_v56 = vld [vmem:[%s9209_s1 + $0xe98] sm:$0xff]  }
 0x1a3   :  { %5367 = vmatmul.mubr.bf16.vlgmr.msra.gmra.mrb[48].mxu0 %v5714_v51  ;;  %v7461_v51 = vld [vmem:[%s9209_s1 + $0xe10] sm:$0xff]  }
 0x1a4   :  { %5407 = vmatmul.mubr.bf16.vlgmr.msra.gmra.mrb[48].mxu1 %v5716_v53  ;;  %6816 = vmatpush3.bf16.msra.mxu0 %v7417_v57  ;;  %v7463_v53 = vld [vmem:[%s9209_s1 + $0xe58] sm:$0xff]   ;;  %v7467_v57 = vld [vmem:[%s9209_s1 + $0xe60] sm:$0xff]  }
 0x1a5   :  { %6838 = vmatpush3.bf16.msra.mxu1 %v7418_v58  ;;  %6817 = vmatprep.subr.bf16.mxu0 %v7419_v59  ;;  %v7468_v58 = vld [vmem:[%s9209_s1 + $0xee0] sm:$0xff]  }
 0x1a6   :  { %6839 = vmatprep.subr.bf16.mxu1 %v7420_v60  ;;  %5446 = vmatprep.mubr.bf16.mxu0 %v5719_v37  ;;  %v7469_v60 = vld [vmem:[%s9209_s1 + $0xe20] sm:$0xff]   ;;  %v7497_v37 = vld [vmem:[%s9209_s1 + $0xf10] sm:$0xff]  }
 0x1a7   :  { %5486 = vmatprep.mubr.bf16.mxu1 %v5721_v40  ;;  %v7500_v40 = vld [vmem:[%s9209_s1 + $0xfd8] sm:$0xff]  }
 0x1a8   :  { %6818 = vmatpush3.bf16.msra.mxu0 %v7421_v61 }
 0x1a9   :  { %6840 = vmatpush3.bf16.msra.mxu1 %v7422_v62  ;;  %6819 = vmatprep.subr.bf16.mxu0 %v7423_v63  ;;  %v7470_v62 = vld [vmem:[%s9209_s1 + $0xea0] sm:$0xff]  }
 0x1aa   :  { %6841 = vmatprep.subr.bf16.mxu1 %v7424_v0 }
 0x1ac   :  { %6820 = vmatpush3.bf16.msra.mxu0 %v7425_v1  ;;  %v7471_v1 = vld [vmem:[%s9209_s1 + $0xe68] sm:$0xff]  }
 0x1ad   :  { %6842 = vmatpush3.bf16.msra.mxu1 %v7426_v2  ;;  %6821 = vmatprep.subr.bf16.mxu0 %v7427_v3 }
 0x1ae   :  { %6843 = vmatprep.subr.bf16.mxu1 %v7428_v4  ;;  %v7472_v4 = vld [vmem:[%s9209_s1 + $0xee8] sm:$0xff]  }
 0x1b0   :  { %6822 = vmatpush3.bf16.msra.mxu0 %v7429_v5 }
 0x1b1   :  { %6844 = vmatpush3.bf16.msra.mxu1 %v7430_v6  ;;  %6823 = vmatprep.subr.bf16.mxu0 %v7431_v7  ;;  %v7473_v7 = vld [vmem:[%s9209_s1 + $0xe28] sm:$0xff]  }
 0x1b2   :  { %6845 = vmatprep.subr.bf16.mxu1 %v7432_v8 }
 0x1b4   :  { %6824 = vmatpush3.bf16.msra.mxu0 %v7433_v10 }
 0x1b5   :  { %6846 = vmatpush3.bf16.msra.mxu1 %v7434_v12  ;;  %6825 = vmatprep.subr.bf16.mxu0 %v7435_v15  ;;  %v7475_v12 = vld [vmem:[%s9209_s1 + $0xe70] sm:$0xff]  }
 0x1b6   :  { %v6523_v9 = vpop.f32.mrb[24].mxu0  ;;  %6847 = vmatprep.subr.bf16.mxu1 %v7436_v18  ;;  %v7477_v15 = vld [vmem:[%s9209_s1 + $0xe30] sm:$0xff]   ;;  %v7480_v18 = vld [vmem:[%s9209_s1 + $0xef8] sm:$0xff]  }
 0x1b7   :  { %v6545_v11 = vpop.f32.mrb[24].mxu1  ;;  %v6524_v13 = vpop.f32.mrb[25].mxu0 }
 0x1b8   :  { %v6546_v14 = vpop.f32.mrb[25].mxu1  ;;  %v6525_v16 = vadd.f32 %v6524_v13, %v6523_v9  ;;  %v6526_v19 = vpop.f32.mrb[26].mxu0  ;;  %6826 = vmatpush3.bf16.msra.mxu0 %v7437_v21  ;;  %v7474_v9 = vld [vmem:[%s9209_s1 + $0xea8] sm:$0xff]   ;;  %v43_v21 = vld [vmem:[%s9210_s0 + $0xe0] sm:$0xff] }
 0x1b9   :  { %v6547_v17 = vadd.f32 %v6546_v14, %v6545_v11  ;;  %v6548_v20 = vpop.f32.mrb[26].mxu1  ;;  %v6527_v24 = vpop.f32.mrb[27].mxu0  ;;  %6848 = vmatpush3.bf16.msra.mxu1 %v7438_v23  ;;  %6827 = vmatprep.subr.bf16.mxu0 %v7439_v26  ;;  %v7476_v14 = vld [vmem:[%s9209_s1 + $0xef0] sm:$0xff]   ;;  %v7481_v19 = vld [vmem:[%s9209_s1 + $0xe38] sm:$0xff]   ;;  %v5722_v23 = vcombine.low %v43_v21, %v43_v21 }
 0x1ba   :  { %v4889_v22 = vadd.f32 %v6525_v16, %v8861_v39  ;;  %v6549_v25 = vpop.f32.mrb[27].mxu1  ;;  %6849 = vmatprep.subr.bf16.mxu1 %v7440_v28  ;;  %v5720_v39 = vcombine.low %v42_v38, %v42_v38  ;;  %v7478_v16 = vld [vmem:[%s9209_s1 + $0xeb0] sm:$0xff]   ;;  %v7482_v20 = vld [vmem:[%s9209_s1 + $0xeb8] sm:$0xff]   ;;  %v5723_v24 = vcombine.high %v43_v21, %v43_v21  ;;  %v7488_v28 = vld [vmem:[%s9209_s1 + $0xfc0] sm:$0xff]  }
 0x1bb   :  { %v7498_v38 = vld [vmem:[%s9209_s1 + $0xf90] sm:$0xff]  }
 0x1bc   :  { %v8969_v27 = vadd.f32 %v6547_v17, %v4889_v22  ;;  %6828 = vmatpush3.bf16.msra.mxu0 %v7441_v29  ;;  %v7479_v17 = vld [vmem:[%s9209_s1 + $0xe78] sm:$0xff]   ;;  %v44_v22 = vld [vmem:[%s9210_s0 + $0xe8] sm:$0xff]  ;;  %v7489_v29 = vld [vmem:[%s9209_s1 + $0xf00] sm:$0xff]  }
 0x1bd   :  { %6850 = vmatpush3.bf16.msra.mxu1 %v7442_v30  ;;  %6829 = vmatprep.subr.bf16.mxu0 %v7443_v31  ;;  %v5724_v25 = vcombine.low %v44_v22, %v44_v22  ;;  %v5725_v26 = vcombine.high %v44_v22, %v44_v22  ;;  %v7490_v30 = vld [vmem:[%s9209_s1 + $0xf80] sm:$0xff]   ;;  %v7491_v31 = vld [vmem:[%s9209_s1 + $0xf48] sm:$0xff]  }
 0x1be   :  { %6851 = vmatprep.subr.bf16.mxu1 %v7444_v32  ;;  %v7492_v32 = vld [vmem:[%s9209_s1 + $0xfc8] sm:$0xff]  }
 0x1c0   :  { %6830 = vmatpush3.bf16.msra.mxu0 %v7445_v33  ;;  %v7493_v33 = vld [vmem:[%s9209_s1 + $0xf08] sm:$0xff]  }
 0x1c1   :  { %6852 = vmatpush3.bf16.msra.mxu1 %v7446_v34  ;;  %6859 = vmatprep.subr.bf16.mxu0 %v7451_v41  ;;  %v7494_v34 = vld [vmem:[%s9209_s1 + $0xf88] sm:$0xff]   ;;  %v7501_v41 = vld [vmem:[%s9209_s1 + $0xf18] sm:$0xff]  }
 0x1c2   :  { %6881 = vmatprep.subr.bf16.mxu1 %v7452_v42  ;;  %v7502_v42 = vld [vmem:[%s9209_s1 + $0xf98] sm:$0xff]  }
 0x1c3   :  { %5447 = vmatmul.mubr.bf16.vlgmr.msra.gmra.mrb[52].mxu0 %v5718_v36  ;;  %v7496_v36 = vld [vmem:[%s9209_s1 + $0xfd0] sm:$0xff]  }
 0x1c4   :  { %5487 = vmatmul.mubr.bf16.vlgmr.msra.gmra.mrb[52].mxu1 %v5720_v39  ;;  %6860 = vmatpush3.bf16.msra.mxu0 %v7453_v43  ;;  %v7499_v39 = vld [vmem:[%s9209_s1 + $0xf58] sm:$0xff]   ;;  %v7503_v43 = vld [vmem:[%s9209_s1 + $0xf60] sm:$0xff]  }
 0x1c5   :  { %6882 = vmatpush3.bf16.msra.mxu1 %v7454_v44  ;;  %6861 = vmatprep.subr.bf16.mxu0 %v7455_v45  ;;  %v7504_v44 = vld [vmem:[%s9209_s1 + $0xfe0] sm:$0xff]  }
 0x1c6   :  { %6883 = vmatprep.subr.bf16.mxu1 %v7456_v46  ;;  %5526 = vmatprep.mubr.bf16.mxu0 %v5723_v24  ;;  %v7505_v45 = vld [vmem:[%s9209_s1 + $0xf20] sm:$0xff]  }
 0x1c7   :  { %5566 = vmatprep.mubr.bf16.mxu1 %v5725_v26 }
 0x1c8   :  { %6862 = vmatpush3.bf16.msra.mxu0 %v7457_v47  ;;  %v7506_v47 = vld [vmem:[%s9209_s1 + $0xfa0] sm:$0xff]  }
 0x1c9   :  { %6884 = vmatpush3.bf16.msra.mxu1 %v7458_v48  ;;  %6863 = vmatprep.subr.bf16.mxu0 %v7459_v49 }
 0x1ca   :  { %6885 = vmatprep.subr.bf16.mxu1 %v7460_v50 }
 0x1cc   :  { %6864 = vmatpush3.bf16.msra.mxu0 %v7461_v51 }
 0x1cd   :  { %6886 = vmatpush3.bf16.msra.mxu1 %v7462_v52  ;;  %6865 = vmatprep.subr.bf16.mxu0 %v7463_v53  ;;  %v7507_v53 = vld [vmem:[%s9209_s1 + $0xf68] sm:$0xff]  }
 0x1ce   :  { %6887 = vmatprep.subr.bf16.mxu1 %v7464_v54 }
 0x1d0   :  { %6866 = vmatpush3.bf16.msra.mxu0 %v7465_v55  ;;  %v7508_v55 = vld [vmem:[%s9209_s1 + $0xfe8] sm:$0xff]  }
 0x1d1   :  { %6888 = vmatpush3.bf16.msra.mxu1 %v7466_v56  ;;  %6867 = vmatprep.subr.bf16.mxu0 %v7467_v57 }
 0x1d2   :  { %6889 = vmatprep.subr.bf16.mxu1 %v7468_v58  ;;  %v7509_v58 = vld [vmem:[%s9209_s1 + $0xf28] sm:$0xff]  }
 0x1d4   :  { %6868 = vmatpush3.bf16.msra.mxu0 %v7469_v60  ;;  %v7510_v60 = vld [vmem:[%s9209_s1 + $0xfa8] sm:$0xff]  }
 0x1d5   :  { %6890 = vmatpush3.bf16.msra.mxu1 %v7470_v62  ;;  %6869 = vmatprep.subr.bf16.mxu0 %v7471_v1  ;;  %v7513_v1 = vld [vmem:[%s9209_s1 + $0xf30] sm:$0xff]  }
 0x1d6   :  { %v6567_v59 = vpop.f32.mrb[28].mxu0  ;;  %6891 = vmatprep.subr.bf16.mxu1 %v7472_v4  ;;  %v7516_v4 = vld [vmem:[%s9209_s1 + $0xff8] sm:$0xff]  }
 0x1d7   :  { %v6589_v61 = vpop.f32.mrb[28].mxu1  ;;  %v6568_v63 = vpop.f32.mrb[29].mxu0 }
 0x1d8   :  { %v6590_v0 = vpop.f32.mrb[29].mxu1  ;;  %v6569_v2 = vadd.f32 %v6568_v63, %v6567_v59  ;;  %v6570_v5 = vpop.f32.mrb[30].mxu0  ;;  %6870 = vmatpush3.bf16.msra.mxu0 %v7473_v7  ;;  %v7511_v63 = vld [vmem:[%s9209_s1 + $0xf70] sm:$0xff]  }
 0x1d9   :  { %v6591_v3 = vadd.f32 %v6590_v0, %v6589_v61  ;;  %v6592_v6 = vpop.f32.mrb[30].mxu1  ;;  %v6571_v10 = vpop.f32.mrb[31].mxu0  ;;  %6892 = vmatpush3.bf16.msra.mxu1 %v7474_v9  ;;  %6871 = vmatprep.subr.bf16.mxu0 %v7475_v12  ;;  %v7512_v0 = vld [vmem:[%s9209_s1 + $0xff0] sm:$0xff]   ;;  %v7517_v5 = vld [vmem:[%s9209_s1 + $0xf38] sm:$0xff]  }
 0x1da   :  { %v4969_v8 = vadd.f32 %v6569_v2, %v8969_v27  ;;  %v6593_v11 = vpop.f32.mrb[31].mxu1  ;;  %6893 = vmatprep.subr.bf16.mxu1 %v7476_v14  ;;  %v7487_v27 = vld [vmem:[%s9209_s1 + $0xf40] sm:$0xff]   ;;  %v7514_v2 = vld [vmem:[%s9209_s1 + $0xfb0] sm:$0xff]   ;;  %v7518_v6 = vld [vmem:[%s9209_s1 + $0xfb8] sm:$0xff]  }
 0x1db   :  { %v45_v7 = vld [vmem:[%s9210_s0 + $0xf0] sm:$0xff] }
 0x1dc   :  { %v9074_v13 = vadd.f32 %v6591_v3, %v4969_v8  ;;  %6872 = vmatpush3.bf16.msra.mxu0 %v7477_v15  ;;  %v7515_v3 = vld [vmem:[%s9209_s1 + $0xf78] sm:$0xff]   ;;  %v5726_v9 = vcombine.low %v45_v7, %v45_v7  ;;  %v5727_v10 = vcombine.high %v45_v7, %v45_v7 }
 0x1dd   :  { %6894 = vmatpush3.bf16.msra.mxu1 %v7478_v16  ;;  %6873 = vmatprep.subr.bf16.mxu0 %v7479_v17  ;;  %v46_v8 = vld [vmem:[%s9210_s0 + $0xf8] sm:$0xff] }
 0x1de   :  { %6895 = vmatprep.subr.bf16.mxu1 %v7480_v18  ;;  %v5728_v11 = vcombine.low %v46_v8, %v46_v8  ;;  %v5729_v12 = vcombine.high %v46_v8, %v46_v8 }
 0x1e0   :  { %6874 = vmatpush3.bf16.msra.mxu0 %v7481_v19 }
 0x1e1   :  { %6896 = vmatpush3.bf16.msra.mxu1 %v7482_v20  ;;  %6903 = vmatprep.subr.bf16.mxu0 %v7487_v27 }
 0x1e2   :  { %6925 = vmatprep.subr.bf16.mxu1 %v7488_v28 }
 0x1e3   :  { %5527 = vmatmul.mubr.bf16.vlgmr.msra.gmra.mrb[56].mxu0 %v5722_v23 }
 0x1e4   :  { %5567 = vmatmul.mubr.bf16.vlgmr.msra.gmra.mrb[56].mxu1 %v5724_v25  ;;  %6904 = vmatpush3.bf16.msra.mxu0 %v7489_v29 }
 0x1e5   :  { %6926 = vmatpush3.bf16.msra.mxu1 %v7490_v30  ;;  %6905 = vmatprep.subr.bf16.mxu0 %v7491_v31 }
 0x1e6   :  { %6927 = vmatprep.subr.bf16.mxu1 %v7492_v32  ;;  %5606 = vmatprep.mubr.bf16.mxu0 %v5727_v10 }
 0x1e7   :  { %5646 = vmatprep.mubr.bf16.mxu1 %v5729_v12 }
 0x1e8   :  { %6906 = vmatpush3.bf16.msra.mxu0 %v7493_v33 }
 0x1e9   :  { %6928 = vmatpush3.bf16.msra.mxu1 %v7494_v34  ;;  %6907 = vmatprep.subr.bf16.mxu0 %v7495_v35 }
 0x1ea   :  { %6929 = vmatprep.subr.bf16.mxu1 %v7496_v36 }
 0x1ec   :  { %6908 = vmatpush3.bf16.msra.mxu0 %v7497_v37 }
 0x1ed   :  { %6930 = vmatpush3.bf16.msra.mxu1 %v7498_v38  ;;  %6909 = vmatprep.subr.bf16.mxu0 %v7499_v39 }
 0x1ee   :  { %6931 = vmatprep.subr.bf16.mxu1 %v7500_v40 }
 0x1f0   :  { %6910 = vmatpush3.bf16.msra.mxu0 %v7501_v41 }
 0x1f1   :  { %6932 = vmatpush3.bf16.msra.mxu1 %v7502_v42  ;;  %6911 = vmatprep.subr.bf16.mxu0 %v7503_v43 }
 0x1f2   :  { %6933 = vmatprep.subr.bf16.mxu1 %v7504_v44 }
 0x1f4   :  { %6912 = vmatpush3.bf16.msra.mxu0 %v7505_v45 }
 0x1f5   :  { %6934 = vmatpush3.bf16.msra.mxu1 %v7506_v47  ;;  %6913 = vmatprep.subr.bf16.mxu0 %v7507_v53 }
 0x1f6   :  { %v6611_v46 = vpop.f32.mrb[32].mxu0  ;;  %6935 = vmatprep.subr.bf16.mxu1 %v7508_v55 }
 0x1f7   :  { %v6633_v48 = vpop.f32.mrb[32].mxu1  ;;  %v6612_v49 = vpop.f32.mrb[33].mxu0 }
 0x1f8   :  { %v6634_v50 = vpop.f32.mrb[33].mxu1  ;;  %v6613_v51 = vadd.f32 %v6612_v49, %v6611_v46  ;;  %v6614_v54 = vpop.f32.mrb[34].mxu0  ;;  %6914 = vmatpush3.bf16.msra.mxu0 %v7509_v58 }
 0x1f9   :  { %v6635_v52 = vadd.f32 %v6634_v50, %v6633_v48  ;;  %v6636_v56 = vpop.f32.mrb[34].mxu1  ;;  %v6615_v59 = vpop.f32.mrb[35].mxu0  ;;  %6936 = vmatpush3.bf16.msra.mxu1 %v7510_v60  ;;  %6915 = vmatprep.subr.bf16.mxu0 %v7511_v63 }
 0x1fa   :  { %v5049_v57 = vadd.f32 %v6613_v51, %v9074_v13  ;;  %v6637_v61 = vpop.f32.mrb[35].mxu1  ;;  %6937 = vmatprep.subr.bf16.mxu1 %v7512_v0 }
 0x1fc   :  { %v5089_v62 = vadd.f32 %v6635_v52, %v5049_v57  ;;  %6916 = vmatpush3.bf16.msra.mxu0 %v7513_v1 }
 0x1fd   :  { %6938 = vmatpush3.bf16.msra.mxu1 %v7514_v2  ;;  %6917 = vmatprep.subr.bf16.mxu0 %v7515_v3 }
 0x1fe   :  { %6939 = vmatprep.subr.bf16.mxu1 %v7516_v4 }
 0x200   :  { %6918 = vmatpush3.bf16.msra.mxu0 %v7517_v5 }
 0x201   :  { %6940 = vmatpush3.bf16.msra.mxu1 %v7518_v6 }
 0x203   :  { %5607 = vmatmul.mubr.bf16.vlgmr.msra.gmra.mrb[60].mxu0 %v5726_v9 }
 0x204   :  { %5647 = vmatmul.mubr.bf16.vlgmr.msra.gmra.mrb[60].mxu1 %v5728_v11 }
 0x216   :  { %v6655_v13 = vpop.f32.mrb[36].mxu0 }
 0x217   :  { %v6677_v14 = vpop.f32.mrb[36].mxu1  ;;  %v6656_v15 = vpop.f32.mrb[37].mxu0 }
 0x218   :  { %v6657_v16 = vadd.f32 %v6656_v15, %v6655_v13  ;;  %v6678_v17 = vpop.f32.mrb[37].mxu1  ;;  %v6658_v18 = vpop.f32.mrb[38].mxu0 }
 0x219   :  { %v6679_v19 = vadd.f32 %v6678_v17, %v6677_v14  ;;  %v6680_v20 = vpop.f32.mrb[38].mxu1  ;;  %v6659_v21 = vpop.f32.mrb[39].mxu0 }
 0x21a   :  { %v5129_v22 = vadd.f32 %v6657_v16, %v5089_v62  ;;  %v6681_v23 = vpop.f32.mrb[39].mxu1 }
 0x21c   :  { %v5169_v24 = vadd.f32 %v6679_v19, %v5129_v22 }
 0x236   :  { %v6699_v25 = vpop.f32.mrb[40].mxu0 }
 0x237   :  { %v6721_v26 = vpop.f32.mrb[40].mxu1  ;;  %v6700_v27 = vpop.f32.mrb[41].mxu0 }
 0x238   :  { %v6722_v28 = vpop.f32.mrb[41].mxu1  ;;  %v6701_v29 = vadd.f32 %v6700_v27, %v6699_v25  ;;  %v6702_v31 = vpop.f32.mrb[42].mxu0 }
 0x239   :  { %v6723_v30 = vadd.f32 %v6722_v28, %v6721_v26  ;;  %v6724_v32 = vpop.f32.mrb[42].mxu1  ;;  %v6703_v33 = vpop.f32.mrb[43].mxu0 }
 0x23a   :  { %v6725_v34 = vpop.f32.mrb[43].mxu1  ;;  %v5209_v35 = vadd.f32 %v6701_v29, %v5169_v24 }
 0x23c   :  { %v5249_v36 = vadd.f32 %v6723_v30, %v5209_v35 }
 0x256   :  { %v6743_v37 = vpop.f32.mrb[44].mxu0 }
 0x257   :  { %v6765_v38 = vpop.f32.mrb[44].mxu1  ;;  %v6744_v39 = vpop.f32.mrb[45].mxu0 }
 0x258   :  { %v6745_v40 = vadd.f32 %v6744_v39, %v6743_v37  ;;  %v6766_v41 = vpop.f32.mrb[45].mxu1  ;;  %v6746_v42 = vpop.f32.mrb[46].mxu0 }
 0x259   :  { %v6767_v43 = vadd.f32 %v6766_v41, %v6765_v38  ;;  %v6768_v44 = vpop.f32.mrb[46].mxu1  ;;  %v6747_v45 = vpop.f32.mrb[47].mxu0 }
 0x25a   :  { %v5289_v46 = vadd.f32 %v6745_v40, %v5249_v36  ;;  %v6769_v47 = vpop.f32.mrb[47].mxu1 }
 0x25c   :  { %v5329_v48 = vadd.f32 %v6767_v43, %v5289_v46 }
 0x276   :  { %v6787_v49 = vpop.f32.mrb[48].mxu0 }
 0x277   :  { %v6809_v50 = vpop.f32.mrb[48].mxu1  ;;  %v6788_v51 = vpop.f32.mrb[49].mxu0 }
 0x278   :  { %v6789_v52 = vadd.f32 %v6788_v51, %v6787_v49  ;;  %v6810_v53 = vpop.f32.mrb[49].mxu1  ;;  %v6790_v54 = vpop.f32.mrb[50].mxu0 }
 0x279   :  { %v6811_v55 = vadd.f32 %v6810_v53, %v6809_v50  ;;  %v6812_v56 = vpop.f32.mrb[50].mxu1  ;;  %v6791_v57 = vpop.f32.mrb[51].mxu0 }
 0x27a   :  { %v5369_v58 = vadd.f32 %v6789_v52, %v5329_v48  ;;  %v6813_v59 = vpop.f32.mrb[51].mxu1 }
 0x27c   :  { %v5409_v60 = vadd.f32 %v6811_v55, %v5369_v58 }
 0x296   :  { %v6831_v61 = vpop.f32.mrb[52].mxu0 }
 0x297   :  { %v6853_v62 = vpop.f32.mrb[52].mxu1  ;;  %v6832_v63 = vpop.f32.mrb[53].mxu0 }
 0x298   :  { %v6854_v0 = vpop.f32.mrb[53].mxu1  ;;  %v6833_v1 = vadd.f32 %v6832_v63, %v6831_v61  ;;  %v6834_v3 = vpop.f32.mrb[54].mxu0 }
 0x299   :  { %v6855_v2 = vadd.f32 %v6854_v0, %v6853_v62  ;;  %v6856_v4 = vpop.f32.mrb[54].mxu1  ;;  %v6835_v5 = vpop.f32.mrb[55].mxu0 }
 0x29a   :  { %v6857_v6 = vpop.f32.mrb[55].mxu1  ;;  %v5449_v7 = vadd.f32 %v6833_v1, %v5409_v60 }
 0x29c   :  { %v5489_v8 = vadd.f32 %v6855_v2, %v5449_v7 }
 0x2b6   :  { %v6875_v9 = vpop.f32.mrb[56].mxu0 }
 0x2b7   :  { %v6897_v10 = vpop.f32.mrb[56].mxu1  ;;  %v6876_v11 = vpop.f32.mrb[57].mxu0 }
 0x2b8   :  { %v6877_v12 = vadd.f32 %v6876_v11, %v6875_v9  ;;  %v6898_v13 = vpop.f32.mrb[57].mxu1  ;;  %v6878_v14 = vpop.f32.mrb[58].mxu0 }
 0x2b9   :  { %v6899_v15 = vadd.f32 %v6898_v13, %v6897_v10  ;;  %v6900_v16 = vpop.f32.mrb[58].mxu1  ;;  %v6879_v17 = vpop.f32.mrb[59].mxu0 }
 0x2ba   :  { %v5529_v18 = vadd.f32 %v6877_v12, %v5489_v8  ;;  %v6901_v19 = vpop.f32.mrb[59].mxu1 }
 0x2bc   :  { %v5569_v20 = vadd.f32 %v6899_v15, %v5529_v18 }
 0x2d6   :  { %v6919_v21 = vpop.f32.mrb[60].mxu0 }
 0x2d7   :  { %v6941_v22 = vpop.f32.mrb[60].mxu1  ;;  %v6920_v23 = vpop.f32.mrb[61].mxu0 }
 0x2d8   :  { %v6921_v24 = vadd.f32 %v6920_v23, %v6919_v21  ;;  %v6942_v25 = vpop.f32.mrb[61].mxu1  ;;  %v6922_v26 = vpop.f32.mrb[62].mxu0 }
 0x2d9   :  { %v6943_v27 = vadd.f32 %v6942_v25, %v6941_v22  ;;  %v6944_v28 = vpop.f32.mrb[62].mxu1  ;;  %v6923_v29 = vpop.f32.mrb[63].mxu0 }
 0x2da   :  { %v5609_v30 = vadd.f32 %v6921_v24, %v5569_v20  ;;  %v6945_v31 = vpop.f32.mrb[63].mxu1 }
 0x2dc   :  { %v5649_v32 = vadd.f32 %v6943_v27, %v5609_v30 }
 0x2de   :  { %v6242_v33 = vmul.f32 -1.442695, %v5649_v32 }
 0x2e0   :  { %7523 = vpow2.f32 %v6242_v33 }
 0x2ea   :  { %v7524_v34 = vpop.eup %7523 }
 0x2eb   :  { %v5657_v35 = vadd.f32 1.0, %v7524_v34 }
 0x2ed   :  { %7525 = vrcp.f32 %v5657_v35 }
 0x2f7   :  { %v7526_v36 = vpop.eup %7525 }
 0x2f8   :  { %5660 = vst [vmem:[%s9212_s3] sm:$0xff] %v7526_v36 }

</bundles_post_ra>
